<compile_context>
chip_gen: v6e
topology: v6e:2x2x1
jax: 0.10.0
libtpu: 0.0.40
codegen_flags: <defaults>
</compile_context>

<pallas_src>
import functools

import jax
import jax.numpy as jnp
from jax.experimental import pallas as pl
from jax.experimental.pallas import tpu as pltpu


def _fused_encoder_kernel(patches_ref, wbd_ref, bias_ref, fcw_ref, fcb_ref,
                          out_ref, *, pp):
    # patches_ref : (PP, BN, HWp*CK)  one lane-dense row per image per pool offset
    # wbd_ref     : (HWp*CK, HWp*F)   block-diagonal conv weight
    # bias_ref    : (1, HWp*F)        conv bias tiled per spatial position
    # fcw_ref     : (HWp*F, D)        fc weights, columns permuted to (hw, f)
    # fcb_ref     : (1, D)
    # out_ref     : (BN, D)
    wbd = wbd_ref[...]

    # Conv matmul + running max over the PP pooling offsets.
    # acc is lane-dense (BN, HWp*F) — no repack needed before the fc.
    acc = jnp.dot(patches_ref[0], wbd, preferred_element_type=jnp.float32)
    for t in range(1, pp):
        acc = jnp.maximum(
            acc, jnp.dot(patches_ref[t], wbd, preferred_element_type=jnp.float32))

    # Bias + ReLU applied once on the lane-dense slab (hoisted out of the max
    # loop — valid because ReLU is monotone and bias is offset-independent).
    x = jnp.maximum(acc + bias_ref[...], 0.0)

    out_ref[...] = (
        jnp.dot(x, fcw_ref[...], preferred_element_type=jnp.float32)
        + fcb_ref[...])


@functools.partial(jax.jit, static_argnames=("conv_kernel", "pool_kernel"))
def object_encoder_forward(objects, conv_w, conv_b, fc_w, fc_b, *,
                           conv_kernel, pool_kernel):
    B, N, C, H, W = objects.shape
    K, P = conv_kernel, pool_kernel
    F = conv_w.shape[0]
    D = fc_w.shape[0]
    Ho, Wo = H - K + 1, W - K + 1
    Hp, Wp = Ho // P, Wo // P
    BN, KK = B * N, K * K
    CK, HWp, PP = C * KK, Hp * Wp, P * P

    x = objects.reshape(BN, C, H, W).astype(jnp.float32)

    # ---- glue: im2col arranged as (pool-offset, image, hw*CK) ---------------
    # patches[t=(py,px), b, hw*CK + ck] = x[b, c, hp*P+py+kh, wp*P+px+kw]
    cols = jnp.stack(
        [x[:, :, kh:kh + Ho, kw:kw + Wo] for kh in range(K) for kw in range(K)],
        axis=2)                                        # (BN, C, KK, Ho, Wo)
    cols = cols[:, :, :, :Hp * P, :Wp * P]
    cols = cols.reshape(BN, C, KK, Hp, P, Wp, P)
    cols = jnp.transpose(cols, (4, 6, 0, 3, 5, 1, 2))  # (py, px, BN, hp, wp, c, kk)
    patches = cols.reshape(PP, BN, HWp * CK)

    # ---- block-diagonal conv weight: conv matmul emits (BN, HWp*F) directly --
    w_mat = conv_w.reshape(F, CK).T.astype(jnp.float32)          # (CK, F)
    eye = jnp.eye(HWp, dtype=jnp.float32)
    wbd = (eye[:, None, :, None] * w_mat[None, :, None, :]).reshape(
        HWp * CK, HWp * F)                                       # (HWp*CK, HWp*F)

    bias_big = jnp.tile(conv_b.astype(jnp.float32), HWp).reshape(1, HWp * F)
    # torch flattens (F, Hp, Wp); our fc-input columns are (hw, f) -> permute cols.
    fc_w_perm = (fc_w.astype(jnp.float32).reshape(D, F, Hp, Wp)
                 .transpose(0, 2, 3, 1).reshape(D, HWp * F).T)   # (HWp*F, D)
    fc_b_mat = fc_b.astype(jnp.float32).reshape(1, D)

    kernel = functools.partial(_fused_encoder_kernel, pp=PP)

    # Single grid step everywhere: v5e/v6e are single-TC; on v7x the work per
    # core here is too small for a 2-way CORE_PARALLEL split to pay off.
    out = pl.pallas_call(
        kernel,
        out_shape=jax.ShapeDtypeStruct((BN, D), jnp.float32),
        grid=(1,),
        in_specs=[
            pl.BlockSpec((PP, BN, HWp * CK), lambda i: (0, 0, 0)),
            pl.BlockSpec((HWp * CK, HWp * F), lambda i: (0, 0)),
            pl.BlockSpec((1, HWp * F), lambda i: (0, 0)),
            pl.BlockSpec((HWp * F, D), lambda i: (0, 0)),
            pl.BlockSpec((1, D), lambda i: (0, 0)),
        ],
        out_specs=pl.BlockSpec((BN, D), lambda i: (0, 0)),
        compiler_params=pltpu.CompilerParams(
            dimension_semantics=("arbitrary",),
            allow_input_fusion=[True, True, True, True, True],
        ),
    )(patches, wbd, bias_big, fc_w_perm, fc_b_mat)

    return out.reshape(B, N, D)


def _reference(objects, conv_w, conv_b, fc_w, fc_b, *, pool_kernel):
    # Pure-JAX reference mirroring the PyTorch forward.
    B, N, C, H, W = objects.shape
    P = pool_kernel
    x = objects.reshape(B * N, C, H, W)
    y = jax.lax.conv_general_dilated(
        x, conv_w, (1, 1), "VALID", dimension_numbers=("NCHW", "OIHW", "NCHW"))
    y = jnp.maximum(y + conv_b[None, :, None, None], 0.0)
    y = jax.lax.reduce_window(
        y, -jnp.inf, jax.lax.max, (1, 1, P, P), (1, 1, P, P), "VALID")
    y = y.reshape(B * N, -1)                  # torch flatten order: (F, Hp, Wp)
    y = y @ fc_w.T + fc_b
    return y.reshape(B, N, -1)


if __name__ == "__main__":
    # Module hyperparameters (small, consistent with ObjectEncoder.__init__).
    num_filters, conv_kernel, pool_kernel, image_size, object_dim = 8, 3, 2, 16, 32
    B, N = 2, 3
    Ho = image_size - conv_kernel + 1                 # 14
    Hp = Ho // pool_kernel                            # 7
    fc_in = num_filters * Hp * Hp                     # 392

    key = jax.random.PRNGKey(0)
    k1, k2, k3, k4, k5 = jax.random.split(key, 5)
    conv_w = jax.random.normal(k1, (num_filters, 3, conv_kernel, conv_kernel), jnp.float32) * 0.1
    conv_b = jax.random.normal(k2, (num_filters,), jnp.float32) * 0.1
    fc_w = jax.random.normal(k3, (object_dim, fc_in), jnp.float32) * 0.05
    fc_b = jax.random.normal(k4, (object_dim,), jnp.float32) * 0.05
    objects = jax.random.normal(k5, (B, N, 3, image_size, image_size), jnp.float32)

    out = object_encoder_forward(
        objects, conv_w, conv_b, fc_w, fc_b,
        conv_kernel=conv_kernel, pool_kernel=pool_kernel)
    out = jax.block_until_ready(out)

    ref = _reference(objects, conv_w, conv_b, fc_w, fc_b, pool_kernel=pool_kernel)
    assert out.shape == (B, N, object_dim)
    assert jnp.allclose(out, ref, rtol=1e-2, atol=1e-2), "mismatch vs JAX reference"

    print("KERNEL_OK")
</pallas_src>

<mosaic_0001>
module attributes {stable_mosaic.version = 11 : i64} {
  func.func @_fused_encoder_kernel(%arg0: i32, %arg1: memref<4x6x1323xf32, #tpu.memory_space<vmem>>, %arg2: memref<1323x392xf32, #tpu.memory_space<vmem>>, %arg3: memref<1x392xf32, #tpu.memory_space<vmem>>, %arg4: memref<392x32xf32, #tpu.memory_space<vmem>>, %arg5: memref<1x32xf32, #tpu.memory_space<vmem>>, %arg6: memref<6x32xf32, #tpu.memory_space<vmem>>) attributes {dimension_semantics = [#tpu.dimension_semantics<arbitrary>], iteration_bounds = array<i64: 1>, scalar_prefetch = 0 : i64, scratch_operands = 0 : i64, tpu.core_type = #tpu.core_type<tc>, window_params = [{pipeline_mode = #tpu.pipeline_mode<synchronous>, transform_indices = @transform_0, window_bounds = array<i64: 4, 6, 1323>}, {pipeline_mode = #tpu.pipeline_mode<synchronous>, transform_indices = @transform_1, window_bounds = array<i64: 1323, 392>}, {pipeline_mode = #tpu.pipeline_mode<synchronous>, transform_indices = @transform_2, window_bounds = array<i64: 1, 392>}, {pipeline_mode = #tpu.pipeline_mode<synchronous>, transform_indices = @transform_3, window_bounds = array<i64: 392, 32>}, {pipeline_mode = #tpu.pipeline_mode<synchronous>, transform_indices = @transform_4, window_bounds = array<i64: 1, 32>}, {pipeline_mode = #tpu.pipeline_mode<synchronous>, transform_indices = @transform_5, window_bounds = array<i64: 6, 32>}]} {
    %c0 = arith.constant 0 : index
    %c0_0 = arith.constant 0 : index
    %0 = vector.load %arg2[%c0, %c0_0] : memref<1323x392xf32, #tpu.memory_space<vmem>>, vector<1323x392xf32>
    %c0_1 = arith.constant 0 : index
    %c0_2 = arith.constant 0 : index
    %c0_3 = arith.constant 0 : index
    %1 = vector.load %arg1[%c0_1, %c0_2, %c0_3] : memref<4x6x1323xf32, #tpu.memory_space<vmem>>, vector<1x6x1323xf32>
    %2 = vector.shape_cast %1 : vector<1x6x1323xf32> to vector<6x1323xf32>
    %cst = arith.constant dense<0.000000e+00> : vector<6x392xf32>
    %3 = tpu.matmul %2, %0, %cst {dimension_numbers = #tpu.dot_dimension_numbers<[1], [0], [0], [1], [0, 0, 1, 1], [], []>} : vector<6x1323xf32>, vector<1323x392xf32>, vector<6x392xf32> -> vector<6x392xf32>
    %c1 = arith.constant 1 : index
    %c0_4 = arith.constant 0 : index
    %c0_5 = arith.constant 0 : index
    %4 = vector.load %arg1[%c1, %c0_4, %c0_5] : memref<4x6x1323xf32, #tpu.memory_space<vmem>>, vector<1x6x1323xf32>
    %5 = vector.shape_cast %4 : vector<1x6x1323xf32> to vector<6x1323xf32>
    %cst_6 = arith.constant dense<0.000000e+00> : vector<6x392xf32>
    %6 = tpu.matmul %5, %0, %cst_6 {dimension_numbers = #tpu.dot_dimension_numbers<[1], [0], [0], [1], [0, 0, 1, 1], [], []>} : vector<6x1323xf32>, vector<1323x392xf32>, vector<6x392xf32> -> vector<6x392xf32>
    %7 = arith.maximumf %3, %6 : vector<6x392xf32>
    %c2 = arith.constant 2 : index
    %c0_7 = arith.constant 0 : index
    %c0_8 = arith.constant 0 : index
    %8 = vector.load %arg1[%c2, %c0_7, %c0_8] : memref<4x6x1323xf32, #tpu.memory_space<vmem>>, vector<1x6x1323xf32>
    %9 = vector.shape_cast %8 : vector<1x6x1323xf32> to vector<6x1323xf32>
    %cst_9 = arith.constant dense<0.000000e+00> : vector<6x392xf32>
    %10 = tpu.matmul %9, %0, %cst_9 {dimension_numbers = #tpu.dot_dimension_numbers<[1], [0], [0], [1], [0, 0, 1, 1], [], []>} : vector<6x1323xf32>, vector<1323x392xf32>, vector<6x392xf32> -> vector<6x392xf32>
    %11 = arith.maximumf %7, %10 : vector<6x392xf32>
    %c3 = arith.constant 3 : index
    %c0_10 = arith.constant 0 : index
    %c0_11 = arith.constant 0 : index
    %12 = vector.load %arg1[%c3, %c0_10, %c0_11] : memref<4x6x1323xf32, #tpu.memory_space<vmem>>, vector<1x6x1323xf32>
    %13 = vector.shape_cast %12 : vector<1x6x1323xf32> to vector<6x1323xf32>
    %cst_12 = arith.constant dense<0.000000e+00> : vector<6x392xf32>
    %14 = tpu.matmul %13, %0, %cst_12 {dimension_numbers = #tpu.dot_dimension_numbers<[1], [0], [0], [1], [0, 0, 1, 1], [], []>} : vector<6x1323xf32>, vector<1323x392xf32>, vector<6x392xf32> -> vector<6x392xf32>
    %15 = arith.maximumf %11, %14 : vector<6x392xf32>
    %c0_13 = arith.constant 0 : index
    %c0_14 = arith.constant 0 : index
    %16 = vector.load %arg3[%c0_13, %c0_14] : memref<1x392xf32, #tpu.memory_space<vmem>>, vector<1x392xf32>
    %17 = vector.broadcast %16 : vector<1x392xf32> to vector<6x392xf32>
    %18 = arith.addf %15, %17 : vector<6x392xf32>
    %cst_15 = arith.constant 0.000000e+00 : f32
    %19 = vector.broadcast %cst_15 : f32 to vector<6x392xf32>
    %20 = arith.maximumf %18, %19 : vector<6x392xf32>
    %c0_16 = arith.constant 0 : index
    %c0_17 = arith.constant 0 : index
    %21 = vector.load %arg4[%c0_16, %c0_17] : memref<392x32xf32, #tpu.memory_space<vmem>>, vector<392x32xf32>
    %cst_18 = arith.constant dense<0.000000e+00> : vector<6x32xf32>
    %22 = tpu.matmul %20, %21, %cst_18 {dimension_numbers = #tpu.dot_dimension_numbers<[1], [0], [0], [1], [0, 0, 1, 1], [], []>} : vector<6x392xf32>, vector<392x32xf32>, vector<6x32xf32> -> vector<6x32xf32>
    %c0_19 = arith.constant 0 : index
    %c0_20 = arith.constant 0 : index
    %23 = vector.load %arg5[%c0_19, %c0_20] : memref<1x32xf32, #tpu.memory_space<vmem>>, vector<1x32xf32>
    %24 = vector.broadcast %23 : vector<1x32xf32> to vector<6x32xf32>
    %25 = arith.addf %22, %24 : vector<6x32xf32>
    %c0_21 = arith.constant 0 : index
    %c0_22 = arith.constant 0 : index
    %26 = vector.load %arg6[%c0_21, %c0_22] : memref<6x32xf32, #tpu.memory_space<vmem>>, vector<6x32xf32>
    tpu.vector_store %arg6[%c0_21, %c0_22], %25 {strides = array<i32>} : memref<6x32xf32, #tpu.memory_space<vmem>>, vector<6x32xf32>,
    return
  }
  func.func @transform_0(%arg0: i32) -> (i32, i32, i32) {
    %c0_i32 = arith.constant 0 : i32
    %c0_i32_0 = arith.constant 0 : i32
    %c0_i32_1 = arith.constant 0 : i32
    %c0_i32_2 = arith.constant 0 : i32
    return %c0_i32, %c0_i32_0, %c0_i32_1 : i32, i32, i32
  }
  func.func @transform_1(%arg0: i32) -> (i32, i32) {
    %c0_i32 = arith.constant 0 : i32
    %c0_i32_0 = arith.constant 0 : i32
    %c0_i32_1 = arith.constant 0 : i32
    return %c0_i32, %c0_i32_0 : i32, i32
  }
  func.func @transform_2(%arg0: i32) -> (i32, i32) {
    %c0_i32 = arith.constant 0 : i32
    %c0_i32_0 = arith.constant 0 : i32
    %c0_i32_1 = arith.constant 0 : i32
    return %c0_i32, %c0_i32_0 : i32, i32
  }
  func.func @transform_3(%arg0: i32) -> (i32, i32) {
    %c0_i32 = arith.constant 0 : i32
    %c0_i32_0 = arith.constant 0 : i32
    %c0_i32_1 = arith.constant 0 : i32
    return %c0_i32, %c0_i32_0 : i32, i32
  }
  func.func @transform_4(%arg0: i32) -> (i32, i32) {
    %c0_i32 = arith.constant 0 : i32
    %c0_i32_0 = arith.constant 0 : i32
    %c0_i32_1 = arith.constant 0 : i32
    return %c0_i32, %c0_i32_0 : i32, i32
  }
  func.func @transform_5(%arg0: i32) -> (i32, i32) {
    %c0_i32 = arith.constant 0 : i32
    %c0_i32_0 = arith.constant 0 : i32
    %c0_i32_1 = arith.constant 0 : i32
    return %c0_i32, %c0_i32_0 : i32, i32
  }
}

</mosaic_0001>

<bundles_post_ra>
// kernel: tile.8
= control target key start
LH: loop header
LB: loop body
LE: loop exit
PB: predicated region body
PF: predicated region fallthrough
CT: control target
= control target key end

     0   :  { %s58_s0 = inlined_call_operand.vmem [shape: f32[8], index: 0, kind: input, shape index: {}]   ;;  %s59_s1 = inlined_call_operand.vmem [shape: f32[49,8], index: 1, kind: output, shape index: {}]  }
   0x1   :  { %v4_v0 = vld [vmem:[%s58_s0] ss:$0 sm:$0xff] }
   0x2   :  { %5 = vst [vmem:[%s59_s1] sm:$0xff] %v4_v0  ;;  %18 = vst [vmem:[%s59_s1 + $0x8] sm:$0xff] %v4_v0 }
   0x3   :  { %19 = vst [vmem:[%s59_s1 + $0x10] sm:$0xff] %v4_v0  ;;  %20 = vst [vmem:[%s59_s1 + $0x18] sm:$0xff] %v4_v0 }
   0x4   :  { %21 = vst [vmem:[%s59_s1 + $0x20] sm:$0xff] %v4_v0  ;;  %22 = vst [vmem:[%s59_s1 + $0x28] sm:$0xff] %v4_v0 }
   0x5   :  { %23 = vst [vmem:[%s59_s1 + $0x30] sm:$0xff] %v4_v0 }

// kernel: tile.9
= control target key start
LH: loop header
LB: loop body
LE: loop exit
PB: predicated region body
PF: predicated region fallthrough
CT: control target
= control target key end

     0   :  { %s11_s6 = smov 3  ;;  %vm15_vm0 = vcmask 1042434   ;;  %s33_s11 = smov 3  ;;  %vm6_vm1 = vcmask 1043458   ;;  %vm8_vm2 = vcmask 64512   ;;  %vm19_vm3 = vcmask 1048512   ;;  %s401_s0 = inlined_call_operand.vmem [shape: f32[49,8], index: 0, kind: input, shape index: {}]   ;;  %s402_s1 = inlined_call_operand.vmem [shape: f32[1,392], index: 1, kind: output, shape index: {}]  }
   0x1   :  { %v206_v0 = vld [vmem:[%s401_s0 + $0x2d] sm:$0x4]   ;;  %v210_v2 = vld [vmem:[%s401_s0 + $0x2b] sm:$0x4]   ;;  %s22_s16 = smov 3  ;;  %s253_s19 = smov 120  }
   0x2   :  { %v205_v1 = vld [vmem:[%s401_s0 + $0xf] ss:$16 sm:%s11_s6]   ;;  %v209_v4 = vld [vmem:[%s401_s0 + $0xd] ss:$16 sm:%s33_s11]   ;;  %s44_s22 = smov 3  ;;  %s254_s25 = smov 104  }
   0x3   :  { %v16_v3 = vsel %vm15_vm0, %v206_v0, %v205_v1  ;;  %v208_v5 = vld [vmem:[%s401_s0 + $0x2c] sm:$0x4]   ;;  %v38_v6 = vsel %vm15_vm0, %v210_v2, %v209_v4  ;;  %v212_v8 = vld [vmem:[%s401_s0 + $0x2a] sm:$0x4]   ;;  %s55_s28 = smov 3  ;;  %s66_s4 = smov 3 }
   0x4   :  { %17 = vrot.lane.b32.xlu0 %v16_v3, %s253_s19  ;;  %v207_v7 = vld [vmem:[%s401_s0 + $0xe] ss:$16 sm:%s22_s16]   ;;  %39 = vrot.lane.b32.xlu1 %v38_v6, %s254_s25  ;;  %s77_s9 = smov 3  ;;  %s255_s10 = smov 112   ;;  %vm30_vm4 = vcmask 982912   ;;  %vm41_vm5 = vcmask 917312  }
   0x5   :  { %v27_v9 = vsel %vm15_vm0, %v208_v5, %v207_v7  ;;  %v211_v10 = vld [vmem:[%s401_s0 + $0xc] ss:$16 sm:%s44_s22]   ;;  %v213_v12 = vld [vmem:[%s401_s0 + $0xb] ss:$16 sm:%s55_s28]   ;;  %s88_s11 = smov 3  ;;  %s256_s12 = smov 96  }
   0x6   :  { %v49_v11 = vsel %vm15_vm0, %v212_v8, %v211_v10  ;;  %v214_v13 = vld [vmem:[%s401_s0 + $0x29] sm:$0x4]   ;;  %v215_v14 = vld [vmem:[%s401_s0 + $0xa] ss:$16 sm:%s66_s4]   ;;  %v218_v19 = vld [vmem:[%s401_s0 + $0x27] sm:$0x4]  }
   0x7   :  { %v216_v15 = vld [vmem:[%s401_s0 + $0x28] sm:$0x4]   ;;  %v60_v16 = vsel %vm15_vm0, %v214_v13, %v213_v12  ;;  %v217_v18 = vld [vmem:[%s401_s0 + $0x9] ss:$16 sm:%s77_s9]   ;;  %v220_v21 = vld [vmem:[%s401_s0 + $0x26] sm:$0x4]  }
   0x8   :  { %28 = vrot.lane.b32.xlu0 %v27_v9, %s255_s10  ;;  %50 = vrot.lane.b32.xlu1 %v49_v11, %s256_s12  ;;  %v71_v17 = vsel %vm15_vm0, %v216_v15, %v215_v14  ;;  %v219_v20 = vld [vmem:[%s401_s0 + $0x8] ss:$16 sm:%s88_s11]   ;;  %s99_s21 = smov 3  ;;  %s257_s22 = smov 88   ;;  %v82_v22 = vsel %vm15_vm0, %v218_v19, %v217_v18  ;;  %vm52_vm6 = vcmask 851712   ;;  %vm63_vm7 = vcmask 786112  }
   0x9   :  { %s110_s23 = smov 3  ;;  %s258_s24 = smov 80   ;;  %v93_v23 = vsel %vm15_vm0, %v220_v21, %v219_v20  ;;  %v221_v24 = vld [vmem:[%s401_s0 + $0x7] ss:$16 sm:%s99_s21]   ;;  %v224_v27 = vld [vmem:[%s401_s0 + $0x24] sm:$0x4]  }
   0xa   :  { %v222_v25 = vld [vmem:[%s401_s0 + $0x25] sm:$0x4]   ;;  %v223_v26 = vld [vmem:[%s401_s0 + $0x6] ss:$16 sm:%s110_s23]   ;;  %s121_s4 = smov 3  ;;  %s132_s5 = smov 3 }
   0xb   :  { %s259_s6 = smov 72   ;;  %s2_s7 = smov 3  ;;  %v104_v28 = vsel %vm15_vm0, %v222_v25, %v221_v24  ;;  %v226_v29 = vld [vmem:[%s401_s0 + $0x23] sm:$0x4]   ;;  %v115_v31 = vsel %vm15_vm0, %v224_v27, %v223_v26  ;;  %v227_v34 = vld [vmem:[%s401_s0 + $0x4] ss:$16 sm:%s132_s5]  }
   0xc   :  { %61 = vrot.lane.b32.xlu0 %v60_v16, %s257_s22  ;;  %72 = vrot.lane.b32.xlu1 %v71_v17, %s258_s24  ;;  %s4_s8 = smov 12  ;;  %s260_s9 = smov 64   ;;  %v3_v30 = vld [vmem:[%s401_s0] ss:$16 sm:%s2_s7]   ;;  %vm74_vm8 = vcmask 720512   ;;  %vm85_vm9 = vcmask 654912  }
   0xd   :  { %v225_v32 = vld [vmem:[%s401_s0 + $0x5] ss:$16 sm:%s121_s4]   ;;  %v5_v33 = vld [vmem:[%s401_s0] ss:$16 sm:%s4_s8]   ;;  %s143_s22 = smov 3  ;;  %s261_s23 = smov 56  }
   0xe   :  { %v228_v35 = vld [vmem:[%s401_s0 + $0x22] sm:$0x4]   ;;  %v7_v36 = vsel %vm6_vm1, %v5_v33, %v3_v30  ;;  %s154_s24 = smov 3  ;;  %s262_s25 = smov 48   ;;  %v126_v37 = vsel %vm15_vm0, %v226_v29, %v225_v32  ;;  %v229_v39 = vld [vmem:[%s401_s0 + $0x3] ss:$16 sm:%s143_s22]  }
   0xf   :  { %9 = vst.msk [vmem:[#allocation0] ss:$8 sm:$0xf] %vm8_vm2, %v7_v36   ;;  %v137_v38 = vsel %vm15_vm0, %v228_v35, %v227_v34  ;;  %v230_v40 = vld [vmem:[%s401_s0 + $0x21] sm:$0x4]   ;;  %s165_s5 = smov 3 }
  0x10   :  { %83 = vrot.lane.b32.xlu0 %v82_v22, %s259_s6  ;;  %94 = vrot.lane.b32.xlu1 %v93_v23, %s260_s9  ;;  %v231_v41 = vld [vmem:[%s401_s0 + $0x2] ss:$16 sm:%s154_s24]   ;;  %s263_s6 = smov 40   ;;  %s264_s7 = smov 32   ;;  %v148_v43 = vsel %vm15_vm0, %v230_v40, %v229_v39  ;;  %vm96_vm10 = vcmask 589312   ;;  %vm107_vm11 = vcmask 523712  }
  0x11   :  { %v232_v42 = vld [vmem:[%s401_s0 + $0x20] sm:$0x4]   ;;  %v233_v45 = vld [vmem:[%s401_s0 + $0x1] ss:$16 sm:%s165_s5]   ;;  %s266_s14 = smov 16   ;;  %s267_s15 = smov 8  }
  0x12   :  { %v159_v44 = vsel %vm15_vm0, %v232_v42, %v231_v41  ;;  %v234_v46 = vld [vmem:[%s401_s0 + $0x1f] sm:$0x4]   ;;  %s265_s0 = smov 24   ;;  %vm118_vm12 = vcmask 458112   ;;  %vm129_vm13 = vcmask 392512   ;;  %vm140_vm14 = vcmask 326912  }
  0x13   :  { %v170_v48 = vsel %vm15_vm0, %v234_v46, %v233_v45  ;;  %vm151_vm15 = vcmask 261312   ;;  %vm162_vm0 = vcmask 195712   ;;  %vm173_vm1 = vcmask 130112  }
  0x14   :  { %105 = vrot.lane.b32.xlu0 %v104_v28, %s261_s23  ;;  %116 = vrot.lane.b32.xlu1 %v115_v31, %s262_s25 }
  0x16   :  { %v197_v47 = vld [vmem:[#allocation0 + $0x18] sm:$0x1] }
  0x17   :  { %237 = vst [vmem:[%s402_s1 + $0x3] sm:$0x1] %v197_v47 }
  0x18   :  { %127 = vrot.lane.b32.xlu0 %v126_v37, %s263_s6  ;;  %138 = vrot.lane.b32.xlu1 %v137_v38, %s264_s7 }
  0x1c   :  { %149 = vrot.lane.b32.xlu0 %v148_v43, %s265_s0  ;;  %160 = vrot.lane.b32.xlu1 %v159_v44, %s266_s14 }
  0x20   :  { %171 = vrot.lane.b32.xlu0 %v170_v48, %s267_s15 }
  0x76   :  { %v18_v49 = vpop.permute.xlu0 %17   ;;  %v40_v50 = vpop.permute.xlu1 %39  }
  0x77   :  { %20 = vst.msk [vmem:[#allocation0] ss:$8 sm:$0x7] %vm19_vm3, %v18_v49  }
  0x7a   :  { %v29_v51 = vpop.permute.xlu0 %28   ;;  %v51_v52 = vpop.permute.xlu1 %50  }
  0x7b   :  { %31 = vst.msk [vmem:[#allocation0] ss:$8 sm:$0x7] %vm30_vm4, %v29_v51  }
  0x7c   :  { %42 = vst.msk [vmem:[#allocation0] ss:$8 sm:$0x7] %vm41_vm5, %v40_v50  }
  0x7d   :  { %53 = vst.msk [vmem:[#allocation0] ss:$8 sm:$0x7] %vm52_vm6, %v51_v52  }
  0x7e   :  { %v62_v53 = vpop.permute.xlu0 %61   ;;  %v73_v54 = vpop.permute.xlu1 %72  }
  0x7f   :  { %64 = vst.msk [vmem:[#allocation0] ss:$8 sm:$0x7] %vm63_vm7, %v62_v53  }
  0x80   :  { %75 = vst.msk [vmem:[#allocation0] ss:$8 sm:$0x7] %vm74_vm8, %v73_v54  }
  0x82   :  { %v84_v55 = vpop.permute.xlu0 %83   ;;  %v95_v56 = vpop.permute.xlu1 %94  }
  0x83   :  { %86 = vst.msk [vmem:[#allocation0] ss:$8 sm:$0x7] %vm85_vm9, %v84_v55  }
  0x84   :  { %97 = vst.msk [vmem:[#allocation0] ss:$8 sm:$0x7] %vm96_vm10, %v95_v56  }
  0x86   :  { %v106_v57 = vpop.permute.xlu0 %105   ;;  %v117_v58 = vpop.permute.xlu1 %116  }
  0x87   :  { %108 = vst.msk [vmem:[#allocation0] ss:$8 sm:$0x7] %vm107_vm11, %v106_v57  }
  0x88   :  { %119 = vst.msk [vmem:[#allocation0] ss:$8 sm:$0x7] %vm118_vm12, %v117_v58  }
  0x8a   :  { %v128_v59 = vpop.permute.xlu0 %127   ;;  %v139_v60 = vpop.permute.xlu1 %138  }
  0x8b   :  { %130 = vst.msk [vmem:[#allocation0] ss:$8 sm:$0x7] %vm129_vm13, %v128_v59  }
  0x8c   :  { %141 = vst.msk [vmem:[#allocation0] ss:$8 sm:$0x7] %vm140_vm14, %v139_v60  }
  0x8e   :  { %v150_v61 = vpop.permute.xlu0 %149   ;;  %v161_v62 = vpop.permute.xlu1 %160  }
  0x8f   :  { %152 = vst.msk [vmem:[#allocation0] ss:$8 sm:$0x7] %vm151_vm15, %v150_v61  }
  0x90   :  { %163 = vst.msk [vmem:[#allocation0] ss:$8 sm:$0x7] %vm162_vm0, %v161_v62  }
  0x92   :  { %v172_v63 = vpop.permute.xlu0 %171  }
  0x93   :  { %174 = vst.msk [vmem:[#allocation0] ss:$8 sm:$0x7] %vm173_vm1, %v172_v63  }
  0x9a   :  { %v179_v0 = vld [vmem:[#allocation0] sm:$0x1]  ;;  %v184_v1 = vld [vmem:[#allocation0 + $0x8] sm:$0x1]  ;;  %v190_v2 = vld [vmem:[#allocation0 + $0x10] sm:$0x1] }
  0x9b   :  { %182 = vst [vmem:[%s402_s1] sm:$0x1] %v179_v0  ;;  %235 = vst [vmem:[%s402_s1 + $0x1] sm:$0x1] %v184_v1 }
  0x9c   :  { %236 = vst [vmem:[%s402_s1 + $0x2] sm:$0x1] %v190_v2 }

// kernel: object_encoder_forward.2
= control target key start
LH: loop header
LB: loop body
LE: loop exit
PB: predicated region body
PF: predicated region fallthrough
CT: control target
= control target key end

     0   :  { %vm703_vm0 = vcmask 1042432   ;;  %vm699_vm1 = vcmask 351232   ;;  %vm4267_vm2 = vcmask 64512   ;;  %vm4411_vm3 = vcmask 259072   ;;  %s15160_s0 = inlined_call_operand.vmem [shape: f32[4,6,1323], index: 0, kind: input, shape index: {}]   ;;  %s15161_s1 = inlined_call_operand.vmem [shape: f32[1323,392], index: 1, kind: input, shape index: {}]   ;;  %s15162_s2 = inlined_call_operand.vmem [shape: f32[1,392], index: 2, kind: input, shape index: {}]   ;;  %s15163_s3 = inlined_call_operand.vmem [shape: f32[392,32], index: 3, kind: input, shape index: {}]   ;;  %s15164_s4 = inlined_call_operand.vmem [shape: f32[32], index: 4, kind: input, shape index: {}]   ;;  %s15165_s5 = inlined_call_operand.vmem [shape: f32[6,32], index: 5, kind: output, shape index: {}]  }
   0x1   :  { %v85_v0 = vld [vmem:[%s15161_s1 + $0x1e8] sm:$0xff]  ;;  %v84_v2 = vld [vmem:[%s15161_s1 + $0x1e0] sm:$0xff] }
   0x2   :  { %v213_v1 = vld [vmem:[%s15161_s1 + $0x5e8] sm:$0xff]  ;;  %716 = vmatprep.subr.mxu0 %v85_v0  ;;  %v212_v3 = vld [vmem:[%s15161_s1 + $0x5e0] sm:$0xff] }
   0x3   :  { %787 = vmatprep.subr.mxu1 %v213_v1  ;;  %v81_v4 = vld [vmem:[%s15161_s1 + $0x1c8] sm:$0xff]  ;;  %717 = vmatpush1.msra.mxu0 %v84_v2  ;;  %v80_v6 = vld [vmem:[%s15161_s1 + $0x1c0] sm:$0xff] }
   0x4   :  { %v209_v5 = vld [vmem:[%s15161_s1 + $0x5c8] sm:$0xff]  ;;  %788 = vmatpush1.msra.mxu1 %v212_v3  ;;  %v208_v7 = vld [vmem:[%s15161_s1 + $0x5c0] sm:$0xff]  ;;  %718 = vmatprep.subr.mxu0 %v81_v4 }
   0x5   :  { %v77_v8 = vld [vmem:[%s15161_s1 + $0x1a8] sm:$0xff]  ;;  %789 = vmatprep.subr.mxu1 %v209_v5  ;;  %v76_v10 = vld [vmem:[%s15161_s1 + $0x1a0] sm:$0xff]  ;;  %719 = vmatpush1.msra.mxu0 %v80_v6 }
   0x6   :  { %v205_v9 = vld [vmem:[%s15161_s1 + $0x5a8] sm:$0xff]  ;;  %v204_v11 = vld [vmem:[%s15161_s1 + $0x5a0] sm:$0xff]  ;;  %790 = vmatpush1.msra.mxu1 %v208_v7  ;;  %720 = vmatprep.subr.mxu0 %v77_v8 }
   0x7   :  { %v73_v12 = vld [vmem:[%s15161_s1 + $0x188] sm:$0xff]  ;;  %791 = vmatprep.subr.mxu1 %v205_v9  ;;  %v72_v14 = vld [vmem:[%s15161_s1 + $0x180] sm:$0xff]  ;;  %721 = vmatpush1.msra.mxu0 %v76_v10 }
   0x8   :  { %v201_v13 = vld [vmem:[%s15161_s1 + $0x588] sm:$0xff]  ;;  %v200_v15 = vld [vmem:[%s15161_s1 + $0x580] sm:$0xff]  ;;  %792 = vmatpush1.msra.mxu1 %v204_v11  ;;  %722 = vmatprep.subr.mxu0 %v73_v12 }
   0x9   :  { %v69_v16 = vld [vmem:[%s15161_s1 + $0x168] sm:$0xff]  ;;  %793 = vmatprep.subr.mxu1 %v201_v13  ;;  %v68_v18 = vld [vmem:[%s15161_s1 + $0x160] sm:$0xff]  ;;  %723 = vmatpush1.msra.mxu0 %v72_v14 }
   0xa   :  { %v197_v17 = vld [vmem:[%s15161_s1 + $0x568] sm:$0xff]  ;;  %v196_v19 = vld [vmem:[%s15161_s1 + $0x560] sm:$0xff]  ;;  %794 = vmatpush1.msra.mxu1 %v200_v15  ;;  %724 = vmatprep.subr.mxu0 %v69_v16 }
   0xb   :  { %v65_v20 = vld [vmem:[%s15161_s1 + $0x148] sm:$0xff]  ;;  %795 = vmatprep.subr.mxu1 %v197_v17  ;;  %v64_v22 = vld [vmem:[%s15161_s1 + $0x140] sm:$0xff]  ;;  %725 = vmatpush1.msra.mxu0 %v68_v18 }
   0xc   :  { %v193_v21 = vld [vmem:[%s15161_s1 + $0x548] sm:$0xff]  ;;  %v192_v23 = vld [vmem:[%s15161_s1 + $0x540] sm:$0xff]  ;;  %796 = vmatpush1.msra.mxu1 %v196_v19  ;;  %726 = vmatprep.subr.mxu0 %v65_v20 }
   0xd   :  { %v61_v24 = vld [vmem:[%s15161_s1 + $0x128] sm:$0xff]  ;;  %797 = vmatprep.subr.mxu1 %v193_v21  ;;  %v60_v26 = vld [vmem:[%s15161_s1 + $0x120] sm:$0xff]  ;;  %727 = vmatpush1.msra.mxu0 %v64_v22 }
   0xe   :  { %v189_v25 = vld [vmem:[%s15161_s1 + $0x528] sm:$0xff]  ;;  %v188_v27 = vld [vmem:[%s15161_s1 + $0x520] sm:$0xff]  ;;  %798 = vmatpush1.msra.mxu1 %v192_v23  ;;  %728 = vmatprep.subr.mxu0 %v61_v24 }
   0xf   :  { %v57_v28 = vld [vmem:[%s15161_s1 + $0x108] sm:$0xff]  ;;  %799 = vmatprep.subr.mxu1 %v189_v25  ;;  %v56_v30 = vld [vmem:[%s15161_s1 + $0x100] sm:$0xff]  ;;  %729 = vmatpush1.msra.mxu0 %v60_v26 }
  0x10   :  { %v185_v29 = vld [vmem:[%s15161_s1 + $0x508] sm:$0xff]  ;;  %v184_v31 = vld [vmem:[%s15161_s1 + $0x500] sm:$0xff]  ;;  %800 = vmatpush1.msra.mxu1 %v188_v27  ;;  %730 = vmatprep.subr.mxu0 %v57_v28 }
  0x11   :  { %v53_v32 = vld [vmem:[%s15161_s1 + $0xe8] sm:$0xff]  ;;  %801 = vmatprep.subr.mxu1 %v185_v29  ;;  %v52_v34 = vld [vmem:[%s15161_s1 + $0xe0] sm:$0xff]  ;;  %731 = vmatpush1.msra.mxu0 %v56_v30 }
  0x12   :  { %v181_v33 = vld [vmem:[%s15161_s1 + $0x4e8] sm:$0xff]  ;;  %v180_v35 = vld [vmem:[%s15161_s1 + $0x4e0] sm:$0xff]  ;;  %802 = vmatpush1.msra.mxu1 %v184_v31  ;;  %732 = vmatprep.subr.mxu0 %v53_v32 }
  0x13   :  { %v49_v36 = vld [vmem:[%s15161_s1 + $0xc8] sm:$0xff]  ;;  %803 = vmatprep.subr.mxu1 %v181_v33  ;;  %v48_v38 = vld [vmem:[%s15161_s1 + $0xc0] sm:$0xff]  ;;  %733 = vmatpush1.msra.mxu0 %v52_v34 }
  0x14   :  { %v177_v37 = vld [vmem:[%s15161_s1 + $0x4c8] sm:$0xff]  ;;  %v176_v39 = vld [vmem:[%s15161_s1 + $0x4c0] sm:$0xff]  ;;  %804 = vmatpush1.msra.mxu1 %v180_v35  ;;  %734 = vmatprep.subr.mxu0 %v49_v36 }
  0x15   :  { %v45_v40 = vld [vmem:[%s15161_s1 + $0xa8] sm:$0xff]  ;;  %805 = vmatprep.subr.mxu1 %v177_v37  ;;  %v44_v42 = vld [vmem:[%s15161_s1 + $0xa0] sm:$0xff]  ;;  %735 = vmatpush1.msra.mxu0 %v48_v38 }
  0x16   :  { %v173_v41 = vld [vmem:[%s15161_s1 + $0x4a8] sm:$0xff]  ;;  %v172_v43 = vld [vmem:[%s15161_s1 + $0x4a0] sm:$0xff]  ;;  %806 = vmatpush1.msra.mxu1 %v176_v39  ;;  %736 = vmatprep.subr.mxu0 %v45_v40 }
  0x17   :  { %v41_v44 = vld [vmem:[%s15161_s1 + $0x88] sm:$0xff]  ;;  %807 = vmatprep.subr.mxu1 %v173_v41  ;;  %v40_v46 = vld [vmem:[%s15161_s1 + $0x80] sm:$0xff]  ;;  %737 = vmatpush1.msra.mxu0 %v44_v42 }
  0x18   :  { %v169_v45 = vld [vmem:[%s15161_s1 + $0x488] sm:$0xff]  ;;  %v168_v47 = vld [vmem:[%s15161_s1 + $0x480] sm:$0xff]  ;;  %808 = vmatpush1.msra.mxu1 %v172_v43  ;;  %738 = vmatprep.subr.mxu0 %v41_v44 }
  0x19   :  { %v37_v48 = vld [vmem:[%s15161_s1 + $0x68] sm:$0xff]  ;;  %809 = vmatprep.subr.mxu1 %v169_v45  ;;  %v36_v50 = vld [vmem:[%s15161_s1 + $0x60] sm:$0xff]  ;;  %739 = vmatpush1.msra.mxu0 %v40_v46 }
  0x1a   :  { %v165_v49 = vld [vmem:[%s15161_s1 + $0x468] sm:$0xff]  ;;  %v164_v51 = vld [vmem:[%s15161_s1 + $0x460] sm:$0xff]  ;;  %810 = vmatpush1.msra.mxu1 %v168_v47  ;;  %740 = vmatprep.subr.mxu0 %v37_v48 }
  0x1b   :  { %v33_v52 = vld [vmem:[%s15161_s1 + $0x48] sm:$0xff]  ;;  %811 = vmatprep.subr.mxu1 %v165_v49  ;;  %v32_v54 = vld [vmem:[%s15161_s1 + $0x40] sm:$0xff]  ;;  %741 = vmatpush1.msra.mxu0 %v36_v50 }
  0x1c   :  { %v161_v53 = vld [vmem:[%s15161_s1 + $0x448] sm:$0xff]  ;;  %v160_v55 = vld [vmem:[%s15161_s1 + $0x440] sm:$0xff]  ;;  %812 = vmatpush1.msra.mxu1 %v164_v51  ;;  %742 = vmatprep.subr.mxu0 %v33_v52 }
  0x1d   :  { %v29_v56 = vld [vmem:[%s15161_s1 + $0x28] sm:$0xff]  ;;  %813 = vmatprep.subr.mxu1 %v161_v53  ;;  %v28_v58 = vld [vmem:[%s15161_s1 + $0x20] sm:$0xff]  ;;  %743 = vmatpush1.msra.mxu0 %v32_v54 }
  0x1e   :  { %v157_v57 = vld [vmem:[%s15161_s1 + $0x428] sm:$0xff]  ;;  %v156_v59 = vld [vmem:[%s15161_s1 + $0x420] sm:$0xff]  ;;  %814 = vmatpush1.msra.mxu1 %v160_v55  ;;  %744 = vmatprep.subr.mxu0 %v29_v56 }
  0x1f   :  { %v25_v60 = vld [vmem:[%s15161_s1 + $0x8] sm:$0xff]  ;;  %815 = vmatprep.subr.mxu1 %v157_v57  ;;  %v24_v62 = vld [vmem:[%s15161_s1] sm:$0xff]  ;;  %745 = vmatpush1.msra.mxu0 %v28_v58 }
  0x20   :  { %v153_v61 = vld [vmem:[%s15161_s1 + $0x408] sm:$0xff]  ;;  %v152_v63 = vld [vmem:[%s15161_s1 + $0x400] sm:$0xff]  ;;  %816 = vmatpush1.msra.mxu1 %v156_v59  ;;  %746 = vmatprep.subr.mxu0 %v25_v60 }
  0x21   :  { %v149_v0 = vld [vmem:[%s15161_s1 + $0x3e8] sm:$0xff]  ;;  %817 = vmatprep.subr.mxu1 %v153_v61  ;;  %v148_v2 = vld [vmem:[%s15161_s1 + $0x3e0] sm:$0xff]  ;;  %747 = vmatpush1.msra.mxu0 %v24_v62 }
  0x22   :  { %v277_v1 = vld [vmem:[%s15161_s1 + $0x7e8] sm:$0xff]  ;;  %v276_v3 = vld [vmem:[%s15161_s1 + $0x7e0] sm:$0xff]  ;;  %818 = vmatpush1.msra.mxu1 %v152_v63  ;;  %748 = vmatprep.subr.mxu0 %v149_v0 }
  0x23   :  { %v145_v4 = vld [vmem:[%s15161_s1 + $0x3c8] sm:$0xff]  ;;  %819 = vmatprep.subr.mxu1 %v277_v1  ;;  %v144_v6 = vld [vmem:[%s15161_s1 + $0x3c0] sm:$0xff]  ;;  %749 = vmatpush2.msra.mxu0 %v148_v2  ;;  %v691_v1 = vld [vmem:[%s15160_s0 + $0x18] sm:$0x3f] }
  0x24   :  { %v273_v5 = vld [vmem:[%s15161_s1 + $0x7c8] sm:$0xff]  ;;  %v272_v7 = vld [vmem:[%s15161_s1 + $0x7c0] sm:$0xff]  ;;  %820 = vmatpush2.msra.mxu1 %v276_v3  ;;  %750 = vmatprep.subr.mxu0 %v145_v4  ;;  %v690_v3 = vld [vmem:[%s15160_s0 + $0x10] sm:$0x3f] }
  0x25   :  { %v141_v8 = vld [vmem:[%s15161_s1 + $0x3a8] sm:$0xff]  ;;  %821 = vmatprep.subr.mxu1 %v273_v5  ;;  %v140_v10 = vld [vmem:[%s15161_s1 + $0x3a0] sm:$0xff]  ;;  %751 = vmatpush2.msra.mxu0 %v144_v6 }
  0x26   :  { %v269_v9 = vld [vmem:[%s15161_s1 + $0x7a8] sm:$0xff]  ;;  %v268_v11 = vld [vmem:[%s15161_s1 + $0x7a0] sm:$0xff]  ;;  %822 = vmatpush2.msra.mxu1 %v272_v7  ;;  %752 = vmatprep.subr.mxu0 %v141_v8 }
  0x27   :  { %v137_v12 = vld [vmem:[%s15161_s1 + $0x388] sm:$0xff]  ;;  %823 = vmatprep.subr.mxu1 %v269_v9  ;;  %v136_v14 = vld [vmem:[%s15161_s1 + $0x380] sm:$0xff]  ;;  %753 = vmatpush2.msra.mxu0 %v140_v10 }
  0x28   :  { %v265_v13 = vld [vmem:[%s15161_s1 + $0x788] sm:$0xff]  ;;  %v264_v15 = vld [vmem:[%s15161_s1 + $0x780] sm:$0xff]  ;;  %824 = vmatpush2.msra.mxu1 %v268_v11  ;;  %754 = vmatprep.subr.mxu0 %v137_v12 }
  0x29   :  { %v133_v16 = vld [vmem:[%s15161_s1 + $0x368] sm:$0xff]  ;;  %825 = vmatprep.subr.mxu1 %v265_v13  ;;  %v132_v18 = vld [vmem:[%s15161_s1 + $0x360] sm:$0xff]  ;;  %755 = vmatpush2.msra.mxu0 %v136_v14 }
  0x2a   :  { %v261_v17 = vld [vmem:[%s15161_s1 + $0x768] sm:$0xff]  ;;  %v260_v19 = vld [vmem:[%s15161_s1 + $0x760] sm:$0xff]  ;;  %826 = vmatpush2.msra.mxu1 %v264_v15  ;;  %756 = vmatprep.subr.mxu0 %v133_v16 }
  0x2b   :  { %v129_v20 = vld [vmem:[%s15161_s1 + $0x348] sm:$0xff]  ;;  %827 = vmatprep.subr.mxu1 %v261_v17  ;;  %v128_v22 = vld [vmem:[%s15161_s1 + $0x340] sm:$0xff]  ;;  %757 = vmatpush2.msra.mxu0 %v132_v18 }
  0x2c   :  { %v257_v21 = vld [vmem:[%s15161_s1 + $0x748] sm:$0xff]  ;;  %v256_v23 = vld [vmem:[%s15161_s1 + $0x740] sm:$0xff]  ;;  %828 = vmatpush2.msra.mxu1 %v260_v19  ;;  %758 = vmatprep.subr.mxu0 %v129_v20 }
  0x2d   :  { %v125_v24 = vld [vmem:[%s15161_s1 + $0x328] sm:$0xff]  ;;  %829 = vmatprep.subr.mxu1 %v257_v21  ;;  %v124_v26 = vld [vmem:[%s15161_s1 + $0x320] sm:$0xff]  ;;  %759 = vmatpush2.msra.mxu0 %v128_v22 }
  0x2e   :  { %v253_v25 = vld [vmem:[%s15161_s1 + $0x728] sm:$0xff]  ;;  %v252_v27 = vld [vmem:[%s15161_s1 + $0x720] sm:$0xff]  ;;  %830 = vmatpush2.msra.mxu1 %v256_v23  ;;  %760 = vmatprep.subr.mxu0 %v125_v24 }
  0x2f   :  { %v121_v28 = vld [vmem:[%s15161_s1 + $0x308] sm:$0xff]  ;;  %831 = vmatprep.subr.mxu1 %v253_v25  ;;  %v120_v30 = vld [vmem:[%s15161_s1 + $0x300] sm:$0xff]  ;;  %761 = vmatpush2.msra.mxu0 %v124_v26 }
  0x30   :  { %v249_v29 = vld [vmem:[%s15161_s1 + $0x708] sm:$0xff]  ;;  %v248_v31 = vld [vmem:[%s15161_s1 + $0x700] sm:$0xff]  ;;  %832 = vmatpush2.msra.mxu1 %v252_v27  ;;  %762 = vmatprep.subr.mxu0 %v121_v28 }
  0x31   :  { %v117_v32 = vld [vmem:[%s15161_s1 + $0x2e8] sm:$0xff]  ;;  %833 = vmatprep.subr.mxu1 %v249_v29  ;;  %v116_v34 = vld [vmem:[%s15161_s1 + $0x2e0] sm:$0xff]  ;;  %763 = vmatpush2.msra.mxu0 %v120_v30 }
  0x32   :  { %v245_v33 = vld [vmem:[%s15161_s1 + $0x6e8] sm:$0xff]  ;;  %v244_v35 = vld [vmem:[%s15161_s1 + $0x6e0] sm:$0xff]  ;;  %834 = vmatpush2.msra.mxu1 %v248_v31  ;;  %764 = vmatprep.subr.mxu0 %v117_v32 }
  0x33   :  { %v113_v36 = vld [vmem:[%s15161_s1 + $0x2c8] sm:$0xff]  ;;  %835 = vmatprep.subr.mxu1 %v245_v33  ;;  %v112_v38 = vld [vmem:[%s15161_s1 + $0x2c0] sm:$0xff]  ;;  %765 = vmatpush2.msra.mxu0 %v116_v34 }
  0x34   :  { %v241_v37 = vld [vmem:[%s15161_s1 + $0x6c8] sm:$0xff]  ;;  %v240_v39 = vld [vmem:[%s15161_s1 + $0x6c0] sm:$0xff]  ;;  %836 = vmatpush2.msra.mxu1 %v244_v35  ;;  %766 = vmatprep.subr.mxu0 %v113_v36 }
  0x35   :  { %v109_v40 = vld [vmem:[%s15161_s1 + $0x2a8] sm:$0xff]  ;;  %837 = vmatprep.subr.mxu1 %v241_v37  ;;  %v108_v42 = vld [vmem:[%s15161_s1 + $0x2a0] sm:$0xff]  ;;  %767 = vmatpush2.msra.mxu0 %v112_v38 }
  0x36   :  { %v237_v41 = vld [vmem:[%s15161_s1 + $0x6a8] sm:$0xff]  ;;  %v236_v43 = vld [vmem:[%s15161_s1 + $0x6a0] sm:$0xff]  ;;  %838 = vmatpush2.msra.mxu1 %v240_v39  ;;  %768 = vmatprep.subr.mxu0 %v109_v40 }
  0x37   :  { %v105_v44 = vld [vmem:[%s15161_s1 + $0x288] sm:$0xff]  ;;  %839 = vmatprep.subr.mxu1 %v237_v41  ;;  %v104_v46 = vld [vmem:[%s15161_s1 + $0x280] sm:$0xff]  ;;  %769 = vmatpush2.msra.mxu0 %v108_v42 }
  0x38   :  { %v233_v45 = vld [vmem:[%s15161_s1 + $0x688] sm:$0xff]  ;;  %v232_v47 = vld [vmem:[%s15161_s1 + $0x680] sm:$0xff]  ;;  %840 = vmatpush2.msra.mxu1 %v236_v43  ;;  %770 = vmatprep.subr.mxu0 %v105_v44 }
  0x39   :  { %v101_v48 = vld [vmem:[%s15161_s1 + $0x268] sm:$0xff]  ;;  %841 = vmatprep.subr.mxu1 %v233_v45  ;;  %v100_v50 = vld [vmem:[%s15161_s1 + $0x260] sm:$0xff]  ;;  %771 = vmatpush2.msra.mxu0 %v104_v46 }
  0x3a   :  { %v229_v49 = vld [vmem:[%s15161_s1 + $0x668] sm:$0xff]  ;;  %v228_v51 = vld [vmem:[%s15161_s1 + $0x660] sm:$0xff]  ;;  %842 = vmatpush2.msra.mxu1 %v232_v47  ;;  %772 = vmatprep.subr.mxu0 %v101_v48 }
  0x3b   :  { %v97_v52 = vld [vmem:[%s15161_s1 + $0x248] sm:$0xff]  ;;  %843 = vmatprep.subr.mxu1 %v229_v49  ;;  %v96_v54 = vld [vmem:[%s15161_s1 + $0x240] sm:$0xff]  ;;  %773 = vmatpush2.msra.mxu0 %v100_v50 }
  0x3c   :  { %v225_v53 = vld [vmem:[%s15161_s1 + $0x648] sm:$0xff]  ;;  %v224_v55 = vld [vmem:[%s15161_s1 + $0x640] sm:$0xff]  ;;  %844 = vmatpush2.msra.mxu1 %v228_v51  ;;  %774 = vmatprep.subr.mxu0 %v97_v52 }
  0x3d   :  { %v93_v56 = vld [vmem:[%s15161_s1 + $0x228] sm:$0xff]  ;;  %845 = vmatprep.subr.mxu1 %v225_v53  ;;  %v92_v58 = vld [vmem:[%s15161_s1 + $0x220] sm:$0xff]  ;;  %775 = vmatpush2.msra.mxu0 %v96_v54 }
  0x3e   :  { %v221_v57 = vld [vmem:[%s15161_s1 + $0x628] sm:$0xff]  ;;  %v220_v59 = vld [vmem:[%s15161_s1 + $0x620] sm:$0xff]  ;;  %846 = vmatpush2.msra.mxu1 %v224_v55  ;;  %776 = vmatprep.subr.mxu0 %v93_v56 }
  0x3f   :  { %v89_v60 = vld [vmem:[%s15161_s1 + $0x208] sm:$0xff]  ;;  %847 = vmatprep.subr.mxu1 %v221_v57  ;;  %v88_v62 = vld [vmem:[%s15161_s1 + $0x200] sm:$0xff]  ;;  %777 = vmatpush2.msra.mxu0 %v92_v58 }
  0x40   :  { %v217_v61 = vld [vmem:[%s15161_s1 + $0x608] sm:$0xff]  ;;  %848 = vmatpush2.msra.mxu1 %v220_v59  ;;  %v216_v0 = vld [vmem:[%s15161_s1 + $0x600] sm:$0xff]  ;;  %778 = vmatprep.subr.mxu0 %v89_v60 }
  0x41   :  { %v689_v63 = vld [vmem:[%s15160_s0 + $0x8] sm:$0x3f]  ;;  %849 = vmatprep.subr.mxu1 %v217_v61  ;;  %v688_v2 = vld [vmem:[%s15160_s0] sm:$0x3f]  ;;  %779 = vmatpush2.msra.mxu0 %v88_v62 }
  0x42   :  { %780 = vmatprep.mubr.f32.mxu0 %v689_v63  ;;  %v341_v4 = vld [vmem:[%s15161_s1 + $0x9e8] sm:$0xff]  ;;  %850 = vmatpush2.msra.mxu1 %v216_v0  ;;  %v340_v6 = vld [vmem:[%s15161_s1 + $0x9e0] sm:$0xff] }
  0x43   :  { %v469_v5 = vld [vmem:[%s15161_s1 + $0xde8] sm:$0xff]  ;;  %851 = vmatprep.mubr.f32.mxu1 %v691_v1  ;;  %v468_v7 = vld [vmem:[%s15161_s1 + $0xde0] sm:$0xff]  ;;  %781 = vmatmul.mubr.f32.vlgmr.msra.gmra.mxu0 %v688_v2 }
  0x44   :  { %852 = vmatmul.mubr.f32.vlgmr.msra.gmra.mxu1 %v690_v3  ;;  %v337_v8 = vld [vmem:[%s15161_s1 + $0x9c8] sm:$0xff]  ;;  %858 = vmatprep.subr.mxu0 %v341_v4  ;;  %v336_v10 = vld [vmem:[%s15161_s1 + $0x9c0] sm:$0xff] }
  0x45   :  { %v465_v9 = vld [vmem:[%s15161_s1 + $0xdc8] sm:$0xff]  ;;  %929 = vmatprep.subr.mxu1 %v469_v5  ;;  %v464_v11 = vld [vmem:[%s15161_s1 + $0xdc0] sm:$0xff]  ;;  %859 = vmatpush1.msra.mxu0 %v340_v6 }
  0x46   :  { %930 = vmatpush1.msra.mxu1 %v468_v7  ;;  %v333_v12 = vld [vmem:[%s15161_s1 + $0x9a8] sm:$0xff]  ;;  %860 = vmatprep.subr.mxu0 %v337_v8  ;;  %v332_v14 = vld [vmem:[%s15161_s1 + $0x9a0] sm:$0xff] }
  0x47   :  { %v461_v13 = vld [vmem:[%s15161_s1 + $0xda8] sm:$0xff]  ;;  %931 = vmatprep.subr.mxu1 %v465_v9  ;;  %v460_v15 = vld [vmem:[%s15161_s1 + $0xda0] sm:$0xff]  ;;  %861 = vmatpush1.msra.mxu0 %v336_v10 }
  0x48   :  { %932 = vmatpush1.msra.mxu1 %v464_v11  ;;  %v329_v16 = vld [vmem:[%s15161_s1 + $0x988] sm:$0xff]  ;;  %862 = vmatprep.subr.mxu0 %v333_v12  ;;  %v328_v18 = vld [vmem:[%s15161_s1 + $0x980] sm:$0xff] }
  0x49   :  { %v457_v17 = vld [vmem:[%s15161_s1 + $0xd88] sm:$0xff]  ;;  %933 = vmatprep.subr.mxu1 %v461_v13  ;;  %v456_v19 = vld [vmem:[%s15161_s1 + $0xd80] sm:$0xff]  ;;  %863 = vmatpush1.msra.mxu0 %v332_v14 }
  0x4a   :  { %934 = vmatpush1.msra.mxu1 %v460_v15  ;;  %v325_v20 = vld [vmem:[%s15161_s1 + $0x968] sm:$0xff]  ;;  %864 = vmatprep.subr.mxu0 %v329_v16  ;;  %v324_v22 = vld [vmem:[%s15161_s1 + $0x960] sm:$0xff] }
  0x4b   :  { %v453_v21 = vld [vmem:[%s15161_s1 + $0xd68] sm:$0xff]  ;;  %935 = vmatprep.subr.mxu1 %v457_v17  ;;  %v452_v23 = vld [vmem:[%s15161_s1 + $0xd60] sm:$0xff]  ;;  %865 = vmatpush1.msra.mxu0 %v328_v18 }
  0x4c   :  { %936 = vmatpush1.msra.mxu1 %v456_v19  ;;  %v321_v24 = vld [vmem:[%s15161_s1 + $0x948] sm:$0xff]  ;;  %866 = vmatprep.subr.mxu0 %v325_v20  ;;  %v320_v26 = vld [vmem:[%s15161_s1 + $0x940] sm:$0xff] }
  0x4d   :  { %v449_v25 = vld [vmem:[%s15161_s1 + $0xd48] sm:$0xff]  ;;  %937 = vmatprep.subr.mxu1 %v453_v21  ;;  %v448_v27 = vld [vmem:[%s15161_s1 + $0xd40] sm:$0xff]  ;;  %867 = vmatpush1.msra.mxu0 %v324_v22 }
  0x4e   :  { %938 = vmatpush1.msra.mxu1 %v452_v23  ;;  %v317_v28 = vld [vmem:[%s15161_s1 + $0x928] sm:$0xff]  ;;  %868 = vmatprep.subr.mxu0 %v321_v24  ;;  %v316_v30 = vld [vmem:[%s15161_s1 + $0x920] sm:$0xff] }
  0x4f   :  { %v445_v29 = vld [vmem:[%s15161_s1 + $0xd28] sm:$0xff]  ;;  %939 = vmatprep.subr.mxu1 %v449_v25  ;;  %v444_v31 = vld [vmem:[%s15161_s1 + $0xd20] sm:$0xff]  ;;  %869 = vmatpush1.msra.mxu0 %v320_v26 }
  0x50   :  { %940 = vmatpush1.msra.mxu1 %v448_v27  ;;  %v313_v32 = vld [vmem:[%s15161_s1 + $0x908] sm:$0xff]  ;;  %870 = vmatprep.subr.mxu0 %v317_v28  ;;  %v312_v34 = vld [vmem:[%s15161_s1 + $0x900] sm:$0xff] }
  0x51   :  { %v441_v33 = vld [vmem:[%s15161_s1 + $0xd08] sm:$0xff]  ;;  %941 = vmatprep.subr.mxu1 %v445_v29  ;;  %v440_v35 = vld [vmem:[%s15161_s1 + $0xd00] sm:$0xff]  ;;  %871 = vmatpush1.msra.mxu0 %v316_v30 }
  0x52   :  { %942 = vmatpush1.msra.mxu1 %v444_v31  ;;  %v309_v36 = vld [vmem:[%s15161_s1 + $0x8e8] sm:$0xff]  ;;  %872 = vmatprep.subr.mxu0 %v313_v32  ;;  %v308_v38 = vld [vmem:[%s15161_s1 + $0x8e0] sm:$0xff] }
  0x53   :  { %v437_v37 = vld [vmem:[%s15161_s1 + $0xce8] sm:$0xff]  ;;  %943 = vmatprep.subr.mxu1 %v441_v33  ;;  %v436_v39 = vld [vmem:[%s15161_s1 + $0xce0] sm:$0xff]  ;;  %873 = vmatpush1.msra.mxu0 %v312_v34 }
  0x54   :  { %944 = vmatpush1.msra.mxu1 %v440_v35  ;;  %v305_v40 = vld [vmem:[%s15161_s1 + $0x8c8] sm:$0xff]  ;;  %874 = vmatprep.subr.mxu0 %v309_v36  ;;  %v304_v42 = vld [vmem:[%s15161_s1 + $0x8c0] sm:$0xff] }
  0x55   :  { %v433_v41 = vld [vmem:[%s15161_s1 + $0xcc8] sm:$0xff]  ;;  %945 = vmatprep.subr.mxu1 %v437_v37  ;;  %v432_v43 = vld [vmem:[%s15161_s1 + $0xcc0] sm:$0xff]  ;;  %875 = vmatpush1.msra.mxu0 %v308_v38 }
  0x56   :  { %946 = vmatpush1.msra.mxu1 %v436_v39  ;;  %v301_v44 = vld [vmem:[%s15161_s1 + $0x8a8] sm:$0xff]  ;;  %876 = vmatprep.subr.mxu0 %v305_v40  ;;  %v300_v46 = vld [vmem:[%s15161_s1 + $0x8a0] sm:$0xff] }
  0x57   :  { %v429_v45 = vld [vmem:[%s15161_s1 + $0xca8] sm:$0xff]  ;;  %947 = vmatprep.subr.mxu1 %v433_v41  ;;  %v428_v47 = vld [vmem:[%s15161_s1 + $0xca0] sm:$0xff]  ;;  %877 = vmatpush1.msra.mxu0 %v304_v42 }
  0x58   :  { %948 = vmatpush1.msra.mxu1 %v432_v43  ;;  %v297_v48 = vld [vmem:[%s15161_s1 + $0x888] sm:$0xff]  ;;  %878 = vmatprep.subr.mxu0 %v301_v44  ;;  %v296_v50 = vld [vmem:[%s15161_s1 + $0x880] sm:$0xff] }
  0x59   :  { %v425_v49 = vld [vmem:[%s15161_s1 + $0xc88] sm:$0xff]  ;;  %949 = vmatprep.subr.mxu1 %v429_v45  ;;  %v424_v51 = vld [vmem:[%s15161_s1 + $0xc80] sm:$0xff]  ;;  %879 = vmatpush1.msra.mxu0 %v300_v46 }
  0x5a   :  { %950 = vmatpush1.msra.mxu1 %v428_v47  ;;  %v293_v52 = vld [vmem:[%s15161_s1 + $0x868] sm:$0xff]  ;;  %880 = vmatprep.subr.mxu0 %v297_v48  ;;  %v292_v54 = vld [vmem:[%s15161_s1 + $0x860] sm:$0xff] }
  0x5b   :  { %v421_v53 = vld [vmem:[%s15161_s1 + $0xc68] sm:$0xff]  ;;  %951 = vmatprep.subr.mxu1 %v425_v49  ;;  %v420_v55 = vld [vmem:[%s15161_s1 + $0xc60] sm:$0xff]  ;;  %881 = vmatpush1.msra.mxu0 %v296_v50 }
  0x5c   :  { %952 = vmatpush1.msra.mxu1 %v424_v51  ;;  %v289_v56 = vld [vmem:[%s15161_s1 + $0x848] sm:$0xff]  ;;  %882 = vmatprep.subr.mxu0 %v293_v52  ;;  %v288_v58 = vld [vmem:[%s15161_s1 + $0x840] sm:$0xff] }
  0x5d   :  { %v417_v57 = vld [vmem:[%s15161_s1 + $0xc48] sm:$0xff]  ;;  %953 = vmatprep.subr.mxu1 %v421_v53  ;;  %v416_v59 = vld [vmem:[%s15161_s1 + $0xc40] sm:$0xff]  ;;  %883 = vmatpush1.msra.mxu0 %v292_v54 }
  0x5e   :  { %954 = vmatpush1.msra.mxu1 %v420_v55  ;;  %v285_v60 = vld [vmem:[%s15161_s1 + $0x828] sm:$0xff]  ;;  %884 = vmatprep.subr.mxu0 %v289_v56  ;;  %v284_v62 = vld [vmem:[%s15161_s1 + $0x820] sm:$0xff] }
  0x5f   :  { %v413_v61 = vld [vmem:[%s15161_s1 + $0xc28] sm:$0xff]  ;;  %955 = vmatprep.subr.mxu1 %v417_v57  ;;  %v412_v63 = vld [vmem:[%s15161_s1 + $0xc20] sm:$0xff]  ;;  %885 = vmatpush1.msra.mxu0 %v288_v58 }
  0x60   :  { %956 = vmatpush1.msra.mxu1 %v416_v59  ;;  %v281_v0 = vld [vmem:[%s15161_s1 + $0x808] sm:$0xff]  ;;  %886 = vmatprep.subr.mxu0 %v285_v60  ;;  %v280_v2 = vld [vmem:[%s15161_s1 + $0x800] sm:$0xff] }
  0x61   :  { %v409_v1 = vld [vmem:[%s15161_s1 + $0xc08] sm:$0xff]  ;;  %957 = vmatprep.subr.mxu1 %v413_v61  ;;  %v408_v3 = vld [vmem:[%s15161_s1 + $0xc00] sm:$0xff]  ;;  %887 = vmatpush1.msra.mxu0 %v284_v62 }
  0x62   :  { %958 = vmatpush1.msra.mxu1 %v412_v63  ;;  %v405_v4 = vld [vmem:[%s15161_s1 + $0xbe8] sm:$0xff]  ;;  %888 = vmatprep.subr.mxu0 %v281_v0  ;;  %v404_v6 = vld [vmem:[%s15161_s1 + $0xbe0] sm:$0xff] }
  0x63   :  { %v533_v5 = vld [vmem:[%s15161_s1 + $0xfe8] sm:$0xff]  ;;  %959 = vmatprep.subr.mxu1 %v409_v1  ;;  %v532_v7 = vld [vmem:[%s15161_s1 + $0xfe0] sm:$0xff]  ;;  %889 = vmatpush1.msra.mxu0 %v280_v2 }
  0x64   :  { %960 = vmatpush1.msra.mxu1 %v408_v3  ;;  %v401_v8 = vld [vmem:[%s15161_s1 + $0xbc8] sm:$0xff]  ;;  %890 = vmatprep.subr.mxu0 %v405_v4  ;;  %v400_v10 = vld [vmem:[%s15161_s1 + $0xbc0] sm:$0xff] }
  0x65   :  { %v529_v9 = vld [vmem:[%s15161_s1 + $0xfc8] sm:$0xff]  ;;  %961 = vmatprep.subr.mxu1 %v533_v5  ;;  %v528_v11 = vld [vmem:[%s15161_s1 + $0xfc0] sm:$0xff]  ;;  %891 = vmatpush2.msra.mxu0 %v404_v6  ;;  %v695_v5 = vld [vmem:[%s15160_s0 + $0x38] sm:$0x3f] }
  0x66   :  { %962 = vmatpush2.msra.mxu1 %v532_v7  ;;  %v397_v12 = vld [vmem:[%s15161_s1 + $0xba8] sm:$0xff]  ;;  %892 = vmatprep.subr.mxu0 %v401_v8  ;;  %v396_v14 = vld [vmem:[%s15161_s1 + $0xba0] sm:$0xff]  ;;  %v694_v7 = vld [vmem:[%s15160_s0 + $0x30] sm:$0x3f] }
  0x67   :  { %v525_v13 = vld [vmem:[%s15161_s1 + $0xfa8] sm:$0xff]  ;;  %963 = vmatprep.subr.mxu1 %v529_v9  ;;  %v524_v15 = vld [vmem:[%s15161_s1 + $0xfa0] sm:$0xff]  ;;  %893 = vmatpush2.msra.mxu0 %v400_v10 }
  0x68   :  { %964 = vmatpush2.msra.mxu1 %v528_v11  ;;  %v393_v16 = vld [vmem:[%s15161_s1 + $0xb88] sm:$0xff]  ;;  %894 = vmatprep.subr.mxu0 %v397_v12  ;;  %v392_v18 = vld [vmem:[%s15161_s1 + $0xb80] sm:$0xff] }
  0x69   :  { %v521_v17 = vld [vmem:[%s15161_s1 + $0xf88] sm:$0xff]  ;;  %965 = vmatprep.subr.mxu1 %v525_v13  ;;  %v520_v19 = vld [vmem:[%s15161_s1 + $0xf80] sm:$0xff]  ;;  %895 = vmatpush2.msra.mxu0 %v396_v14 }
  0x6a   :  { %966 = vmatpush2.msra.mxu1 %v524_v15  ;;  %v389_v20 = vld [vmem:[%s15161_s1 + $0xb68] sm:$0xff]  ;;  %896 = vmatprep.subr.mxu0 %v393_v16  ;;  %v388_v22 = vld [vmem:[%s15161_s1 + $0xb60] sm:$0xff] }
  0x6b   :  { %v517_v21 = vld [vmem:[%s15161_s1 + $0xf68] sm:$0xff]  ;;  %967 = vmatprep.subr.mxu1 %v521_v17  ;;  %v516_v23 = vld [vmem:[%s15161_s1 + $0xf60] sm:$0xff]  ;;  %897 = vmatpush2.msra.mxu0 %v392_v18 }
  0x6c   :  { %968 = vmatpush2.msra.mxu1 %v520_v19  ;;  %v385_v24 = vld [vmem:[%s15161_s1 + $0xb48] sm:$0xff]  ;;  %898 = vmatprep.subr.mxu0 %v389_v20  ;;  %v384_v26 = vld [vmem:[%s15161_s1 + $0xb40] sm:$0xff] }
  0x6d   :  { %v513_v25 = vld [vmem:[%s15161_s1 + $0xf48] sm:$0xff]  ;;  %969 = vmatprep.subr.mxu1 %v517_v21  ;;  %v512_v27 = vld [vmem:[%s15161_s1 + $0xf40] sm:$0xff]  ;;  %899 = vmatpush2.msra.mxu0 %v388_v22 }
  0x6e   :  { %970 = vmatpush2.msra.mxu1 %v516_v23  ;;  %v381_v28 = vld [vmem:[%s15161_s1 + $0xb28] sm:$0xff]  ;;  %900 = vmatprep.subr.mxu0 %v385_v24  ;;  %v380_v30 = vld [vmem:[%s15161_s1 + $0xb20] sm:$0xff] }
  0x6f   :  { %v509_v29 = vld [vmem:[%s15161_s1 + $0xf28] sm:$0xff]  ;;  %971 = vmatprep.subr.mxu1 %v513_v25  ;;  %v508_v31 = vld [vmem:[%s15161_s1 + $0xf20] sm:$0xff]  ;;  %901 = vmatpush2.msra.mxu0 %v384_v26 }
  0x70   :  { %972 = vmatpush2.msra.mxu1 %v512_v27  ;;  %v377_v32 = vld [vmem:[%s15161_s1 + $0xb08] sm:$0xff]  ;;  %902 = vmatprep.subr.mxu0 %v381_v28  ;;  %v376_v34 = vld [vmem:[%s15161_s1 + $0xb00] sm:$0xff] }
  0x71   :  { %v505_v33 = vld [vmem:[%s15161_s1 + $0xf08] sm:$0xff]  ;;  %973 = vmatprep.subr.mxu1 %v509_v29  ;;  %v504_v35 = vld [vmem:[%s15161_s1 + $0xf00] sm:$0xff]  ;;  %903 = vmatpush2.msra.mxu0 %v380_v30 }
  0x72   :  { %974 = vmatpush2.msra.mxu1 %v508_v31  ;;  %v373_v36 = vld [vmem:[%s15161_s1 + $0xae8] sm:$0xff]  ;;  %904 = vmatprep.subr.mxu0 %v377_v32  ;;  %v372_v38 = vld [vmem:[%s15161_s1 + $0xae0] sm:$0xff] }
  0x73   :  { %v501_v37 = vld [vmem:[%s15161_s1 + $0xee8] sm:$0xff]  ;;  %975 = vmatprep.subr.mxu1 %v505_v33  ;;  %v500_v39 = vld [vmem:[%s15161_s1 + $0xee0] sm:$0xff]  ;;  %905 = vmatpush2.msra.mxu0 %v376_v34  ;;  %v698_v33 = vld [vmem:[%s15160_s0 + $0x50] sm:$0x3f] }
  0x74   :  { %976 = vmatpush2.msra.mxu1 %v504_v35  ;;  %v369_v40 = vld [vmem:[%s15161_s1 + $0xac8] sm:$0xff]  ;;  %906 = vmatprep.subr.mxu0 %v373_v36  ;;  %v368_v42 = vld [vmem:[%s15161_s1 + $0xac0] sm:$0xff]  ;;  %v87_v34 = vld [vmem:[%s15161_s1 + $0x1f8] sm:$0xff] }
  0x75   :  { %v497_v41 = vld [vmem:[%s15161_s1 + $0xec8] sm:$0xff]  ;;  %977 = vmatprep.subr.mxu1 %v501_v37  ;;  %v496_v43 = vld [vmem:[%s15161_s1 + $0xec0] sm:$0xff]  ;;  %907 = vmatpush2.msra.mxu0 %v372_v38  ;;  %v86_v36 = vld [vmem:[%s15161_s1 + $0x1f0] sm:$0xff]  ;;  %v6515_v37 = vmov 0.0  }
  0x76   :  { %978 = vmatpush2.msra.mxu1 %v500_v39  ;;  %v365_v44 = vld [vmem:[%s15161_s1 + $0xaa8] sm:$0xff]  ;;  %908 = vmatprep.subr.mxu0 %v369_v40  ;;  %v364_v46 = vld [vmem:[%s15161_s1 + $0xaa0] sm:$0xff]  ;;  %v83_v39 = vld [vmem:[%s15161_s1 + $0x1d8] sm:$0xff] }
  0x77   :  { %v493_v45 = vld [vmem:[%s15161_s1 + $0xea8] sm:$0xff]  ;;  %979 = vmatprep.subr.mxu1 %v497_v41  ;;  %v492_v47 = vld [vmem:[%s15161_s1 + $0xea0] sm:$0xff]  ;;  %909 = vmatpush2.msra.mxu0 %v368_v42  ;;  %v82_v41 = vld [vmem:[%s15161_s1 + $0x1d0] sm:$0xff] }
  0x78   :  { %980 = vmatpush2.msra.mxu1 %v496_v43  ;;  %v361_v48 = vld [vmem:[%s15161_s1 + $0xa88] sm:$0xff]  ;;  %910 = vmatprep.subr.mxu0 %v365_v44  ;;  %v360_v50 = vld [vmem:[%s15161_s1 + $0xa80] sm:$0xff]  ;;  %v79_v43 = vld [vmem:[%s15161_s1 + $0x1b8] sm:$0xff] }
  0x79   :  { %v489_v49 = vld [vmem:[%s15161_s1 + $0xe88] sm:$0xff]  ;;  %981 = vmatprep.subr.mxu1 %v493_v45  ;;  %v488_v51 = vld [vmem:[%s15161_s1 + $0xe80] sm:$0xff]  ;;  %911 = vmatpush2.msra.mxu0 %v364_v46  ;;  %v78_v45 = vld [vmem:[%s15161_s1 + $0x1b0] sm:$0xff] }
  0x7a   :  { %982 = vmatpush2.msra.mxu1 %v492_v47  ;;  %v357_v52 = vld [vmem:[%s15161_s1 + $0xa68] sm:$0xff]  ;;  %912 = vmatprep.subr.mxu0 %v361_v48  ;;  %v356_v54 = vld [vmem:[%s15161_s1 + $0xa60] sm:$0xff]  ;;  %v75_v47 = vld [vmem:[%s15161_s1 + $0x198] sm:$0xff] }
  0x7b   :  { %v485_v53 = vld [vmem:[%s15161_s1 + $0xe68] sm:$0xff]  ;;  %983 = vmatprep.subr.mxu1 %v489_v49  ;;  %v484_v55 = vld [vmem:[%s15161_s1 + $0xe60] sm:$0xff]  ;;  %913 = vmatpush2.msra.mxu0 %v360_v50  ;;  %v74_v49 = vld [vmem:[%s15161_s1 + $0x190] sm:$0xff] }
  0x7c   :  { %984 = vmatpush2.msra.mxu1 %v488_v51  ;;  %v353_v56 = vld [vmem:[%s15161_s1 + $0xa48] sm:$0xff]  ;;  %914 = vmatprep.subr.mxu0 %v357_v52  ;;  %v352_v58 = vld [vmem:[%s15161_s1 + $0xa40] sm:$0xff]  ;;  %v71_v51 = vld [vmem:[%s15161_s1 + $0x178] sm:$0xff] }
  0x7d   :  { %v481_v57 = vld [vmem:[%s15161_s1 + $0xe48] sm:$0xff]  ;;  %985 = vmatprep.subr.mxu1 %v485_v53  ;;  %v480_v59 = vld [vmem:[%s15161_s1 + $0xe40] sm:$0xff]  ;;  %915 = vmatpush2.msra.mxu0 %v356_v54  ;;  %v70_v53 = vld [vmem:[%s15161_s1 + $0x170] sm:$0xff] }
  0x7e   :  { %986 = vmatpush2.msra.mxu1 %v484_v55  ;;  %v349_v60 = vld [vmem:[%s15161_s1 + $0xa28] sm:$0xff]  ;;  %916 = vmatprep.subr.mxu0 %v353_v56  ;;  %v348_v62 = vld [vmem:[%s15161_s1 + $0xa20] sm:$0xff]  ;;  %v67_v55 = vld [vmem:[%s15161_s1 + $0x158] sm:$0xff] }
  0x7f   :  { %v477_v61 = vld [vmem:[%s15161_s1 + $0xe28] sm:$0xff]  ;;  %987 = vmatprep.subr.mxu1 %v481_v57  ;;  %v476_v63 = vld [vmem:[%s15161_s1 + $0xe20] sm:$0xff]  ;;  %917 = vmatpush2.msra.mxu0 %v352_v58  ;;  %v66_v57 = vld [vmem:[%s15161_s1 + $0x150] sm:$0xff] }
  0x80   :  { %988 = vmatpush2.msra.mxu1 %v480_v59  ;;  %v345_v0 = vld [vmem:[%s15161_s1 + $0xa08] sm:$0xff]  ;;  %918 = vmatprep.subr.mxu0 %v349_v60  ;;  %v344_v2 = vld [vmem:[%s15161_s1 + $0xa00] sm:$0xff]  ;;  %v63_v59 = vld [vmem:[%s15161_s1 + $0x138] sm:$0xff] }
  0x81   :  { %v473_v1 = vld [vmem:[%s15161_s1 + $0xe08] sm:$0xff]  ;;  %989 = vmatprep.subr.mxu1 %v477_v61  ;;  %919 = vmatpush2.msra.mxu0 %v348_v62  ;;  %v472_v4 = vld [vmem:[%s15161_s1 + $0xe00] sm:$0xff]  ;;  %v62_v61 = vld [vmem:[%s15161_s1 + $0x130] sm:$0xff] }
  0x82   :  { %v693_v3 = vld [vmem:[%s15160_s0 + $0x28] sm:$0x3f]  ;;  %990 = vmatpush2.msra.mxu1 %v476_v63  ;;  %920 = vmatprep.subr.mxu0 %v345_v0  ;;  %v692_v6 = vld [vmem:[%s15160_s0 + $0x20] sm:$0x3f]  ;;  %v59_v63 = vld [vmem:[%s15161_s1 + $0x118] sm:$0xff] }
  0x83   :  { %991 = vmatprep.subr.mxu1 %v473_v1  ;;  %921 = vmatpush2.msra.mxu0 %v344_v2  ;;  %v597_v8 = vld [vmem:[%s15161_s1 + $0x11e8] sm:$0xff]  ;;  %v596_v10 = vld [vmem:[%s15161_s1 + $0x11e0] sm:$0xff]  ;;  %v58_v1 = vld [vmem:[%s15161_s1 + $0x110] sm:$0xff] }
  0x84   :  { %922 = vmatprep.mubr.f32.mxu0 %v693_v3  ;;  %v685_v9 = vld [vmem:[%s15161_s1 + $0x14a8] sm:$0x7]  ;;  %992 = vmatpush2.msra.mxu1 %v472_v4  ;;  %v684_v11 = vld [vmem:[%s15161_s1 + $0x14a0] sm:$0x7]  ;;  %v55_v3 = vld [vmem:[%s15161_s1 + $0xf8] sm:$0xff] }
  0x85   :  { %993 = vmatprep.mubr.f32.mxu1 %v695_v5  ;;  %923 = vmatmul.mubr.f32.vlgmr.msra.gmra.mxu0 %v692_v6  ;;  %v593_v12 = vld [vmem:[%s15161_s1 + $0x11c8] sm:$0xff]  ;;  %v592_v14 = vld [vmem:[%s15161_s1 + $0x11c0] sm:$0xff]  ;;  %v54_v5 = vld [vmem:[%s15161_s1 + $0xf0] sm:$0xff] }
  0x86   :  { %994 = vmatmul.mubr.f32.vlgmr.msra.gmra.mxu1 %v694_v7  ;;  %v681_v13 = vld [vmem:[%s15161_s1 + $0x1488] sm:$0xff]  ;;  %1000 = vmatprep.subr.mxu0 %v597_v8  ;;  %v680_v15 = vld [vmem:[%s15161_s1 + $0x1480] sm:$0xff]  ;;  %v51_v7 = vld [vmem:[%s15161_s1 + $0xd8] sm:$0xff] }
  0x87   :  { %4417 = vmatprep.subr.msk.mxu1 %vm703_vm0, %v685_v9  ;;  %1001 = vmatpush1.msra.mxu0 %v596_v10  ;;  %v589_v16 = vld [vmem:[%s15161_s1 + $0x11a8] sm:$0xff]  ;;  %v588_v18 = vld [vmem:[%s15161_s1 + $0x11a0] sm:$0xff]  ;;  %v50_v9 = vld [vmem:[%s15161_s1 + $0xd0] sm:$0xff] }
  0x88   :  { %4418 = vmatpush1.msk.msra.mxu1 %vm703_vm0, %v684_v11  ;;  %v677_v17 = vld [vmem:[%s15161_s1 + $0x1468] sm:$0xff]  ;;  %1002 = vmatprep.subr.mxu0 %v593_v12  ;;  %v676_v19 = vld [vmem:[%s15161_s1 + $0x1460] sm:$0xff]  ;;  %v47_v11 = vld [vmem:[%s15161_s1 + $0xb8] sm:$0xff] }
  0x89   :  { %1093 = vmatprep.subr.mxu1 %v681_v13  ;;  %1003 = vmatpush1.msra.mxu0 %v592_v14  ;;  %v585_v20 = vld [vmem:[%s15161_s1 + $0x1188] sm:$0xff]  ;;  %v584_v22 = vld [vmem:[%s15161_s1 + $0x1180] sm:$0xff]  ;;  %v46_v13 = vld [vmem:[%s15161_s1 + $0xb0] sm:$0xff] }
  0x8a   :  { %1094 = vmatpush1.msra.mxu1 %v680_v15  ;;  %v673_v21 = vld [vmem:[%s15161_s1 + $0x1448] sm:$0xff]  ;;  %1004 = vmatprep.subr.mxu0 %v589_v16  ;;  %v672_v23 = vld [vmem:[%s15161_s1 + $0x1440] sm:$0xff]  ;;  %v43_v15 = vld [vmem:[%s15161_s1 + $0x98] sm:$0xff] }
  0x8b   :  { %1095 = vmatprep.subr.mxu1 %v677_v17  ;;  %1005 = vmatpush1.msra.mxu0 %v588_v18  ;;  %v581_v24 = vld [vmem:[%s15161_s1 + $0x1168] sm:$0xff]  ;;  %v580_v26 = vld [vmem:[%s15161_s1 + $0x1160] sm:$0xff]  ;;  %v42_v17 = vld [vmem:[%s15161_s1 + $0x90] sm:$0xff] }
  0x8c   :  { %1096 = vmatpush1.msra.mxu1 %v676_v19  ;;  %v669_v25 = vld [vmem:[%s15161_s1 + $0x1428] sm:$0xff]  ;;  %1006 = vmatprep.subr.mxu0 %v585_v20  ;;  %v668_v27 = vld [vmem:[%s15161_s1 + $0x1420] sm:$0xff]  ;;  %v39_v19 = vld [vmem:[%s15161_s1 + $0x78] sm:$0xff] }
  0x8d   :  { %1097 = vmatprep.subr.mxu1 %v673_v21  ;;  %1007 = vmatpush1.msra.mxu0 %v584_v22  ;;  %v577_v28 = vld [vmem:[%s15161_s1 + $0x1148] sm:$0xff]  ;;  %v576_v30 = vld [vmem:[%s15161_s1 + $0x1140] sm:$0xff]  ;;  %v38_v21 = vld [vmem:[%s15161_s1 + $0x70] sm:$0xff] }
  0x8e   :  { %1098 = vmatpush1.msra.mxu1 %v672_v23  ;;  %v665_v29 = vld [vmem:[%s15161_s1 + $0x1408] sm:$0xff]  ;;  %1008 = vmatprep.subr.mxu0 %v581_v24  ;;  %v664_v31 = vld [vmem:[%s15161_s1 + $0x1400] sm:$0xff]  ;;  %v35_v23 = vld [vmem:[%s15161_s1 + $0x58] sm:$0xff] }
  0x8f   :  { %1099 = vmatprep.subr.mxu1 %v669_v25  ;;  %1009 = vmatpush1.msra.mxu0 %v580_v26  ;;  %v573_v32 = vld [vmem:[%s15161_s1 + $0x1128] sm:$0xff]  ;;  %v572_v35 = vld [vmem:[%s15161_s1 + $0x1120] sm:$0xff]  ;;  %v34_v25 = vld [vmem:[%s15161_s1 + $0x50] sm:$0xff] }
  0x90   :  { %1100 = vmatpush1.msra.mxu1 %v668_v27  ;;  %1010 = vmatprep.subr.mxu0 %v577_v28  ;;  %v569_v38 = vld [vmem:[%s15161_s1 + $0x1108] sm:$0xff]  ;;  %v568_v40 = vld [vmem:[%s15161_s1 + $0x1100] sm:$0xff]  ;;  %v31_v27 = vld [vmem:[%s15161_s1 + $0x38] sm:$0xff] }
  0x91   :  { %1101 = vmatprep.subr.mxu1 %v665_v29  ;;  %1011 = vmatpush1.msra.mxu0 %v576_v30  ;;  %v565_v42 = vld [vmem:[%s15161_s1 + $0x10e8] sm:$0xff]  ;;  %v564_v44 = vld [vmem:[%s15161_s1 + $0x10e0] sm:$0xff]  ;;  %v30_v29 = vld [vmem:[%s15161_s1 + $0x30] sm:$0xff] }
  0x92   :  { %1102 = vmatpush1.msra.mxu1 %v664_v31  ;;  %1135 = vmatprep.mubr.f32.mxu1 %v6515_v37  ;;  %v561_v46 = vld [vmem:[%s15161_s1 + $0x10c8] sm:$0xff]  ;;  %v560_v48 = vld [vmem:[%s15161_s1 + $0x10c0] sm:$0xff]  ;;  %v27_v31 = vld [vmem:[%s15161_s1 + $0x18] sm:$0xff] }
  0x93   :  { %1012 = vmatprep.subr.mxu0 %v573_v32  ;;  %4419 = vmatmul.mubr.msk.f32.vlgmr.msra.gmra.mxu1 %vm699_vm1, %v698_v33  ;;  %v557_v50 = vld [vmem:[%s15161_s1 + $0x10a8] sm:$0xff]  ;;  %v556_v52 = vld [vmem:[%s15161_s1 + $0x10a0] sm:$0xff]  ;;  %v26_v33 = vld [vmem:[%s15161_s1 + $0x10] sm:$0xff] }
  0x94   :  { %1142 = vmatprep.subr.mxu1 %v87_v34  ;;  %1013 = vmatpush1.msra.mxu0 %v572_v35  ;;  %v553_v54 = vld [vmem:[%s15161_s1 + $0x1088] sm:$0xff]  ;;  %v552_v56 = vld [vmem:[%s15161_s1 + $0x1080] sm:$0xff]  ;;  %v151_v35 = vld [vmem:[%s15161_s1 + $0x3f8] sm:$0xff] }
  0x95   :  { %1143 = vmatpush1.msra.mxu1 %v86_v36  ;;  %1014 = vmatprep.subr.mxu0 %v569_v38  ;;  %v549_v58 = vld [vmem:[%s15161_s1 + $0x1068] sm:$0xff]  ;;  %v548_v60 = vld [vmem:[%s15161_s1 + $0x1060] sm:$0xff]  ;;  %v150_v38 = vld [vmem:[%s15161_s1 + $0x3f0] sm:$0xff] }
  0x96   :  { %1144 = vmatprep.subr.mxu1 %v83_v39  ;;  %1015 = vmatpush1.msra.mxu0 %v568_v40  ;;  %v545_v62 = vld [vmem:[%s15161_s1 + $0x1048] sm:$0xff]  ;;  %v544_v0 = vld [vmem:[%s15161_s1 + $0x1040] sm:$0xff]  ;;  %v147_v40 = vld [vmem:[%s15161_s1 + $0x3d8] sm:$0xff] }
  0x97   :  { %1145 = vmatpush1.msra.mxu1 %v82_v41  ;;  %1016 = vmatprep.subr.mxu0 %v565_v42  ;;  %v541_v2 = vld [vmem:[%s15161_s1 + $0x1028] sm:$0xff]  ;;  %v540_v4 = vld [vmem:[%s15161_s1 + $0x1020] sm:$0xff]  ;;  %v146_v42 = vld [vmem:[%s15161_s1 + $0x3d0] sm:$0xff] }
  0x98   :  { %1146 = vmatprep.subr.mxu1 %v79_v43  ;;  %1017 = vmatpush1.msra.mxu0 %v564_v44  ;;  %v537_v6 = vld [vmem:[%s15161_s1 + $0x1008] sm:$0xff]  ;;  %v536_v8 = vld [vmem:[%s15161_s1 + $0x1000] sm:$0xff]  ;;  %v143_v44 = vld [vmem:[%s15161_s1 + $0x3b8] sm:$0xff] }
  0x99   :  { %1147 = vmatpush1.msra.mxu1 %v78_v45  ;;  %1018 = vmatprep.subr.mxu0 %v561_v46  ;;  %v661_v10 = vld [vmem:[%s15161_s1 + $0x13e8] sm:$0xff]  ;;  %v660_v12 = vld [vmem:[%s15161_s1 + $0x13e0] sm:$0xff]  ;;  %v142_v46 = vld [vmem:[%s15161_s1 + $0x3b0] sm:$0xff] }
  0x9a   :  { %1148 = vmatprep.subr.mxu1 %v75_v47  ;;  %1019 = vmatpush1.msra.mxu0 %v560_v48  ;;  %v657_v14 = vld [vmem:[%s15161_s1 + $0x13c8] sm:$0xff]  ;;  %v656_v16 = vld [vmem:[%s15161_s1 + $0x13c0] sm:$0xff]  ;;  %v139_v48 = vld [vmem:[%s15161_s1 + $0x398] sm:$0xff] }
  0x9b   :  { %1149 = vmatpush1.msra.mxu1 %v74_v49  ;;  %1020 = vmatprep.subr.mxu0 %v557_v50  ;;  %v653_v18 = vld [vmem:[%s15161_s1 + $0x13a8] sm:$0xff]  ;;  %v652_v20 = vld [vmem:[%s15161_s1 + $0x13a0] sm:$0xff]  ;;  %v138_v50 = vld [vmem:[%s15161_s1 + $0x390] sm:$0xff] }
  0x9c   :  { %1150 = vmatprep.subr.mxu1 %v71_v51  ;;  %1021 = vmatpush1.msra.mxu0 %v556_v52  ;;  %v649_v22 = vld [vmem:[%s15161_s1 + $0x1388] sm:$0xff]  ;;  %v648_v24 = vld [vmem:[%s15161_s1 + $0x1380] sm:$0xff]  ;;  %v135_v52 = vld [vmem:[%s15161_s1 + $0x378] sm:$0xff] }
  0x9d   :  { %1151 = vmatpush1.msra.mxu1 %v70_v53  ;;  %1022 = vmatprep.subr.mxu0 %v553_v54  ;;  %v645_v26 = vld [vmem:[%s15161_s1 + $0x1368] sm:$0xff]  ;;  %v644_v28 = vld [vmem:[%s15161_s1 + $0x1360] sm:$0xff]  ;;  %v134_v54 = vld [vmem:[%s15161_s1 + $0x370] sm:$0xff] }
  0x9e   :  { %1152 = vmatprep.subr.mxu1 %v67_v55  ;;  %1023 = vmatpush1.msra.mxu0 %v552_v56  ;;  %v641_v30 = vld [vmem:[%s15161_s1 + $0x1348] sm:$0xff]  ;;  %v640_v32 = vld [vmem:[%s15161_s1 + $0x1340] sm:$0xff]  ;;  %v131_v56 = vld [vmem:[%s15161_s1 + $0x358] sm:$0xff] }
  0x9f   :  { %1153 = vmatpush1.msra.mxu1 %v66_v57  ;;  %1024 = vmatprep.subr.mxu0 %v549_v58  ;;  %v637_v34 = vld [vmem:[%s15161_s1 + $0x1328] sm:$0xff]  ;;  %v636_v36 = vld [vmem:[%s15161_s1 + $0x1320] sm:$0xff]  ;;  %v130_v58 = vld [vmem:[%s15161_s1 + $0x350] sm:$0xff] }
  0xa0   :  { %1154 = vmatprep.subr.mxu1 %v63_v59  ;;  %1025 = vmatpush1.msra.mxu0 %v548_v60  ;;  %v633_v39 = vld [vmem:[%s15161_s1 + $0x1308] sm:$0xff]  ;;  %v632_v41 = vld [vmem:[%s15161_s1 + $0x1300] sm:$0xff]  ;;  %v127_v60 = vld [vmem:[%s15161_s1 + $0x338] sm:$0xff] }
  0xa1   :  { %1155 = vmatpush1.msra.mxu1 %v62_v61  ;;  %1026 = vmatprep.subr.mxu0 %v545_v62  ;;  %v629_v43 = vld [vmem:[%s15161_s1 + $0x12e8] sm:$0xff]  ;;  %v628_v45 = vld [vmem:[%s15161_s1 + $0x12e0] sm:$0xff]  ;;  %v126_v62 = vld [vmem:[%s15161_s1 + $0x330] sm:$0xff] }
  0xa2   :  { %1156 = vmatprep.subr.mxu1 %v59_v63  ;;  %1027 = vmatpush1.msra.mxu0 %v544_v0  ;;  %v625_v47 = vld [vmem:[%s15161_s1 + $0x12c8] sm:$0xff]  ;;  %v624_v49 = vld [vmem:[%s15161_s1 + $0x12c0] sm:$0xff]  ;;  %v123_v0 = vld [vmem:[%s15161_s1 + $0x318] sm:$0xff] }
  0xa3   :  { %1157 = vmatpush1.msra.mxu1 %v58_v1  ;;  %1028 = vmatprep.subr.mxu0 %v541_v2  ;;  %v621_v51 = vld [vmem:[%s15161_s1 + $0x12a8] sm:$0xff]  ;;  %v620_v53 = vld [vmem:[%s15161_s1 + $0x12a0] sm:$0xff]  ;;  %v122_v2 = vld [vmem:[%s15161_s1 + $0x310] sm:$0xff] }
  0xa4   :  { %1158 = vmatprep.subr.mxu1 %v55_v3  ;;  %1029 = vmatpush1.msra.mxu0 %v540_v4  ;;  %v617_v55 = vld [vmem:[%s15161_s1 + $0x1288] sm:$0xff]  ;;  %v616_v57 = vld [vmem:[%s15161_s1 + $0x1280] sm:$0xff]  ;;  %v119_v4 = vld [vmem:[%s15161_s1 + $0x2f8] sm:$0xff] }
  0xa5   :  { %1159 = vmatpush1.msra.mxu1 %v54_v5  ;;  %1030 = vmatprep.subr.mxu0 %v537_v6  ;;  %v613_v59 = vld [vmem:[%s15161_s1 + $0x1268] sm:$0xff]  ;;  %v612_v61 = vld [vmem:[%s15161_s1 + $0x1260] sm:$0xff]  ;;  %v118_v6 = vld [vmem:[%s15161_s1 + $0x2f0] sm:$0xff] }
  0xa6   :  { %1160 = vmatprep.subr.mxu1 %v51_v7  ;;  %1031 = vmatpush1.msra.mxu0 %v536_v8  ;;  %v609_v63 = vld [vmem:[%s15161_s1 + $0x1248] sm:$0xff]  ;;  %v608_v1 = vld [vmem:[%s15161_s1 + $0x1240] sm:$0xff]  ;;  %v115_v8 = vld [vmem:[%s15161_s1 + $0x2d8] sm:$0xff] }
  0xa7   :  { %1161 = vmatpush1.msra.mxu1 %v50_v9  ;;  %1032 = vmatprep.subr.mxu0 %v661_v10  ;;  %v605_v3 = vld [vmem:[%s15161_s1 + $0x1228] sm:$0xff]  ;;  %v604_v5 = vld [vmem:[%s15161_s1 + $0x1220] sm:$0xff] }
  0xa8   :  { %1162 = vmatprep.subr.mxu1 %v47_v11  ;;  %1033 = vmatpush2.msra.mxu0 %v660_v12  ;;  %v601_v7 = vld [vmem:[%s15161_s1 + $0x1208] sm:$0xff]  ;;  %v600_v9 = vld [vmem:[%s15161_s1 + $0x1200] sm:$0xff]  ;;  %v114_v11 = vld [vmem:[%s15161_s1 + $0x2d0] sm:$0xff] }
  0xa9   :  { %1163 = vmatpush1.msra.mxu1 %v46_v13  ;;  %1034 = vmatprep.subr.mxu0 %v657_v14  ;;  %v697_v10 = vld [vmem:[%s15160_s0 + $0x48] sm:$0x3f]  ;;  %v696_v12 = vld [vmem:[%s15160_s0 + $0x40] sm:$0x3f]  ;;  %v111_v13 = vld [vmem:[%s15161_s1 + $0x2b8] sm:$0xff] }
  0xaa   :  { %1164 = vmatprep.subr.mxu1 %v43_v15  ;;  %1035 = vmatpush2.msra.mxu0 %v656_v16  ;;  %v215_v14 = vld [vmem:[%s15161_s1 + $0x5f8] sm:$0xff]  ;;  %v110_v15 = vld [vmem:[%s15161_s1 + $0x2b0] sm:$0xff] }
  0xab   :  { %1165 = vmatpush1.msra.mxu1 %v42_v17  ;;  %1036 = vmatprep.subr.mxu0 %v653_v18  ;;  %v214_v16 = vld [vmem:[%s15161_s1 + $0x5f0] sm:$0xff]  ;;  %v107_v17 = vld [vmem:[%s15161_s1 + $0x298] sm:$0xff] }
  0xac   :  { %1166 = vmatprep.subr.mxu1 %v39_v19  ;;  %1037 = vmatpush2.msra.mxu0 %v652_v20  ;;  %v211_v18 = vld [vmem:[%s15161_s1 + $0x5d8] sm:$0xff]  ;;  %v106_v19 = vld [vmem:[%s15161_s1 + $0x290] sm:$0xff] }
  0xad   :  { %1167 = vmatpush1.msra.mxu1 %v38_v21  ;;  %1038 = vmatprep.subr.mxu0 %v649_v22  ;;  %v210_v20 = vld [vmem:[%s15161_s1 + $0x5d0] sm:$0xff]  ;;  %v103_v21 = vld [vmem:[%s15161_s1 + $0x278] sm:$0xff] }
  0xae   :  { %1168 = vmatprep.subr.mxu1 %v35_v23  ;;  %1039 = vmatpush2.msra.mxu0 %v648_v24  ;;  %v207_v22 = vld [vmem:[%s15161_s1 + $0x5b8] sm:$0xff]  ;;  %v102_v23 = vld [vmem:[%s15161_s1 + $0x270] sm:$0xff] }
  0xaf   :  { %1169 = vmatpush1.msra.mxu1 %v34_v25  ;;  %1040 = vmatprep.subr.mxu0 %v645_v26  ;;  %v206_v24 = vld [vmem:[%s15161_s1 + $0x5b0] sm:$0xff]  ;;  %v99_v25 = vld [vmem:[%s15161_s1 + $0x258] sm:$0xff] }
  0xb0   :  { %1170 = vmatprep.subr.mxu1 %v31_v27  ;;  %1041 = vmatpush2.msra.mxu0 %v644_v28  ;;  %v203_v26 = vld [vmem:[%s15161_s1 + $0x598] sm:$0xff]  ;;  %v98_v27 = vld [vmem:[%s15161_s1 + $0x250] sm:$0xff] }
  0xb1   :  { %1171 = vmatpush1.msra.mxu1 %v30_v29  ;;  %1042 = vmatprep.subr.mxu0 %v641_v30  ;;  %v202_v28 = vld [vmem:[%s15161_s1 + $0x590] sm:$0xff]  ;;  %v95_v29 = vld [vmem:[%s15161_s1 + $0x238] sm:$0xff] }
  0xb2   :  { %1172 = vmatprep.subr.mxu1 %v27_v31  ;;  %1043 = vmatpush2.msra.mxu0 %v640_v32  ;;  %v199_v30 = vld [vmem:[%s15161_s1 + $0x578] sm:$0xff]  ;;  %v94_v31 = vld [vmem:[%s15161_s1 + $0x230] sm:$0xff] }
  0xb3   :  { %1173 = vmatpush1.msra.mxu1 %v26_v33  ;;  %1044 = vmatprep.subr.mxu0 %v637_v34  ;;  %v198_v32 = vld [vmem:[%s15161_s1 + $0x570] sm:$0xff]  ;;  %v91_v33 = vld [vmem:[%s15161_s1 + $0x218] sm:$0xff] }
  0xb4   :  { %1174 = vmatprep.subr.mxu1 %v151_v35  ;;  %1045 = vmatpush2.msra.mxu0 %v636_v36  ;;  %v195_v34 = vld [vmem:[%s15161_s1 + $0x558] sm:$0xff]  ;;  %v90_v35 = vld [vmem:[%s15161_s1 + $0x210] sm:$0xff] }
  0xb5   :  { %1175 = vmatpush2.msra.mxu1 %v150_v38  ;;  %1046 = vmatprep.subr.mxu0 %v633_v39  ;;  %v194_v36 = vld [vmem:[%s15161_s1 + $0x550] sm:$0xff]  ;;  %v191_v38 = vld [vmem:[%s15161_s1 + $0x538] sm:$0xff] }
  0xb6   :  { %1176 = vmatprep.subr.mxu1 %v147_v40  ;;  %1047 = vmatpush2.msra.mxu0 %v632_v41  ;;  %v343_v39 = vld [vmem:[%s15161_s1 + $0x9f8] sm:$0xff]  ;;  %v4512_v40 = vld [vmem:[%s15160_s0 + $0x8] sm:$0x3f]  ;;  %v190_v41 = vld [vmem:[%s15161_s1 + $0x530] sm:$0xff] }
  0xb7   :  { %1177 = vmatpush2.msra.mxu1 %v146_v42  ;;  %1048 = vmatprep.subr.mxu0 %v629_v43  ;;  %v342_v42 = vld [vmem:[%s15161_s1 + $0x9f0] sm:$0xff]  ;;  %v4513_v43 = vld [vmem:[%s15160_s0] sm:$0x3f] }
  0xb8   :  { %1178 = vmatprep.subr.mxu1 %v143_v44  ;;  %1049 = vmatpush2.msra.mxu0 %v628_v45  ;;  %v187_v44 = vld [vmem:[%s15161_s1 + $0x518] sm:$0xff] }
  0xb9   :  { %1179 = vmatpush2.msra.mxu1 %v142_v46  ;;  %1050 = vmatprep.subr.mxu0 %v625_v47  ;;  %v339_v45 = vld [vmem:[%s15161_s1 + $0x9d8] sm:$0xff]  ;;  %v186_v46 = vld [vmem:[%s15161_s1 + $0x510] sm:$0xff] }
  0xba   :  { %1180 = vmatprep.subr.mxu1 %v139_v48  ;;  %1051 = vmatpush2.msra.mxu0 %v624_v49  ;;  %v338_v47 = vld [vmem:[%s15161_s1 + $0x9d0] sm:$0xff]  ;;  %v183_v48 = vld [vmem:[%s15161_s1 + $0x4f8] sm:$0xff] }
  0xbb   :  { %1181 = vmatpush2.msra.mxu1 %v138_v50  ;;  %1052 = vmatprep.subr.mxu0 %v621_v51  ;;  %v335_v49 = vld [vmem:[%s15161_s1 + $0x9b8] sm:$0xff]  ;;  %v182_v50 = vld [vmem:[%s15161_s1 + $0x4f0] sm:$0xff] }
  0xbc   :  { %1182 = vmatprep.subr.mxu1 %v135_v52  ;;  %1053 = vmatpush2.msra.mxu0 %v620_v53  ;;  %v334_v51 = vld [vmem:[%s15161_s1 + $0x9b0] sm:$0xff]  ;;  %v179_v52 = vld [vmem:[%s15161_s1 + $0x4d8] sm:$0xff] }
  0xbd   :  { %1183 = vmatpush2.msra.mxu1 %v134_v54  ;;  %1054 = vmatprep.subr.mxu0 %v617_v55  ;;  %v331_v53 = vld [vmem:[%s15161_s1 + $0x998] sm:$0xff]  ;;  %v178_v54 = vld [vmem:[%s15161_s1 + $0x4d0] sm:$0xff] }
  0xbe   :  { %1184 = vmatprep.subr.mxu1 %v131_v56  ;;  %1055 = vmatpush2.msra.mxu0 %v616_v57  ;;  %v330_v55 = vld [vmem:[%s15161_s1 + $0x990] sm:$0xff]  ;;  %v175_v56 = vld [vmem:[%s15161_s1 + $0x4b8] sm:$0xff] }
  0xbf   :  { %1185 = vmatpush2.msra.mxu1 %v130_v58  ;;  %1056 = vmatprep.subr.mxu0 %v613_v59  ;;  %v327_v57 = vld [vmem:[%s15161_s1 + $0x978] sm:$0xff]  ;;  %v174_v58 = vld [vmem:[%s15161_s1 + $0x4b0] sm:$0xff] }
  0xc0   :  { %1186 = vmatprep.subr.mxu1 %v127_v60  ;;  %1057 = vmatpush2.msra.mxu0 %v612_v61  ;;  %v326_v59 = vld [vmem:[%s15161_s1 + $0x970] sm:$0xff]  ;;  %v171_v60 = vld [vmem:[%s15161_s1 + $0x498] sm:$0xff] }
  0xc1   :  { %1187 = vmatpush2.msra.mxu1 %v126_v62  ;;  %1058 = vmatprep.subr.mxu0 %v609_v63  ;;  %v323_v61 = vld [vmem:[%s15161_s1 + $0x958] sm:$0xff]  ;;  %v170_v62 = vld [vmem:[%s15161_s1 + $0x490] sm:$0xff] }
  0xc2   :  { %1188 = vmatprep.subr.mxu1 %v123_v0  ;;  %1059 = vmatpush2.msra.mxu0 %v608_v1  ;;  %v322_v63 = vld [vmem:[%s15161_s1 + $0x950] sm:$0xff]  ;;  %v167_v0 = vld [vmem:[%s15161_s1 + $0x478] sm:$0xff] }
  0xc3   :  { %1189 = vmatpush2.msra.mxu1 %v122_v2  ;;  %1060 = vmatprep.subr.mxu0 %v605_v3  ;;  %v319_v1 = vld [vmem:[%s15161_s1 + $0x938] sm:$0xff]  ;;  %v166_v2 = vld [vmem:[%s15161_s1 + $0x470] sm:$0xff] }
  0xc4   :  { %1190 = vmatprep.subr.mxu1 %v119_v4  ;;  %1061 = vmatpush2.msra.mxu0 %v604_v5  ;;  %v318_v3 = vld [vmem:[%s15161_s1 + $0x930] sm:$0xff]  ;;  %v163_v4 = vld [vmem:[%s15161_s1 + $0x458] sm:$0xff] }
  0xc5   :  { %1191 = vmatpush2.msra.mxu1 %v118_v6  ;;  %1062 = vmatprep.subr.mxu0 %v601_v7  ;;  %v315_v5 = vld [vmem:[%s15161_s1 + $0x918] sm:$0xff]  ;;  %v162_v6 = vld [vmem:[%s15161_s1 + $0x450] sm:$0xff] }
  0xc6   :  { %1192 = vmatprep.subr.mxu1 %v115_v8  ;;  %1063 = vmatpush2.msra.mxu0 %v600_v9  ;;  %v314_v7 = vld [vmem:[%s15161_s1 + $0x910] sm:$0xff]  ;;  %v159_v8 = vld [vmem:[%s15161_s1 + $0x438] sm:$0xff] }
  0xc7   :  { %1064 = vmatprep.mubr.f32.mxu0 %v697_v10  ;;  %1193 = vmatpush2.msra.mxu1 %v114_v11  ;;  %v311_v9 = vld [vmem:[%s15161_s1 + $0x8f8] sm:$0xff]  ;;  %v158_v10 = vld [vmem:[%s15161_s1 + $0x430] sm:$0xff] }
  0xc8   :  { %1065 = vmatmul.mubr.f32.vlgmr.msra.gmra.mxu0 %v696_v12  ;;  %1194 = vmatprep.subr.mxu1 %v111_v13  ;;  %v310_v11 = vld [vmem:[%s15161_s1 + $0x8f0] sm:$0xff]  ;;  %v155_v12 = vld [vmem:[%s15161_s1 + $0x418] sm:$0xff] }
  0xc9   :  { %1213 = vmatprep.subr.mxu0 %v215_v14  ;;  %1195 = vmatpush2.msra.mxu1 %v110_v15  ;;  %v307_v13 = vld [vmem:[%s15161_s1 + $0x8d8] sm:$0xff]  ;;  %v154_v14 = vld [vmem:[%s15161_s1 + $0x410] sm:$0xff] }
  0xca   :  { %1214 = vmatpush1.msra.mxu0 %v214_v16  ;;  %1196 = vmatprep.subr.mxu1 %v107_v17  ;;  %v306_v15 = vld [vmem:[%s15161_s1 + $0x8d0] sm:$0xff]  ;;  %v279_v16 = vld [vmem:[%s15161_s1 + $0x7f8] sm:$0xff] }
  0xcb   :  { %1215 = vmatprep.subr.mxu0 %v211_v18  ;;  %1197 = vmatpush2.msra.mxu1 %v106_v19  ;;  %v303_v17 = vld [vmem:[%s15161_s1 + $0x8b8] sm:$0xff]  ;;  %v278_v18 = vld [vmem:[%s15161_s1 + $0x7f0] sm:$0xff] }
  0xcc   :  { %1216 = vmatpush1.msra.mxu0 %v210_v20  ;;  %1198 = vmatprep.subr.mxu1 %v103_v21  ;;  %v302_v19 = vld [vmem:[%s15161_s1 + $0x8b0] sm:$0xff]  ;;  %v275_v20 = vld [vmem:[%s15161_s1 + $0x7d8] sm:$0xff] }
  0xcd   :  { %1217 = vmatprep.subr.mxu0 %v207_v22  ;;  %1199 = vmatpush2.msra.mxu1 %v102_v23  ;;  %v299_v21 = vld [vmem:[%s15161_s1 + $0x898] sm:$0xff]  ;;  %v274_v22 = vld [vmem:[%s15161_s1 + $0x7d0] sm:$0xff] }
  0xce   :  { %1218 = vmatpush1.msra.mxu0 %v206_v24  ;;  %1200 = vmatprep.subr.mxu1 %v99_v25  ;;  %v298_v23 = vld [vmem:[%s15161_s1 + $0x890] sm:$0xff]  ;;  %v271_v24 = vld [vmem:[%s15161_s1 + $0x7b8] sm:$0xff] }
  0xcf   :  { %1219 = vmatprep.subr.mxu0 %v203_v26  ;;  %1201 = vmatpush2.msra.mxu1 %v98_v27  ;;  %v295_v25 = vld [vmem:[%s15161_s1 + $0x878] sm:$0xff]  ;;  %v270_v26 = vld [vmem:[%s15161_s1 + $0x7b0] sm:$0xff] }
  0xd0   :  { %1220 = vmatpush1.msra.mxu0 %v202_v28  ;;  %1202 = vmatprep.subr.mxu1 %v95_v29  ;;  %v294_v27 = vld [vmem:[%s15161_s1 + $0x870] sm:$0xff]  ;;  %v267_v28 = vld [vmem:[%s15161_s1 + $0x798] sm:$0xff] }
  0xd1   :  { %1221 = vmatprep.subr.mxu0 %v199_v30  ;;  %1203 = vmatpush2.msra.mxu1 %v94_v31  ;;  %v291_v29 = vld [vmem:[%s15161_s1 + $0x858] sm:$0xff]  ;;  %v266_v30 = vld [vmem:[%s15161_s1 + $0x790] sm:$0xff] }
  0xd2   :  { %1222 = vmatpush1.msra.mxu0 %v198_v32  ;;  %1204 = vmatprep.subr.mxu1 %v91_v33  ;;  %v290_v31 = vld [vmem:[%s15161_s1 + $0x850] sm:$0xff]  ;;  %v263_v32 = vld [vmem:[%s15161_s1 + $0x778] sm:$0xff] }
  0xd3   :  { %1223 = vmatprep.subr.mxu0 %v195_v34  ;;  %1205 = vmatpush2.msra.mxu1 %v90_v35  ;;  %v287_v33 = vld [vmem:[%s15161_s1 + $0x838] sm:$0xff]  ;;  %v262_v34 = vld [vmem:[%s15161_s1 + $0x770] sm:$0xff] }
  0xd4   :  { %1206 = vmatprep.mubr.f32.mxu1 %v4512_v40  ;;  %1224 = vmatpush1.msra.mxu0 %v194_v36  ;;  %v286_v35 = vld [vmem:[%s15161_s1 + $0x830] sm:$0xff]  ;;  %v259_v36 = vld [vmem:[%s15161_s1 + $0x758] sm:$0xff] }
  0xd5   :  { %1207 = vmatmul.mubr.f32.vlgmr.msra.gmra.mxu1 %v4513_v43  ;;  %1225 = vmatprep.subr.mxu0 %v191_v38  ;;  %v283_v38 = vld [vmem:[%s15161_s1 + $0x818] sm:$0xff]  ;;  %v282_v40 = vld [vmem:[%s15161_s1 + $0x810] sm:$0xff] }
  0xd6   :  { %1284 = vmatprep.subr.mxu1 %v343_v39  ;;  %1226 = vmatpush1.msra.mxu0 %v190_v41  ;;  %v258_v39 = vld [vmem:[%s15161_s1 + $0x750] sm:$0xff]  ;;  %v255_v41 = vld [vmem:[%s15161_s1 + $0x738] sm:$0xff] }
  0xd7   :  { %1285 = vmatpush1.msra.mxu1 %v342_v42  ;;  %1227 = vmatprep.subr.mxu0 %v187_v44  ;;  %v407_v42 = vld [vmem:[%s15161_s1 + $0xbf8] sm:$0xff]  ;;  %v254_v43 = vld [vmem:[%s15161_s1 + $0x730] sm:$0xff] }
  0xd8   :  { %1286 = vmatprep.subr.mxu1 %v339_v45  ;;  %1228 = vmatpush1.msra.mxu0 %v186_v46  ;;  %v406_v44 = vld [vmem:[%s15161_s1 + $0xbf0] sm:$0xff]  ;;  %v251_v45 = vld [vmem:[%s15161_s1 + $0x718] sm:$0xff] }
  0xd9   :  { %1287 = vmatpush1.msra.mxu1 %v338_v47  ;;  %1229 = vmatprep.subr.mxu0 %v183_v48  ;;  %v403_v46 = vld [vmem:[%s15161_s1 + $0xbd8] sm:$0xff]  ;;  %v250_v47 = vld [vmem:[%s15161_s1 + $0x710] sm:$0xff] }
  0xda   :  { %1288 = vmatprep.subr.mxu1 %v335_v49  ;;  %1230 = vmatpush1.msra.mxu0 %v182_v50  ;;  %v402_v48 = vld [vmem:[%s15161_s1 + $0xbd0] sm:$0xff]  ;;  %v247_v49 = vld [vmem:[%s15161_s1 + $0x6f8] sm:$0xff] }
  0xdb   :  { %1289 = vmatpush1.msra.mxu1 %v334_v51  ;;  %1231 = vmatprep.subr.mxu0 %v179_v52  ;;  %v399_v50 = vld [vmem:[%s15161_s1 + $0xbb8] sm:$0xff]  ;;  %v246_v51 = vld [vmem:[%s15161_s1 + $0x6f0] sm:$0xff] }
  0xdc   :  { %1290 = vmatprep.subr.mxu1 %v331_v53  ;;  %1232 = vmatpush1.msra.mxu0 %v178_v54  ;;  %v398_v52 = vld [vmem:[%s15161_s1 + $0xbb0] sm:$0xff]  ;;  %v243_v53 = vld [vmem:[%s15161_s1 + $0x6d8] sm:$0xff] }
  0xdd   :  { %1291 = vmatpush1.msra.mxu1 %v330_v55  ;;  %1233 = vmatprep.subr.mxu0 %v175_v56  ;;  %v395_v54 = vld [vmem:[%s15161_s1 + $0xb98] sm:$0xff]  ;;  %v242_v55 = vld [vmem:[%s15161_s1 + $0x6d0] sm:$0xff] }
  0xde   :  { %1292 = vmatprep.subr.mxu1 %v327_v57  ;;  %1234 = vmatpush1.msra.mxu0 %v174_v58  ;;  %v394_v56 = vld [vmem:[%s15161_s1 + $0xb90] sm:$0xff]  ;;  %v239_v57 = vld [vmem:[%s15161_s1 + $0x6b8] sm:$0xff] }
  0xdf   :  { %1293 = vmatpush1.msra.mxu1 %v326_v59  ;;  %1235 = vmatprep.subr.mxu0 %v171_v60  ;;  %v391_v58 = vld [vmem:[%s15161_s1 + $0xb78] sm:$0xff]  ;;  %v238_v59 = vld [vmem:[%s15161_s1 + $0x6b0] sm:$0xff] }
  0xe0   :  { %1294 = vmatprep.subr.mxu1 %v323_v61  ;;  %1236 = vmatpush1.msra.mxu0 %v170_v62  ;;  %v390_v60 = vld [vmem:[%s15161_s1 + $0xb70] sm:$0xff]  ;;  %v235_v61 = vld [vmem:[%s15161_s1 + $0x698] sm:$0xff] }
  0xe1   :  { %1295 = vmatpush1.msra.mxu1 %v322_v63  ;;  %1237 = vmatprep.subr.mxu0 %v167_v0  ;;  %v387_v62 = vld [vmem:[%s15161_s1 + $0xb58] sm:$0xff]  ;;  %v234_v63 = vld [vmem:[%s15161_s1 + $0x690] sm:$0xff] }
  0xe2   :  { %1296 = vmatprep.subr.mxu1 %v319_v1  ;;  %1238 = vmatpush1.msra.mxu0 %v166_v2  ;;  %v386_v0 = vld [vmem:[%s15161_s1 + $0xb50] sm:$0xff]  ;;  %v231_v1 = vld [vmem:[%s15161_s1 + $0x678] sm:$0xff] }
  0xe3   :  { %1297 = vmatpush1.msra.mxu1 %v318_v3  ;;  %1239 = vmatprep.subr.mxu0 %v163_v4  ;;  %v383_v2 = vld [vmem:[%s15161_s1 + $0xb38] sm:$0xff]  ;;  %v230_v3 = vld [vmem:[%s15161_s1 + $0x670] sm:$0xff] }
  0xe4   :  { %1298 = vmatprep.subr.mxu1 %v315_v5  ;;  %1240 = vmatpush1.msra.mxu0 %v162_v6  ;;  %v382_v4 = vld [vmem:[%s15161_s1 + $0xb30] sm:$0xff]  ;;  %v227_v5 = vld [vmem:[%s15161_s1 + $0x658] sm:$0xff] }
  0xe5   :  { %1299 = vmatpush1.msra.mxu1 %v314_v7  ;;  %1241 = vmatprep.subr.mxu0 %v159_v8  ;;  %v379_v6 = vld [vmem:[%s15161_s1 + $0xb18] sm:$0xff]  ;;  %v226_v7 = vld [vmem:[%s15161_s1 + $0x650] sm:$0xff] }
  0xe6   :  { %1300 = vmatprep.subr.mxu1 %v311_v9  ;;  %1242 = vmatpush1.msra.mxu0 %v158_v10  ;;  %v378_v8 = vld [vmem:[%s15161_s1 + $0xb10] sm:$0xff]  ;;  %v223_v9 = vld [vmem:[%s15161_s1 + $0x638] sm:$0xff] }
  0xe7   :  { %1301 = vmatpush1.msra.mxu1 %v310_v11  ;;  %1243 = vmatprep.subr.mxu0 %v155_v12  ;;  %v375_v10 = vld [vmem:[%s15161_s1 + $0xaf8] sm:$0xff]  ;;  %v222_v11 = vld [vmem:[%s15161_s1 + $0x630] sm:$0xff] }
  0xe8   :  { %1302 = vmatprep.subr.mxu1 %v307_v13  ;;  %1244 = vmatpush1.msra.mxu0 %v154_v14  ;;  %v374_v12 = vld [vmem:[%s15161_s1 + $0xaf0] sm:$0xff] }
  0xe9   :  { %1303 = vmatpush1.msra.mxu1 %v306_v15  ;;  %1245 = vmatprep.subr.mxu0 %v279_v16  ;;  %v219_v15 = vld [vmem:[%s15161_s1 + $0x618] sm:$0xff] }
  0xea   :  { %1304 = vmatprep.subr.mxu1 %v303_v17  ;;  %1246 = vmatpush2.msra.mxu0 %v278_v18  ;;  %v371_v16 = vld [vmem:[%s15161_s1 + $0xad8] sm:$0xff]  ;;  %v218_v18 = vld [vmem:[%s15161_s1 + $0x610] sm:$0xff] }
  0xeb   :  { %1305 = vmatpush1.msra.mxu1 %v302_v19  ;;  %1247 = vmatprep.subr.mxu0 %v275_v20 }
  0xec   :  { %1306 = vmatprep.subr.mxu1 %v299_v21  ;;  %1248 = vmatpush2.msra.mxu0 %v274_v22  ;;  %v370_v21 = vld [vmem:[%s15161_s1 + $0xad0] sm:$0xff] }
  0xed   :  { %1307 = vmatpush1.msra.mxu1 %v298_v23  ;;  %1249 = vmatprep.subr.mxu0 %v271_v24  ;;  %v367_v23 = vld [vmem:[%s15161_s1 + $0xab8] sm:$0xff] }
  0xee   :  { %1308 = vmatprep.subr.mxu1 %v295_v25  ;;  %1250 = vmatpush2.msra.mxu0 %v270_v26  ;;  %v471_v24 = vld [vmem:[%s15161_s1 + $0xdf8] sm:$0xff]  ;;  %v366_v26 = vld [vmem:[%s15161_s1 + $0xab0] sm:$0xff] }
  0xef   :  { %1309 = vmatpush1.msra.mxu1 %v294_v27  ;;  %1251 = vmatprep.subr.mxu0 %v267_v28  ;;  %v4514_v25 = vld [vmem:[%s15160_s0 + $0x18] sm:$0x3f]  ;;  %v470_v27 = vld [vmem:[%s15161_s1 + $0xdf0] sm:$0xff] }
  0xf0   :  { %1310 = vmatprep.subr.mxu1 %v291_v29  ;;  %1252 = vmatpush2.msra.mxu0 %v266_v30  ;;  %v4515_v28 = vld [vmem:[%s15160_s0 + $0x10] sm:$0x3f]  ;;  %v363_v29 = vld [vmem:[%s15161_s1 + $0xa98] sm:$0xff] }
  0xf1   :  { %1311 = vmatpush1.msra.mxu1 %v290_v31  ;;  %1253 = vmatprep.subr.mxu0 %v263_v32  ;;  %v467_v30 = vld [vmem:[%s15161_s1 + $0xdd8] sm:$0xff]  ;;  %v362_v31 = vld [vmem:[%s15161_s1 + $0xa90] sm:$0xff] }
  0xf2   :  { %1312 = vmatprep.subr.mxu1 %v287_v33  ;;  %1254 = vmatpush2.msra.mxu0 %v262_v34  ;;  %v466_v32 = vld [vmem:[%s15161_s1 + $0xdd0] sm:$0xff]  ;;  %v359_v33 = vld [vmem:[%s15161_s1 + $0xa78] sm:$0xff] }
  0xf3   :  { %1313 = vmatpush1.msra.mxu1 %v286_v35  ;;  %1255 = vmatprep.subr.mxu0 %v259_v36  ;;  %v463_v34 = vld [vmem:[%s15161_s1 + $0xdb8] sm:$0xff]  ;;  %v358_v35 = vld [vmem:[%s15161_s1 + $0xa70] sm:$0xff] }
  0xf4   :  { %1314 = vmatprep.subr.mxu1 %v283_v38  ;;  %1256 = vmatpush2.msra.mxu0 %v258_v39  ;;  %v462_v36 = vld [vmem:[%s15161_s1 + $0xdb0] sm:$0xff]  ;;  %v355_v38 = vld [vmem:[%s15161_s1 + $0xa58] sm:$0xff] }
  0xf5   :  { %1315 = vmatpush1.msra.mxu1 %v282_v40  ;;  %1257 = vmatprep.subr.mxu0 %v255_v41  ;;  %v459_v39 = vld [vmem:[%s15161_s1 + $0xd98] sm:$0xff]  ;;  %v354_v40 = vld [vmem:[%s15161_s1 + $0xa50] sm:$0xff] }
  0xf6   :  { %1316 = vmatprep.subr.mxu1 %v407_v42  ;;  %1258 = vmatpush2.msra.mxu0 %v254_v43  ;;  %v458_v41 = vld [vmem:[%s15161_s1 + $0xd90] sm:$0xff]  ;;  %v351_v42 = vld [vmem:[%s15161_s1 + $0xa38] sm:$0xff] }
  0xf7   :  { %1317 = vmatpush2.msra.mxu1 %v406_v44  ;;  %1259 = vmatprep.subr.mxu0 %v251_v45  ;;  %v455_v43 = vld [vmem:[%s15161_s1 + $0xd78] sm:$0xff]  ;;  %v350_v44 = vld [vmem:[%s15161_s1 + $0xa30] sm:$0xff] }
  0xf8   :  { %1318 = vmatprep.subr.mxu1 %v403_v46  ;;  %1260 = vmatpush2.msra.mxu0 %v250_v47  ;;  %v454_v45 = vld [vmem:[%s15161_s1 + $0xd70] sm:$0xff]  ;;  %v347_v46 = vld [vmem:[%s15161_s1 + $0xa18] sm:$0xff] }
  0xf9   :  { %1319 = vmatpush2.msra.mxu1 %v402_v48  ;;  %1261 = vmatprep.subr.mxu0 %v247_v49  ;;  %v451_v47 = vld [vmem:[%s15161_s1 + $0xd58] sm:$0xff]  ;;  %v346_v48 = vld [vmem:[%s15161_s1 + $0xa10] sm:$0xff] }
  0xfa   :  { %1320 = vmatprep.subr.mxu1 %v399_v50  ;;  %1262 = vmatpush2.msra.mxu0 %v246_v51  ;;  %v450_v49 = vld [vmem:[%s15161_s1 + $0xd50] sm:$0xff]  ;;  %v447_v50 = vld [vmem:[%s15161_s1 + $0xd38] sm:$0xff] }
  0xfb   :  { %1321 = vmatpush2.msra.mxu1 %v398_v52  ;;  %1263 = vmatprep.subr.mxu0 %v243_v53  ;;  %v599_v51 = vld [vmem:[%s15161_s1 + $0x11f8] sm:$0xff]  ;;  %v4516_v52 = vld [vmem:[%s15160_s0 + $0x28] sm:$0x3f]  ;;  %v446_v53 = vld [vmem:[%s15161_s1 + $0xd30] sm:$0xff] }
  0xfc   :  { %1322 = vmatprep.subr.mxu1 %v395_v54  ;;  %1264 = vmatpush2.msra.mxu0 %v242_v55  ;;  %v598_v54 = vld [vmem:[%s15161_s1 + $0x11f0] sm:$0xff]  ;;  %v4517_v55 = vld [vmem:[%s15160_s0 + $0x20] sm:$0x3f] }
  0xfd   :  { %1323 = vmatpush2.msra.mxu1 %v394_v56  ;;  %1265 = vmatprep.subr.mxu0 %v239_v57  ;;  %v443_v56 = vld [vmem:[%s15161_s1 + $0xd18] sm:$0xff] }
  0xfe   :  { %1324 = vmatprep.subr.mxu1 %v391_v58  ;;  %1266 = vmatpush2.msra.mxu0 %v238_v59  ;;  %v595_v57 = vld [vmem:[%s15161_s1 + $0x11d8] sm:$0xff]  ;;  %v442_v58 = vld [vmem:[%s15161_s1 + $0xd10] sm:$0xff] }
  0xff   :  { %1325 = vmatpush2.msra.mxu1 %v390_v60  ;;  %1267 = vmatprep.subr.mxu0 %v235_v61  ;;  %v594_v59 = vld [vmem:[%s15161_s1 + $0x11d0] sm:$0xff]  ;;  %v439_v60 = vld [vmem:[%s15161_s1 + $0xcf8] sm:$0xff] }
 0x100   :  { %1326 = vmatprep.subr.mxu1 %v387_v62  ;;  %1268 = vmatpush2.msra.mxu0 %v234_v63  ;;  %v591_v61 = vld [vmem:[%s15161_s1 + $0x11b8] sm:$0xff]  ;;  %v438_v62 = vld [vmem:[%s15161_s1 + $0xcf0] sm:$0xff] }
 0x101   :  { %1327 = vmatpush2.msra.mxu1 %v386_v0  ;;  %1269 = vmatprep.subr.mxu0 %v231_v1  ;;  %v590_v63 = vld [vmem:[%s15161_s1 + $0x11b0] sm:$0xff]  ;;  %v435_v0 = vld [vmem:[%s15161_s1 + $0xcd8] sm:$0xff] }
 0x102   :  { %1328 = vmatprep.subr.mxu1 %v383_v2  ;;  %1270 = vmatpush2.msra.mxu0 %v230_v3  ;;  %v587_v1 = vld [vmem:[%s15161_s1 + $0x1198] sm:$0xff]  ;;  %v434_v2 = vld [vmem:[%s15161_s1 + $0xcd0] sm:$0xff] }
 0x103   :  { %1329 = vmatpush2.msra.mxu1 %v382_v4  ;;  %1271 = vmatprep.subr.mxu0 %v227_v5  ;;  %v782_v13 = vpop.f32.mrf.mxu0  ;;  %v586_v3 = vld [vmem:[%s15161_s1 + $0x1190] sm:$0xff]  ;;  %v431_v4 = vld [vmem:[%s15161_s1 + $0xcb8] sm:$0xff] }
 0x104   :  { %1330 = vmatprep.subr.mxu1 %v379_v6  ;;  %v853_v14 = vpop.f32.mrf.mxu1  ;;  %1272 = vmatpush2.msra.mxu0 %v226_v7  ;;  %v583_v5 = vld [vmem:[%s15161_s1 + $0x1178] sm:$0xff]  ;;  %v430_v6 = vld [vmem:[%s15161_s1 + $0xcb0] sm:$0xff] }
 0x105   :  { %1331 = vmatpush2.msra.mxu1 %v378_v8  ;;  %v8119_v17 = vadd.f32 %v853_v14, %v782_v13  ;;  %1273 = vmatprep.subr.mxu0 %v223_v9  ;;  %v784_v19 = vpop.f32.mrf.mxu0  ;;  %v582_v7 = vld [vmem:[%s15161_s1 + $0x1170] sm:$0xff]  ;;  %v427_v8 = vld [vmem:[%s15161_s1 + $0xc98] sm:$0xff] }
 0x106   :  { %1332 = vmatprep.subr.mxu1 %v375_v10  ;;  %v855_v20 = vpop.f32.mrf.mxu1  ;;  %1274 = vmatpush2.msra.mxu0 %v222_v11  ;;  %v579_v9 = vld [vmem:[%s15161_s1 + $0x1158] sm:$0xff]  ;;  %v426_v10 = vld [vmem:[%s15161_s1 + $0xc90] sm:$0xff] }
 0x107   :  { %1333 = vmatpush2.msra.mxu1 %v374_v12  ;;  %v8127_v22 = vadd.f32 %v855_v20, %v784_v19  ;;  %1275 = vmatprep.subr.mxu0 %v219_v15  ;;  %v578_v11 = vld [vmem:[%s15161_s1 + $0x1150] sm:$0xff]  ;;  %v423_v12 = vld [vmem:[%s15161_s1 + $0xc78] sm:$0xff] }
 0x108   :  { %1334 = vmatprep.subr.mxu1 %v371_v16  ;;  %1276 = vmatpush2.msra.mxu0 %v218_v18  ;;  %v575_v13 = vld [vmem:[%s15161_s1 + $0x1138] sm:$0xff]  ;;  %v422_v14 = vld [vmem:[%s15161_s1 + $0xc70] sm:$0xff] }
 0x109   :  { %1277 = vmatprep.mubr.f32.mxu0 %v4514_v25  ;;  %1335 = vmatpush2.msra.mxu1 %v370_v21  ;;  %v574_v15 = vld [vmem:[%s15161_s1 + $0x1130] sm:$0xff]  ;;  %v419_v16 = vld [vmem:[%s15161_s1 + $0xc58] sm:$0xff] }
 0x10a   :  { %1278 = vmatmul.mubr.f32.vlgmr.msra.gmra.mxu0 %v4515_v28  ;;  %1336 = vmatprep.subr.mxu1 %v367_v23  ;;  %v571_v18 = vld [vmem:[%s15161_s1 + $0x1118] sm:$0xff]  ;;  %v418_v19 = vld [vmem:[%s15161_s1 + $0xc50] sm:$0xff] }
 0x10b   :  { %1355 = vmatprep.subr.mxu0 %v471_v24  ;;  %1337 = vmatpush2.msra.mxu1 %v366_v26  ;;  %v570_v20 = vld [vmem:[%s15161_s1 + $0x1110] sm:$0xff]  ;;  %v415_v21 = vld [vmem:[%s15161_s1 + $0xc38] sm:$0xff] }
 0x10c   :  { %1356 = vmatpush1.msra.mxu0 %v470_v27  ;;  %1338 = vmatprep.subr.mxu1 %v363_v29  ;;  %v567_v23 = vld [vmem:[%s15161_s1 + $0x10f8] sm:$0xff]  ;;  %v414_v24 = vld [vmem:[%s15161_s1 + $0xc30] sm:$0xff] }
 0x10d   :  { %1357 = vmatprep.subr.mxu0 %v467_v30  ;;  %1339 = vmatpush2.msra.mxu1 %v362_v31  ;;  %v566_v25 = vld [vmem:[%s15161_s1 + $0x10f0] sm:$0xff]  ;;  %v411_v26 = vld [vmem:[%s15161_s1 + $0xc18] sm:$0xff] }
 0x10e   :  { %1358 = vmatpush1.msra.mxu0 %v466_v32  ;;  %1340 = vmatprep.subr.mxu1 %v359_v33  ;;  %v563_v27 = vld [vmem:[%s15161_s1 + $0x10d8] sm:$0xff]  ;;  %v410_v28 = vld [vmem:[%s15161_s1 + $0xc10] sm:$0xff] }
 0x10f   :  { %1359 = vmatprep.subr.mxu0 %v463_v34  ;;  %1341 = vmatpush2.msra.mxu1 %v358_v35  ;;  %v562_v29 = vld [vmem:[%s15161_s1 + $0x10d0] sm:$0xff]  ;;  %v535_v30 = vld [vmem:[%s15161_s1 + $0xff8] sm:$0xff] }
 0x110   :  { %1360 = vmatpush1.msra.mxu0 %v462_v36  ;;  %1342 = vmatprep.subr.mxu1 %v355_v38  ;;  %v559_v31 = vld [vmem:[%s15161_s1 + $0x10b8] sm:$0xff]  ;;  %v534_v32 = vld [vmem:[%s15161_s1 + $0xff0] sm:$0xff] }
 0x111   :  { %1361 = vmatprep.subr.mxu0 %v459_v39  ;;  %1343 = vmatpush2.msra.mxu1 %v354_v40  ;;  %v558_v33 = vld [vmem:[%s15161_s1 + $0x10b0] sm:$0xff]  ;;  %v531_v34 = vld [vmem:[%s15161_s1 + $0xfd8] sm:$0xff] }
 0x112   :  { %1362 = vmatpush1.msra.mxu0 %v458_v41  ;;  %1344 = vmatprep.subr.mxu1 %v351_v42  ;;  %v555_v35 = vld [vmem:[%s15161_s1 + $0x1098] sm:$0xff]  ;;  %v530_v36 = vld [vmem:[%s15161_s1 + $0xfd0] sm:$0xff] }
 0x113   :  { %1363 = vmatprep.subr.mxu0 %v455_v43  ;;  %1345 = vmatpush2.msra.mxu1 %v350_v44  ;;  %v554_v38 = vld [vmem:[%s15161_s1 + $0x1090] sm:$0xff]  ;;  %v527_v39 = vld [vmem:[%s15161_s1 + $0xfb8] sm:$0xff] }
 0x114   :  { %1364 = vmatpush1.msra.mxu0 %v454_v45  ;;  %1346 = vmatprep.subr.mxu1 %v347_v46  ;;  %v551_v40 = vld [vmem:[%s15161_s1 + $0x1078] sm:$0xff]  ;;  %v526_v41 = vld [vmem:[%s15161_s1 + $0xfb0] sm:$0xff] }
 0x115   :  { %1365 = vmatprep.subr.mxu0 %v451_v47  ;;  %1347 = vmatpush2.msra.mxu1 %v346_v48  ;;  %v550_v42 = vld [vmem:[%s15161_s1 + $0x1070] sm:$0xff]  ;;  %v523_v43 = vld [vmem:[%s15161_s1 + $0xf98] sm:$0xff] }
 0x116   :  { %1348 = vmatprep.mubr.f32.mxu1 %v4516_v52  ;;  %1366 = vmatpush1.msra.mxu0 %v450_v49  ;;  %v547_v44 = vld [vmem:[%s15161_s1 + $0x1058] sm:$0xff]  ;;  %v522_v45 = vld [vmem:[%s15161_s1 + $0xf90] sm:$0xff] }
 0x117   :  { %1349 = vmatmul.mubr.f32.vlgmr.msra.gmra.mxu1 %v4517_v55  ;;  %1367 = vmatprep.subr.mxu0 %v447_v50  ;;  %v546_v46 = vld [vmem:[%s15161_s1 + $0x1050] sm:$0xff]  ;;  %v519_v47 = vld [vmem:[%s15161_s1 + $0xf78] sm:$0xff] }
 0x118   :  { %1426 = vmatprep.subr.mxu1 %v599_v51  ;;  %1368 = vmatpush1.msra.mxu0 %v446_v53  ;;  %v543_v48 = vld [vmem:[%s15161_s1 + $0x1038] sm:$0xff]  ;;  %v518_v49 = vld [vmem:[%s15161_s1 + $0xf70] sm:$0xff] }
 0x119   :  { %1427 = vmatpush1.msra.mxu1 %v598_v54  ;;  %1369 = vmatprep.subr.mxu0 %v443_v56  ;;  %v542_v50 = vld [vmem:[%s15161_s1 + $0x1030] sm:$0xff]  ;;  %v515_v51 = vld [vmem:[%s15161_s1 + $0xf58] sm:$0xff] }
 0x11a   :  { %1428 = vmatprep.subr.mxu1 %v595_v57  ;;  %1370 = vmatpush1.msra.mxu0 %v442_v58  ;;  %v539_v52 = vld [vmem:[%s15161_s1 + $0x1018] sm:$0xff]  ;;  %v514_v53 = vld [vmem:[%s15161_s1 + $0xf50] sm:$0xff] }
 0x11b   :  { %1429 = vmatpush1.msra.mxu1 %v594_v59  ;;  %1371 = vmatprep.subr.mxu0 %v439_v60  ;;  %v538_v54 = vld [vmem:[%s15161_s1 + $0x1010] sm:$0xff]  ;;  %v511_v55 = vld [vmem:[%s15161_s1 + $0xf38] sm:$0xff] }
 0x11c   :  { %1430 = vmatprep.subr.mxu1 %v591_v61  ;;  %1372 = vmatpush1.msra.mxu0 %v438_v62  ;;  %v663_v56 = vld [vmem:[%s15161_s1 + $0x13f8] sm:$0xff]  ;;  %v510_v57 = vld [vmem:[%s15161_s1 + $0xf30] sm:$0xff] }
 0x11d   :  { %1431 = vmatpush1.msra.mxu1 %v590_v63  ;;  %1373 = vmatprep.subr.mxu0 %v435_v0  ;;  %v662_v58 = vld [vmem:[%s15161_s1 + $0x13f0] sm:$0xff]  ;;  %v507_v59 = vld [vmem:[%s15161_s1 + $0xf18] sm:$0xff] }
 0x11e   :  { %1432 = vmatprep.subr.mxu1 %v587_v1  ;;  %1374 = vmatpush1.msra.mxu0 %v434_v2  ;;  %v659_v60 = vld [vmem:[%s15161_s1 + $0x13d8] sm:$0xff]  ;;  %v506_v61 = vld [vmem:[%s15161_s1 + $0xf10] sm:$0xff] }
 0x11f   :  { %1433 = vmatpush1.msra.mxu1 %v586_v3  ;;  %1375 = vmatprep.subr.mxu0 %v431_v4  ;;  %v658_v62 = vld [vmem:[%s15161_s1 + $0x13d0] sm:$0xff]  ;;  %v503_v63 = vld [vmem:[%s15161_s1 + $0xef8] sm:$0xff] }
 0x120   :  { %1434 = vmatprep.subr.mxu1 %v583_v5  ;;  %1376 = vmatpush1.msra.mxu0 %v430_v6  ;;  %v655_v0 = vld [vmem:[%s15161_s1 + $0x13b8] sm:$0xff]  ;;  %v502_v1 = vld [vmem:[%s15161_s1 + $0xef0] sm:$0xff] }
 0x121   :  { %1435 = vmatpush1.msra.mxu1 %v582_v7  ;;  %1377 = vmatprep.subr.mxu0 %v427_v8  ;;  %v654_v2 = vld [vmem:[%s15161_s1 + $0x13b0] sm:$0xff]  ;;  %v499_v3 = vld [vmem:[%s15161_s1 + $0xed8] sm:$0xff] }
 0x122   :  { %1436 = vmatprep.subr.mxu1 %v579_v9  ;;  %1378 = vmatpush1.msra.mxu0 %v426_v10  ;;  %v651_v4 = vld [vmem:[%s15161_s1 + $0x1398] sm:$0xff]  ;;  %v498_v5 = vld [vmem:[%s15161_s1 + $0xed0] sm:$0xff] }
 0x123   :  { %1437 = vmatpush1.msra.mxu1 %v578_v11  ;;  %1379 = vmatprep.subr.mxu0 %v423_v12  ;;  %v650_v6 = vld [vmem:[%s15161_s1 + $0x1390] sm:$0xff]  ;;  %v495_v7 = vld [vmem:[%s15161_s1 + $0xeb8] sm:$0xff] }
 0x124   :  { %1438 = vmatprep.subr.mxu1 %v575_v13  ;;  %1380 = vmatpush1.msra.mxu0 %v422_v14  ;;  %v647_v8 = vld [vmem:[%s15161_s1 + $0x1378] sm:$0xff]  ;;  %v494_v9 = vld [vmem:[%s15161_s1 + $0xeb0] sm:$0xff] }
 0x125   :  { %1439 = vmatpush1.msra.mxu1 %v574_v15  ;;  %1381 = vmatprep.subr.mxu0 %v419_v16  ;;  %v646_v10 = vld [vmem:[%s15161_s1 + $0x1370] sm:$0xff]  ;;  %v491_v11 = vld [vmem:[%s15161_s1 + $0xe98] sm:$0xff] }
 0x126   :  { %1440 = vmatprep.subr.mxu1 %v571_v18  ;;  %1382 = vmatpush1.msra.mxu0 %v418_v19  ;;  %v643_v12 = vld [vmem:[%s15161_s1 + $0x1358] sm:$0xff]  ;;  %v490_v13 = vld [vmem:[%s15161_s1 + $0xe90] sm:$0xff] }
 0x127   :  { %1441 = vmatpush1.msra.mxu1 %v570_v20  ;;  %1383 = vmatprep.subr.mxu0 %v415_v21  ;;  %v642_v14 = vld [vmem:[%s15161_s1 + $0x1350] sm:$0xff]  ;;  %v487_v15 = vld [vmem:[%s15161_s1 + $0xe78] sm:$0xff] }
 0x128   :  { %1442 = vmatprep.subr.mxu1 %v567_v23  ;;  %1384 = vmatpush1.msra.mxu0 %v414_v24  ;;  %v639_v16 = vld [vmem:[%s15161_s1 + $0x1338] sm:$0xff]  ;;  %v486_v18 = vld [vmem:[%s15161_s1 + $0xe70] sm:$0xff] }
 0x129   :  { %1443 = vmatpush1.msra.mxu1 %v566_v25  ;;  %1385 = vmatprep.subr.mxu0 %v411_v26  ;;  %v638_v19 = vld [vmem:[%s15161_s1 + $0x1330] sm:$0xff]  ;;  %v483_v20 = vld [vmem:[%s15161_s1 + $0xe58] sm:$0xff] }
 0x12a   :  { %1444 = vmatprep.subr.mxu1 %v563_v27  ;;  %1386 = vmatpush1.msra.mxu0 %v410_v28  ;;  %v635_v21 = vld [vmem:[%s15161_s1 + $0x1318] sm:$0xff]  ;;  %v482_v23 = vld [vmem:[%s15161_s1 + $0xe50] sm:$0xff] }
 0x12b   :  { %1445 = vmatpush1.msra.mxu1 %v562_v29  ;;  %1387 = vmatprep.subr.mxu0 %v535_v30  ;;  %v634_v24 = vld [vmem:[%s15161_s1 + $0x1310] sm:$0xff]  ;;  %v479_v25 = vld [vmem:[%s15161_s1 + $0xe38] sm:$0xff] }
 0x12c   :  { %1446 = vmatprep.subr.mxu1 %v559_v31  ;;  %1388 = vmatpush2.msra.mxu0 %v534_v32  ;;  %v631_v26 = vld [vmem:[%s15161_s1 + $0x12f8] sm:$0xff]  ;;  %v478_v27 = vld [vmem:[%s15161_s1 + $0xe30] sm:$0xff] }
 0x12d   :  { %1447 = vmatpush1.msra.mxu1 %v558_v33  ;;  %1389 = vmatprep.subr.mxu0 %v531_v34  ;;  %v630_v28 = vld [vmem:[%s15161_s1 + $0x12f0] sm:$0xff]  ;;  %v475_v31 = vld [vmem:[%s15161_s1 + $0xe18] sm:$0xff] }
 0x12e   :  { %1448 = vmatprep.subr.mxu1 %v555_v35  ;;  %1390 = vmatpush2.msra.mxu0 %v530_v36  ;;  %v627_v32 = vld [vmem:[%s15161_s1 + $0x12d8] sm:$0xff]  ;;  %v474_v34 = vld [vmem:[%s15161_s1 + $0xe10] sm:$0xff] }
 0x12f   :  { %1449 = vmatpush1.msra.mxu1 %v554_v38  ;;  %1391 = vmatprep.subr.mxu0 %v527_v39  ;;  %v626_v36 = vld [vmem:[%s15161_s1 + $0x12d0] sm:$0xff] }
 0x130   :  { %1450 = vmatprep.subr.mxu1 %v551_v40  ;;  %1392 = vmatpush2.msra.mxu0 %v526_v41  ;;  %v687_v40 = vld [vmem:[%s15161_s1 + $0x14b8] sm:$0x7] }
 0x131   :  { %1451 = vmatpush1.msra.mxu1 %v550_v42  ;;  %1393 = vmatprep.subr.mxu0 %v523_v43  ;;  %v4518_v42 = vld [vmem:[%s15160_s0 + $0x38] sm:$0x3f]  ;;  %v686_v43 = vld [vmem:[%s15161_s1 + $0x14b0] sm:$0x7] }
 0x132   :  { %1452 = vmatprep.subr.mxu1 %v547_v44  ;;  %1394 = vmatpush2.msra.mxu0 %v522_v45  ;;  %v4519_v45 = vld [vmem:[%s15160_s0 + $0x30] sm:$0x3f] }
 0x133   :  { %1453 = vmatpush1.msra.mxu1 %v546_v46  ;;  %1395 = vmatprep.subr.mxu0 %v519_v47  ;;  %v619_v46 = vld [vmem:[%s15161_s1 + $0x1298] sm:$0xff] }
 0x134   :  { %1454 = vmatprep.subr.mxu1 %v543_v48  ;;  %1396 = vmatpush2.msra.mxu0 %v518_v49  ;;  %v683_v47 = vld [vmem:[%s15161_s1 + $0x1498] sm:$0xff]  ;;  %v618_v48 = vld [vmem:[%s15161_s1 + $0x1290] sm:$0xff] }
 0x135   :  { %1455 = vmatpush1.msra.mxu1 %v542_v50  ;;  %1397 = vmatprep.subr.mxu0 %v515_v51  ;;  %v682_v49 = vld [vmem:[%s15161_s1 + $0x1490] sm:$0xff]  ;;  %v615_v50 = vld [vmem:[%s15161_s1 + $0x1278] sm:$0xff] }
 0x136   :  { %1456 = vmatprep.subr.mxu1 %v539_v52  ;;  %1398 = vmatpush2.msra.mxu0 %v514_v53  ;;  %v679_v51 = vld [vmem:[%s15161_s1 + $0x1478] sm:$0xff]  ;;  %v614_v52 = vld [vmem:[%s15161_s1 + $0x1270] sm:$0xff] }
 0x137   :  { %1457 = vmatpush1.msra.mxu1 %v538_v54  ;;  %1399 = vmatprep.subr.mxu0 %v511_v55  ;;  %v678_v53 = vld [vmem:[%s15161_s1 + $0x1470] sm:$0xff]  ;;  %v611_v54 = vld [vmem:[%s15161_s1 + $0x1258] sm:$0xff] }
 0x138   :  { %1458 = vmatprep.subr.mxu1 %v663_v56  ;;  %1400 = vmatpush2.msra.mxu0 %v510_v57  ;;  %v675_v55 = vld [vmem:[%s15161_s1 + $0x1458] sm:$0xff]  ;;  %v610_v56 = vld [vmem:[%s15161_s1 + $0x1250] sm:$0xff] }
 0x139   :  { %1459 = vmatpush2.msra.mxu1 %v662_v58  ;;  %1401 = vmatprep.subr.mxu0 %v507_v59  ;;  %v674_v57 = vld [vmem:[%s15161_s1 + $0x1450] sm:$0xff]  ;;  %v607_v58 = vld [vmem:[%s15161_s1 + $0x1238] sm:$0xff] }
 0x13a   :  { %1460 = vmatprep.subr.mxu1 %v659_v60  ;;  %1402 = vmatpush2.msra.mxu0 %v506_v61  ;;  %v671_v59 = vld [vmem:[%s15161_s1 + $0x1438] sm:$0xff]  ;;  %v606_v60 = vld [vmem:[%s15161_s1 + $0x1230] sm:$0xff] }
 0x13b   :  { %1461 = vmatpush2.msra.mxu1 %v658_v62  ;;  %1403 = vmatprep.subr.mxu0 %v503_v63  ;;  %v670_v61 = vld [vmem:[%s15161_s1 + $0x1430] sm:$0xff]  ;;  %v603_v62 = vld [vmem:[%s15161_s1 + $0x1218] sm:$0xff] }
 0x13c   :  { %1462 = vmatprep.subr.mxu1 %v655_v0  ;;  %1404 = vmatpush2.msra.mxu0 %v502_v1  ;;  %v667_v63 = vld [vmem:[%s15161_s1 + $0x1418] sm:$0xff]  ;;  %v602_v0 = vld [vmem:[%s15161_s1 + $0x1210] sm:$0xff] }
 0x13d   :  { %1463 = vmatpush2.msra.mxu1 %v654_v2  ;;  %1405 = vmatprep.subr.mxu0 %v499_v3  ;;  %v666_v1 = vld [vmem:[%s15161_s1 + $0x1410] sm:$0xff]  ;;  %v4520_v2 = vld [vmem:[%s15160_s0 + $0x48] sm:$0x3f]  ;;  %v4521_v3 = vld [vmem:[%s15160_s0 + $0x40] sm:$0x3f] }
 0x13e   :  { %1464 = vmatprep.subr.mxu1 %v651_v4  ;;  %1406 = vmatpush2.msra.mxu0 %v498_v5  ;;  %v4522_v4 = vld [vmem:[%s15161_s1 + $0x1e8] sm:$0xff] }
 0x13f   :  { %1465 = vmatpush2.msra.mxu1 %v650_v6  ;;  %1407 = vmatprep.subr.mxu0 %v495_v7  ;;  %v4523_v5 = vld [vmem:[%s15161_s1 + $0x5e8] sm:$0xff]  ;;  %v4524_v6 = vld [vmem:[%s15160_s0 + $0x50] sm:$0x3f]  ;;  %v4525_v7 = vld [vmem:[%s15161_s1 + $0x1e0] sm:$0xff] }
 0x140   :  { %1466 = vmatprep.subr.mxu1 %v647_v8  ;;  %1408 = vmatpush2.msra.mxu0 %v494_v9  ;;  %v4526_v8 = vld [vmem:[%s15161_s1 + $0x5e0] sm:$0xff]  ;;  %v4527_v9 = vld [vmem:[%s15161_s1 + $0x1c8] sm:$0xff] }
 0x141   :  { %1467 = vmatpush2.msra.mxu1 %v646_v10  ;;  %1409 = vmatprep.subr.mxu0 %v491_v11  ;;  %v4528_v10 = vld [vmem:[%s15161_s1 + $0x5c8] sm:$0xff]  ;;  %v4529_v11 = vld [vmem:[%s15161_s1 + $0x1c0] sm:$0xff] }
 0x142   :  { %1468 = vmatprep.subr.mxu1 %v643_v12  ;;  %1410 = vmatpush2.msra.mxu0 %v490_v13  ;;  %v4530_v12 = vld [vmem:[%s15161_s1 + $0x5c0] sm:$0xff]  ;;  %v4531_v13 = vld [vmem:[%s15161_s1 + $0x1a8] sm:$0xff] }
 0x143   :  { %1469 = vmatpush2.msra.mxu1 %v642_v14  ;;  %1411 = vmatprep.subr.mxu0 %v487_v15  ;;  %v4532_v14 = vld [vmem:[%s15161_s1 + $0x5a8] sm:$0xff]  ;;  %v4533_v15 = vld [vmem:[%s15161_s1 + $0x1a0] sm:$0xff] }
 0x144   :  { %1470 = vmatprep.subr.mxu1 %v639_v16  ;;  %1412 = vmatpush2.msra.mxu0 %v486_v18  ;;  %v4534_v16 = vld [vmem:[%s15161_s1 + $0x5a0] sm:$0xff]  ;;  %v4535_v18 = vld [vmem:[%s15161_s1 + $0x188] sm:$0xff] }
 0x145   :  { %1471 = vmatpush2.msra.mxu1 %v638_v19  ;;  %1413 = vmatprep.subr.mxu0 %v483_v20  ;;  %v924_v29 = vpop.f32.mrf.mxu0  ;;  %v4536_v19 = vld [vmem:[%s15161_s1 + $0x588] sm:$0xff]  ;;  %v4537_v20 = vld [vmem:[%s15161_s1 + $0x180] sm:$0xff] }
 0x146   :  { %1472 = vmatprep.subr.mxu1 %v635_v21  ;;  %v995_v30 = vpop.f32.mrf.mxu1  ;;  %1414 = vmatpush2.msra.mxu0 %v482_v23  ;;  %v925_v33 = vadd.f32 %v924_v29, %v8119_v17  ;;  %v623_v17 = vld [vmem:[%s15161_s1 + $0x12b8] sm:$0xff]  ;;  %v4538_v21 = vld [vmem:[%s15161_s1 + $0x580] sm:$0xff]  ;;  %v4539_v23 = vld [vmem:[%s15161_s1 + $0x168] sm:$0xff] }
 0x147   :  { %1473 = vmatpush2.msra.mxu1 %v634_v24  ;;  %1415 = vmatprep.subr.mxu0 %v479_v25  ;;  %v926_v35 = vpop.f32.mrf.mxu0  ;;  %v4540_v24 = vld [vmem:[%s15161_s1 + $0x568] sm:$0xff]  ;;  %v4541_v25 = vld [vmem:[%s15161_s1 + $0x160] sm:$0xff] }
 0x148   :  { %1474 = vmatprep.subr.mxu1 %v631_v26  ;;  %1416 = vmatpush2.msra.mxu0 %v478_v27  ;;  %v8526_v38 = vadd.f32 %v995_v30, %v925_v33  ;;  %v927_v39 = vadd.f32 %v926_v35, %v8127_v22  ;;  %v997_v41 = vpop.f32.mrf.mxu1  ;;  %v622_v22 = vld [vmem:[%s15161_s1 + $0x12b0] sm:$0xff]  ;;  %v4542_v26 = vld [vmem:[%s15161_s1 + $0x560] sm:$0xff]  ;;  %v4543_v27 = vld [vmem:[%s15161_s1 + $0x148] sm:$0xff] }
 0x149   :  { %1475 = vmatpush2.msra.mxu1 %v630_v28  ;;  %1417 = vmatprep.subr.mxu0 %v475_v31  ;;  %v4544_v28 = vld [vmem:[%s15161_s1 + $0x548] sm:$0xff]  ;;  %v4545_v29 = vld [vmem:[%s15161_s1 + $0x140] sm:$0xff] }
 0x14a   :  { %1476 = vmatprep.subr.mxu1 %v627_v32  ;;  %1418 = vmatpush2.msra.mxu0 %v474_v34  ;;  %v8544_v44 = vadd.f32 %v997_v41, %v927_v39  ;;  %v4546_v30 = vld [vmem:[%s15161_s1 + $0x540] sm:$0xff]  ;;  %v4547_v31 = vld [vmem:[%s15161_s1 + $0x128] sm:$0xff] }
 0x14b   :  { %1419 = vmatprep.mubr.f32.mxu0 %v4518_v42  ;;  %1477 = vmatpush2.msra.mxu1 %v626_v36  ;;  %v4548_v32 = vld [vmem:[%s15161_s1 + $0x528] sm:$0xff]  ;;  %v4549_v33 = vld [vmem:[%s15161_s1 + $0x120] sm:$0xff] }
 0x14c   :  { %1420 = vmatmul.mubr.f32.vlgmr.msra.gmra.mxu0 %v4519_v45  ;;  %1478 = vmatprep.subr.mxu1 %v623_v17  ;;  %v4550_v34 = vld [vmem:[%s15161_s1 + $0x520] sm:$0xff]  ;;  %v4551_v35 = vld [vmem:[%s15161_s1 + $0x108] sm:$0xff] }
 0x14d   :  { %4420 = vmatprep.subr.msk.mxu0 %vm703_vm0, %v687_v40  ;;  %1479 = vmatpush2.msra.mxu1 %v622_v22  ;;  %v4552_v36 = vld [vmem:[%s15161_s1 + $0x508] sm:$0xff]  ;;  %v4553_v39 = vld [vmem:[%s15161_s1 + $0x100] sm:$0xff] }
 0x14e   :  { %4421 = vmatpush1.msk.msra.mxu0 %vm703_vm0, %v686_v43  ;;  %1480 = vmatprep.subr.mxu1 %v619_v46  ;;  %v4554_v17 = vld [vmem:[%s15161_s1 + $0x500] sm:$0xff]  ;;  %v4555_v40 = vld [vmem:[%s15161_s1 + $0xe8] sm:$0xff] }
 0x14f   :  { %1519 = vmatprep.subr.mxu0 %v683_v47  ;;  %1481 = vmatpush2.msra.mxu1 %v618_v48  ;;  %v4556_v41 = vld [vmem:[%s15161_s1 + $0x4e8] sm:$0xff]  ;;  %v4557_v42 = vld [vmem:[%s15161_s1 + $0xe0] sm:$0xff] }
 0x150   :  { %1520 = vmatpush1.msra.mxu0 %v682_v49  ;;  %1482 = vmatprep.subr.mxu1 %v615_v50  ;;  %v4558_v22 = vld [vmem:[%s15161_s1 + $0x4e0] sm:$0xff]  ;;  %v4559_v43 = vld [vmem:[%s15161_s1 + $0xc8] sm:$0xff] }
 0x151   :  { %1521 = vmatprep.subr.mxu0 %v679_v51  ;;  %1483 = vmatpush2.msra.mxu1 %v614_v52  ;;  %v4560_v45 = vld [vmem:[%s15161_s1 + $0x4c8] sm:$0xff]  ;;  %v4561_v46 = vld [vmem:[%s15161_s1 + $0xc0] sm:$0xff] }
 0x152   :  { %1522 = vmatpush1.msra.mxu0 %v678_v53  ;;  %1484 = vmatprep.subr.mxu1 %v611_v54  ;;  %v4562_v47 = vld [vmem:[%s15161_s1 + $0x4c0] sm:$0xff]  ;;  %v4563_v48 = vld [vmem:[%s15161_s1 + $0xa8] sm:$0xff] }
 0x153   :  { %1523 = vmatprep.subr.mxu0 %v675_v55  ;;  %1485 = vmatpush2.msra.mxu1 %v610_v56  ;;  %v4564_v49 = vld [vmem:[%s15161_s1 + $0x4a8] sm:$0xff]  ;;  %v4565_v50 = vld [vmem:[%s15161_s1 + $0xa0] sm:$0xff] }
 0x154   :  { %1524 = vmatpush1.msra.mxu0 %v674_v57  ;;  %1486 = vmatprep.subr.mxu1 %v607_v58  ;;  %v4566_v51 = vld [vmem:[%s15161_s1 + $0x4a0] sm:$0xff]  ;;  %v4567_v52 = vld [vmem:[%s15161_s1 + $0x88] sm:$0xff] }
 0x155   :  { %1525 = vmatprep.subr.mxu0 %v671_v59  ;;  %1487 = vmatpush2.msra.mxu1 %v606_v60  ;;  %v4568_v53 = vld [vmem:[%s15161_s1 + $0x488] sm:$0xff]  ;;  %v4569_v54 = vld [vmem:[%s15161_s1 + $0x80] sm:$0xff] }
 0x156   :  { %1526 = vmatpush1.msra.mxu0 %v670_v61  ;;  %1488 = vmatprep.subr.mxu1 %v603_v62  ;;  %v4570_v55 = vld [vmem:[%s15161_s1 + $0x480] sm:$0xff]  ;;  %v4571_v56 = vld [vmem:[%s15161_s1 + $0x68] sm:$0xff] }
 0x157   :  { %1527 = vmatprep.subr.mxu0 %v667_v63  ;;  %1489 = vmatpush2.msra.mxu1 %v602_v0  ;;  %v4572_v57 = vld [vmem:[%s15161_s1 + $0x468] sm:$0xff]  ;;  %v4573_v58 = vld [vmem:[%s15161_s1 + $0x60] sm:$0xff] }
 0x158   :  { %1490 = vmatprep.mubr.f32.mxu1 %v4520_v2  ;;  %1528 = vmatpush1.msra.mxu0 %v666_v1  ;;  %v4574_v59 = vld [vmem:[%s15161_s1 + $0x460] sm:$0xff]  ;;  %v4575_v60 = vld [vmem:[%s15161_s1 + $0x48] sm:$0xff] }
 0x159   :  { %1491 = vmatmul.mubr.f32.vlgmr.msra.gmra.mxu1 %v4521_v3  ;;  %1561 = vmatprep.mubr.f32.mxu0 %v6515_v37  ;;  %v4576_v61 = vld [vmem:[%s15161_s1 + $0x448] sm:$0xff]  ;;  %v4577_v62 = vld [vmem:[%s15161_s1 + $0x40] sm:$0xff] }
 0x15a   :  { %1583 = vmatprep.subr.mxu0 %v4522_v4  ;;  %1654 = vmatprep.subr.mxu1 %v4523_v5  ;;  %v4578_v63 = vld [vmem:[%s15161_s1 + $0x440] sm:$0xff]  ;;  %v4579_v0 = vld [vmem:[%s15161_s1 + $0x28] sm:$0xff] }
 0x15b   :  { %4422 = vmatmul.mubr.msk.f32.vlgmr.msra.gmra.mxu0 %vm699_vm1, %v4524_v6  ;;  %1655 = vmatpush1.msra.mxu1 %v4526_v8  ;;  %v4580_v1 = vld [vmem:[%s15161_s1 + $0x428] sm:$0xff]  ;;  %v4581_v2 = vld [vmem:[%s15161_s1 + $0x20] sm:$0xff] }
 0x15c   :  { %1584 = vmatpush1.msra.mxu0 %v4525_v7  ;;  %1656 = vmatprep.subr.mxu1 %v4528_v10  ;;  %v4582_v3 = vld [vmem:[%s15161_s1 + $0x420] sm:$0xff]  ;;  %v4583_v4 = vld [vmem:[%s15161_s1 + $0x8] sm:$0xff] }
 0x15d   :  { %1585 = vmatprep.subr.mxu0 %v4527_v9  ;;  %1657 = vmatpush1.msra.mxu1 %v4530_v12  ;;  %v4584_v5 = vld [vmem:[%s15161_s1 + $0x408] sm:$0xff]  ;;  %v4585_v6 = vld [vmem:[%s15161_s1] sm:$0xff] }
 0x15e   :  { %1586 = vmatpush1.msra.mxu0 %v4529_v11  ;;  %1658 = vmatprep.subr.mxu1 %v4532_v14  ;;  %v4586_v7 = vld [vmem:[%s15161_s1 + $0x400] sm:$0xff]  ;;  %v4587_v8 = vld [vmem:[%s15161_s1 + $0x3e8] sm:$0xff] }
 0x15f   :  { %1587 = vmatprep.subr.mxu0 %v4531_v13  ;;  %1659 = vmatpush1.msra.mxu1 %v4534_v16  ;;  %v4588_v9 = vld [vmem:[%s15161_s1 + $0x7e8] sm:$0xff]  ;;  %v4589_v10 = vld [vmem:[%s15161_s1 + $0x3e0] sm:$0xff] }
 0x160   :  { %1588 = vmatpush1.msra.mxu0 %v4533_v15  ;;  %1660 = vmatprep.subr.mxu1 %v4536_v19  ;;  %v4590_v11 = vld [vmem:[%s15161_s1 + $0x7e0] sm:$0xff]  ;;  %v4591_v12 = vld [vmem:[%s15161_s1 + $0x3c8] sm:$0xff] }
 0x161   :  { %1589 = vmatprep.subr.mxu0 %v4535_v18  ;;  %1661 = vmatpush1.msra.mxu1 %v4538_v21  ;;  %v4592_v13 = vld [vmem:[%s15161_s1 + $0x7c8] sm:$0xff]  ;;  %v4593_v14 = vld [vmem:[%s15161_s1 + $0x3c0] sm:$0xff] }
 0x162   :  { %1590 = vmatpush1.msra.mxu0 %v4537_v20  ;;  %1662 = vmatprep.subr.mxu1 %v4540_v24  ;;  %v4594_v15 = vld [vmem:[%s15161_s1 + $0x7c0] sm:$0xff]  ;;  %v4595_v16 = vld [vmem:[%s15161_s1 + $0x3a8] sm:$0xff] }
 0x163   :  { %1591 = vmatprep.subr.mxu0 %v4539_v23  ;;  %1663 = vmatpush1.msra.mxu1 %v4542_v26  ;;  %v4596_v18 = vld [vmem:[%s15161_s1 + $0x7a8] sm:$0xff]  ;;  %v4597_v19 = vld [vmem:[%s15161_s1 + $0x3a0] sm:$0xff] }
 0x164   :  { %1592 = vmatpush1.msra.mxu0 %v4541_v25  ;;  %1664 = vmatprep.subr.mxu1 %v4544_v28  ;;  %v4598_v20 = vld [vmem:[%s15161_s1 + $0x7a0] sm:$0xff]  ;;  %v4599_v21 = vld [vmem:[%s15161_s1 + $0x388] sm:$0xff] }
 0x165   :  { %1593 = vmatprep.subr.mxu0 %v4543_v27  ;;  %1665 = vmatpush1.msra.mxu1 %v4546_v30  ;;  %v4600_v23 = vld [vmem:[%s15161_s1 + $0x788] sm:$0xff]  ;;  %v4601_v24 = vld [vmem:[%s15161_s1 + $0x380] sm:$0xff] }
 0x166   :  { %1594 = vmatpush1.msra.mxu0 %v4545_v29  ;;  %1666 = vmatprep.subr.mxu1 %v4548_v32  ;;  %v4602_v25 = vld [vmem:[%s15161_s1 + $0x780] sm:$0xff]  ;;  %v4603_v26 = vld [vmem:[%s15161_s1 + $0x368] sm:$0xff] }
 0x167   :  { %1595 = vmatprep.subr.mxu0 %v4547_v31  ;;  %1667 = vmatpush1.msra.mxu1 %v4550_v34  ;;  %v4604_v27 = vld [vmem:[%s15161_s1 + $0x768] sm:$0xff]  ;;  %v4605_v28 = vld [vmem:[%s15161_s1 + $0x360] sm:$0xff] }
 0x168   :  { %1596 = vmatpush1.msra.mxu0 %v4549_v33  ;;  %1668 = vmatprep.subr.mxu1 %v4552_v36  ;;  %v4606_v29 = vld [vmem:[%s15161_s1 + $0x760] sm:$0xff]  ;;  %v4607_v30 = vld [vmem:[%s15161_s1 + $0x348] sm:$0xff]  ;;  %v1137_v36 = vpop.f32.mrf.mxu1 }
 0x169   :  { %1597 = vmatprep.subr.mxu0 %v4551_v35  ;;  %1669 = vmatpush1.msra.mxu1 %v4554_v17  ;;  %v4608_v31 = vld [vmem:[%s15161_s1 + $0x748] sm:$0xff]  ;;  %v4609_v32 = vld [vmem:[%s15161_s1 + $0x340] sm:$0xff] }
 0x16a   :  { %1598 = vmatpush1.msra.mxu0 %v4553_v39  ;;  %1670 = vmatprep.subr.mxu1 %v4556_v41  ;;  %v4610_v33 = vld [vmem:[%s15161_s1 + $0x740] sm:$0xff]  ;;  %v4611_v34 = vld [vmem:[%s15161_s1 + $0x328] sm:$0xff] }
 0x16b   :  { %1599 = vmatprep.subr.mxu0 %v4555_v40  ;;  %1671 = vmatpush1.msra.mxu1 %v4558_v22  ;;  %v4612_v35 = vld [vmem:[%s15161_s1 + $0x728] sm:$0xff]  ;;  %v4613_v39 = vld [vmem:[%s15161_s1 + $0x320] sm:$0xff] }
 0x16c   :  { %1600 = vmatpush1.msra.mxu0 %v4557_v42  ;;  %1672 = vmatprep.subr.mxu1 %v4560_v45  ;;  %v4614_v17 = vld [vmem:[%s15161_s1 + $0x720] sm:$0xff]  ;;  %v4615_v41 = vld [vmem:[%s15161_s1 + $0x308] sm:$0xff] }
 0x16d   :  { %1601 = vmatprep.subr.mxu0 %v4559_v43  ;;  %1673 = vmatpush1.msra.mxu1 %v4562_v47  ;;  %v4616_v42 = vld [vmem:[%s15161_s1 + $0x708] sm:$0xff]  ;;  %v4617_v43 = vld [vmem:[%s15161_s1 + $0x300] sm:$0xff] }
 0x16e   :  { %1602 = vmatpush1.msra.mxu0 %v4561_v46  ;;  %1674 = vmatprep.subr.mxu1 %v4564_v49  ;;  %v4618_v45 = vld [vmem:[%s15161_s1 + $0x700] sm:$0xff]  ;;  %v4619_v47 = vld [vmem:[%s15161_s1 + $0x2e8] sm:$0xff] }
 0x16f   :  { %1603 = vmatprep.subr.mxu0 %v4563_v48  ;;  %1675 = vmatpush1.msra.mxu1 %v4566_v51  ;;  %v4621_v51 = vld [vmem:[%s15161_s1 + $0x2e0] sm:$0xff] }
 0x170   :  { %1604 = vmatpush1.msra.mxu0 %v4565_v50  ;;  %1676 = vmatprep.subr.mxu1 %v4568_v53  ;;  %v1139_v50 = vpop.f32.mrf.mxu1  ;;  %v4623_v53 = vld [vmem:[%s15161_s1 + $0x2c8] sm:$0xff] }
 0x171   :  { %1605 = vmatprep.subr.mxu0 %v4567_v52  ;;  %1677 = vmatpush1.msra.mxu1 %v4570_v55  ;;  %v4622_v52 = vld [vmem:[%s15161_s1 + $0x6e0] sm:$0xff] }
 0x172   :  { %1606 = vmatpush1.msra.mxu0 %v4569_v54  ;;  %1678 = vmatprep.subr.mxu1 %v4572_v57  ;;  %v4625_v55 = vld [vmem:[%s15161_s1 + $0x2c0] sm:$0xff]  ;;  %v4627_v57 = vld [vmem:[%s15161_s1 + $0x2a8] sm:$0xff] }
 0x173   :  { %1607 = vmatprep.subr.mxu0 %v4571_v56  ;;  %1679 = vmatpush1.msra.mxu1 %v4574_v59  ;;  %v4626_v56 = vld [vmem:[%s15161_s1 + $0x6c0] sm:$0xff] }
 0x174   :  { %1608 = vmatpush1.msra.mxu0 %v4573_v58  ;;  %1680 = vmatprep.subr.mxu1 %v4576_v61  ;;  %v4628_v58 = vld [vmem:[%s15161_s1 + $0x6a8] sm:$0xff]  ;;  %v4629_v59 = vld [vmem:[%s15161_s1 + $0x2a0] sm:$0xff] }
 0x175   :  { %1609 = vmatprep.subr.mxu0 %v4575_v60  ;;  %1681 = vmatpush1.msra.mxu1 %v4578_v63  ;;  %v4630_v60 = vld [vmem:[%s15161_s1 + $0x6a0] sm:$0xff]  ;;  %v4631_v61 = vld [vmem:[%s15161_s1 + $0x288] sm:$0xff] }
 0x176   :  { %1610 = vmatpush1.msra.mxu0 %v4577_v62  ;;  %1682 = vmatprep.subr.mxu1 %v4580_v1  ;;  %v4632_v62 = vld [vmem:[%s15161_s1 + $0x688] sm:$0xff]  ;;  %v4633_v63 = vld [vmem:[%s15161_s1 + $0x280] sm:$0xff] }
 0x177   :  { %1611 = vmatprep.subr.mxu0 %v4579_v0  ;;  %1683 = vmatpush1.msra.mxu1 %v4582_v3  ;;  %v4634_v0 = vld [vmem:[%s15161_s1 + $0x680] sm:$0xff]  ;;  %v4635_v1 = vld [vmem:[%s15161_s1 + $0x268] sm:$0xff] }
 0x178   :  { %1612 = vmatpush1.msra.mxu0 %v4581_v2  ;;  %1684 = vmatprep.subr.mxu1 %v4584_v5  ;;  %v4636_v2 = vld [vmem:[%s15161_s1 + $0x668] sm:$0xff]  ;;  %v4637_v3 = vld [vmem:[%s15161_s1 + $0x260] sm:$0xff] }
 0x179   :  { %1613 = vmatprep.subr.mxu0 %v4583_v4  ;;  %1685 = vmatpush1.msra.mxu1 %v4586_v7  ;;  %v4638_v4 = vld [vmem:[%s15161_s1 + $0x660] sm:$0xff]  ;;  %v4639_v5 = vld [vmem:[%s15161_s1 + $0x248] sm:$0xff] }
 0x17a   :  { %1614 = vmatpush1.msra.mxu0 %v4585_v6  ;;  %1686 = vmatprep.subr.mxu1 %v4588_v9  ;;  %v4640_v6 = vld [vmem:[%s15161_s1 + $0x648] sm:$0xff]  ;;  %v4641_v7 = vld [vmem:[%s15161_s1 + $0x240] sm:$0xff] }
 0x17b   :  { %1615 = vmatprep.subr.mxu0 %v4587_v8  ;;  %1687 = vmatpush2.msra.mxu1 %v4590_v11  ;;  %v4642_v8 = vld [vmem:[%s15161_s1 + $0x640] sm:$0xff]  ;;  %v4643_v9 = vld [vmem:[%s15161_s1 + $0x228] sm:$0xff] }
 0x17c   :  { %1616 = vmatpush2.msra.mxu0 %v4589_v10  ;;  %1688 = vmatprep.subr.mxu1 %v4592_v13  ;;  %v4644_v10 = vld [vmem:[%s15161_s1 + $0x628] sm:$0xff]  ;;  %v8997_v11 = vld [vmem:[%s15160_s0 + $0x60] sm:$0x3f] }
 0x17d   :  { %1617 = vmatprep.subr.mxu0 %v4591_v12  ;;  %1689 = vmatpush2.msra.mxu1 %v4594_v15  ;;  %v4645_v12 = vld [vmem:[%s15161_s1 + $0x220] sm:$0xff]  ;;  %v4647_v15 = vld [vmem:[%s15161_s1 + $0x208] sm:$0xff] }
 0x17e   :  { %1618 = vmatpush2.msra.mxu0 %v4593_v14  ;;  %1690 = vmatprep.subr.mxu1 %v4596_v18  ;;  %v4646_v13 = vld [vmem:[%s15161_s1 + $0x620] sm:$0xff]  ;;  %v9008_v14 = vld [vmem:[%s15160_s0 + $0x70] sm:$0x3f]  ;;  %v9019_v18 = vld [vmem:[%s15160_s0 + $0x58] sm:$0x3f] }
 0x17f   :  { %1619 = vmatprep.subr.mxu0 %v4595_v16  ;;  %1691 = vmatpush2.msra.mxu1 %v4598_v20  ;;  %v4648_v16 = vld [vmem:[%s15161_s1 + $0x608] sm:$0xff]  ;;  %v4649_v20 = vld [vmem:[%s15161_s1 + $0x200] sm:$0xff] }
 0x180   :  { %1620 = vmatpush2.msra.mxu0 %v4597_v19  ;;  %1692 = vmatprep.subr.mxu1 %v4600_v23  ;;  %v9024_v19 = vld [vmem:[%s15160_s0 + $0x68] sm:$0x3f] }
 0x181   :  { %1621 = vmatprep.subr.mxu0 %v4599_v21  ;;  %1693 = vmatpush2.msra.mxu1 %v4602_v25  ;;  %v4650_v21 = vld [vmem:[%s15161_s1 + $0x600] sm:$0xff]  ;;  %v4651_v23 = vld [vmem:[%s15161_s1 + $0x9e8] sm:$0xff] }
 0x182   :  { %1622 = vmatpush2.msra.mxu0 %v4601_v24  ;;  %1694 = vmatprep.subr.mxu1 %v4604_v27  ;;  %v4652_v24 = vld [vmem:[%s15161_s1 + $0xde8] sm:$0xff]  ;;  %v4653_v25 = vld [vmem:[%s15161_s1 + $0x9e0] sm:$0xff] }
 0x183   :  { %1623 = vmatprep.subr.mxu0 %v4603_v26  ;;  %1695 = vmatpush2.msra.mxu1 %v4606_v29  ;;  %v4654_v26 = vld [vmem:[%s15161_s1 + $0xde0] sm:$0xff]  ;;  %v4655_v27 = vld [vmem:[%s15161_s1 + $0x9c8] sm:$0xff] }
 0x184   :  { %1624 = vmatpush2.msra.mxu0 %v4605_v28  ;;  %1696 = vmatprep.subr.mxu1 %v4608_v31  ;;  %v4656_v28 = vld [vmem:[%s15161_s1 + $0xdc8] sm:$0xff]  ;;  %v4657_v29 = vld [vmem:[%s15161_s1 + $0x9c0] sm:$0xff] }
 0x185   :  { %1625 = vmatprep.subr.mxu0 %v4607_v30  ;;  %1697 = vmatpush2.msra.mxu1 %v4610_v33  ;;  %v4658_v30 = vld [vmem:[%s15161_s1 + $0xdc0] sm:$0xff]  ;;  %v4659_v31 = vld [vmem:[%s15161_s1 + $0x9a8] sm:$0xff] }
 0x186   :  { %1626 = vmatpush2.msra.mxu0 %v4609_v32  ;;  %1698 = vmatprep.subr.mxu1 %v4612_v35  ;;  %v4660_v32 = vld [vmem:[%s15161_s1 + $0xda8] sm:$0xff]  ;;  %v4661_v33 = vld [vmem:[%s15161_s1 + $0x9a0] sm:$0xff] }
 0x187   :  { %1627 = vmatprep.subr.mxu0 %v4611_v34  ;;  %1699 = vmatpush2.msra.mxu1 %v4614_v17  ;;  %v4662_v34 = vld [vmem:[%s15161_s1 + $0xda0] sm:$0xff]  ;;  %v4663_v35 = vld [vmem:[%s15161_s1 + $0x988] sm:$0xff] }
 0x188   :  { %1628 = vmatpush2.msra.mxu0 %v4613_v39  ;;  %v1066_v40 = vpop.f32.mrf.mxu0  ;;  %1700 = vmatprep.subr.mxu1 %v4616_v42  ;;  %v4665_v39 = vld [vmem:[%s15161_s1 + $0x980] sm:$0xff] }
 0x189   :  { %1629 = vmatprep.subr.mxu0 %v4615_v41  ;;  %v1067_v22 = vadd.f32 %v1066_v40, %v8526_v38  ;;  %1701 = vmatpush2.msra.mxu1 %v4618_v45  ;;  %v4620_v38 = vld [vmem:[%s15161_s1 + $0x6e8] sm:$0xff]  ;;  %v4666_v17 = vld [vmem:[%s15161_s1 + $0xd80] sm:$0xff] }
 0x18a   :  { %1630 = vmatpush2.msra.mxu0 %v4617_v43  ;;  %v1068_v46 = vpop.f32.mrf.mxu0  ;;  %1702 = vmatprep.subr.mxu1 %v4620_v38  ;;  %v4667_v40 = vld [vmem:[%s15161_s1 + $0x968] sm:$0xff]  ;;  %v4669_v42 = vld [vmem:[%s15161_s1 + $0x960] sm:$0xff] }
 0x18b   :  { %1631 = vmatprep.subr.mxu0 %v4619_v47  ;;  %v8917_v48 = vadd.f32 %v1137_v36, %v1067_v22  ;;  %v1069_v49 = vadd.f32 %v1068_v46, %v8544_v44  ;;  %1703 = vmatpush2.msra.mxu1 %v4622_v52  ;;  %v4624_v44 = vld [vmem:[%s15161_s1 + $0x6c8] sm:$0xff]  ;;  %v4670_v22 = vld [vmem:[%s15161_s1 + $0xd60] sm:$0xff] }
 0x18c   :  { %1632 = vmatpush2.msra.mxu0 %v4621_v51  ;;  %1704 = vmatprep.subr.mxu1 %v4624_v44  ;;  %v4664_v36 = vld [vmem:[%s15161_s1 + $0xd88] sm:$0xff]  ;;  %v4673_v46 = vld [vmem:[%s15161_s1 + $0x940] sm:$0xff] }
 0x18d   :  { %1633 = vmatprep.subr.mxu0 %v4623_v53  ;;  %v8932_v54 = vadd.f32 %v1139_v50, %v1069_v49  ;;  %1705 = vmatpush2.msra.mxu1 %v4626_v56  ;;  %v4668_v41 = vld [vmem:[%s15161_s1 + $0xd68] sm:$0xff]  ;;  %v4674_v47 = vld [vmem:[%s15161_s1 + $0xd40] sm:$0xff] }
 0x18e   :  { %1634 = vmatpush2.msra.mxu0 %v4625_v55  ;;  %1706 = vmatprep.subr.mxu1 %v4628_v58  ;;  %v4671_v43 = vld [vmem:[%s15161_s1 + $0x948] sm:$0xff]  ;;  %v4677_v50 = vld [vmem:[%s15161_s1 + $0x920] sm:$0xff] }
 0x18f   :  { %1635 = vmatprep.subr.mxu0 %v4627_v57  ;;  %1707 = vmatpush2.msra.mxu1 %v4630_v60  ;;  %v4672_v45 = vld [vmem:[%s15161_s1 + $0xd48] sm:$0xff]  ;;  %v4678_v51 = vld [vmem:[%s15161_s1 + $0xd20] sm:$0xff] }
 0x190   :  { %1636 = vmatpush2.msra.mxu0 %v4629_v59  ;;  %1708 = vmatprep.subr.mxu1 %v4632_v62  ;;  %v4675_v38 = vld [vmem:[%s15161_s1 + $0x928] sm:$0xff]  ;;  %v4681_v44 = vld [vmem:[%s15161_s1 + $0x900] sm:$0xff] }
 0x191   :  { %1637 = vmatprep.subr.mxu0 %v4631_v61  ;;  %1709 = vmatpush2.msra.mxu1 %v4634_v0  ;;  %v4676_v49 = vld [vmem:[%s15161_s1 + $0xd28] sm:$0xff]  ;;  %v4682_v55 = vld [vmem:[%s15161_s1 + $0xd00] sm:$0xff] }
 0x192   :  { %1638 = vmatpush2.msra.mxu0 %v4633_v63  ;;  %1710 = vmatprep.subr.mxu1 %v4636_v2  ;;  %v4679_v52 = vld [vmem:[%s15161_s1 + $0x908] sm:$0xff]  ;;  %v4685_v58 = vld [vmem:[%s15161_s1 + $0x8e0] sm:$0xff] }
 0x193   :  { %1639 = vmatprep.subr.mxu0 %v4635_v1  ;;  %1711 = vmatpush2.msra.mxu1 %v4638_v4  ;;  %v4680_v53 = vld [vmem:[%s15161_s1 + $0xd08] sm:$0xff]  ;;  %v4686_v59 = vld [vmem:[%s15161_s1 + $0xce0] sm:$0xff] }
 0x194   :  { %1640 = vmatpush2.msra.mxu0 %v4637_v3  ;;  %1712 = vmatprep.subr.mxu1 %v4640_v6  ;;  %v4683_v56 = vld [vmem:[%s15161_s1 + $0x8e8] sm:$0xff]  ;;  %v4689_v62 = vld [vmem:[%s15161_s1 + $0x8c0] sm:$0xff] }
 0x195   :  { %1641 = vmatprep.subr.mxu0 %v4639_v5  ;;  %1713 = vmatpush2.msra.mxu1 %v4642_v8  ;;  %v4684_v57 = vld [vmem:[%s15161_s1 + $0xce8] sm:$0xff]  ;;  %v4690_v63 = vld [vmem:[%s15161_s1 + $0xcc0] sm:$0xff] }
 0x196   :  { %1642 = vmatpush2.msra.mxu0 %v4641_v7  ;;  %1714 = vmatprep.subr.mxu1 %v4644_v10  ;;  %v4687_v60 = vld [vmem:[%s15161_s1 + $0x8c8] sm:$0xff]  ;;  %v4693_v2 = vld [vmem:[%s15161_s1 + $0x8a0] sm:$0xff] }
 0x197   :  { %1643 = vmatprep.subr.mxu0 %v4643_v9  ;;  %1715 = vmatpush2.msra.mxu1 %v4646_v13  ;;  %v4688_v61 = vld [vmem:[%s15161_s1 + $0xcc8] sm:$0xff]  ;;  %v4694_v3 = vld [vmem:[%s15161_s1 + $0xca0] sm:$0xff] }
 0x198   :  { %1644 = vmatpush2.msra.mxu0 %v4645_v12  ;;  %1716 = vmatprep.subr.mxu1 %v4648_v16  ;;  %v4691_v0 = vld [vmem:[%s15161_s1 + $0x8a8] sm:$0xff]  ;;  %v4697_v6 = vld [vmem:[%s15161_s1 + $0x880] sm:$0xff] }
 0x199   :  { %1645 = vmatprep.subr.mxu0 %v4647_v15  ;;  %1647 = vmatprep.mubr.f32.mxu0 %v8997_v11  ;;  %v4692_v1 = vld [vmem:[%s15161_s1 + $0xca8] sm:$0xff]  ;;  %v4698_v7 = vld [vmem:[%s15161_s1 + $0xc80] sm:$0xff] }
 0x19a   :  { %1646 = vmatpush2.msra.mxu0 %v4649_v20  ;;  %1717 = vmatpush2.msra.mxu1 %v4650_v21  ;;  %v4695_v4 = vld [vmem:[%s15161_s1 + $0x888] sm:$0xff]  ;;  %v4701_v10 = vld [vmem:[%s15161_s1 + $0x860] sm:$0xff] }
 0x19b   :  { %1718 = vmatprep.mubr.f32.mxu1 %v9008_v14  ;;  %1648 = vmatmul.mubr.f32.vlgmr.msra.gmra.mxu0 %v9019_v18  ;;  %v4696_v5 = vld [vmem:[%s15161_s1 + $0xc88] sm:$0xff]  ;;  %v4702_v12 = vld [vmem:[%s15161_s1 + $0xc60] sm:$0xff] }
 0x19c   :  { %1719 = vmatmul.mubr.f32.vlgmr.msra.gmra.mxu1 %v9024_v19  ;;  %1725 = vmatprep.subr.mxu0 %v4651_v23  ;;  %v4699_v8 = vld [vmem:[%s15161_s1 + $0x868] sm:$0xff]  ;;  %v4705_v16 = vld [vmem:[%s15161_s1 + $0x840] sm:$0xff] }
 0x19d   :  { %1796 = vmatprep.subr.mxu1 %v4652_v24  ;;  %1726 = vmatpush1.msra.mxu0 %v4653_v25  ;;  %v4700_v9 = vld [vmem:[%s15161_s1 + $0xc68] sm:$0xff]  ;;  %v4706_v20 = vld [vmem:[%s15161_s1 + $0xc40] sm:$0xff] }
 0x19e   :  { %1797 = vmatpush1.msra.mxu1 %v4654_v26  ;;  %1727 = vmatprep.subr.mxu0 %v4655_v27  ;;  %v4703_v13 = vld [vmem:[%s15161_s1 + $0x848] sm:$0xff]  ;;  %v4709_v24 = vld [vmem:[%s15161_s1 + $0x820] sm:$0xff] }
 0x19f   :  { %1798 = vmatprep.subr.mxu1 %v4656_v28  ;;  %1728 = vmatpush1.msra.mxu0 %v4657_v29  ;;  %v4704_v15 = vld [vmem:[%s15161_s1 + $0xc48] sm:$0xff]  ;;  %v4710_v25 = vld [vmem:[%s15161_s1 + $0xc20] sm:$0xff] }
 0x1a0   :  { %1799 = vmatpush1.msra.mxu1 %v4658_v30  ;;  %1729 = vmatprep.subr.mxu0 %v4659_v31  ;;  %v4707_v21 = vld [vmem:[%s15161_s1 + $0x828] sm:$0xff]  ;;  %v4713_v28 = vld [vmem:[%s15161_s1 + $0x800] sm:$0xff] }
 0x1a1   :  { %1800 = vmatprep.subr.mxu1 %v4660_v32  ;;  %1730 = vmatpush1.msra.mxu0 %v4661_v33  ;;  %v4708_v23 = vld [vmem:[%s15161_s1 + $0xc28] sm:$0xff]  ;;  %v4714_v29 = vld [vmem:[%s15161_s1 + $0xc00] sm:$0xff] }
 0x1a2   :  { %1801 = vmatpush1.msra.mxu1 %v4662_v34  ;;  %1731 = vmatprep.subr.mxu0 %v4663_v35  ;;  %v4711_v26 = vld [vmem:[%s15161_s1 + $0x808] sm:$0xff]  ;;  %v4717_v32 = vld [vmem:[%s15161_s1 + $0xbe0] sm:$0xff] }
 0x1a3   :  { %1802 = vmatprep.subr.mxu1 %v4664_v36  ;;  %1732 = vmatpush1.msra.mxu0 %v4665_v39  ;;  %v4712_v27 = vld [vmem:[%s15161_s1 + $0xc08] sm:$0xff]  ;;  %v4718_v33 = vld [vmem:[%s15161_s1 + $0xfe0] sm:$0xff] }
 0x1a4   :  { %1803 = vmatpush1.msra.mxu1 %v4666_v17  ;;  %1733 = vmatprep.subr.mxu0 %v4667_v40  ;;  %v4715_v30 = vld [vmem:[%s15161_s1 + $0xbe8] sm:$0xff]  ;;  %v4721_v36 = vld [vmem:[%s15161_s1 + $0xbc0] sm:$0xff] }
 0x1a5   :  { %1804 = vmatprep.subr.mxu1 %v4668_v41  ;;  %1734 = vmatpush1.msra.mxu0 %v4669_v42  ;;  %v4716_v31 = vld [vmem:[%s15161_s1 + $0xfe8] sm:$0xff]  ;;  %v4722_v39 = vld [vmem:[%s15161_s1 + $0xfc0] sm:$0xff] }
 0x1a6   :  { %1805 = vmatpush1.msra.mxu1 %v4670_v22  ;;  %1735 = vmatprep.subr.mxu0 %v4671_v43  ;;  %v4719_v34 = vld [vmem:[%s15161_s1 + $0xbc8] sm:$0xff]  ;;  %v4725_v41 = vld [vmem:[%s15161_s1 + $0xba0] sm:$0xff] }
 0x1a7   :  { %1806 = vmatprep.subr.mxu1 %v4672_v45  ;;  %1736 = vmatpush1.msra.mxu0 %v4673_v46  ;;  %v4720_v35 = vld [vmem:[%s15161_s1 + $0xfc8] sm:$0xff]  ;;  %v4726_v42 = vld [vmem:[%s15161_s1 + $0xfa0] sm:$0xff] }
 0x1a8   :  { %1807 = vmatpush1.msra.mxu1 %v4674_v47  ;;  %1737 = vmatprep.subr.mxu0 %v4675_v38  ;;  %v4723_v17 = vld [vmem:[%s15161_s1 + $0xba8] sm:$0xff]  ;;  %v4729_v45 = vld [vmem:[%s15161_s1 + $0xb80] sm:$0xff] }
 0x1a9   :  { %1808 = vmatprep.subr.mxu1 %v4676_v49  ;;  %1738 = vmatpush1.msra.mxu0 %v4677_v50  ;;  %v4724_v40 = vld [vmem:[%s15161_s1 + $0xfa8] sm:$0xff]  ;;  %v4730_v46 = vld [vmem:[%s15161_s1 + $0xf80] sm:$0xff] }
 0x1aa   :  { %1809 = vmatpush1.msra.mxu1 %v4678_v51  ;;  %1739 = vmatprep.subr.mxu0 %v4679_v52  ;;  %v4727_v22 = vld [vmem:[%s15161_s1 + $0xb88] sm:$0xff]  ;;  %v4733_v49 = vld [vmem:[%s15161_s1 + $0xb60] sm:$0xff] }
 0x1ab   :  { %1810 = vmatprep.subr.mxu1 %v4680_v53  ;;  %1740 = vmatpush1.msra.mxu0 %v4681_v44  ;;  %v4728_v43 = vld [vmem:[%s15161_s1 + $0xf88] sm:$0xff]  ;;  %v4734_v50 = vld [vmem:[%s15161_s1 + $0xf60] sm:$0xff]  ;;  %v1208_v53 = vpop.f32.mrf.mxu1 }
 0x1ac   :  { %1811 = vmatpush1.msra.mxu1 %v4682_v55  ;;  %1741 = vmatprep.subr.mxu0 %v4683_v56  ;;  %v4731_v47 = vld [vmem:[%s15161_s1 + $0xb68] sm:$0xff]  ;;  %v4737_v44 = vld [vmem:[%s15161_s1 + $0xb40] sm:$0xff] }
 0x1ad   :  { %1812 = vmatprep.subr.mxu1 %v4684_v57  ;;  %1742 = vmatpush1.msra.mxu0 %v4685_v58  ;;  %v4732_v38 = vld [vmem:[%s15161_s1 + $0xf68] sm:$0xff]  ;;  %v4738_v55 = vld [vmem:[%s15161_s1 + $0xf40] sm:$0xff] }
 0x1ae   :  { %1813 = vmatpush1.msra.mxu1 %v4686_v59  ;;  %1743 = vmatprep.subr.mxu0 %v4687_v60  ;;  %v4735_v51 = vld [vmem:[%s15161_s1 + $0xb48] sm:$0xff]  ;;  %v4741_v58 = vld [vmem:[%s15161_s1 + $0xb20] sm:$0xff] }
 0x1af   :  { %1814 = vmatprep.subr.mxu1 %v4688_v61  ;;  %1744 = vmatpush1.msra.mxu0 %v4689_v62  ;;  %v4736_v52 = vld [vmem:[%s15161_s1 + $0xf48] sm:$0xff]  ;;  %v4742_v59 = vld [vmem:[%s15161_s1 + $0xf20] sm:$0xff] }
 0x1b0   :  { %1815 = vmatpush1.msra.mxu1 %v4690_v63  ;;  %1745 = vmatprep.subr.mxu0 %v4691_v0  ;;  %v4739_v56 = vld [vmem:[%s15161_s1 + $0xb28] sm:$0xff]  ;;  %v1210_v0 = vpop.f32.mrf.mxu1 }
 0x1b1   :  { %1816 = vmatprep.subr.mxu1 %v4692_v1  ;;  %1746 = vmatpush1.msra.mxu0 %v4693_v2  ;;  %v4740_v57 = vld [vmem:[%s15161_s1 + $0xf28] sm:$0xff]  ;;  %v4745_v1 = vld [vmem:[%s15161_s1 + $0xb00] sm:$0xff] }
 0x1b2   :  { %1817 = vmatpush1.msra.mxu1 %v4694_v3  ;;  %1747 = vmatprep.subr.mxu0 %v4695_v4  ;;  %v4743_v61 = vld [vmem:[%s15161_s1 + $0xb08] sm:$0xff]  ;;  %v4746_v2 = vld [vmem:[%s15161_s1 + $0xf00] sm:$0xff] }
 0x1b3   :  { %1818 = vmatprep.subr.mxu1 %v4696_v5  ;;  %1748 = vmatpush1.msra.mxu0 %v4697_v6  ;;  %v4744_v62 = vld [vmem:[%s15161_s1 + $0xf08] sm:$0xff] }
 0x1b4   :  { %1819 = vmatpush1.msra.mxu1 %v4698_v7  ;;  %1749 = vmatprep.subr.mxu0 %v4699_v8  ;;  %v4747_v4 = vld [vmem:[%s15161_s1 + $0xae8] sm:$0xff]  ;;  %v4749_v7 = vld [vmem:[%s15161_s1 + $0xae0] sm:$0xff] }
 0x1b5   :  { %1820 = vmatprep.subr.mxu1 %v4700_v9  ;;  %1750 = vmatpush1.msra.mxu0 %v4701_v10  ;;  %v4748_v5 = vld [vmem:[%s15161_s1 + $0xee8] sm:$0xff]  ;;  %v4750_v8 = vld [vmem:[%s15161_s1 + $0xee0] sm:$0xff] }
 0x1b6   :  { %1821 = vmatpush1.msra.mxu1 %v4702_v12  ;;  %1751 = vmatprep.subr.mxu0 %v4703_v13  ;;  %v4751_v9 = vld [vmem:[%s15161_s1 + $0xac8] sm:$0xff]  ;;  %v4753_v12 = vld [vmem:[%s15161_s1 + $0xac0] sm:$0xff] }
 0x1b7   :  { %1822 = vmatprep.subr.mxu1 %v4704_v15  ;;  %1752 = vmatpush1.msra.mxu0 %v4705_v16  ;;  %v4752_v10 = vld [vmem:[%s15161_s1 + $0xec8] sm:$0xff]  ;;  %v4754_v13 = vld [vmem:[%s15161_s1 + $0xec0] sm:$0xff] }
 0x1b8   :  { %1823 = vmatpush1.msra.mxu1 %v4706_v20  ;;  %1753 = vmatprep.subr.mxu0 %v4707_v21  ;;  %v4755_v15 = vld [vmem:[%s15161_s1 + $0xaa8] sm:$0xff]  ;;  %v4757_v20 = vld [vmem:[%s15161_s1 + $0xaa0] sm:$0xff] }
 0x1b9   :  { %1824 = vmatprep.subr.mxu1 %v4708_v23  ;;  %1754 = vmatpush1.msra.mxu0 %v4709_v24  ;;  %v4756_v16 = vld [vmem:[%s15161_s1 + $0xea8] sm:$0xff]  ;;  %v4758_v21 = vld [vmem:[%s15161_s1 + $0xea0] sm:$0xff] }
 0x1ba   :  { %1825 = vmatpush1.msra.mxu1 %v4710_v25  ;;  %1755 = vmatprep.subr.mxu0 %v4711_v26  ;;  %v4759_v23 = vld [vmem:[%s15161_s1 + $0xa88] sm:$0xff]  ;;  %v4761_v25 = vld [vmem:[%s15161_s1 + $0xa80] sm:$0xff] }
 0x1bb   :  { %1826 = vmatprep.subr.mxu1 %v4712_v27  ;;  %1756 = vmatpush1.msra.mxu0 %v4713_v28  ;;  %v4760_v24 = vld [vmem:[%s15161_s1 + $0xe88] sm:$0xff]  ;;  %v4762_v26 = vld [vmem:[%s15161_s1 + $0xe80] sm:$0xff] }
 0x1bc   :  { %1827 = vmatpush1.msra.mxu1 %v4714_v29  ;;  %1757 = vmatprep.subr.mxu0 %v4715_v30  ;;  %v4763_v27 = vld [vmem:[%s15161_s1 + $0xa68] sm:$0xff]  ;;  %v4765_v29 = vld [vmem:[%s15161_s1 + $0xa60] sm:$0xff] }
 0x1bd   :  { %1828 = vmatprep.subr.mxu1 %v4716_v31  ;;  %1758 = vmatpush2.msra.mxu0 %v4717_v32  ;;  %v4764_v28 = vld [vmem:[%s15161_s1 + $0xe68] sm:$0xff]  ;;  %v4766_v30 = vld [vmem:[%s15161_s1 + $0xe60] sm:$0xff] }
 0x1be   :  { %1829 = vmatpush2.msra.mxu1 %v4718_v33  ;;  %1759 = vmatprep.subr.mxu0 %v4719_v34  ;;  %v4767_v31 = vld [vmem:[%s15161_s1 + $0xa48] sm:$0xff]  ;;  %v4769_v34 = vld [vmem:[%s15161_s1 + $0xa40] sm:$0xff] }
 0x1bf   :  { %1830 = vmatprep.subr.mxu1 %v4720_v35  ;;  %1760 = vmatpush2.msra.mxu0 %v4721_v36  ;;  %v4768_v32 = vld [vmem:[%s15161_s1 + $0xe48] sm:$0xff]  ;;  %v4770_v35 = vld [vmem:[%s15161_s1 + $0xe40] sm:$0xff] }
 0x1c0   :  { %1831 = vmatpush2.msra.mxu1 %v4722_v39  ;;  %1761 = vmatprep.subr.mxu0 %v4723_v17  ;;  %v4771_v39 = vld [vmem:[%s15161_s1 + $0xa28] sm:$0xff] }
 0x1c1   :  { %1832 = vmatprep.subr.mxu1 %v4724_v40  ;;  %1762 = vmatpush2.msra.mxu0 %v4725_v41  ;;  %v4772_v17 = vld [vmem:[%s15161_s1 + $0xe28] sm:$0xff]  ;;  %v9407_v40 = vld [vmem:[%s15160_s0 + $0x80] sm:$0x3f] }
 0x1c2   :  { %1833 = vmatpush2.msra.mxu1 %v4726_v42  ;;  %1763 = vmatprep.subr.mxu0 %v4727_v22  ;;  %v4773_v42 = vld [vmem:[%s15161_s1 + $0xa20] sm:$0xff] }
 0x1c3   :  { %1834 = vmatprep.subr.mxu1 %v4728_v43  ;;  %1764 = vmatpush2.msra.mxu0 %v4729_v45  ;;  %v4774_v22 = vld [vmem:[%s15161_s1 + $0xe20] sm:$0xff]  ;;  %v9418_v43 = vld [vmem:[%s15160_s0 + $0x90] sm:$0x3f] }
 0x1c4   :  { %1835 = vmatpush2.msra.mxu1 %v4730_v46  ;;  %1765 = vmatprep.subr.mxu0 %v4731_v47  ;;  %v4775_v46 = vld [vmem:[%s15161_s1 + $0xa08] sm:$0xff] }
 0x1c5   :  { %1836 = vmatprep.subr.mxu1 %v4732_v38  ;;  %1766 = vmatpush2.msra.mxu0 %v4733_v49  ;;  %v4776_v47 = vld [vmem:[%s15161_s1 + $0xe08] sm:$0xff]  ;;  %v9431_v38 = vld [vmem:[%s15160_s0 + $0x78] sm:$0x3f] }
 0x1c6   :  { %1837 = vmatpush2.msra.mxu1 %v4734_v50  ;;  %1767 = vmatprep.subr.mxu0 %v4735_v51  ;;  %v9436_v49 = vld [vmem:[%s15160_s0 + $0x88] sm:$0x3f]  ;;  %v4777_v50 = vld [vmem:[%s15161_s1 + $0xa00] sm:$0xff] }
 0x1c7   :  { %1838 = vmatprep.subr.mxu1 %v4736_v52  ;;  %1768 = vmatpush2.msra.mxu0 %v4737_v44  ;;  %v4778_v51 = vld [vmem:[%s15161_s1 + $0xe00] sm:$0xff]  ;;  %v4779_v52 = vld [vmem:[%s15161_s1 + $0x11e8] sm:$0xff] }
 0x1c8   :  { %1839 = vmatpush2.msra.mxu1 %v4738_v55  ;;  %1769 = vmatprep.subr.mxu0 %v4739_v56  ;;  %v4781_v44 = vld [vmem:[%s15161_s1 + $0x11e0] sm:$0xff]  ;;  %v4783_v56 = vld [vmem:[%s15161_s1 + $0x11c8] sm:$0xff] }
 0x1c9   :  { %1840 = vmatprep.subr.mxu1 %v4740_v57  ;;  %1770 = vmatpush2.msra.mxu0 %v4741_v58  ;;  %v4782_v55 = vld [vmem:[%s15161_s1 + $0x14a0] sm:$0x7]  ;;  %v4784_v57 = vld [vmem:[%s15161_s1 + $0x1488] sm:$0xff] }
 0x1ca   :  { %1841 = vmatpush2.msra.mxu1 %v4742_v59  ;;  %v1279_v60 = vpop.f32.mrf.mxu0  ;;  %1771 = vmatprep.subr.mxu0 %v4743_v61  ;;  %v4785_v58 = vld [vmem:[%s15161_s1 + $0x11c0] sm:$0xff]  ;;  %v4788_v61 = vld [vmem:[%s15161_s1 + $0x1468] sm:$0xff] }
 0x1cb   :  { %1842 = vmatprep.subr.mxu1 %v4744_v62  ;;  %v1280_v63 = vadd.f32 %v1279_v60, %v1208_v53  ;;  %1772 = vmatpush2.msra.mxu0 %v4745_v1  ;;  %v4780_v53 = vld [vmem:[%s15161_s1 + $0x14a8] sm:$0x7]  ;;  %v4786_v59 = vld [vmem:[%s15161_s1 + $0x1480] sm:$0xff] }
 0x1cc   :  { %1843 = vmatpush2.msra.mxu1 %v4746_v2  ;;  %v1281_v3 = vpop.f32.mrf.mxu0  ;;  %1773 = vmatprep.subr.mxu0 %v4747_v4  ;;  %v4787_v60 = vld [vmem:[%s15161_s1 + $0x11a8] sm:$0xff]  ;;  %v4789_v62 = vld [vmem:[%s15161_s1 + $0x11a0] sm:$0xff] }
 0x1cd   :  { %1844 = vmatprep.subr.mxu1 %v4748_v5  ;;  %v1282_v6 = vadd.f32 %v1281_v3, %v1210_v0  ;;  %1774 = vmatpush2.msra.mxu0 %v4749_v7  ;;  %v4791_v0 = vld [vmem:[%s15161_s1 + $0x1188] sm:$0xff]  ;;  %v4793_v2 = vld [vmem:[%s15161_s1 + $0x1180] sm:$0xff] }
 0x1ce   :  { %1845 = vmatpush2.msra.mxu1 %v4750_v8  ;;  %1775 = vmatprep.subr.mxu0 %v4751_v9  ;;  %v4792_v1 = vld [vmem:[%s15161_s1 + $0x1448] sm:$0xff]  ;;  %v4794_v3 = vld [vmem:[%s15161_s1 + $0x1440] sm:$0xff] }
 0x1cf   :  { %1846 = vmatprep.subr.mxu1 %v4752_v10  ;;  %1776 = vmatpush2.msra.mxu0 %v4753_v12  ;;  %v4795_v4 = vld [vmem:[%s15161_s1 + $0x1168] sm:$0xff]  ;;  %v4798_v7 = vld [vmem:[%s15161_s1 + $0x1420] sm:$0xff] }
 0x1d0   :  { %1847 = vmatpush2.msra.mxu1 %v4754_v13  ;;  %1777 = vmatprep.subr.mxu0 %v4755_v15  ;;  %v4796_v5 = vld [vmem:[%s15161_s1 + $0x1428] sm:$0xff]  ;;  %v4801_v12 = vld [vmem:[%s15161_s1 + $0x1140] sm:$0xff] }
 0x1d1   :  { %1848 = vmatprep.subr.mxu1 %v4756_v16  ;;  %1778 = vmatpush2.msra.mxu0 %v4757_v20  ;;  %v4799_v8 = vld [vmem:[%s15161_s1 + $0x1148] sm:$0xff]  ;;  %v4802_v13 = vld [vmem:[%s15161_s1 + $0x1400] sm:$0xff]  ;;  %v4804_v16 = vld [vmem:[%s15161_s1 + $0x1f8] sm:$0xff] }
 0x1d2   :  { %1849 = vmatpush2.msra.mxu1 %v4758_v21  ;;  %1779 = vmatprep.subr.mxu0 %v4759_v23  ;;  %v4800_v9 = vld [vmem:[%s15161_s1 + $0x1408] sm:$0xff]  ;;  %v4805_v20 = vld [vmem:[%s15161_s1 + $0x1120] sm:$0xff]  ;;  %v4806_v21 = vld [vmem:[%s15161_s1 + $0x1f0] sm:$0xff] }
 0x1d3   :  { %1850 = vmatprep.subr.mxu1 %v4760_v24  ;;  %1780 = vmatpush2.msra.mxu0 %v4761_v25  ;;  %v9519_v10 = vld [vmem:[%s15160_s0 + $0xa8] sm:$0x3f]  ;;  %v4808_v24 = vld [vmem:[%s15161_s1 + $0x1d8] sm:$0xff]  ;;  %v4809_v25 = vld [vmem:[%s15161_s1 + $0x1100] sm:$0xff] }
 0x1d4   :  { %1851 = vmatpush2.msra.mxu1 %v4762_v26  ;;  %1781 = vmatprep.subr.mxu0 %v4763_v27  ;;  %v4803_v15 = vld [vmem:[%s15161_s1 + $0x1128] sm:$0xff]  ;;  %v4810_v26 = vld [vmem:[%s15161_s1 + $0x1d0] sm:$0xff] }
 0x1d5   :  { %1852 = vmatprep.subr.mxu1 %v4764_v28  ;;  %1782 = vmatpush2.msra.mxu0 %v4765_v29  ;;  %v4807_v23 = vld [vmem:[%s15161_s1 + $0x1108] sm:$0xff]  ;;  %v4812_v28 = vld [vmem:[%s15161_s1 + $0x1b8] sm:$0xff]  ;;  %v4813_v29 = vld [vmem:[%s15161_s1 + $0x10e0] sm:$0xff] }
 0x1d6   :  { %1853 = vmatpush2.msra.mxu1 %v4766_v30  ;;  %1783 = vmatprep.subr.mxu0 %v4767_v31  ;;  %v4811_v27 = vld [vmem:[%s15161_s1 + $0x10e8] sm:$0xff]  ;;  %v4814_v30 = vld [vmem:[%s15161_s1 + $0x1b0] sm:$0xff] }
 0x1d7   :  { %1854 = vmatprep.subr.mxu1 %v4768_v32  ;;  %v1350_v33 = vpop.f32.mrf.mxu1  ;;  %1784 = vmatpush2.msra.mxu0 %v4769_v34  ;;  %v4815_v31 = vld [vmem:[%s15161_s1 + $0x10c8] sm:$0xff]  ;;  %v4816_v32 = vld [vmem:[%s15161_s1 + $0x198] sm:$0xff]  ;;  %v4818_v34 = vld [vmem:[%s15161_s1 + $0x190] sm:$0xff] }
 0x1d8   :  { %1855 = vmatpush2.msra.mxu1 %v4770_v35  ;;  %v9396_v36 = vadd.f32 %v1350_v33, %v1280_v63  ;;  %1785 = vmatprep.subr.mxu0 %v4771_v39  ;;  %v4790_v63 = vld [vmem:[%s15161_s1 + $0x1460] sm:$0xff]  ;;  %v4819_v35 = vld [vmem:[%s15161_s1 + $0x10a8] sm:$0xff]  ;;  %v4820_v39 = vld [vmem:[%s15161_s1 + $0x178] sm:$0xff] }
 0x1d9   :  { %1856 = vmatprep.subr.mxu1 %v4772_v17  ;;  %v1352_v41 = vpop.f32.mrf.mxu1  ;;  %1786 = vmatpush2.msra.mxu0 %v4773_v42  ;;  %v4817_v33 = vld [vmem:[%s15161_s1 + $0x10c0] sm:$0xff]  ;;  %v4823_v42 = vld [vmem:[%s15161_s1 + $0x1088] sm:$0xff] }
 0x1da   :  { %1857 = vmatpush2.msra.mxu1 %v4774_v22  ;;  %v9420_v45 = vadd.f32 %v1352_v41, %v1282_v6  ;;  %1787 = vmatprep.subr.mxu0 %v4775_v46  ;;  %v4797_v6 = vld [vmem:[%s15161_s1 + $0x1160] sm:$0xff]  ;;  %v4822_v41 = vld [vmem:[%s15161_s1 + $0x170] sm:$0xff]  ;;  %v4824_v22 = vld [vmem:[%s15161_s1 + $0x158] sm:$0xff] }
 0x1db   :  { %1858 = vmatprep.subr.mxu1 %v4776_v47  ;;  %1788 = vmatpush2.msra.mxu0 %v4777_v50  ;;  %v4821_v17 = vld [vmem:[%s15161_s1 + $0x10a0] sm:$0xff]  ;;  %v4826_v47 = vld [vmem:[%s15161_s1 + $0x150] sm:$0xff]  ;;  %v4827_v50 = vld [vmem:[%s15161_s1 + $0x1068] sm:$0xff] }
 0x1dc   :  { %1789 = vmatprep.mubr.f32.mxu0 %v9407_v40  ;;  %1859 = vmatpush2.msra.mxu1 %v4778_v51  ;;  %v4825_v46 = vld [vmem:[%s15161_s1 + $0x1080] sm:$0xff]  ;;  %v4828_v51 = vld [vmem:[%s15161_s1 + $0x138] sm:$0xff] }
 0x1dd   :  { %1860 = vmatprep.mubr.f32.mxu1 %v9418_v43  ;;  %1790 = vmatmul.mubr.f32.vlgmr.msra.gmra.mxu0 %v9431_v38 }
 0x1de   :  { %1861 = vmatmul.mubr.f32.vlgmr.msra.gmra.mxu1 %v9436_v49  ;;  %1867 = vmatprep.subr.mxu0 %v4779_v52  ;;  %v4829_v52 = vld [vmem:[%s15161_s1 + $0x1060] sm:$0xff] }
 0x1df   :  { %4434 = vmatprep.subr.msk.mxu1 %vm703_vm0, %v4780_v53  ;;  %1868 = vmatpush1.msra.mxu0 %v4781_v44  ;;  %v4830_v53 = vld [vmem:[%s15161_s1 + $0x130] sm:$0xff]  ;;  %v4831_v44 = vld [vmem:[%s15161_s1 + $0x1048] sm:$0xff] }
 0x1e0   :  { %4435 = vmatpush1.msk.msra.mxu1 %vm703_vm0, %v4782_v55  ;;  %1869 = vmatprep.subr.mxu0 %v4783_v56  ;;  %v4832_v55 = vld [vmem:[%s15161_s1 + $0x118] sm:$0xff]  ;;  %v4833_v56 = vld [vmem:[%s15161_s1 + $0x1040] sm:$0xff] }
 0x1e1   :  { %1960 = vmatprep.subr.mxu1 %v4784_v57  ;;  %1870 = vmatpush1.msra.mxu0 %v4785_v58  ;;  %v4834_v57 = vld [vmem:[%s15161_s1 + $0x110] sm:$0xff]  ;;  %v4835_v58 = vld [vmem:[%s15161_s1 + $0x1028] sm:$0xff] }
 0x1e2   :  { %1961 = vmatpush1.msra.mxu1 %v4786_v59  ;;  %1871 = vmatprep.subr.mxu0 %v4787_v60  ;;  %v4836_v59 = vld [vmem:[%s15161_s1 + $0xf8] sm:$0xff]  ;;  %v4837_v60 = vld [vmem:[%s15161_s1 + $0x1020] sm:$0xff] }
 0x1e3   :  { %1962 = vmatprep.subr.mxu1 %v4788_v61  ;;  %1872 = vmatpush1.msra.mxu0 %v4789_v62  ;;  %v4838_v61 = vld [vmem:[%s15161_s1 + $0xf0] sm:$0xff]  ;;  %v4839_v62 = vld [vmem:[%s15161_s1 + $0x1008] sm:$0xff] }
 0x1e4   :  { %1963 = vmatpush1.msra.mxu1 %v4790_v63  ;;  %1873 = vmatprep.subr.mxu0 %v4791_v0  ;;  %v4840_v63 = vld [vmem:[%s15161_s1 + $0xd8] sm:$0xff]  ;;  %v4841_v0 = vld [vmem:[%s15161_s1 + $0x1000] sm:$0xff] }
 0x1e5   :  { %1964 = vmatprep.subr.mxu1 %v4792_v1  ;;  %1874 = vmatpush1.msra.mxu0 %v4793_v2  ;;  %v4842_v1 = vld [vmem:[%s15161_s1 + $0xd0] sm:$0xff]  ;;  %v4843_v2 = vld [vmem:[%s15161_s1 + $0x13e8] sm:$0xff] }
 0x1e6   :  { %1965 = vmatpush1.msra.mxu1 %v4794_v3  ;;  %1875 = vmatprep.subr.mxu0 %v4795_v4  ;;  %v4844_v3 = vld [vmem:[%s15161_s1 + $0xb8] sm:$0xff]  ;;  %v4845_v4 = vld [vmem:[%s15161_s1 + $0x13e0] sm:$0xff] }
 0x1e7   :  { %1966 = vmatprep.subr.mxu1 %v4796_v5  ;;  %1876 = vmatpush1.msra.mxu0 %v4797_v6  ;;  %v4846_v5 = vld [vmem:[%s15161_s1 + $0xb0] sm:$0xff]  ;;  %v4847_v6 = vld [vmem:[%s15161_s1 + $0x13c8] sm:$0xff] }
 0x1e8   :  { %1967 = vmatpush1.msra.mxu1 %v4798_v7  ;;  %1877 = vmatprep.subr.mxu0 %v4799_v8  ;;  %v4848_v7 = vld [vmem:[%s15161_s1 + $0x98] sm:$0xff]  ;;  %v4849_v8 = vld [vmem:[%s15161_s1 + $0x13c0] sm:$0xff] }
 0x1e9   :  { %1968 = vmatprep.subr.mxu1 %v4800_v9  ;;  %1878 = vmatpush1.msra.mxu0 %v4801_v12  ;;  %v4850_v9 = vld [vmem:[%s15161_s1 + $0x90] sm:$0xff]  ;;  %v4851_v12 = vld [vmem:[%s15161_s1 + $0x13a8] sm:$0xff] }
 0x1ea   :  { %1969 = vmatpush1.msra.mxu1 %v4802_v13  ;;  %2002 = vmatprep.mubr.f32.mxu1 %v6515_v37  ;;  %v4852_v13 = vld [vmem:[%s15161_s1 + $0x78] sm:$0xff] }
 0x1eb   :  { %1879 = vmatprep.subr.mxu0 %v4803_v15  ;;  %4436 = vmatmul.mubr.msk.f32.vlgmr.msra.gmra.mxu1 %vm699_vm1, %v9519_v10  ;;  %v4853_v15 = vld [vmem:[%s15161_s1 + $0x13a0] sm:$0xff] }
 0x1ec   :  { %2009 = vmatprep.subr.mxu1 %v4804_v16  ;;  %1880 = vmatpush1.msra.mxu0 %v4805_v20  ;;  %v4854_v16 = vld [vmem:[%s15161_s1 + $0x70] sm:$0xff]  ;;  %v4855_v20 = vld [vmem:[%s15161_s1 + $0x1388] sm:$0xff] }
 0x1ed   :  { %2010 = vmatpush1.msra.mxu1 %v4806_v21  ;;  %1881 = vmatprep.subr.mxu0 %v4807_v23  ;;  %v4856_v21 = vld [vmem:[%s15161_s1 + $0x58] sm:$0xff]  ;;  %v4857_v23 = vld [vmem:[%s15161_s1 + $0x1380] sm:$0xff] }
 0x1ee   :  { %2011 = vmatprep.subr.mxu1 %v4808_v24  ;;  %1882 = vmatpush1.msra.mxu0 %v4809_v25  ;;  %v4858_v24 = vld [vmem:[%s15161_s1 + $0x50] sm:$0xff]  ;;  %v4859_v25 = vld [vmem:[%s15161_s1 + $0x1368] sm:$0xff] }
 0x1ef   :  { %2012 = vmatpush1.msra.mxu1 %v4810_v26  ;;  %1883 = vmatprep.subr.mxu0 %v4811_v27  ;;  %v4860_v26 = vld [vmem:[%s15161_s1 + $0x38] sm:$0xff]  ;;  %v4861_v27 = vld [vmem:[%s15161_s1 + $0x1360] sm:$0xff] }
 0x1f0   :  { %2013 = vmatprep.subr.mxu1 %v4812_v28  ;;  %1884 = vmatpush1.msra.mxu0 %v4813_v29  ;;  %v4862_v28 = vld [vmem:[%s15161_s1 + $0x30] sm:$0xff]  ;;  %v4863_v29 = vld [vmem:[%s15161_s1 + $0x1348] sm:$0xff] }
 0x1f1   :  { %2014 = vmatpush1.msra.mxu1 %v4814_v30  ;;  %1885 = vmatprep.subr.mxu0 %v4815_v31  ;;  %v4864_v30 = vld [vmem:[%s15161_s1 + $0x18] sm:$0xff]  ;;  %v4865_v31 = vld [vmem:[%s15161_s1 + $0x1340] sm:$0xff] }
 0x1f2   :  { %2015 = vmatprep.subr.mxu1 %v4816_v32  ;;  %1886 = vmatpush1.msra.mxu0 %v4817_v33  ;;  %v4866_v32 = vld [vmem:[%s15161_s1 + $0x10] sm:$0xff]  ;;  %v4867_v33 = vld [vmem:[%s15161_s1 + $0x1328] sm:$0xff] }
 0x1f3   :  { %2016 = vmatpush1.msra.mxu1 %v4818_v34  ;;  %1887 = vmatprep.subr.mxu0 %v4819_v35  ;;  %v4868_v34 = vld [vmem:[%s15161_s1 + $0x3f8] sm:$0xff] }
 0x1f4   :  { %2017 = vmatprep.subr.mxu1 %v4820_v39  ;;  %1888 = vmatpush1.msra.mxu0 %v4821_v17  ;;  %v4869_v39 = vld [vmem:[%s15161_s1 + $0x1320] sm:$0xff]  ;;  %v4870_v17 = vld [vmem:[%s15161_s1 + $0x3f0] sm:$0xff] }
 0x1f5   :  { %2018 = vmatpush1.msra.mxu1 %v4822_v41  ;;  %1889 = vmatprep.subr.mxu0 %v4823_v42  ;;  %v4871_v42 = vld [vmem:[%s15161_s1 + $0x1308] sm:$0xff] }
 0x1f6   :  { %2019 = vmatprep.subr.mxu1 %v4824_v22  ;;  %1890 = vmatpush1.msra.mxu0 %v4825_v46  ;;  %v4872_v22 = vld [vmem:[%s15161_s1 + $0x3d8] sm:$0xff] }
 0x1f7   :  { %2020 = vmatpush1.msra.mxu1 %v4826_v47  ;;  %1891 = vmatprep.subr.mxu0 %v4827_v50  ;;  %v4873_v47 = vld [vmem:[%s15161_s1 + $0x1300] sm:$0xff] }
 0x1f8   :  { %2021 = vmatprep.subr.mxu1 %v4828_v51  ;;  %1892 = vmatpush1.msra.mxu0 %v4829_v52  ;;  %v4875_v51 = vld [vmem:[%s15161_s1 + $0x12e8] sm:$0xff]  ;;  %v4876_v52 = vld [vmem:[%s15161_s1 + $0x3b8] sm:$0xff] }
 0x1f9   :  { %2022 = vmatpush1.msra.mxu1 %v4830_v53  ;;  %1893 = vmatprep.subr.mxu0 %v4831_v44  ;;  %v4877_v53 = vld [vmem:[%s15161_s1 + $0x12e0] sm:$0xff]  ;;  %v4878_v44 = vld [vmem:[%s15161_s1 + $0x3b0] sm:$0xff] }
 0x1fa   :  { %2023 = vmatprep.subr.mxu1 %v4832_v55  ;;  %1894 = vmatpush1.msra.mxu0 %v4833_v56  ;;  %v4880_v55 = vld [vmem:[%s15161_s1 + $0x398] sm:$0xff]  ;;  %v4881_v56 = vld [vmem:[%s15161_s1 + $0x12c0] sm:$0xff] }
 0x1fb   :  { %2024 = vmatpush1.msra.mxu1 %v4834_v57  ;;  %1895 = vmatprep.subr.mxu0 %v4835_v58  ;;  %v4882_v57 = vld [vmem:[%s15161_s1 + $0x390] sm:$0xff]  ;;  %v4883_v58 = vld [vmem:[%s15161_s1 + $0x12a8] sm:$0xff] }
 0x1fc   :  { %2025 = vmatprep.subr.mxu1 %v4836_v59  ;;  %1896 = vmatpush1.msra.mxu0 %v4837_v60  ;;  %v4884_v59 = vld [vmem:[%s15161_s1 + $0x378] sm:$0xff]  ;;  %v4885_v60 = vld [vmem:[%s15161_s1 + $0x12a0] sm:$0xff] }
 0x1fd   :  { %2026 = vmatpush1.msra.mxu1 %v4838_v61  ;;  %1897 = vmatprep.subr.mxu0 %v4839_v62  ;;  %v4886_v61 = vld [vmem:[%s15161_s1 + $0x370] sm:$0xff]  ;;  %v4887_v62 = vld [vmem:[%s15161_s1 + $0x1288] sm:$0xff] }
 0x1fe   :  { %2027 = vmatprep.subr.mxu1 %v4840_v63  ;;  %1898 = vmatpush1.msra.mxu0 %v4841_v0  ;;  %v4888_v63 = vld [vmem:[%s15161_s1 + $0x358] sm:$0xff]  ;;  %v4889_v0 = vld [vmem:[%s15161_s1 + $0x1280] sm:$0xff] }
 0x1ff   :  { %2028 = vmatpush1.msra.mxu1 %v4842_v1  ;;  %1899 = vmatprep.subr.mxu0 %v4843_v2  ;;  %v4890_v1 = vld [vmem:[%s15161_s1 + $0x350] sm:$0xff]  ;;  %v4891_v2 = vld [vmem:[%s15161_s1 + $0x1268] sm:$0xff] }
 0x200   :  { %2029 = vmatprep.subr.mxu1 %v4844_v3  ;;  %1900 = vmatpush2.msra.mxu0 %v4845_v4  ;;  %v4892_v3 = vld [vmem:[%s15161_s1 + $0x338] sm:$0xff]  ;;  %v4893_v4 = vld [vmem:[%s15161_s1 + $0x1260] sm:$0xff] }
 0x201   :  { %2030 = vmatpush1.msra.mxu1 %v4846_v5  ;;  %1901 = vmatprep.subr.mxu0 %v4847_v6  ;;  %v4894_v5 = vld [vmem:[%s15161_s1 + $0x330] sm:$0xff] }
 0x202   :  { %2031 = vmatprep.subr.mxu1 %v4848_v7  ;;  %1902 = vmatpush2.msra.mxu0 %v4849_v8  ;;  %v4895_v7 = vld [vmem:[%s15161_s1 + $0x1248] sm:$0xff]  ;;  %v4896_v8 = vld [vmem:[%s15161_s1 + $0x318] sm:$0xff] }
 0x203   :  { %2032 = vmatpush1.msra.mxu1 %v4850_v9  ;;  %1903 = vmatprep.subr.mxu0 %v4851_v12  ;;  %v4897_v12 = vld [vmem:[%s15161_s1 + $0x1240] sm:$0xff] }
 0x204   :  { %2033 = vmatprep.subr.mxu1 %v4852_v13  ;;  %1904 = vmatpush2.msra.mxu0 %v4853_v15  ;;  %v4898_v13 = vld [vmem:[%s15161_s1 + $0x310] sm:$0xff] }
 0x205   :  { %2034 = vmatpush1.msra.mxu1 %v4854_v16  ;;  %1905 = vmatprep.subr.mxu0 %v4855_v20  ;;  %v4899_v20 = vld [vmem:[%s15161_s1 + $0x1228] sm:$0xff] }
 0x206   :  { %2035 = vmatprep.subr.mxu1 %v4856_v21  ;;  %1906 = vmatpush2.msra.mxu0 %v4857_v23  ;;  %v4900_v21 = vld [vmem:[%s15161_s1 + $0x2f8] sm:$0xff]  ;;  %v9829_v23 = vld [vmem:[%s15160_s0 + $0xa0] sm:$0x3f] }
 0x207   :  { %2036 = vmatpush1.msra.mxu1 %v4858_v24  ;;  %1907 = vmatprep.subr.mxu0 %v4859_v25 }
 0x208   :  { %2037 = vmatprep.subr.mxu1 %v4860_v26  ;;  %1908 = vmatpush2.msra.mxu0 %v4861_v27  ;;  %v4901_v26 = vld [vmem:[%s15161_s1 + $0x1220] sm:$0xff]  ;;  %v4902_v27 = vld [vmem:[%s15161_s1 + $0x2f0] sm:$0xff] }
 0x209   :  { %2038 = vmatpush1.msra.mxu1 %v4862_v28  ;;  %1909 = vmatprep.subr.mxu0 %v4863_v29  ;;  %v9842_v28 = vld [vmem:[%s15160_s0 + $0x98] sm:$0x3f] }
 0x20a   :  { %2039 = vmatprep.subr.mxu1 %v4864_v30  ;;  %1910 = vmatpush2.msra.mxu0 %v4865_v31  ;;  %v4903_v30 = vld [vmem:[%s15161_s1 + $0x1208] sm:$0xff]  ;;  %v4904_v31 = vld [vmem:[%s15161_s1 + $0x2d8] sm:$0xff] }
 0x20b   :  { %2040 = vmatpush1.msra.mxu1 %v4866_v32  ;;  %1911 = vmatprep.subr.mxu0 %v4867_v33  ;;  %v4905_v33 = vld [vmem:[%s15161_s1 + $0x1200] sm:$0xff] }
 0x20c   :  { %2041 = vmatprep.subr.mxu1 %v4868_v34  ;;  %v1421_v35 = vpop.f32.mrf.mxu0  ;;  %1912 = vmatpush2.msra.mxu0 %v4869_v39  ;;  %v4906_v34 = vld [vmem:[%s15161_s1 + $0x2d0] sm:$0xff]  ;;  %v4908_v39 = vld [vmem:[%s15161_s1 + $0x5f8] sm:$0xff] }
 0x20d   :  { %2042 = vmatpush2.msra.mxu1 %v4870_v17  ;;  %v1422_v41 = vadd.f32 %v1421_v35, %v9396_v36  ;;  %1913 = vmatprep.subr.mxu0 %v4871_v42  ;;  %v4874_v36 = vld [vmem:[%s15161_s1 + $0x3d0] sm:$0xff]  ;;  %v4907_v35 = vld [vmem:[%s15161_s1 + $0x2b8] sm:$0xff] }
 0x20e   :  { %2043 = vmatprep.subr.mxu1 %v4872_v22  ;;  %v1423_v46 = vpop.f32.mrf.mxu0  ;;  %1914 = vmatpush2.msra.mxu0 %v4873_v47  ;;  %v4909_v17 = vld [vmem:[%s15161_s1 + $0x2b0] sm:$0xff]  ;;  %v4911_v42 = vld [vmem:[%s15161_s1 + $0x298] sm:$0xff] }
 0x20f   :  { %2044 = vmatpush2.msra.mxu1 %v4874_v36  ;;  %v1424_v50 = vadd.f32 %v1423_v46, %v9420_v45  ;;  %1915 = vmatprep.subr.mxu0 %v4875_v51  ;;  %v4879_v45 = vld [vmem:[%s15161_s1 + $0x12c8] sm:$0xff]  ;;  %v4912_v22 = vld [vmem:[%s15161_s1 + $0x5d8] sm:$0xff]  ;;  %v4913_v46 = vld [vmem:[%s15161_s1 + $0x290] sm:$0xff] }
 0x210   :  { %2045 = vmatprep.subr.mxu1 %v4876_v52  ;;  %1916 = vmatpush2.msra.mxu0 %v4877_v53  ;;  %v4914_v47 = vld [vmem:[%s15161_s1 + $0x5d0] sm:$0xff]  ;;  %v4915_v36 = vld [vmem:[%s15161_s1 + $0x278] sm:$0xff] }
 0x211   :  { %2046 = vmatpush2.msra.mxu1 %v4878_v44  ;;  %1917 = vmatprep.subr.mxu0 %v4879_v45  ;;  %v4917_v51 = vld [vmem:[%s15161_s1 + $0x270] sm:$0xff]  ;;  %v4919_v53 = vld [vmem:[%s15161_s1 + $0x258] sm:$0xff] }
 0x212   :  { %2047 = vmatprep.subr.mxu1 %v4880_v55  ;;  %1918 = vmatpush2.msra.mxu0 %v4881_v56  ;;  %v4918_v52 = vld [vmem:[%s15161_s1 + $0x5b0] sm:$0xff]  ;;  %v4920_v44 = vld [vmem:[%s15161_s1 + $0x598] sm:$0xff] }
 0x213   :  { %2048 = vmatpush2.msra.mxu1 %v4882_v57  ;;  %1919 = vmatprep.subr.mxu0 %v4883_v58  ;;  %v4921_v45 = vld [vmem:[%s15161_s1 + $0x250] sm:$0xff]  ;;  %v4923_v56 = vld [vmem:[%s15161_s1 + $0x238] sm:$0xff] }
 0x214   :  { %2049 = vmatprep.subr.mxu1 %v4884_v59  ;;  %1920 = vmatpush2.msra.mxu0 %v4885_v60  ;;  %v4922_v55 = vld [vmem:[%s15161_s1 + $0x590] sm:$0xff]  ;;  %v4924_v57 = vld [vmem:[%s15161_s1 + $0x578] sm:$0xff] }
 0x215   :  { %2050 = vmatpush2.msra.mxu1 %v4886_v61  ;;  %1921 = vmatprep.subr.mxu0 %v4887_v62  ;;  %v4925_v58 = vld [vmem:[%s15161_s1 + $0x230] sm:$0xff]  ;;  %v4927_v60 = vld [vmem:[%s15161_s1 + $0x218] sm:$0xff] }
 0x216   :  { %2051 = vmatprep.subr.mxu1 %v4888_v63  ;;  %1922 = vmatpush2.msra.mxu0 %v4889_v0  ;;  %v4926_v59 = vld [vmem:[%s15161_s1 + $0x570] sm:$0xff]  ;;  %v4928_v61 = vld [vmem:[%s15161_s1 + $0x558] sm:$0xff] }
 0x217   :  { %2052 = vmatpush2.msra.mxu1 %v4890_v1  ;;  %1923 = vmatprep.subr.mxu0 %v4891_v2  ;;  %v4929_v62 = vld [vmem:[%s15161_s1 + $0x210] sm:$0xff]  ;;  %v4931_v0 = vld [vmem:[%s15161_s1 + $0x538] sm:$0xff] }
 0x218   :  { %2053 = vmatprep.subr.mxu1 %v4892_v3  ;;  %1924 = vmatpush2.msra.mxu0 %v4893_v4  ;;  %v4930_v63 = vld [vmem:[%s15161_s1 + $0x550] sm:$0xff]  ;;  %v4932_v1 = vld [vmem:[%s15161_s1 + $0x9f8] sm:$0xff] }
 0x219   :  { %2054 = vmatpush2.msra.mxu1 %v4894_v5  ;;  %v1492_v6 = vpop.f32.mrf.mxu1  ;;  %1925 = vmatprep.subr.mxu0 %v4895_v7  ;;  %v4934_v2 = vld [vmem:[%s15161_s1 + $0x9f0] sm:$0xff]  ;;  %v4936_v3 = vld [vmem:[%s15161_s1 + $0x9d8] sm:$0xff] }
 0x21a   :  { %2055 = vmatprep.subr.mxu1 %v4896_v8  ;;  %v1493_v9 = vadd.f32 %v1492_v6, %v1422_v41  ;;  %1926 = vmatpush2.msra.mxu0 %v4897_v12  ;;  %v4910_v41 = vld [vmem:[%s15161_s1 + $0x5f0] sm:$0xff]  ;;  %v4939_v6 = vld [vmem:[%s15161_s1 + $0x4f8] sm:$0xff] }
 0x21b   :  { %2056 = vmatpush2.msra.mxu1 %v4898_v13  ;;  %v1563_v15 = vpop.f32.mrf.mxu0  ;;  %v1494_v16 = vpop.f32.mrf.mxu1  ;;  %1927 = vmatprep.subr.mxu0 %v4899_v20  ;;  %v4937_v4 = vld [vmem:[%s15161_s1 + $0x510] sm:$0xff]  ;;  %v4940_v7 = vld [vmem:[%s15161_s1 + $0x9b8] sm:$0xff] }
 0x21c   :  { %2057 = vmatprep.subr.mxu1 %v4900_v21  ;;  %v9831_v24 = vadd.f32 %v1563_v15, %v1493_v9  ;;  %v1495_v25 = vadd.f32 %v1494_v16, %v1424_v50  ;;  %1928 = vmatpush2.msra.mxu0 %v4901_v26  ;;  %v4916_v50 = vld [vmem:[%s15161_s1 + $0x5b8] sm:$0xff]  ;;  %v4938_v5 = vld [vmem:[%s15161_s1 + $0x9d0] sm:$0xff] }
 0x21d   :  { %2058 = vmatpush2.msra.mxu1 %v4902_v27  ;;  %v1565_v29 = vpop.f32.mrf.mxu0  ;;  %1929 = vmatprep.subr.mxu0 %v4903_v30  ;;  %v4941_v8 = vld [vmem:[%s15161_s1 + $0x4f0] sm:$0xff]  ;;  %v4943_v12 = vld [vmem:[%s15161_s1 + $0x4d8] sm:$0xff] }
 0x21e   :  { %2059 = vmatprep.subr.mxu1 %v4904_v31  ;;  %v9850_v32 = vadd.f32 %v1565_v29, %v1495_v25  ;;  %1930 = vmatpush2.msra.mxu0 %v4905_v33  ;;  %v4942_v9 = vld [vmem:[%s15161_s1 + $0x9b0] sm:$0xff]  ;;  %v4944_v13 = vld [vmem:[%s15161_s1 + $0x998] sm:$0xff] }
 0x21f   :  { %1931 = vmatprep.mubr.f32.mxu0 %v9829_v23  ;;  %2060 = vmatpush2.msra.mxu1 %v4906_v34  ;;  %v4945_v15 = vld [vmem:[%s15161_s1 + $0x4d0] sm:$0xff]  ;;  %v4947_v20 = vld [vmem:[%s15161_s1 + $0x4b8] sm:$0xff] }
 0x220   :  { %1932 = vmatmul.mubr.f32.vlgmr.msra.gmra.mxu0 %v9842_v28  ;;  %2061 = vmatprep.subr.mxu1 %v4907_v35  ;;  %v4946_v16 = vld [vmem:[%s15161_s1 + $0x990] sm:$0xff]  ;;  %v4948_v21 = vld [vmem:[%s15161_s1 + $0x978] sm:$0xff] }
 0x221   :  { %2080 = vmatprep.subr.mxu0 %v4908_v39  ;;  %2062 = vmatpush2.msra.mxu1 %v4909_v17  ;;  %v4949_v25 = vld [vmem:[%s15161_s1 + $0x4b0] sm:$0xff]  ;;  %v4951_v27 = vld [vmem:[%s15161_s1 + $0x498] sm:$0xff] }
 0x222   :  { %2081 = vmatpush1.msra.mxu0 %v4910_v41  ;;  %2063 = vmatprep.subr.mxu1 %v4911_v42  ;;  %v4950_v26 = vld [vmem:[%s15161_s1 + $0x970] sm:$0xff]  ;;  %v4952_v29 = vld [vmem:[%s15161_s1 + $0x958] sm:$0xff] }
 0x223   :  { %2082 = vmatprep.subr.mxu0 %v4912_v22  ;;  %2064 = vmatpush2.msra.mxu1 %v4913_v46  ;;  %v4953_v30 = vld [vmem:[%s15161_s1 + $0x490] sm:$0xff]  ;;  %v4955_v33 = vld [vmem:[%s15161_s1 + $0x478] sm:$0xff] }
 0x224   :  { %2083 = vmatpush1.msra.mxu0 %v4914_v47  ;;  %2065 = vmatprep.subr.mxu1 %v4915_v36  ;;  %v4954_v31 = vld [vmem:[%s15161_s1 + $0x950] sm:$0xff]  ;;  %v4956_v34 = vld [vmem:[%s15161_s1 + $0x938] sm:$0xff] }
 0x225   :  { %2084 = vmatprep.subr.mxu0 %v4916_v50  ;;  %2066 = vmatpush2.msra.mxu1 %v4917_v51  ;;  %v4957_v35 = vld [vmem:[%s15161_s1 + $0x470] sm:$0xff]  ;;  %v4959_v17 = vld [vmem:[%s15161_s1 + $0x458] sm:$0xff] }
 0x226   :  { %2085 = vmatpush1.msra.mxu0 %v4918_v52  ;;  %2067 = vmatprep.subr.mxu1 %v4919_v53  ;;  %v4958_v39 = vld [vmem:[%s15161_s1 + $0x930] sm:$0xff]  ;;  %v4960_v41 = vld [vmem:[%s15161_s1 + $0x918] sm:$0xff] }
 0x227   :  { %2086 = vmatprep.subr.mxu0 %v4920_v44  ;;  %2068 = vmatpush2.msra.mxu1 %v4921_v45  ;;  %v4961_v42 = vld [vmem:[%s15161_s1 + $0x450] sm:$0xff]  ;;  %v4963_v46 = vld [vmem:[%s15161_s1 + $0x438] sm:$0xff] }
 0x228   :  { %2087 = vmatpush1.msra.mxu0 %v4922_v55  ;;  %2069 = vmatprep.subr.mxu1 %v4923_v56  ;;  %v4962_v22 = vld [vmem:[%s15161_s1 + $0x910] sm:$0xff]  ;;  %v4964_v47 = vld [vmem:[%s15161_s1 + $0x8f8] sm:$0xff] }
 0x229   :  { %2088 = vmatprep.subr.mxu0 %v4924_v57  ;;  %2070 = vmatpush2.msra.mxu1 %v4925_v58  ;;  %v4965_v36 = vld [vmem:[%s15161_s1 + $0x430] sm:$0xff]  ;;  %v4967_v51 = vld [vmem:[%s15161_s1 + $0x418] sm:$0xff] }
 0x22a   :  { %2089 = vmatpush1.msra.mxu0 %v4926_v59  ;;  %2071 = vmatprep.subr.mxu1 %v4927_v60  ;;  %v4966_v50 = vld [vmem:[%s15161_s1 + $0x8f0] sm:$0xff]  ;;  %v4968_v52 = vld [vmem:[%s15161_s1 + $0x8d8] sm:$0xff] }
 0x22b   :  { %2090 = vmatprep.subr.mxu0 %v4928_v61  ;;  %2072 = vmatpush2.msra.mxu1 %v4929_v62  ;;  %v4969_v53 = vld [vmem:[%s15161_s1 + $0x410] sm:$0xff]  ;;  %v4971_v45 = vld [vmem:[%s15161_s1 + $0x7f8] sm:$0xff] }
 0x22c   :  { %2073 = vmatprep.mubr.f32.mxu1 %v8997_v11  ;;  %2091 = vmatpush1.msra.mxu0 %v4930_v63  ;;  %v4933_v11 = vld [vmem:[%s15161_s1 + $0x530] sm:$0xff]  ;;  %v4972_v55 = vld [vmem:[%s15161_s1 + $0x8b8] sm:$0xff] }
 0x22d   :  { %2074 = vmatmul.mubr.f32.vlgmr.msra.gmra.mxu1 %v9019_v18  ;;  %2092 = vmatprep.subr.mxu0 %v4931_v0  ;;  %v4935_v18 = vld [vmem:[%s15161_s1 + $0x518] sm:$0xff]  ;;  %v4970_v44 = vld [vmem:[%s15161_s1 + $0x8d0] sm:$0xff] }
 0x22e   :  { %2151 = vmatprep.subr.mxu1 %v4932_v1  ;;  %2093 = vmatpush1.msra.mxu0 %v4933_v11  ;;  %v4973_v56 = vld [vmem:[%s15161_s1 + $0x7f0] sm:$0xff]  ;;  %v4975_v58 = vld [vmem:[%s15161_s1 + $0x7d8] sm:$0xff] }
 0x22f   :  { %2152 = vmatpush1.msra.mxu1 %v4934_v2  ;;  %2094 = vmatprep.subr.mxu0 %v4935_v18  ;;  %v4974_v57 = vld [vmem:[%s15161_s1 + $0x8b0] sm:$0xff]  ;;  %v4976_v59 = vld [vmem:[%s15161_s1 + $0x898] sm:$0xff] }
 0x230   :  { %2153 = vmatprep.subr.mxu1 %v4936_v3  ;;  %2095 = vmatpush1.msra.mxu0 %v4937_v4  ;;  %v4977_v60 = vld [vmem:[%s15161_s1 + $0x7d0] sm:$0xff]  ;;  %v4979_v62 = vld [vmem:[%s15161_s1 + $0x7b8] sm:$0xff] }
 0x231   :  { %2154 = vmatpush1.msra.mxu1 %v4938_v5  ;;  %2096 = vmatprep.subr.mxu0 %v4939_v6  ;;  %v4978_v61 = vld [vmem:[%s15161_s1 + $0x890] sm:$0xff]  ;;  %v4980_v63 = vld [vmem:[%s15161_s1 + $0x878] sm:$0xff] }
 0x232   :  { %2155 = vmatprep.subr.mxu1 %v4940_v7  ;;  %2097 = vmatpush1.msra.mxu0 %v4941_v8  ;;  %v4981_v0 = vld [vmem:[%s15161_s1 + $0x7b0] sm:$0xff]  ;;  %v4983_v11 = vld [vmem:[%s15161_s1 + $0x798] sm:$0xff] }
 0x233   :  { %2156 = vmatpush1.msra.mxu1 %v4942_v9  ;;  %2098 = vmatprep.subr.mxu0 %v4943_v12  ;;  %v4982_v1 = vld [vmem:[%s15161_s1 + $0x870] sm:$0xff]  ;;  %v4984_v2 = vld [vmem:[%s15161_s1 + $0x858] sm:$0xff] }
 0x234   :  { %2157 = vmatprep.subr.mxu1 %v4944_v13  ;;  %2099 = vmatpush1.msra.mxu0 %v4945_v15  ;;  %v4985_v18 = vld [vmem:[%s15161_s1 + $0x790] sm:$0xff]  ;;  %v4987_v4 = vld [vmem:[%s15161_s1 + $0x778] sm:$0xff] }
 0x235   :  { %2158 = vmatpush1.msra.mxu1 %v4946_v16  ;;  %2100 = vmatprep.subr.mxu0 %v4947_v20  ;;  %v4986_v3 = vld [vmem:[%s15161_s1 + $0x850] sm:$0xff]  ;;  %v4988_v5 = vld [vmem:[%s15161_s1 + $0x838] sm:$0xff] }
 0x236   :  { %2159 = vmatprep.subr.mxu1 %v4948_v21  ;;  %2101 = vmatpush1.msra.mxu0 %v4949_v25  ;;  %v4989_v6 = vld [vmem:[%s15161_s1 + $0x770] sm:$0xff]  ;;  %v4991_v8 = vld [vmem:[%s15161_s1 + $0x758] sm:$0xff] }
 0x237   :  { %2160 = vmatpush1.msra.mxu1 %v4950_v26  ;;  %2102 = vmatprep.subr.mxu0 %v4951_v27  ;;  %v4990_v7 = vld [vmem:[%s15161_s1 + $0x830] sm:$0xff]  ;;  %v4992_v9 = vld [vmem:[%s15161_s1 + $0x818] sm:$0xff] }
 0x238   :  { %2161 = vmatprep.subr.mxu1 %v4952_v29  ;;  %2103 = vmatpush1.msra.mxu0 %v4953_v30  ;;  %v4993_v12 = vld [vmem:[%s15161_s1 + $0x750] sm:$0xff]  ;;  %v4995_v15 = vld [vmem:[%s15161_s1 + $0x738] sm:$0xff] }
 0x239   :  { %2162 = vmatpush1.msra.mxu1 %v4954_v31  ;;  %2104 = vmatprep.subr.mxu0 %v4955_v33  ;;  %v4994_v13 = vld [vmem:[%s15161_s1 + $0x810] sm:$0xff]  ;;  %v4996_v16 = vld [vmem:[%s15161_s1 + $0xbf8] sm:$0xff] }
 0x23a   :  { %2163 = vmatprep.subr.mxu1 %v4956_v34  ;;  %2105 = vmatpush1.msra.mxu0 %v4957_v35  ;;  %v4997_v20 = vld [vmem:[%s15161_s1 + $0x730] sm:$0xff]  ;;  %v4999_v25 = vld [vmem:[%s15161_s1 + $0x718] sm:$0xff] }
 0x23b   :  { %2164 = vmatpush1.msra.mxu1 %v4958_v39  ;;  %2106 = vmatprep.subr.mxu0 %v4959_v17  ;;  %v4998_v21 = vld [vmem:[%s15161_s1 + $0xbf0] sm:$0xff]  ;;  %v5000_v26 = vld [vmem:[%s15161_s1 + $0xbd8] sm:$0xff] }
 0x23c   :  { %2165 = vmatprep.subr.mxu1 %v4960_v41  ;;  %2107 = vmatpush1.msra.mxu0 %v4961_v42  ;;  %v5001_v27 = vld [vmem:[%s15161_s1 + $0x710] sm:$0xff]  ;;  %v5003_v30 = vld [vmem:[%s15161_s1 + $0x6f8] sm:$0xff] }
 0x23d   :  { %2166 = vmatpush1.msra.mxu1 %v4962_v22  ;;  %2108 = vmatprep.subr.mxu0 %v4963_v46  ;;  %v5002_v29 = vld [vmem:[%s15161_s1 + $0xbd0] sm:$0xff]  ;;  %v5004_v31 = vld [vmem:[%s15161_s1 + $0xbb8] sm:$0xff] }
 0x23e   :  { %2167 = vmatprep.subr.mxu1 %v4964_v47  ;;  %2109 = vmatpush1.msra.mxu0 %v4965_v36  ;;  %v5005_v33 = vld [vmem:[%s15161_s1 + $0x6f0] sm:$0xff]  ;;  %v5007_v35 = vld [vmem:[%s15161_s1 + $0x6d8] sm:$0xff] }
 0x23f   :  { %2168 = vmatpush1.msra.mxu1 %v4966_v50  ;;  %2110 = vmatprep.subr.mxu0 %v4967_v51  ;;  %v5006_v34 = vld [vmem:[%s15161_s1 + $0xbb0] sm:$0xff]  ;;  %v5008_v39 = vld [vmem:[%s15161_s1 + $0xb98] sm:$0xff] }
 0x240   :  { %2169 = vmatprep.subr.mxu1 %v4968_v52  ;;  %2111 = vmatpush1.msra.mxu0 %v4969_v53  ;;  %v5009_v17 = vld [vmem:[%s15161_s1 + $0x6d0] sm:$0xff]  ;;  %v5011_v42 = vld [vmem:[%s15161_s1 + $0x6b8] sm:$0xff] }
 0x241   :  { %2170 = vmatpush1.msra.mxu1 %v4970_v44  ;;  %2112 = vmatprep.subr.mxu0 %v4971_v45  ;;  %v5010_v41 = vld [vmem:[%s15161_s1 + $0xb90] sm:$0xff]  ;;  %v5012_v22 = vld [vmem:[%s15161_s1 + $0xb78] sm:$0xff] }
 0x242   :  { %2171 = vmatprep.subr.mxu1 %v4972_v55  ;;  %2113 = vmatpush2.msra.mxu0 %v4973_v56  ;;  %v5013_v46 = vld [vmem:[%s15161_s1 + $0x6b0] sm:$0xff]  ;;  %v5015_v36 = vld [vmem:[%s15161_s1 + $0x698] sm:$0xff] }
 0x243   :  { %2172 = vmatpush1.msra.mxu1 %v4974_v57  ;;  %2114 = vmatprep.subr.mxu0 %v4975_v58  ;;  %v5014_v47 = vld [vmem:[%s15161_s1 + $0xb70] sm:$0xff]  ;;  %v5016_v50 = vld [vmem:[%s15161_s1 + $0xb58] sm:$0xff] }
 0x244   :  { %2173 = vmatprep.subr.mxu1 %v4976_v59  ;;  %2115 = vmatpush2.msra.mxu0 %v4977_v60  ;;  %v5017_v51 = vld [vmem:[%s15161_s1 + $0x690] sm:$0xff]  ;;  %v5019_v53 = vld [vmem:[%s15161_s1 + $0x678] sm:$0xff] }
 0x245   :  { %2174 = vmatpush1.msra.mxu1 %v4978_v61  ;;  %2116 = vmatprep.subr.mxu0 %v4979_v62  ;;  %v5018_v52 = vld [vmem:[%s15161_s1 + $0xb50] sm:$0xff]  ;;  %v5020_v44 = vld [vmem:[%s15161_s1 + $0xb38] sm:$0xff] }
 0x246   :  { %2175 = vmatprep.subr.mxu1 %v4980_v63  ;;  %2117 = vmatpush2.msra.mxu0 %v4981_v0  ;;  %v5021_v45 = vld [vmem:[%s15161_s1 + $0x670] sm:$0xff]  ;;  %v5023_v56 = vld [vmem:[%s15161_s1 + $0x658] sm:$0xff] }
 0x247   :  { %2176 = vmatpush1.msra.mxu1 %v4982_v1  ;;  %2118 = vmatprep.subr.mxu0 %v4983_v11  ;;  %v5022_v55 = vld [vmem:[%s15161_s1 + $0xb30] sm:$0xff]  ;;  %v5024_v57 = vld [vmem:[%s15161_s1 + $0xb18] sm:$0xff] }
 0x248   :  { %2177 = vmatprep.subr.mxu1 %v4984_v2  ;;  %2119 = vmatpush2.msra.mxu0 %v4985_v18  ;;  %v5025_v58 = vld [vmem:[%s15161_s1 + $0x650] sm:$0xff]  ;;  %v5027_v60 = vld [vmem:[%s15161_s1 + $0x638] sm:$0xff] }
 0x249   :  { %2178 = vmatpush1.msra.mxu1 %v4986_v3  ;;  %2120 = vmatprep.subr.mxu0 %v4987_v4  ;;  %v5026_v59 = vld [vmem:[%s15161_s1 + $0xb10] sm:$0xff]  ;;  %v5028_v61 = vld [vmem:[%s15161_s1 + $0xaf8] sm:$0xff] }
 0x24a   :  { %2179 = vmatprep.subr.mxu1 %v4988_v5  ;;  %2121 = vmatpush2.msra.mxu0 %v4989_v6  ;;  %v5029_v62 = vld [vmem:[%s15161_s1 + $0x630] sm:$0xff]  ;;  %v5031_v0 = vld [vmem:[%s15161_s1 + $0x618] sm:$0xff] }
 0x24b   :  { %2180 = vmatpush1.msra.mxu1 %v4990_v7  ;;  %2122 = vmatprep.subr.mxu0 %v4991_v8  ;;  %v5030_v63 = vld [vmem:[%s15161_s1 + $0xaf0] sm:$0xff]  ;;  %v5032_v1 = vld [vmem:[%s15161_s1 + $0xad8] sm:$0xff] }
 0x24c   :  { %2181 = vmatprep.subr.mxu1 %v4992_v9  ;;  %2123 = vmatpush2.msra.mxu0 %v4993_v12  ;;  %v5033_v11 = vld [vmem:[%s15161_s1 + $0x610] sm:$0xff]  ;;  %v5035_v18 = vld [vmem:[%s15161_s1 + $0xab8] sm:$0xff] }
 0x24d   :  { %2182 = vmatpush1.msra.mxu1 %v4994_v13  ;;  %2124 = vmatprep.subr.mxu0 %v4995_v15  ;;  %v5034_v2 = vld [vmem:[%s15161_s1 + $0xad0] sm:$0xff]  ;;  %v5036_v3 = vld [vmem:[%s15161_s1 + $0xdf8] sm:$0xff] }
 0x24e   :  { %2183 = vmatprep.subr.mxu1 %v4996_v16  ;;  %2125 = vmatpush2.msra.mxu0 %v4997_v20  ;;  %v5038_v4 = vld [vmem:[%s15161_s1 + $0xdf0] sm:$0xff]  ;;  %v5040_v5 = vld [vmem:[%s15161_s1 + $0xdd8] sm:$0xff] }
 0x24f   :  { %2184 = vmatpush2.msra.mxu1 %v4998_v21  ;;  %2126 = vmatprep.subr.mxu0 %v4999_v25  ;;  %v5041_v6 = vld [vmem:[%s15161_s1 + $0xa90] sm:$0xff]  ;;  %v5043_v8 = vld [vmem:[%s15161_s1 + $0xa78] sm:$0xff] }
 0x250   :  { %2185 = vmatprep.subr.mxu1 %v5000_v26  ;;  %2127 = vmatpush2.msra.mxu0 %v5001_v27  ;;  %v5042_v7 = vld [vmem:[%s15161_s1 + $0xdd0] sm:$0xff]  ;;  %v5044_v9 = vld [vmem:[%s15161_s1 + $0xdb8] sm:$0xff] }
 0x251   :  { %2186 = vmatpush2.msra.mxu1 %v5002_v29  ;;  %2128 = vmatprep.subr.mxu0 %v5003_v30  ;;  %v5045_v12 = vld [vmem:[%s15161_s1 + $0xa70] sm:$0xff]  ;;  %v5047_v15 = vld [vmem:[%s15161_s1 + $0xa58] sm:$0xff] }
 0x252   :  { %2187 = vmatprep.subr.mxu1 %v5004_v31  ;;  %2129 = vmatpush2.msra.mxu0 %v5005_v33  ;;  %v5046_v13 = vld [vmem:[%s15161_s1 + $0xdb0] sm:$0xff]  ;;  %v5048_v16 = vld [vmem:[%s15161_s1 + $0xd98] sm:$0xff] }
 0x253   :  { %2188 = vmatpush2.msra.mxu1 %v5006_v34  ;;  %2130 = vmatprep.subr.mxu0 %v5007_v35  ;;  %v5049_v20 = vld [vmem:[%s15161_s1 + $0xa50] sm:$0xff]  ;;  %v5051_v25 = vld [vmem:[%s15161_s1 + $0xa38] sm:$0xff] }
 0x254   :  { %2189 = vmatprep.subr.mxu1 %v5008_v39  ;;  %2131 = vmatpush2.msra.mxu0 %v5009_v17  ;;  %v5050_v21 = vld [vmem:[%s15161_s1 + $0xd90] sm:$0xff]  ;;  %v5052_v26 = vld [vmem:[%s15161_s1 + $0xd78] sm:$0xff] }
 0x255   :  { %2190 = vmatpush2.msra.mxu1 %v5010_v41  ;;  %2132 = vmatprep.subr.mxu0 %v5011_v42  ;;  %v5053_v27 = vld [vmem:[%s15161_s1 + $0xa30] sm:$0xff]  ;;  %v5055_v30 = vld [vmem:[%s15161_s1 + $0xa18] sm:$0xff] }
 0x256   :  { %2191 = vmatprep.subr.mxu1 %v5012_v22  ;;  %2133 = vmatpush2.msra.mxu0 %v5013_v46  ;;  %v5054_v29 = vld [vmem:[%s15161_s1 + $0xd70] sm:$0xff]  ;;  %v5056_v31 = vld [vmem:[%s15161_s1 + $0xd58] sm:$0xff] }
 0x257   :  { %2192 = vmatpush2.msra.mxu1 %v5014_v47  ;;  %2134 = vmatprep.subr.mxu0 %v5015_v36  ;;  %v5057_v33 = vld [vmem:[%s15161_s1 + $0xa10] sm:$0xff]  ;;  %v5059_v35 = vld [vmem:[%s15161_s1 + $0xd38] sm:$0xff] }
 0x258   :  { %2193 = vmatprep.subr.mxu1 %v5016_v50  ;;  %2135 = vmatpush2.msra.mxu0 %v5017_v51  ;;  %v5058_v34 = vld [vmem:[%s15161_s1 + $0xd50] sm:$0xff]  ;;  %v5060_v39 = vld [vmem:[%s15161_s1 + $0x11f8] sm:$0xff] }
 0x259   :  { %2194 = vmatpush2.msra.mxu1 %v5018_v52  ;;  %2136 = vmatprep.subr.mxu0 %v5019_v53  ;;  %v5062_v17 = vld [vmem:[%s15161_s1 + $0x11f0] sm:$0xff]  ;;  %v5064_v41 = vld [vmem:[%s15161_s1 + $0x11d8] sm:$0xff] }
 0x25a   :  { %2195 = vmatprep.subr.mxu1 %v5020_v44  ;;  %2137 = vmatpush2.msra.mxu0 %v5021_v45  ;;  %v5065_v42 = vld [vmem:[%s15161_s1 + $0xd10] sm:$0xff]  ;;  %v5067_v46 = vld [vmem:[%s15161_s1 + $0xcf8] sm:$0xff] }
 0x25b   :  { %2196 = vmatpush2.msra.mxu1 %v5022_v55  ;;  %2138 = vmatprep.subr.mxu0 %v5023_v56  ;;  %v5066_v22 = vld [vmem:[%s15161_s1 + $0x11d0] sm:$0xff]  ;;  %v5068_v47 = vld [vmem:[%s15161_s1 + $0x11b8] sm:$0xff] }
 0x25c   :  { %2197 = vmatprep.subr.mxu1 %v5024_v57  ;;  %2139 = vmatpush2.msra.mxu0 %v5025_v58  ;;  %v5069_v36 = vld [vmem:[%s15161_s1 + $0xcf0] sm:$0xff]  ;;  %v5071_v51 = vld [vmem:[%s15161_s1 + $0xcd8] sm:$0xff] }
 0x25d   :  { %2198 = vmatpush2.msra.mxu1 %v5026_v59  ;;  %2140 = vmatprep.subr.mxu0 %v5027_v60  ;;  %v5070_v50 = vld [vmem:[%s15161_s1 + $0x11b0] sm:$0xff]  ;;  %v5072_v52 = vld [vmem:[%s15161_s1 + $0x1198] sm:$0xff] }
 0x25e   :  { %2199 = vmatprep.subr.mxu1 %v5028_v61  ;;  %2141 = vmatpush2.msra.mxu0 %v5029_v62  ;;  %v5073_v53 = vld [vmem:[%s15161_s1 + $0xcd0] sm:$0xff]  ;;  %v5075_v45 = vld [vmem:[%s15161_s1 + $0xcb8] sm:$0xff] }
 0x25f   :  { %2200 = vmatpush2.msra.mxu1 %v5030_v63  ;;  %2142 = vmatprep.subr.mxu0 %v5031_v0  ;;  %v5074_v44 = vld [vmem:[%s15161_s1 + $0x1190] sm:$0xff]  ;;  %v5076_v55 = vld [vmem:[%s15161_s1 + $0x1178] sm:$0xff] }
 0x260   :  { %2201 = vmatprep.subr.mxu1 %v5032_v1  ;;  %2143 = vmatpush2.msra.mxu0 %v5033_v11  ;;  %v5077_v56 = vld [vmem:[%s15161_s1 + $0xcb0] sm:$0xff]  ;;  %v5079_v58 = vld [vmem:[%s15161_s1 + $0xc98] sm:$0xff] }
 0x261   :  { %2144 = vmatprep.mubr.f32.mxu0 %v9008_v14  ;;  %2202 = vmatpush2.msra.mxu1 %v5034_v2  ;;  %v5037_v14 = vld [vmem:[%s15161_s1 + $0xab0] sm:$0xff]  ;;  %v5080_v59 = vld [vmem:[%s15161_s1 + $0x1158] sm:$0xff] }
 0x262   :  { %2145 = vmatmul.mubr.f32.vlgmr.msra.gmra.mxu0 %v9024_v19  ;;  %2203 = vmatprep.subr.mxu1 %v5035_v18  ;;  %v5039_v19 = vld [vmem:[%s15161_s1 + $0xa98] sm:$0xff]  ;;  %v5078_v57 = vld [vmem:[%s15161_s1 + $0x1170] sm:$0xff] }
 0x263   :  { %2222 = vmatprep.subr.mxu0 %v5036_v3  ;;  %2204 = vmatpush2.msra.mxu1 %v5037_v14  ;;  %v5081_v60 = vld [vmem:[%s15161_s1 + $0xc90] sm:$0xff]  ;;  %v5083_v62 = vld [vmem:[%s15161_s1 + $0xc78] sm:$0xff] }
 0x264   :  { %2223 = vmatpush1.msra.mxu0 %v5038_v4  ;;  %2205 = vmatprep.subr.mxu1 %v5039_v19  ;;  %v5082_v61 = vld [vmem:[%s15161_s1 + $0x1150] sm:$0xff]  ;;  %v5084_v63 = vld [vmem:[%s15161_s1 + $0x1138] sm:$0xff] }
 0x265   :  { %2224 = vmatprep.subr.mxu0 %v5040_v5  ;;  %2206 = vmatpush2.msra.mxu1 %v5041_v6  ;;  %v5085_v0 = vld [vmem:[%s15161_s1 + $0xc70] sm:$0xff]  ;;  %v5087_v11 = vld [vmem:[%s15161_s1 + $0xc58] sm:$0xff] }
 0x266   :  { %2225 = vmatpush1.msra.mxu0 %v5042_v7  ;;  %2207 = vmatprep.subr.mxu1 %v5043_v8  ;;  %v5086_v1 = vld [vmem:[%s15161_s1 + $0x1130] sm:$0xff]  ;;  %v5088_v2 = vld [vmem:[%s15161_s1 + $0x1118] sm:$0xff] }
 0x267   :  { %2226 = vmatprep.subr.mxu0 %v5044_v9  ;;  %2208 = vmatpush2.msra.mxu1 %v5045_v12  ;;  %v5089_v18 = vld [vmem:[%s15161_s1 + $0xc50] sm:$0xff]  ;;  %v5091_v14 = vld [vmem:[%s15161_s1 + $0xc38] sm:$0xff] }
 0x268   :  { %2227 = vmatpush1.msra.mxu0 %v5046_v13  ;;  %2209 = vmatprep.subr.mxu1 %v5047_v15  ;;  %v5090_v3 = vld [vmem:[%s15161_s1 + $0x1110] sm:$0xff]  ;;  %v5092_v4 = vld [vmem:[%s15161_s1 + $0x10f8] sm:$0xff] }
 0x269   :  { %2228 = vmatprep.subr.mxu0 %v5048_v16  ;;  %2210 = vmatpush2.msra.mxu1 %v5049_v20  ;;  %v5093_v19 = vld [vmem:[%s15161_s1 + $0xc30] sm:$0xff]  ;;  %v5095_v6 = vld [vmem:[%s15161_s1 + $0xc18] sm:$0xff] }
 0x26a   :  { %2229 = vmatpush1.msra.mxu0 %v5050_v21  ;;  %2211 = vmatprep.subr.mxu1 %v5051_v25  ;;  %v5094_v5 = vld [vmem:[%s15161_s1 + $0x10f0] sm:$0xff]  ;;  %v5096_v7 = vld [vmem:[%s15161_s1 + $0x10d8] sm:$0xff] }
 0x26b   :  { %2230 = vmatprep.subr.mxu0 %v5052_v26  ;;  %2212 = vmatpush2.msra.mxu1 %v5053_v27  ;;  %v5097_v8 = vld [vmem:[%s15161_s1 + $0xc10] sm:$0xff]  ;;  %v5099_v12 = vld [vmem:[%s15161_s1 + $0xff8] sm:$0xff] }
 0x26c   :  { %2231 = vmatpush1.msra.mxu0 %v5054_v29  ;;  %2213 = vmatprep.subr.mxu1 %v5055_v30  ;;  %v5098_v9 = vld [vmem:[%s15161_s1 + $0x10d0] sm:$0xff]  ;;  %v5100_v13 = vld [vmem:[%s15161_s1 + $0x10b8] sm:$0xff] }
 0x26d   :  { %2232 = vmatprep.subr.mxu0 %v5056_v31  ;;  %2214 = vmatpush2.msra.mxu1 %v5057_v33  ;;  %v5101_v15 = vld [vmem:[%s15161_s1 + $0xff0] sm:$0xff]  ;;  %v5103_v20 = vld [vmem:[%s15161_s1 + $0xfd8] sm:$0xff] }
 0x26e   :  { %2215 = vmatprep.mubr.f32.mxu1 %v9407_v40  ;;  %2233 = vmatpush1.msra.mxu0 %v5058_v34  ;;  %v5061_v40 = vld [vmem:[%s15161_s1 + $0xd30] sm:$0xff]  ;;  %v5104_v21 = vld [vmem:[%s15161_s1 + $0x1098] sm:$0xff] }
 0x26f   :  { %2216 = vmatmul.mubr.f32.vlgmr.msra.gmra.mxu1 %v9431_v38  ;;  %2234 = vmatprep.subr.mxu0 %v5059_v35  ;;  %v5063_v38 = vld [vmem:[%s15161_s1 + $0xd18] sm:$0xff]  ;;  %v5102_v16 = vld [vmem:[%s15161_s1 + $0x10b0] sm:$0xff] }
 0x270   :  { %2293 = vmatprep.subr.mxu1 %v5060_v39  ;;  %2235 = vmatpush1.msra.mxu0 %v5061_v40  ;;  %v5105_v25 = vld [vmem:[%s15161_s1 + $0xfd0] sm:$0xff]  ;;  %v5107_v27 = vld [vmem:[%s15161_s1 + $0xfb8] sm:$0xff] }
 0x271   :  { %2294 = vmatpush1.msra.mxu1 %v5062_v17  ;;  %2236 = vmatprep.subr.mxu0 %v5063_v38  ;;  %v5106_v26 = vld [vmem:[%s15161_s1 + $0x1090] sm:$0xff]  ;;  %v5108_v29 = vld [vmem:[%s15161_s1 + $0x1078] sm:$0xff] }
 0x272   :  { %2295 = vmatprep.subr.mxu1 %v5064_v41  ;;  %2237 = vmatpush1.msra.mxu0 %v5065_v42  ;;  %v5109_v30 = vld [vmem:[%s15161_s1 + $0xfb0] sm:$0xff]  ;;  %v5111_v33 = vld [vmem:[%s15161_s1 + $0xf98] sm:$0xff] }
 0x273   :  { %2296 = vmatpush1.msra.mxu1 %v5066_v22  ;;  %2238 = vmatprep.subr.mxu0 %v5067_v46  ;;  %v5110_v31 = vld [vmem:[%s15161_s1 + $0x1070] sm:$0xff]  ;;  %v5112_v34 = vld [vmem:[%s15161_s1 + $0x1058] sm:$0xff] }
 0x274   :  { %2297 = vmatprep.subr.mxu1 %v5068_v47  ;;  %2239 = vmatpush1.msra.mxu0 %v5069_v36  ;;  %v5113_v35 = vld [vmem:[%s15161_s1 + $0xf90] sm:$0xff]  ;;  %v5115_v40 = vld [vmem:[%s15161_s1 + $0xf78] sm:$0xff] }
 0x275   :  { %2298 = vmatpush1.msra.mxu1 %v5070_v50  ;;  %2240 = vmatprep.subr.mxu0 %v5071_v51  ;;  %v5114_v39 = vld [vmem:[%s15161_s1 + $0x1050] sm:$0xff]  ;;  %v5116_v17 = vld [vmem:[%s15161_s1 + $0x1038] sm:$0xff] }
 0x276   :  { %2299 = vmatprep.subr.mxu1 %v5072_v52  ;;  %2241 = vmatpush1.msra.mxu0 %v5073_v53  ;;  %v5117_v38 = vld [vmem:[%s15161_s1 + $0xf70] sm:$0xff]  ;;  %v5119_v42 = vld [vmem:[%s15161_s1 + $0xf58] sm:$0xff] }
 0x277   :  { %2300 = vmatpush1.msra.mxu1 %v5074_v44  ;;  %2242 = vmatprep.subr.mxu0 %v5075_v45  ;;  %v5118_v41 = vld [vmem:[%s15161_s1 + $0x1030] sm:$0xff]  ;;  %v5120_v22 = vld [vmem:[%s15161_s1 + $0x1018] sm:$0xff] }
 0x278   :  { %2301 = vmatprep.subr.mxu1 %v5076_v55  ;;  %2243 = vmatpush1.msra.mxu0 %v5077_v56  ;;  %v5121_v46 = vld [vmem:[%s15161_s1 + $0xf50] sm:$0xff]  ;;  %v5123_v36 = vld [vmem:[%s15161_s1 + $0xf38] sm:$0xff] }
 0x279   :  { %2302 = vmatpush1.msra.mxu1 %v5078_v57  ;;  %2244 = vmatprep.subr.mxu0 %v5079_v58  ;;  %v5122_v47 = vld [vmem:[%s15161_s1 + $0x1010] sm:$0xff]  ;;  %v5124_v50 = vld [vmem:[%s15161_s1 + $0x13f8] sm:$0xff] }
 0x27a   :  { %2303 = vmatprep.subr.mxu1 %v5080_v59  ;;  %2245 = vmatpush1.msra.mxu0 %v5081_v60  ;;  %v5125_v51 = vld [vmem:[%s15161_s1 + $0xf30] sm:$0xff]  ;;  %v5127_v53 = vld [vmem:[%s15161_s1 + $0xf18] sm:$0xff] }
 0x27b   :  { %2304 = vmatpush1.msra.mxu1 %v5082_v61  ;;  %2246 = vmatprep.subr.mxu0 %v5083_v62  ;;  %v5126_v52 = vld [vmem:[%s15161_s1 + $0x13f0] sm:$0xff]  ;;  %v5128_v44 = vld [vmem:[%s15161_s1 + $0x13d8] sm:$0xff] }
 0x27c   :  { %2305 = vmatprep.subr.mxu1 %v5084_v63  ;;  %2247 = vmatpush1.msra.mxu0 %v5085_v0  ;;  %v5129_v45 = vld [vmem:[%s15161_s1 + $0xf10] sm:$0xff]  ;;  %v5131_v56 = vld [vmem:[%s15161_s1 + $0xef8] sm:$0xff] }
 0x27d   :  { %2306 = vmatpush1.msra.mxu1 %v5086_v1  ;;  %2248 = vmatprep.subr.mxu0 %v5087_v11  ;;  %v5130_v55 = vld [vmem:[%s15161_s1 + $0x13d0] sm:$0xff]  ;;  %v5132_v57 = vld [vmem:[%s15161_s1 + $0x13b8] sm:$0xff] }
 0x27e   :  { %2307 = vmatprep.subr.mxu1 %v5088_v2  ;;  %2249 = vmatpush1.msra.mxu0 %v5089_v18  ;;  %v5133_v58 = vld [vmem:[%s15161_s1 + $0xef0] sm:$0xff]  ;;  %v5135_v60 = vld [vmem:[%s15161_s1 + $0xed8] sm:$0xff] }
 0x27f   :  { %2308 = vmatpush1.msra.mxu1 %v5090_v3  ;;  %2250 = vmatprep.subr.mxu0 %v5091_v14  ;;  %v5134_v59 = vld [vmem:[%s15161_s1 + $0x13b0] sm:$0xff]  ;;  %v5136_v61 = vld [vmem:[%s15161_s1 + $0x1398] sm:$0xff] }
 0x280   :  { %2309 = vmatprep.subr.mxu1 %v5092_v4  ;;  %2251 = vmatpush1.msra.mxu0 %v5093_v19  ;;  %v5137_v62 = vld [vmem:[%s15161_s1 + $0xed0] sm:$0xff]  ;;  %v5139_v0 = vld [vmem:[%s15161_s1 + $0xeb8] sm:$0xff] }
 0x281   :  { %2310 = vmatpush1.msra.mxu1 %v5094_v5  ;;  %2252 = vmatprep.subr.mxu0 %v5095_v6  ;;  %v5138_v63 = vld [vmem:[%s15161_s1 + $0x1390] sm:$0xff]  ;;  %v5140_v1 = vld [vmem:[%s15161_s1 + $0x1378] sm:$0xff] }
 0x282   :  { %2311 = vmatprep.subr.mxu1 %v5096_v7  ;;  %2253 = vmatpush1.msra.mxu0 %v5097_v8  ;;  %v5141_v11 = vld [vmem:[%s15161_s1 + $0xeb0] sm:$0xff]  ;;  %v5143_v18 = vld [vmem:[%s15161_s1 + $0xe98] sm:$0xff] }
 0x283   :  { %2312 = vmatpush1.msra.mxu1 %v5098_v9  ;;  %2254 = vmatprep.subr.mxu0 %v5099_v12  ;;  %v5142_v2 = vld [vmem:[%s15161_s1 + $0x1370] sm:$0xff]  ;;  %v5144_v3 = vld [vmem:[%s15161_s1 + $0x1358] sm:$0xff] }
 0x284   :  { %2313 = vmatprep.subr.mxu1 %v5100_v13  ;;  %2255 = vmatpush2.msra.mxu0 %v5101_v15  ;;  %v5145_v14 = vld [vmem:[%s15161_s1 + $0xe90] sm:$0xff]  ;;  %v5147_v19 = vld [vmem:[%s15161_s1 + $0xe78] sm:$0xff] }
 0x285   :  { %2314 = vmatpush1.msra.mxu1 %v5102_v16  ;;  %2256 = vmatprep.subr.mxu0 %v5103_v20  ;;  %v5146_v4 = vld [vmem:[%s15161_s1 + $0x1350] sm:$0xff]  ;;  %v5148_v5 = vld [vmem:[%s15161_s1 + $0x1338] sm:$0xff] }
 0x286   :  { %2315 = vmatprep.subr.mxu1 %v5104_v21  ;;  %2257 = vmatpush2.msra.mxu0 %v5105_v25  ;;  %v5149_v6 = vld [vmem:[%s15161_s1 + $0xe70] sm:$0xff]  ;;  %v5151_v8 = vld [vmem:[%s15161_s1 + $0xe58] sm:$0xff] }
 0x287   :  { %2316 = vmatpush1.msra.mxu1 %v5106_v26  ;;  %2258 = vmatprep.subr.mxu0 %v5107_v27  ;;  %v5150_v7 = vld [vmem:[%s15161_s1 + $0x1330] sm:$0xff]  ;;  %v5152_v9 = vld [vmem:[%s15161_s1 + $0x1318] sm:$0xff] }
 0x288   :  { %2317 = vmatprep.subr.mxu1 %v5108_v29  ;;  %2259 = vmatpush2.msra.mxu0 %v5109_v30  ;;  %v5153_v12 = vld [vmem:[%s15161_s1 + $0xe50] sm:$0xff]  ;;  %v5155_v15 = vld [vmem:[%s15161_s1 + $0xe38] sm:$0xff] }
 0x289   :  { %2318 = vmatpush1.msra.mxu1 %v5110_v31  ;;  %2260 = vmatprep.subr.mxu0 %v5111_v33  ;;  %v5154_v13 = vld [vmem:[%s15161_s1 + $0x1310] sm:$0xff]  ;;  %v5156_v16 = vld [vmem:[%s15161_s1 + $0x12f8] sm:$0xff] }
 0x28a   :  { %2319 = vmatprep.subr.mxu1 %v5112_v34  ;;  %2261 = vmatpush2.msra.mxu0 %v5113_v35  ;;  %v5157_v20 = vld [vmem:[%s15161_s1 + $0xe30] sm:$0xff]  ;;  %v5159_v25 = vld [vmem:[%s15161_s1 + $0xe18] sm:$0xff] }
 0x28b   :  { %2320 = vmatpush1.msra.mxu1 %v5114_v39  ;;  %2262 = vmatprep.subr.mxu0 %v5115_v40  ;;  %v5158_v21 = vld [vmem:[%s15161_s1 + $0x12f0] sm:$0xff]  ;;  %v5160_v26 = vld [vmem:[%s15161_s1 + $0x12d8] sm:$0xff] }
 0x28c   :  { %2321 = vmatprep.subr.mxu1 %v5116_v17  ;;  %2263 = vmatpush2.msra.mxu0 %v5117_v38  ;;  %v5161_v27 = vld [vmem:[%s15161_s1 + $0xe10] sm:$0xff]  ;;  %v5163_v30 = vld [vmem:[%s15161_s1 + $0x12b8] sm:$0xff] }
 0x28d   :  { %2322 = vmatpush1.msra.mxu1 %v5118_v41  ;;  %2264 = vmatprep.subr.mxu0 %v5119_v42  ;;  %v5162_v29 = vld [vmem:[%s15161_s1 + $0x12d0] sm:$0xff]  ;;  %v5164_v31 = vld [vmem:[%s15161_s1 + $0x14b8] sm:$0x7] }
 0x28e   :  { %2323 = vmatprep.subr.mxu1 %v5120_v22  ;;  %2265 = vmatpush2.msra.mxu0 %v5121_v46  ;;  %v5167_v33 = vld [vmem:[%s15161_s1 + $0x1298] sm:$0xff]  ;;  %v5169_v35 = vld [vmem:[%s15161_s1 + $0x1290] sm:$0xff] }
 0x28f   :  { %2324 = vmatpush1.msra.mxu1 %v5122_v47  ;;  %2266 = vmatprep.subr.mxu0 %v5123_v36  ;;  %v5168_v34 = vld [vmem:[%s15161_s1 + $0x1498] sm:$0xff]  ;;  %v5170_v39 = vld [vmem:[%s15161_s1 + $0x1490] sm:$0xff] }
 0x290   :  { %2325 = vmatprep.subr.mxu1 %v5124_v50  ;;  %2267 = vmatpush2.msra.mxu0 %v5125_v51  ;;  %v5171_v40 = vld [vmem:[%s15161_s1 + $0x1278] sm:$0xff]  ;;  %v5173_v38 = vld [vmem:[%s15161_s1 + $0x1270] sm:$0xff] }
 0x291   :  { %2326 = vmatpush2.msra.mxu1 %v5126_v52  ;;  %2268 = vmatprep.subr.mxu0 %v5127_v53  ;;  %v5172_v17 = vld [vmem:[%s15161_s1 + $0x1478] sm:$0xff]  ;;  %v5174_v41 = vld [vmem:[%s15161_s1 + $0x1470] sm:$0xff] }
 0x292   :  { %2327 = vmatprep.subr.mxu1 %v5128_v44  ;;  %2269 = vmatpush2.msra.mxu0 %v5129_v45  ;;  %v5175_v42 = vld [vmem:[%s15161_s1 + $0x1258] sm:$0xff]  ;;  %v5177_v46 = vld [vmem:[%s15161_s1 + $0x1250] sm:$0xff] }
 0x293   :  { %2328 = vmatpush2.msra.mxu1 %v5130_v55  ;;  %2270 = vmatprep.subr.mxu0 %v5131_v56  ;;  %v5176_v22 = vld [vmem:[%s15161_s1 + $0x1458] sm:$0xff]  ;;  %v5178_v47 = vld [vmem:[%s15161_s1 + $0x1450] sm:$0xff]  ;;  %v5187_v56 = vld [vmem:[%s15161_s1 + $0x1e8] sm:$0xff] }
 0x294   :  { %2329 = vmatprep.subr.mxu1 %v5132_v57  ;;  %2271 = vmatpush2.msra.mxu0 %v5133_v58  ;;  %v5179_v36 = vld [vmem:[%s15161_s1 + $0x1238] sm:$0xff]  ;;  %v5181_v51 = vld [vmem:[%s15161_s1 + $0x1230] sm:$0xff]  ;;  %v5188_v57 = vld [vmem:[%s15161_s1 + $0x5e8] sm:$0xff] }
 0x295   :  { %2330 = vmatpush2.msra.mxu1 %v5134_v59  ;;  %2272 = vmatprep.subr.mxu0 %v5135_v60  ;;  %v5180_v50 = vld [vmem:[%s15161_s1 + $0x1438] sm:$0xff]  ;;  %v5182_v52 = vld [vmem:[%s15161_s1 + $0x1430] sm:$0xff]  ;;  %v5191_v58 = vld [vmem:[%s15161_s1 + $0x1c8] sm:$0xff] }
 0x296   :  { %2331 = vmatprep.subr.mxu1 %v5136_v61  ;;  %2273 = vmatpush2.msra.mxu0 %v5137_v62  ;;  %v5183_v53 = vld [vmem:[%s15161_s1 + $0x1218] sm:$0xff]  ;;  %v5185_v45 = vld [vmem:[%s15161_s1 + $0x1210] sm:$0xff]  ;;  %v5192_v59 = vld [vmem:[%s15161_s1 + $0x5c8] sm:$0xff] }
 0x297   :  { %2332 = vmatpush2.msra.mxu1 %v5138_v63  ;;  %2274 = vmatprep.subr.mxu0 %v5139_v0  ;;  %v5184_v44 = vld [vmem:[%s15161_s1 + $0x1418] sm:$0xff]  ;;  %v5186_v55 = vld [vmem:[%s15161_s1 + $0x1410] sm:$0xff]  ;;  %v5194_v60 = vld [vmem:[%s15161_s1 + $0x5c0] sm:$0xff] }
 0x298   :  { %2333 = vmatprep.subr.mxu1 %v5140_v1  ;;  %2275 = vmatpush2.msra.mxu0 %v5141_v11  ;;  %v5195_v61 = vld [vmem:[%s15161_s1 + $0x1a8] sm:$0xff]  ;;  %v5197_v63 = vld [vmem:[%s15161_s1 + $0x1a0] sm:$0xff] }
 0x299   :  { %2334 = vmatpush2.msra.mxu1 %v5142_v2  ;;  %2276 = vmatprep.subr.mxu0 %v5143_v18  ;;  %v5196_v62 = vld [vmem:[%s15161_s1 + $0x5a8] sm:$0xff]  ;;  %v5198_v0 = vld [vmem:[%s15161_s1 + $0x5a0] sm:$0xff] }
 0x29a   :  { %2335 = vmatprep.subr.mxu1 %v5144_v3  ;;  %2277 = vmatpush2.msra.mxu0 %v5145_v14  ;;  %v5199_v1 = vld [vmem:[%s15161_s1 + $0x188] sm:$0xff]  ;;  %v5201_v2 = vld [vmem:[%s15161_s1 + $0x180] sm:$0xff] }
 0x29b   :  { %2336 = vmatpush2.msra.mxu1 %v5146_v4  ;;  %2278 = vmatprep.subr.mxu0 %v5147_v19  ;;  %v5200_v11 = vld [vmem:[%s15161_s1 + $0x588] sm:$0xff]  ;;  %v5202_v18 = vld [vmem:[%s15161_s1 + $0x580] sm:$0xff] }
 0x29c   :  { %2337 = vmatprep.subr.mxu1 %v5148_v5  ;;  %2279 = vmatpush2.msra.mxu0 %v5149_v6  ;;  %v5203_v3 = vld [vmem:[%s15161_s1 + $0x168] sm:$0xff]  ;;  %v5205_v4 = vld [vmem:[%s15161_s1 + $0x160] sm:$0xff] }
 0x29d   :  { %2338 = vmatpush2.msra.mxu1 %v5150_v7  ;;  %2280 = vmatprep.subr.mxu0 %v5151_v8  ;;  %v5204_v14 = vld [vmem:[%s15161_s1 + $0x568] sm:$0xff]  ;;  %v5206_v19 = vld [vmem:[%s15161_s1 + $0x560] sm:$0xff] }
 0x29e   :  { %2339 = vmatprep.subr.mxu1 %v5152_v9  ;;  %2281 = vmatpush2.msra.mxu0 %v5153_v12  ;;  %v5207_v5 = vld [vmem:[%s15161_s1 + $0x148] sm:$0xff]  ;;  %v5209_v7 = vld [vmem:[%s15161_s1 + $0x140] sm:$0xff] }
 0x29f   :  { %2340 = vmatpush2.msra.mxu1 %v5154_v13  ;;  %2282 = vmatprep.subr.mxu0 %v5155_v15  ;;  %v5208_v6 = vld [vmem:[%s15161_s1 + $0x548] sm:$0xff]  ;;  %v5210_v8 = vld [vmem:[%s15161_s1 + $0x540] sm:$0xff] }
 0x2a0   :  { %2341 = vmatprep.subr.mxu1 %v5156_v16  ;;  %2283 = vmatpush2.msra.mxu0 %v5157_v20  ;;  %v5211_v9 = vld [vmem:[%s15161_s1 + $0x128] sm:$0xff]  ;;  %v5213_v13 = vld [vmem:[%s15161_s1 + $0x120] sm:$0xff] }
 0x2a1   :  { %2342 = vmatpush2.msra.mxu1 %v5158_v21  ;;  %2284 = vmatprep.subr.mxu0 %v5159_v25  ;;  %v5212_v12 = vld [vmem:[%s15161_s1 + $0x528] sm:$0xff]  ;;  %v5214_v15 = vld [vmem:[%s15161_s1 + $0x520] sm:$0xff] }
 0x2a2   :  { %2343 = vmatprep.subr.mxu1 %v5160_v26  ;;  %2285 = vmatpush2.msra.mxu0 %v5161_v27  ;;  %v5215_v16 = vld [vmem:[%s15161_s1 + $0x108] sm:$0xff]  ;;  %v5217_v21 = vld [vmem:[%s15161_s1 + $0x100] sm:$0xff] }
 0x2a3   :  { %2286 = vmatprep.mubr.f32.mxu0 %v9418_v43  ;;  %2344 = vmatpush2.msra.mxu1 %v5162_v29  ;;  %v5165_v43 = vld [vmem:[%s15161_s1 + $0x12b0] sm:$0xff]  ;;  %v5216_v20 = vld [vmem:[%s15161_s1 + $0x508] sm:$0xff]  ;;  %v5218_v25 = vld [vmem:[%s15161_s1 + $0x500] sm:$0xff] }
 0x2a4   :  { %2287 = vmatmul.mubr.f32.vlgmr.msra.gmra.mxu0 %v9436_v49  ;;  %2345 = vmatprep.subr.mxu1 %v5163_v30  ;;  %v5166_v49 = vld [vmem:[%s15161_s1 + $0x14b0] sm:$0x7]  ;;  %v5219_v26 = vld [vmem:[%s15161_s1 + $0xe8] sm:$0xff]  ;;  %v5221_v29 = vld [vmem:[%s15161_s1 + $0xe0] sm:$0xff] }
 0x2a5   :  { %4437 = vmatprep.subr.msk.mxu0 %vm703_vm0, %v5164_v31  ;;  %2346 = vmatpush2.msra.mxu1 %v5165_v43  ;;  %v5220_v27 = vld [vmem:[%s15161_s1 + $0x4e8] sm:$0xff]  ;;  %v5222_v30 = vld [vmem:[%s15161_s1 + $0x4e0] sm:$0xff] }
 0x2a6   :  { %4438 = vmatpush1.msk.msra.mxu0 %vm703_vm0, %v5166_v49  ;;  %2347 = vmatprep.subr.mxu1 %v5167_v33  ;;  %v5223_v31 = vld [vmem:[%s15161_s1 + $0xc8] sm:$0xff]  ;;  %v5225_v49 = vld [vmem:[%s15161_s1 + $0xc0] sm:$0xff] }
 0x2a7   :  { %2386 = vmatprep.subr.mxu0 %v5168_v34  ;;  %2348 = vmatpush2.msra.mxu1 %v5169_v35  ;;  %v5224_v43 = vld [vmem:[%s15161_s1 + $0x4c8] sm:$0xff]  ;;  %v5226_v33 = vld [vmem:[%s15161_s1 + $0x4c0] sm:$0xff] }
 0x2a8   :  { %2387 = vmatpush1.msra.mxu0 %v5170_v39  ;;  %2349 = vmatprep.subr.mxu1 %v5171_v40  ;;  %v5227_v34 = vld [vmem:[%s15161_s1 + $0xa8] sm:$0xff]  ;;  %v5229_v39 = vld [vmem:[%s15161_s1 + $0xa0] sm:$0xff] }
 0x2a9   :  { %2388 = vmatprep.subr.mxu0 %v5172_v17  ;;  %2350 = vmatpush2.msra.mxu1 %v5173_v38  ;;  %v5228_v35 = vld [vmem:[%s15161_s1 + $0x4a8] sm:$0xff]  ;;  %v5230_v40 = vld [vmem:[%s15161_s1 + $0x4a0] sm:$0xff] }
 0x2aa   :  { %2389 = vmatpush1.msra.mxu0 %v5174_v41  ;;  %2351 = vmatprep.subr.mxu1 %v5175_v42  ;;  %v5231_v17 = vld [vmem:[%s15161_s1 + $0x88] sm:$0xff]  ;;  %v5233_v41 = vld [vmem:[%s15161_s1 + $0x80] sm:$0xff] }
 0x2ab   :  { %2390 = vmatprep.subr.mxu0 %v5176_v22  ;;  %2352 = vmatpush2.msra.mxu1 %v5177_v46  ;;  %v5232_v38 = vld [vmem:[%s15161_s1 + $0x488] sm:$0xff]  ;;  %v5234_v42 = vld [vmem:[%s15161_s1 + $0x480] sm:$0xff] }
 0x2ac   :  { %2391 = vmatpush1.msra.mxu0 %v5178_v47  ;;  %2353 = vmatprep.subr.mxu1 %v5179_v36  ;;  %v5235_v22 = vld [vmem:[%s15161_s1 + $0x68] sm:$0xff]  ;;  %v5237_v47 = vld [vmem:[%s15161_s1 + $0x60] sm:$0xff] }
 0x2ad   :  { %2392 = vmatprep.subr.mxu0 %v5180_v50  ;;  %2354 = vmatpush2.msra.mxu1 %v5181_v51  ;;  %v5236_v46 = vld [vmem:[%s15161_s1 + $0x468] sm:$0xff]  ;;  %v5238_v36 = vld [vmem:[%s15161_s1 + $0x460] sm:$0xff] }
 0x2ae   :  { %2393 = vmatpush1.msra.mxu0 %v5182_v52  ;;  %2355 = vmatprep.subr.mxu1 %v5183_v53  ;;  %v5239_v50 = vld [vmem:[%s15161_s1 + $0x48] sm:$0xff]  ;;  %v5241_v52 = vld [vmem:[%s15161_s1 + $0x40] sm:$0xff] }
 0x2af   :  { %2394 = vmatprep.subr.mxu0 %v5184_v44  ;;  %2356 = vmatpush2.msra.mxu1 %v5185_v45  ;;  %v5240_v51 = vld [vmem:[%s15161_s1 + $0x448] sm:$0xff]  ;;  %v5242_v53 = vld [vmem:[%s15161_s1 + $0x440] sm:$0xff] }
 0x2b0   :  { %2357 = vmatprep.mubr.f32.mxu1 %v9829_v23  ;;  %2395 = vmatpush1.msra.mxu0 %v5186_v55  ;;  %v5189_v23 = vld [vmem:[%s15161_s1 + $0x1e0] sm:$0xff]  ;;  %v5243_v44 = vld [vmem:[%s15161_s1 + $0x28] sm:$0xff] }
 0x2b1   :  { %2358 = vmatmul.mubr.f32.vlgmr.msra.gmra.mxu1 %v9842_v28  ;;  %2428 = vmatprep.mubr.f32.mxu0 %v6515_v37  ;;  %v5190_v28 = vld [vmem:[%s15161_s1 + $0x5e0] sm:$0xff]  ;;  %v5244_v45 = vld [vmem:[%s15161_s1 + $0x428] sm:$0xff] }
 0x2b2   :  { %2454 = vmatprep.subr.mxu0 %v5187_v56  ;;  %2525 = vmatprep.subr.mxu1 %v5188_v57  ;;  %v5245_v55 = vld [vmem:[%s15161_s1 + $0x20] sm:$0xff]  ;;  %v5247_v57 = vld [vmem:[%s15161_s1 + $0x8] sm:$0xff] }
 0x2b3   :  { %4439 = vmatmul.mubr.msk.f32.vlgmr.msra.gmra.mxu0 %vm699_vm1, %v9519_v10  ;;  %2526 = vmatpush1.msra.mxu1 %v5190_v28  ;;  %v5193_v10 = vld [vmem:[%s15161_s1 + $0x1c0] sm:$0xff] }
 0x2b4   :  { %2455 = vmatpush1.msra.mxu0 %v5189_v23  ;;  %2527 = vmatprep.subr.mxu1 %v5192_v59  ;;  %v5246_v56 = vld [vmem:[%s15161_s1 + $0x420] sm:$0xff]  ;;  %v5248_v23 = vld [vmem:[%s15161_s1 + $0x408] sm:$0xff] }
 0x2b5   :  { %2456 = vmatprep.subr.mxu0 %v5191_v58  ;;  %2528 = vmatpush1.msra.mxu1 %v5194_v60  ;;  %v5249_v28 = vld [vmem:[%s15161_s1] sm:$0xff]  ;;  %v5251_v59 = vld [vmem:[%s15161_s1 + $0x3e8] sm:$0xff] }
 0x2b6   :  { %2457 = vmatpush1.msra.mxu0 %v5193_v10  ;;  %2529 = vmatprep.subr.mxu1 %v5196_v62  ;;  %v5250_v58 = vld [vmem:[%s15161_s1 + $0x400] sm:$0xff]  ;;  %v5252_v10 = vld [vmem:[%s15161_s1 + $0x7e8] sm:$0xff] }
 0x2b7   :  { %2458 = vmatprep.subr.mxu0 %v5195_v61  ;;  %2530 = vmatpush1.msra.mxu1 %v5198_v0  ;;  %v5253_v60 = vld [vmem:[%s15161_s1 + $0x3e0] sm:$0xff]  ;;  %v5255_v62 = vld [vmem:[%s15161_s1 + $0x3c8] sm:$0xff] }
 0x2b8   :  { %2459 = vmatpush1.msra.mxu0 %v5197_v63  ;;  %2531 = vmatprep.subr.mxu1 %v5200_v11  ;;  %v5254_v61 = vld [vmem:[%s15161_s1 + $0x7e0] sm:$0xff]  ;;  %v5256_v63 = vld [vmem:[%s15161_s1 + $0x7c8] sm:$0xff] }
 0x2b9   :  { %2460 = vmatprep.subr.mxu0 %v5199_v1  ;;  %2532 = vmatpush1.msra.mxu1 %v5202_v18  ;;  %v5257_v0 = vld [vmem:[%s15161_s1 + $0x3c0] sm:$0xff]  ;;  %v5259_v11 = vld [vmem:[%s15161_s1 + $0x3a8] sm:$0xff] }
 0x2ba   :  { %2461 = vmatpush1.msra.mxu0 %v5201_v2  ;;  %2533 = vmatprep.subr.mxu1 %v5204_v14  ;;  %v5258_v1 = vld [vmem:[%s15161_s1 + $0x7c0] sm:$0xff]  ;;  %v5260_v2 = vld [vmem:[%s15161_s1 + $0x7a8] sm:$0xff] }
 0x2bb   :  { %2462 = vmatprep.subr.mxu0 %v5203_v3  ;;  %2534 = vmatpush1.msra.mxu1 %v5206_v19  ;;  %v5261_v18 = vld [vmem:[%s15161_s1 + $0x3a0] sm:$0xff]  ;;  %v5263_v14 = vld [vmem:[%s15161_s1 + $0x388] sm:$0xff] }
 0x2bc   :  { %2463 = vmatpush1.msra.mxu0 %v5205_v4  ;;  %2535 = vmatprep.subr.mxu1 %v5208_v6  ;;  %v5262_v3 = vld [vmem:[%s15161_s1 + $0x7a0] sm:$0xff]  ;;  %v5264_v4 = vld [vmem:[%s15161_s1 + $0x788] sm:$0xff] }
 0x2bd   :  { %2464 = vmatprep.subr.mxu0 %v5207_v5  ;;  %2536 = vmatpush1.msra.mxu1 %v5210_v8  ;;  %v5265_v19 = vld [vmem:[%s15161_s1 + $0x380] sm:$0xff]  ;;  %v5267_v6 = vld [vmem:[%s15161_s1 + $0x368] sm:$0xff] }
 0x2be   :  { %2465 = vmatpush1.msra.mxu0 %v5209_v7  ;;  %2537 = vmatprep.subr.mxu1 %v5212_v12  ;;  %v5266_v5 = vld [vmem:[%s15161_s1 + $0x780] sm:$0xff]  ;;  %v5268_v7 = vld [vmem:[%s15161_s1 + $0x768] sm:$0xff] }
 0x2bf   :  { %2466 = vmatprep.subr.mxu0 %v5211_v9  ;;  %2538 = vmatpush1.msra.mxu1 %v5214_v15  ;;  %v5269_v8 = vld [vmem:[%s15161_s1 + $0x360] sm:$0xff]  ;;  %v5271_v12 = vld [vmem:[%s15161_s1 + $0x348] sm:$0xff] }
 0x2c0   :  { %2467 = vmatpush1.msra.mxu0 %v5213_v13  ;;  %2539 = vmatprep.subr.mxu1 %v5216_v20  ;;  %v5270_v9 = vld [vmem:[%s15161_s1 + $0x760] sm:$0xff]  ;;  %v5272_v13 = vld [vmem:[%s15161_s1 + $0x748] sm:$0xff] }
 0x2c1   :  { %2468 = vmatprep.subr.mxu0 %v5215_v16  ;;  %2540 = vmatpush1.msra.mxu1 %v5218_v25  ;;  %v5273_v15 = vld [vmem:[%s15161_s1 + $0x340] sm:$0xff]  ;;  %v5275_v20 = vld [vmem:[%s15161_s1 + $0x328] sm:$0xff] }
 0x2c2   :  { %2469 = vmatpush1.msra.mxu0 %v5217_v21  ;;  %2541 = vmatprep.subr.mxu1 %v5220_v27  ;;  %v5274_v16 = vld [vmem:[%s15161_s1 + $0x740] sm:$0xff]  ;;  %v5276_v21 = vld [vmem:[%s15161_s1 + $0x728] sm:$0xff] }
 0x2c3   :  { %2470 = vmatprep.subr.mxu0 %v5219_v26  ;;  %2542 = vmatpush1.msra.mxu1 %v5222_v30  ;;  %v5277_v25 = vld [vmem:[%s15161_s1 + $0x320] sm:$0xff]  ;;  %v5279_v27 = vld [vmem:[%s15161_s1 + $0x308] sm:$0xff] }
 0x2c4   :  { %2471 = vmatpush1.msra.mxu0 %v5221_v29  ;;  %2543 = vmatprep.subr.mxu1 %v5224_v43  ;;  %v5278_v26 = vld [vmem:[%s15161_s1 + $0x720] sm:$0xff]  ;;  %v5280_v29 = vld [vmem:[%s15161_s1 + $0x708] sm:$0xff] }
 0x2c5   :  { %2472 = vmatprep.subr.mxu0 %v5223_v31  ;;  %2544 = vmatpush1.msra.mxu1 %v5226_v33  ;;  %v5281_v30 = vld [vmem:[%s15161_s1 + $0x300] sm:$0xff]  ;;  %v5283_v43 = vld [vmem:[%s15161_s1 + $0x2e8] sm:$0xff] }
 0x2c6   :  { %2473 = vmatpush1.msra.mxu0 %v5225_v49  ;;  %2545 = vmatprep.subr.mxu1 %v5228_v35  ;;  %v5282_v31 = vld [vmem:[%s15161_s1 + $0x700] sm:$0xff]  ;;  %v5284_v49 = vld [vmem:[%s15161_s1 + $0x6e8] sm:$0xff] }
 0x2c7   :  { %2474 = vmatprep.subr.mxu0 %v5227_v34  ;;  %2546 = vmatpush1.msra.mxu1 %v5230_v40  ;;  %v5285_v33 = vld [vmem:[%s15161_s1 + $0x2e0] sm:$0xff]  ;;  %v5287_v35 = vld [vmem:[%s15161_s1 + $0x2c8] sm:$0xff] }
 0x2c8   :  { %2475 = vmatpush1.msra.mxu0 %v5229_v39  ;;  %2547 = vmatprep.subr.mxu1 %v5232_v38  ;;  %v5286_v34 = vld [vmem:[%s15161_s1 + $0x6e0] sm:$0xff]  ;;  %v5288_v39 = vld [vmem:[%s15161_s1 + $0x6c8] sm:$0xff] }
 0x2c9   :  { %2476 = vmatprep.subr.mxu0 %v5231_v17  ;;  %2548 = vmatpush1.msra.mxu1 %v5234_v42  ;;  %v5289_v40 = vld [vmem:[%s15161_s1 + $0x2c0] sm:$0xff]  ;;  %v5291_v38 = vld [vmem:[%s15161_s1 + $0x2a8] sm:$0xff] }
 0x2ca   :  { %2477 = vmatpush1.msra.mxu0 %v5233_v41  ;;  %2549 = vmatprep.subr.mxu1 %v5236_v46  ;;  %v5290_v17 = vld [vmem:[%s15161_s1 + $0x6c0] sm:$0xff]  ;;  %v5292_v41 = vld [vmem:[%s15161_s1 + $0x6a8] sm:$0xff] }
 0x2cb   :  { %2478 = vmatprep.subr.mxu0 %v5235_v22  ;;  %2550 = vmatpush1.msra.mxu1 %v5238_v36  ;;  %v5293_v42 = vld [vmem:[%s15161_s1 + $0x2a0] sm:$0xff]  ;;  %v5295_v46 = vld [vmem:[%s15161_s1 + $0x288] sm:$0xff] }
 0x2cc   :  { %2479 = vmatpush1.msra.mxu0 %v5237_v47  ;;  %2551 = vmatprep.subr.mxu1 %v5240_v51  ;;  %v5294_v22 = vld [vmem:[%s15161_s1 + $0x6a0] sm:$0xff]  ;;  %v5296_v47 = vld [vmem:[%s15161_s1 + $0x688] sm:$0xff] }
 0x2cd   :  { %2480 = vmatprep.subr.mxu0 %v5239_v50  ;;  %2552 = vmatpush1.msra.mxu1 %v5242_v53  ;;  %v5297_v36 = vld [vmem:[%s15161_s1 + $0x280] sm:$0xff]  ;;  %v5299_v51 = vld [vmem:[%s15161_s1 + $0x268] sm:$0xff] }
 0x2ce   :  { %2481 = vmatpush1.msra.mxu0 %v5241_v52  ;;  %2553 = vmatprep.subr.mxu1 %v5244_v45  ;;  %v5298_v50 = vld [vmem:[%s15161_s1 + $0x680] sm:$0xff]  ;;  %v5300_v52 = vld [vmem:[%s15161_s1 + $0x668] sm:$0xff] }
 0x2cf   :  { %2482 = vmatprep.subr.mxu0 %v5243_v44  ;;  %2554 = vmatpush1.msra.mxu1 %v5246_v56  ;;  %v5301_v53 = vld [vmem:[%s15161_s1 + $0x260] sm:$0xff]  ;;  %v5303_v45 = vld [vmem:[%s15161_s1 + $0x248] sm:$0xff] }
 0x2d0   :  { %2483 = vmatpush1.msra.mxu0 %v5245_v55  ;;  %2555 = vmatprep.subr.mxu1 %v5248_v23  ;;  %v5302_v44 = vld [vmem:[%s15161_s1 + $0x660] sm:$0xff]  ;;  %v5304_v55 = vld [vmem:[%s15161_s1 + $0x648] sm:$0xff] }
 0x2d1   :  { %2484 = vmatprep.subr.mxu0 %v5247_v57  ;;  %2556 = vmatpush1.msra.mxu1 %v5250_v58  ;;  %v5305_v56 = vld [vmem:[%s15161_s1 + $0x240] sm:$0xff]  ;;  %v5307_v23 = vld [vmem:[%s15161_s1 + $0x228] sm:$0xff]  ;;  %v11084_v58 = vld [vmem:[%s15160_s0 + $0xb8] sm:$0x3f] }
 0x2d2   :  { %2485 = vmatpush1.msra.mxu0 %v5249_v28  ;;  %2557 = vmatprep.subr.mxu1 %v5252_v10  ;;  %v5306_v57 = vld [vmem:[%s15161_s1 + $0x640] sm:$0xff]  ;;  %v5308_v28 = vld [vmem:[%s15161_s1 + $0x628] sm:$0xff] }
 0x2d3   :  { %2486 = vmatprep.subr.mxu0 %v5251_v59  ;;  %2558 = vmatpush2.msra.mxu1 %v5254_v61  ;;  %v5309_v59 = vld [vmem:[%s15161_s1 + $0x220] sm:$0xff]  ;;  %v5311_v61 = vld [vmem:[%s15161_s1 + $0x208] sm:$0xff] }
 0x2d4   :  { %2487 = vmatpush2.msra.mxu0 %v5253_v60  ;;  %2559 = vmatprep.subr.mxu1 %v5256_v63  ;;  %v5310_v10 = vld [vmem:[%s15161_s1 + $0x620] sm:$0xff]  ;;  %v11095_v60 = vld [vmem:[%s15160_s0 + $0xc8] sm:$0x3f]  ;;  %v11106_v63 = vld [vmem:[%s15160_s0 + $0xb0] sm:$0x3f] }
 0x2d5   :  { %2488 = vmatprep.subr.mxu0 %v5255_v62  ;;  %2560 = vmatpush2.msra.mxu1 %v5258_v1  ;;  %v5312_v62 = vld [vmem:[%s15161_s1 + $0x608] sm:$0xff]  ;;  %v5313_v1 = vld [vmem:[%s15161_s1 + $0x200] sm:$0xff] }
 0x2d6   :  { %2489 = vmatpush2.msra.mxu0 %v5257_v0  ;;  %2561 = vmatprep.subr.mxu1 %v5260_v2  ;;  %v11111_v0 = vld [vmem:[%s15160_s0 + $0xc0] sm:$0x3f]  ;;  %v5315_v2 = vld [vmem:[%s15161_s1 + $0x9e8] sm:$0xff] }
 0x2d7   :  { %2490 = vmatprep.subr.mxu0 %v5259_v11  ;;  %2562 = vmatpush2.msra.mxu1 %v5262_v3  ;;  %v5314_v11 = vld [vmem:[%s15161_s1 + $0x600] sm:$0xff] }
 0x2d8   :  { %2491 = vmatpush2.msra.mxu0 %v5261_v18  ;;  %2563 = vmatprep.subr.mxu1 %v5264_v4  ;;  %v5316_v18 = vld [vmem:[%s15161_s1 + $0xde8] sm:$0xff]  ;;  %v5317_v3 = vld [vmem:[%s15161_s1 + $0x9e0] sm:$0xff] }
 0x2d9   :  { %2492 = vmatprep.subr.mxu0 %v5263_v14  ;;  %2564 = vmatpush2.msra.mxu1 %v5266_v5  ;;  %v5318_v14 = vld [vmem:[%s15161_s1 + $0xde0] sm:$0xff]  ;;  %v5319_v4 = vld [vmem:[%s15161_s1 + $0x9c8] sm:$0xff] }
 0x2da   :  { %2493 = vmatpush2.msra.mxu0 %v5265_v19  ;;  %2565 = vmatprep.subr.mxu1 %v5268_v7  ;;  %v5320_v19 = vld [vmem:[%s15161_s1 + $0xdc8] sm:$0xff]  ;;  %v5321_v5 = vld [vmem:[%s15161_s1 + $0x9c0] sm:$0xff] }
 0x2db   :  { %2494 = vmatprep.subr.mxu0 %v5267_v6  ;;  %2566 = vmatpush2.msra.mxu1 %v5270_v9  ;;  %v5322_v6 = vld [vmem:[%s15161_s1 + $0xdc0] sm:$0xff]  ;;  %v5323_v7 = vld [vmem:[%s15161_s1 + $0x9a8] sm:$0xff] }
 0x2dc   :  { %2495 = vmatpush2.msra.mxu0 %v5269_v8  ;;  %2567 = vmatprep.subr.mxu1 %v5272_v13  ;;  %v5324_v8 = vld [vmem:[%s15161_s1 + $0xda8] sm:$0xff]  ;;  %v5325_v9 = vld [vmem:[%s15161_s1 + $0x9a0] sm:$0xff] }
 0x2dd   :  { %2496 = vmatprep.subr.mxu0 %v5271_v12  ;;  %2568 = vmatpush2.msra.mxu1 %v5274_v16  ;;  %v5326_v12 = vld [vmem:[%s15161_s1 + $0xda0] sm:$0xff]  ;;  %v5327_v13 = vld [vmem:[%s15161_s1 + $0x988] sm:$0xff] }
 0x2de   :  { %2497 = vmatpush2.msra.mxu0 %v5273_v15  ;;  %2569 = vmatprep.subr.mxu1 %v5276_v21  ;;  %v5328_v15 = vld [vmem:[%s15161_s1 + $0xd88] sm:$0xff]  ;;  %v5329_v16 = vld [vmem:[%s15161_s1 + $0x980] sm:$0xff] }
 0x2df   :  { %2498 = vmatprep.subr.mxu0 %v5275_v20  ;;  %2570 = vmatpush2.msra.mxu1 %v5278_v26  ;;  %v5330_v20 = vld [vmem:[%s15161_s1 + $0xd80] sm:$0xff]  ;;  %v5331_v21 = vld [vmem:[%s15161_s1 + $0x968] sm:$0xff] }
 0x2e0   :  { %2499 = vmatpush2.msra.mxu0 %v5277_v25  ;;  %2571 = vmatprep.subr.mxu1 %v5280_v29  ;;  %v5332_v25 = vld [vmem:[%s15161_s1 + $0xd68] sm:$0xff]  ;;  %v5333_v26 = vld [vmem:[%s15161_s1 + $0x960] sm:$0xff] }
 0x2e1   :  { %2500 = vmatprep.subr.mxu0 %v5279_v27  ;;  %2572 = vmatpush2.msra.mxu1 %v5282_v31  ;;  %v5334_v27 = vld [vmem:[%s15161_s1 + $0xd60] sm:$0xff]  ;;  %v5335_v29 = vld [vmem:[%s15161_s1 + $0x948] sm:$0xff] }
 0x2e2   :  { %2501 = vmatpush2.msra.mxu0 %v5281_v30  ;;  %2573 = vmatprep.subr.mxu1 %v5284_v49  ;;  %v5336_v30 = vld [vmem:[%s15161_s1 + $0xd48] sm:$0xff]  ;;  %v5337_v31 = vld [vmem:[%s15161_s1 + $0x940] sm:$0xff] }
 0x2e3   :  { %2502 = vmatprep.subr.mxu0 %v5283_v43  ;;  %2574 = vmatpush2.msra.mxu1 %v5286_v34  ;;  %v5338_v43 = vld [vmem:[%s15161_s1 + $0xd40] sm:$0xff]  ;;  %v5339_v49 = vld [vmem:[%s15161_s1 + $0x928] sm:$0xff] }
 0x2e4   :  { %2503 = vmatpush2.msra.mxu0 %v5285_v33  ;;  %2575 = vmatprep.subr.mxu1 %v5288_v39  ;;  %v5340_v33 = vld [vmem:[%s15161_s1 + $0xd28] sm:$0xff]  ;;  %v5341_v34 = vld [vmem:[%s15161_s1 + $0x920] sm:$0xff] }
 0x2e5   :  { %2504 = vmatprep.subr.mxu0 %v5287_v35  ;;  %2576 = vmatpush2.msra.mxu1 %v5290_v17  ;;  %v5342_v35 = vld [vmem:[%s15161_s1 + $0xd20] sm:$0xff]  ;;  %v5343_v39 = vld [vmem:[%s15161_s1 + $0x908] sm:$0xff] }
 0x2e6   :  { %2505 = vmatpush2.msra.mxu0 %v5289_v40  ;;  %2577 = vmatprep.subr.mxu1 %v5292_v41  ;;  %v5344_v40 = vld [vmem:[%s15161_s1 + $0xd08] sm:$0xff]  ;;  %v5345_v17 = vld [vmem:[%s15161_s1 + $0x900] sm:$0xff] }
 0x2e7   :  { %2506 = vmatprep.subr.mxu0 %v5291_v38  ;;  %2578 = vmatpush2.msra.mxu1 %v5294_v22  ;;  %v5346_v38 = vld [vmem:[%s15161_s1 + $0xd00] sm:$0xff]  ;;  %v5347_v41 = vld [vmem:[%s15161_s1 + $0x8e8] sm:$0xff] }
 0x2e8   :  { %2507 = vmatpush2.msra.mxu0 %v5293_v42  ;;  %2579 = vmatprep.subr.mxu1 %v5296_v47  ;;  %v5348_v42 = vld [vmem:[%s15161_s1 + $0xce8] sm:$0xff]  ;;  %v5349_v22 = vld [vmem:[%s15161_s1 + $0x8e0] sm:$0xff] }
 0x2e9   :  { %2508 = vmatprep.subr.mxu0 %v5295_v46  ;;  %2580 = vmatpush2.msra.mxu1 %v5298_v50  ;;  %v5350_v46 = vld [vmem:[%s15161_s1 + $0xce0] sm:$0xff]  ;;  %v5351_v47 = vld [vmem:[%s15161_s1 + $0x8c8] sm:$0xff] }
 0x2ea   :  { %2509 = vmatpush2.msra.mxu0 %v5297_v36  ;;  %2581 = vmatprep.subr.mxu1 %v5300_v52  ;;  %v5352_v36 = vld [vmem:[%s15161_s1 + $0xcc8] sm:$0xff]  ;;  %v5353_v50 = vld [vmem:[%s15161_s1 + $0x8c0] sm:$0xff] }
 0x2eb   :  { %2510 = vmatprep.subr.mxu0 %v5299_v51  ;;  %2582 = vmatpush2.msra.mxu1 %v5302_v44  ;;  %v5354_v51 = vld [vmem:[%s15161_s1 + $0xcc0] sm:$0xff]  ;;  %v5355_v52 = vld [vmem:[%s15161_s1 + $0x8a8] sm:$0xff] }
 0x2ec   :  { %2511 = vmatpush2.msra.mxu0 %v5301_v53  ;;  %2583 = vmatprep.subr.mxu1 %v5304_v55  ;;  %v5356_v53 = vld [vmem:[%s15161_s1 + $0xca8] sm:$0xff]  ;;  %v5357_v44 = vld [vmem:[%s15161_s1 + $0x8a0] sm:$0xff] }
 0x2ed   :  { %2512 = vmatprep.subr.mxu0 %v5303_v45  ;;  %2584 = vmatpush2.msra.mxu1 %v5306_v57  ;;  %v5358_v45 = vld [vmem:[%s15161_s1 + $0xca0] sm:$0xff]  ;;  %v5359_v55 = vld [vmem:[%s15161_s1 + $0x888] sm:$0xff] }
 0x2ee   :  { %2513 = vmatpush2.msra.mxu0 %v5305_v56  ;;  %2585 = vmatprep.subr.mxu1 %v5308_v28  ;;  %v5360_v56 = vld [vmem:[%s15161_s1 + $0xc88] sm:$0xff]  ;;  %v5361_v57 = vld [vmem:[%s15161_s1 + $0x880] sm:$0xff] }
 0x2ef   :  { %2514 = vmatprep.subr.mxu0 %v5307_v23  ;;  %2586 = vmatpush2.msra.mxu1 %v5310_v10  ;;  %v5362_v23 = vld [vmem:[%s15161_s1 + $0xc80] sm:$0xff]  ;;  %v5363_v28 = vld [vmem:[%s15161_s1 + $0x868] sm:$0xff]  ;;  %v11273_v10 = vpop.f32.mrf.mxu1 }
 0x2f0   :  { %2515 = vmatpush2.msra.mxu0 %v5309_v59  ;;  %2587 = vmatprep.subr.mxu1 %v5312_v62  ;;  %v5364_v59 = vld [vmem:[%s15161_s1 + $0xc68] sm:$0xff]  ;;  %v5366_v62 = vld [vmem:[%s15161_s1 + $0xc60] sm:$0xff] }
 0x2f1   :  { %2516 = vmatprep.subr.mxu0 %v5311_v61  ;;  %2518 = vmatprep.mubr.f32.mxu0 %v11084_v58  ;;  %v5365_v61 = vld [vmem:[%s15161_s1 + $0x860] sm:$0xff] }
 0x2f2   :  { %2517 = vmatpush2.msra.mxu0 %v5313_v1  ;;  %2588 = vmatpush2.msra.mxu1 %v5314_v11  ;;  %v5367_v1 = vld [vmem:[%s15161_s1 + $0x848] sm:$0xff] }
 0x2f3   :  { %2589 = vmatprep.mubr.f32.mxu1 %v11095_v60  ;;  %2519 = vmatmul.mubr.f32.vlgmr.msra.gmra.mxu0 %v11106_v63  ;;  %v5368_v11 = vld [vmem:[%s15161_s1 + $0xc48] sm:$0xff] }
 0x2f4   :  { %2590 = vmatmul.mubr.f32.vlgmr.msra.gmra.mxu1 %v11111_v0  ;;  %2596 = vmatprep.subr.mxu0 %v5315_v2  ;;  %v11287_v2 = vpop.f32.mrf.mxu0 }
 0x2f5   :  { %2667 = vmatprep.subr.mxu1 %v5316_v18  ;;  %2597 = vmatpush1.msra.mxu0 %v5317_v3  ;;  %v5369_v18 = vld [vmem:[%s15161_s1 + $0x840] sm:$0xff] }
 0x2f6   :  { %2668 = vmatpush1.msra.mxu1 %v5318_v14  ;;  %2598 = vmatprep.subr.mxu0 %v5319_v4  ;;  %v5370_v3 = vld [vmem:[%s15161_s1 + $0xc40] sm:$0xff]  ;;  %v5371_v14 = vld [vmem:[%s15161_s1 + $0x828] sm:$0xff] }
 0x2f7   :  { %2669 = vmatprep.subr.mxu1 %v5320_v19  ;;  %2599 = vmatpush1.msra.mxu0 %v5321_v5  ;;  %v5372_v4 = vld [vmem:[%s15161_s1 + $0xc28] sm:$0xff]  ;;  %v11301_v19 = vpop.f32.mrf.mxu1  ;;  %v5373_v5 = vld [vmem:[%s15161_s1 + $0x820] sm:$0xff] }
 0x2f8   :  { %2670 = vmatpush1.msra.mxu1 %v5322_v6  ;;  %2600 = vmatprep.subr.mxu0 %v5323_v7  ;;  %v5374_v6 = vld [vmem:[%s15161_s1 + $0xc20] sm:$0xff]  ;;  %v5375_v7 = vld [vmem:[%s15161_s1 + $0x808] sm:$0xff] }
 0x2f9   :  { %2671 = vmatprep.subr.mxu1 %v5324_v8  ;;  %2601 = vmatpush1.msra.mxu0 %v5325_v9  ;;  %v5376_v8 = vld [vmem:[%s15161_s1 + $0xc08] sm:$0xff]  ;;  %v11315_v9 = vpop.f32.mrf.mxu0 }
 0x2fa   :  { %2672 = vmatpush1.msra.mxu1 %v5326_v12  ;;  %2602 = vmatprep.subr.mxu0 %v5327_v13  ;;  %v11317_v12 = vpop.f32.mrf.mxu1  ;;  %v5377_v13 = vld [vmem:[%s15161_s1 + $0x800] sm:$0xff] }
 0x2fb   :  { %2673 = vmatprep.subr.mxu1 %v5328_v15  ;;  %2603 = vmatpush1.msra.mxu0 %v5329_v16  ;;  %v5378_v15 = vld [vmem:[%s15161_s1 + $0xc00] sm:$0xff]  ;;  %v5379_v16 = vld [vmem:[%s15161_s1 + $0xbe8] sm:$0xff] }
 0x2fc   :  { %2674 = vmatpush1.msra.mxu1 %v5330_v20  ;;  %2604 = vmatprep.subr.mxu0 %v5331_v21  ;;  %v5380_v20 = vld [vmem:[%s15161_s1 + $0xfe8] sm:$0xff]  ;;  %v11331_v21 = vpop.f32.mrf.mxu0 }
 0x2fd   :  { %2675 = vmatprep.subr.mxu1 %v5332_v25  ;;  %2605 = vmatpush1.msra.mxu0 %v5333_v26  ;;  %v5381_v25 = vld [vmem:[%s15161_s1 + $0xbe0] sm:$0xff] }
 0x2fe   :  { %2676 = vmatpush1.msra.mxu1 %v5334_v27  ;;  %2606 = vmatprep.subr.mxu0 %v5335_v29  ;;  %v5382_v26 = vld [vmem:[%s15161_s1 + $0xfe0] sm:$0xff]  ;;  %v5383_v27 = vld [vmem:[%s15161_s1 + $0xbc8] sm:$0xff] }
 0x2ff   :  { %2677 = vmatprep.subr.mxu1 %v5336_v30  ;;  %2607 = vmatpush1.msra.mxu0 %v5337_v31  ;;  %v5384_v29 = vld [vmem:[%s15161_s1 + $0xfc8] sm:$0xff]  ;;  %v11345_v30 = vpop.f32.mrf.mxu1  ;;  %v5385_v31 = vld [vmem:[%s15161_s1 + $0xbc0] sm:$0xff] }
 0x300   :  { %2678 = vmatpush1.msra.mxu1 %v5338_v43  ;;  %2608 = vmatprep.subr.mxu0 %v5339_v49  ;;  %v5386_v43 = vld [vmem:[%s15161_s1 + $0xfc0] sm:$0xff]  ;;  %v5387_v49 = vld [vmem:[%s15161_s1 + $0xba8] sm:$0xff] }
 0x301   :  { %2679 = vmatprep.subr.mxu1 %v5340_v33  ;;  %2609 = vmatpush1.msra.mxu0 %v5341_v34  ;;  %v5388_v33 = vld [vmem:[%s15161_s1 + $0xfa8] sm:$0xff]  ;;  %v11359_v34 = vpop.f32.mrf.mxu0 }
 0x302   :  { %2680 = vmatpush1.msra.mxu1 %v5342_v35  ;;  %2610 = vmatprep.subr.mxu0 %v5343_v39  ;;  %v11361_v35 = vpop.f32.mrf.mxu1  ;;  %v5389_v39 = vld [vmem:[%s15161_s1 + $0xba0] sm:$0xff] }
 0x303   :  { %2681 = vmatprep.subr.mxu1 %v5344_v40  ;;  %2611 = vmatpush1.msra.mxu0 %v5345_v17  ;;  %v5390_v40 = vld [vmem:[%s15161_s1 + $0xfa0] sm:$0xff]  ;;  %v5391_v17 = vld [vmem:[%s15161_s1 + $0xb88] sm:$0xff] }
 0x304   :  { %2682 = vmatpush1.msra.mxu1 %v5346_v38  ;;  %2612 = vmatprep.subr.mxu0 %v5347_v41  ;;  %v5392_v38 = vld [vmem:[%s15161_s1 + $0xf88] sm:$0xff]  ;;  %v11375_v41 = vpop.f32.mrf.mxu0 }
 0x305   :  { %2683 = vmatprep.subr.mxu1 %v5348_v42  ;;  %2613 = vmatpush1.msra.mxu0 %v5349_v22  ;;  %v5393_v42 = vld [vmem:[%s15161_s1 + $0xb80] sm:$0xff] }
 0x306   :  { %2684 = vmatpush1.msra.mxu1 %v5350_v46  ;;  %2614 = vmatprep.subr.mxu0 %v5351_v47  ;;  %v5394_v22 = vld [vmem:[%s15161_s1 + $0xf80] sm:$0xff]  ;;  %v5395_v46 = vld [vmem:[%s15161_s1 + $0xb68] sm:$0xff] }
 0x307   :  { %2685 = vmatprep.subr.mxu1 %v5352_v36  ;;  %2615 = vmatpush1.msra.mxu0 %v5353_v50  ;;  %v5396_v47 = vld [vmem:[%s15161_s1 + $0xf68] sm:$0xff]  ;;  %v11389_v36 = vpop.f32.mrf.mxu1  ;;  %v5397_v50 = vld [vmem:[%s15161_s1 + $0xb60] sm:$0xff] }
 0x308   :  { %2686 = vmatpush1.msra.mxu1 %v5354_v51  ;;  %2616 = vmatprep.subr.mxu0 %v5355_v52  ;;  %v5398_v51 = vld [vmem:[%s15161_s1 + $0xf60] sm:$0xff]  ;;  %v5399_v52 = vld [vmem:[%s15161_s1 + $0xb48] sm:$0xff] }
 0x309   :  { %2687 = vmatprep.subr.mxu1 %v5356_v53  ;;  %2617 = vmatpush1.msra.mxu0 %v5357_v44  ;;  %v5400_v53 = vld [vmem:[%s15161_s1 + $0xf48] sm:$0xff]  ;;  %v11403_v44 = vpop.f32.mrf.mxu0 }
 0x30a   :  { %2688 = vmatpush1.msra.mxu1 %v5358_v45  ;;  %2618 = vmatprep.subr.mxu0 %v5359_v55  ;;  %v2075_v45 = vpop.f32.mrf.mxu1  ;;  %v5401_v55 = vld [vmem:[%s15161_s1 + $0xb40] sm:$0xff] }
 0x30b   :  { %2689 = vmatprep.subr.mxu1 %v5360_v56  ;;  %2619 = vmatpush1.msra.mxu0 %v5361_v57  ;;  %v5402_v56 = vld [vmem:[%s15161_s1 + $0xf40] sm:$0xff]  ;;  %v5403_v57 = vld [vmem:[%s15161_s1 + $0xb28] sm:$0xff] }
 0x30c   :  { %2690 = vmatpush1.msra.mxu1 %v5362_v23  ;;  %2620 = vmatprep.subr.mxu0 %v5363_v28  ;;  %v5404_v23 = vld [vmem:[%s15161_s1 + $0xf28] sm:$0xff]  ;;  %v5405_v28 = vld [vmem:[%s15161_s1 + $0xb20] sm:$0xff] }
 0x30d   :  { %2691 = vmatprep.subr.mxu1 %v5364_v59  ;;  %2621 = vmatpush1.msra.mxu0 %v5365_v61  ;;  %v5406_v59 = vld [vmem:[%s15161_s1 + $0xf20] sm:$0xff] }
 0x30e   :  { %2692 = vmatpush1.msra.mxu1 %v5366_v62  ;;  %2622 = vmatprep.subr.mxu0 %v5367_v1  ;;  %v5407_v62 = vld [vmem:[%s15161_s1 + $0xb08] sm:$0xff] }
 0x30f   :  { %2693 = vmatprep.subr.mxu1 %v5368_v11  ;;  %2623 = vmatpush1.msra.mxu0 %v5369_v18  ;;  %v5408_v1 = vld [vmem:[%s15161_s1 + $0xf08] sm:$0xff]  ;;  %v2077_v18 = vpop.f32.mrf.mxu1 }
 0x310   :  { %2694 = vmatpush1.msra.mxu1 %v5370_v3  ;;  %2624 = vmatprep.subr.mxu0 %v5371_v14  ;;  %v5409_v3 = vld [vmem:[%s15161_s1 + $0xb00] sm:$0xff] }
 0x311   :  { %2695 = vmatprep.subr.mxu1 %v5372_v4  ;;  %2625 = vmatpush1.msra.mxu0 %v5373_v5  ;;  %v5410_v14 = vld [vmem:[%s15161_s1 + $0xf00] sm:$0xff]  ;;  %v5411_v5 = vld [vmem:[%s15161_s1 + $0xae8] sm:$0xff] }
 0x312   :  { %2696 = vmatpush1.msra.mxu1 %v5374_v6  ;;  %2626 = vmatprep.subr.mxu0 %v5375_v7  ;;  %v5412_v6 = vld [vmem:[%s15161_s1 + $0xee8] sm:$0xff] }
 0x313   :  { %2697 = vmatprep.subr.mxu1 %v5376_v8  ;;  %2627 = vmatpush1.msra.mxu0 %v5377_v13  ;;  %v5413_v8 = vld [vmem:[%s15161_s1 + $0xae0] sm:$0xff] }
 0x314   :  { %2698 = vmatpush1.msra.mxu1 %v5378_v15  ;;  %2628 = vmatprep.subr.mxu0 %v5379_v16  ;;  %v5414_v13 = vld [vmem:[%s15161_s1 + $0xee0] sm:$0xff]  ;;  %v5415_v15 = vld [vmem:[%s15161_s1 + $0xac8] sm:$0xff] }
 0x315   :  { %2699 = vmatprep.subr.mxu1 %v5380_v20  ;;  %2629 = vmatpush2.msra.mxu0 %v5381_v25  ;;  %v5416_v16 = vld [vmem:[%s15161_s1 + $0xec8] sm:$0xff]  ;;  %v5417_v20 = vld [vmem:[%s15161_s1 + $0xac0] sm:$0xff] }
 0x316   :  { %2700 = vmatpush2.msra.mxu1 %v5382_v26  ;;  %2630 = vmatprep.subr.mxu0 %v5383_v27  ;;  %v5418_v25 = vld [vmem:[%s15161_s1 + $0xec0] sm:$0xff]  ;;  %v5419_v26 = vld [vmem:[%s15161_s1 + $0xaa8] sm:$0xff] }
 0x317   :  { %2701 = vmatprep.subr.mxu1 %v5384_v29  ;;  %2631 = vmatpush2.msra.mxu0 %v5385_v31  ;;  %v5420_v27 = vld [vmem:[%s15161_s1 + $0xea8] sm:$0xff]  ;;  %v5421_v29 = vld [vmem:[%s15161_s1 + $0xaa0] sm:$0xff] }
 0x318   :  { %2702 = vmatpush2.msra.mxu1 %v5386_v43  ;;  %2632 = vmatprep.subr.mxu0 %v5387_v49  ;;  %v5422_v31 = vld [vmem:[%s15161_s1 + $0xea0] sm:$0xff]  ;;  %v5423_v43 = vld [vmem:[%s15161_s1 + $0xa88] sm:$0xff] }
 0x319   :  { %2703 = vmatprep.subr.mxu1 %v5388_v33  ;;  %2633 = vmatpush2.msra.mxu0 %v5389_v39  ;;  %v5424_v49 = vld [vmem:[%s15161_s1 + $0xe88] sm:$0xff]  ;;  %v5425_v33 = vld [vmem:[%s15161_s1 + $0xa80] sm:$0xff] }
 0x31a   :  { %2704 = vmatpush2.msra.mxu1 %v5390_v40  ;;  %2634 = vmatprep.subr.mxu0 %v5391_v17  ;;  %v5426_v39 = vld [vmem:[%s15161_s1 + $0xe80] sm:$0xff]  ;;  %v5427_v40 = vld [vmem:[%s15161_s1 + $0xa68] sm:$0xff] }
 0x31b   :  { %2705 = vmatprep.subr.mxu1 %v5392_v38  ;;  %2635 = vmatpush2.msra.mxu0 %v5393_v42  ;;  %v5428_v17 = vld [vmem:[%s15161_s1 + $0xe68] sm:$0xff]  ;;  %v5429_v38 = vld [vmem:[%s15161_s1 + $0xa60] sm:$0xff] }
 0x31c   :  { %2706 = vmatpush2.msra.mxu1 %v5394_v22  ;;  %2636 = vmatprep.subr.mxu0 %v5395_v46  ;;  %v5430_v42 = vld [vmem:[%s15161_s1 + $0xe60] sm:$0xff]  ;;  %v5431_v22 = vld [vmem:[%s15161_s1 + $0xa48] sm:$0xff] }
 0x31d   :  { %2707 = vmatprep.subr.mxu1 %v5396_v47  ;;  %2637 = vmatpush2.msra.mxu0 %v5397_v50  ;;  %v5432_v46 = vld [vmem:[%s15161_s1 + $0xe48] sm:$0xff]  ;;  %v5433_v50 = vld [vmem:[%s15161_s1 + $0xa40] sm:$0xff] }
 0x31e   :  { %2708 = vmatpush2.msra.mxu1 %v5398_v51  ;;  %2638 = vmatprep.subr.mxu0 %v5399_v52  ;;  %v5434_v51 = vld [vmem:[%s15161_s1 + $0xe40] sm:$0xff] }
 0x31f   :  { %2709 = vmatprep.subr.mxu1 %v5400_v53  ;;  %2639 = vmatpush2.msra.mxu0 %v5401_v55  ;;  %v5435_v53 = vld [vmem:[%s15161_s1 + $0xa28] sm:$0xff]  ;;  %v11518_v55 = vld [vmem:[%s15160_s0 + $0xd8] sm:$0x3f] }
 0x320   :  { %2710 = vmatpush2.msra.mxu1 %v5402_v56  ;;  %2640 = vmatprep.subr.mxu0 %v5403_v57  ;;  %v5437_v57 = vld [vmem:[%s15161_s1 + $0xa20] sm:$0xff] }
 0x321   :  { %2711 = vmatprep.subr.mxu1 %v5404_v23  ;;  %2641 = vmatpush2.msra.mxu0 %v5405_v28  ;;  %v5438_v23 = vld [vmem:[%s15161_s1 + $0xe20] sm:$0xff]  ;;  %v11529_v28 = vld [vmem:[%s15160_s0 + $0xe8] sm:$0x3f] }
 0x322   :  { %2712 = vmatpush2.msra.mxu1 %v5406_v59  ;;  %v2146_v61 = vpop.f32.mrf.mxu0  ;;  %2642 = vmatprep.subr.mxu0 %v5407_v62  ;;  %v5440_v62 = vld [vmem:[%s15161_s1 + $0xe08] sm:$0xff] }
 0x323   :  { %2713 = vmatprep.subr.mxu1 %v5408_v1  ;;  %v2147_v11 = vadd.f32 %v2146_v61, %v2075_v45  ;;  %2643 = vmatpush2.msra.mxu0 %v5409_v3  ;;  %v5436_v45 = vld [vmem:[%s15161_s1 + $0xe28] sm:$0xff]  ;;  %v11542_v1 = vld [vmem:[%s15160_s0 + $0xd0] sm:$0x3f]  ;;  %v5442_v3 = vld [vmem:[%s15161_s1 + $0xe00] sm:$0xff] }
 0x324   :  { %2714 = vmatpush2.msra.mxu1 %v5410_v14  ;;  %v2148_v4 = vpop.f32.mrf.mxu0  ;;  %2644 = vmatprep.subr.mxu0 %v5411_v5  ;;  %v5439_v61 = vld [vmem:[%s15161_s1 + $0xa08] sm:$0xff]  ;;  %v5445_v5 = vld [vmem:[%s15161_s1 + $0x11e0] sm:$0xff] }
 0x325   :  { %2715 = vmatprep.subr.mxu1 %v5412_v6  ;;  %v2149_v7 = vadd.f32 %v2148_v4, %v2077_v18  ;;  %2645 = vmatpush2.msra.mxu0 %v5413_v8  ;;  %v5441_v18 = vld [vmem:[%s15161_s1 + $0xa00] sm:$0xff]  ;;  %v5443_v14 = vld [vmem:[%s15161_s1 + $0x11e8] sm:$0xff] }
 0x326   :  { %2716 = vmatpush2.msra.mxu1 %v5414_v13  ;;  %2646 = vmatprep.subr.mxu0 %v5415_v15  ;;  %v5444_v4 = vld [vmem:[%s15161_s1 + $0x14a8] sm:$0x7]  ;;  %v5446_v6 = vld [vmem:[%s15161_s1 + $0x14a0] sm:$0x7] }
 0x327   :  { %2717 = vmatprep.subr.mxu1 %v5416_v16  ;;  %2647 = vmatpush2.msra.mxu0 %v5417_v20  ;;  %v5448_v8 = vld [vmem:[%s15161_s1 + $0x1488] sm:$0xff]  ;;  %v5449_v13 = vld [vmem:[%s15161_s1 + $0x11c0] sm:$0xff] }
 0x328   :  { %2718 = vmatpush2.msra.mxu1 %v5418_v25  ;;  %2648 = vmatprep.subr.mxu0 %v5419_v26  ;;  %v5450_v15 = vld [vmem:[%s15161_s1 + $0x1480] sm:$0xff]  ;;  %v5451_v16 = vld [vmem:[%s15161_s1 + $0x11a8] sm:$0xff] }
 0x329   :  { %2719 = vmatprep.subr.mxu1 %v5420_v27  ;;  %2649 = vmatpush2.msra.mxu0 %v5421_v29  ;;  %v5452_v20 = vld [vmem:[%s15161_s1 + $0x1468] sm:$0xff]  ;;  %v5453_v25 = vld [vmem:[%s15161_s1 + $0x11a0] sm:$0xff] }
 0x32a   :  { %2720 = vmatpush2.msra.mxu1 %v5422_v31  ;;  %2650 = vmatprep.subr.mxu0 %v5423_v43  ;;  %v5454_v26 = vld [vmem:[%s15161_s1 + $0x1460] sm:$0xff]  ;;  %v5455_v27 = vld [vmem:[%s15161_s1 + $0x1188] sm:$0xff] }
 0x32b   :  { %2721 = vmatprep.subr.mxu1 %v5424_v49  ;;  %2651 = vmatpush2.msra.mxu0 %v5425_v33  ;;  %v5456_v29 = vld [vmem:[%s15161_s1 + $0x1448] sm:$0xff]  ;;  %v5457_v31 = vld [vmem:[%s15161_s1 + $0x1180] sm:$0xff] }
 0x32c   :  { %2722 = vmatpush2.msra.mxu1 %v5426_v39  ;;  %2652 = vmatprep.subr.mxu0 %v5427_v40  ;;  %v5458_v43 = vld [vmem:[%s15161_s1 + $0x1440] sm:$0xff]  ;;  %v5459_v49 = vld [vmem:[%s15161_s1 + $0x1168] sm:$0xff] }
 0x32d   :  { %2723 = vmatprep.subr.mxu1 %v5428_v17  ;;  %2653 = vmatpush2.msra.mxu0 %v5429_v38  ;;  %v5460_v33 = vld [vmem:[%s15161_s1 + $0x1428] sm:$0xff]  ;;  %v5461_v39 = vld [vmem:[%s15161_s1 + $0x1160] sm:$0xff] }
 0x32e   :  { %2724 = vmatpush2.msra.mxu1 %v5430_v42  ;;  %2654 = vmatprep.subr.mxu0 %v5431_v22  ;;  %v5462_v40 = vld [vmem:[%s15161_s1 + $0x1420] sm:$0xff]  ;;  %v5463_v17 = vld [vmem:[%s15161_s1 + $0x1148] sm:$0xff] }
 0x32f   :  { %2725 = vmatprep.subr.mxu1 %v5432_v46  ;;  %v2217_v47 = vpop.f32.mrf.mxu1  ;;  %2655 = vmatpush2.msra.mxu0 %v5433_v50  ;;  %v5464_v38 = vld [vmem:[%s15161_s1 + $0x1408] sm:$0xff]  ;;  %v11630_v42 = vld [vmem:[%s15160_s0 + $0x100] sm:$0x3f]  ;;  %v5468_v50 = vld [vmem:[%s15161_s1 + $0x1f8] sm:$0xff] }
 0x330   :  { %2726 = vmatpush2.msra.mxu1 %v5434_v51  ;;  %v11507_v52 = vadd.f32 %v2217_v47, %v2147_v11  ;;  %2656 = vmatprep.subr.mxu0 %v5435_v53  ;;  %v11547_v11 = vld [vmem:[%s15160_s0 + $0xe0] sm:$0x3f]  ;;  %v5467_v47 = vld [vmem:[%s15161_s1 + $0x1128] sm:$0xff]  ;;  %v5470_v53 = vld [vmem:[%s15161_s1 + $0x1f0] sm:$0xff] }
 0x331   :  { %2727 = vmatprep.subr.mxu1 %v5436_v45  ;;  %v2219_v56 = vpop.f32.mrf.mxu1  ;;  %2657 = vmatpush2.msra.mxu0 %v5437_v57  ;;  %v5465_v22 = vld [vmem:[%s15161_s1 + $0x1140] sm:$0xff]  ;;  %v5471_v45 = vld [vmem:[%s15161_s1 + $0x1108] sm:$0xff] }
 0x332   :  { %2728 = vmatpush2.msra.mxu1 %v5438_v23  ;;  %v11531_v59 = vadd.f32 %v2219_v56, %v2149_v7  ;;  %2658 = vmatprep.subr.mxu0 %v5439_v61  ;;  %v5447_v7 = vld [vmem:[%s15161_s1 + $0x11c8] sm:$0xff]  ;;  %v5466_v46 = vld [vmem:[%s15161_s1 + $0x1400] sm:$0xff]  ;;  %v5472_v56 = vld [vmem:[%s15161_s1 + $0x1d8] sm:$0xff] }
 0x333   :  { %2729 = vmatprep.subr.mxu1 %v5440_v62  ;;  %2659 = vmatpush2.msra.mxu0 %v5441_v18  ;;  %v5469_v51 = vld [vmem:[%s15161_s1 + $0x1120] sm:$0xff]  ;;  %v5474_v23 = vld [vmem:[%s15161_s1 + $0x1d0] sm:$0xff]  ;;  %v5475_v61 = vld [vmem:[%s15161_s1 + $0x10e8] sm:$0xff] }
 0x334   :  { %2660 = vmatprep.mubr.f32.mxu0 %v11518_v55  ;;  %2730 = vmatpush2.msra.mxu1 %v5442_v3  ;;  %v5473_v57 = vld [vmem:[%s15161_s1 + $0x1100] sm:$0xff]  ;;  %v5476_v62 = vld [vmem:[%s15161_s1 + $0x1b8] sm:$0xff]  ;;  %v5478_v3 = vld [vmem:[%s15161_s1 + $0x1b0] sm:$0xff] }
 0x335   :  { %2731 = vmatprep.mubr.f32.mxu1 %v11529_v28  ;;  %2661 = vmatmul.mubr.f32.vlgmr.msra.gmra.mxu0 %v11542_v1  ;;  %v5477_v18 = vld [vmem:[%s15161_s1 + $0x10e0] sm:$0xff] }
 0x336   :  { %2732 = vmatmul.mubr.f32.vlgmr.msra.gmra.mxu1 %v11547_v11  ;;  %2738 = vmatprep.subr.mxu0 %v5443_v14  ;;  %v5479_v14 = vld [vmem:[%s15161_s1 + $0x10c8] sm:$0xff] }
 0x337   :  { %4451 = vmatprep.subr.msk.mxu1 %vm703_vm0, %v5444_v4  ;;  %2739 = vmatpush1.msra.mxu0 %v5445_v5  ;;  %v5480_v4 = vld [vmem:[%s15161_s1 + $0x198] sm:$0xff]  ;;  %v5481_v5 = vld [vmem:[%s15161_s1 + $0x10c0] sm:$0xff] }
 0x338   :  { %4452 = vmatpush1.msk.msra.mxu1 %vm703_vm0, %v5446_v6  ;;  %2740 = vmatprep.subr.mxu0 %v5447_v7  ;;  %v5482_v6 = vld [vmem:[%s15161_s1 + $0x190] sm:$0xff]  ;;  %v5483_v7 = vld [vmem:[%s15161_s1 + $0x10a8] sm:$0xff] }
 0x339   :  { %2831 = vmatprep.subr.mxu1 %v5448_v8  ;;  %2741 = vmatpush1.msra.mxu0 %v5449_v13  ;;  %v5484_v8 = vld [vmem:[%s15161_s1 + $0x178] sm:$0xff]  ;;  %v5485_v13 = vld [vmem:[%s15161_s1 + $0x10a0] sm:$0xff] }
 0x33a   :  { %2832 = vmatpush1.msra.mxu1 %v5450_v15  ;;  %2742 = vmatprep.subr.mxu0 %v5451_v16  ;;  %v5486_v15 = vld [vmem:[%s15161_s1 + $0x170] sm:$0xff]  ;;  %v5487_v16 = vld [vmem:[%s15161_s1 + $0x1088] sm:$0xff] }
 0x33b   :  { %2833 = vmatprep.subr.mxu1 %v5452_v20  ;;  %2743 = vmatpush1.msra.mxu0 %v5453_v25  ;;  %v5488_v20 = vld [vmem:[%s15161_s1 + $0x158] sm:$0xff]  ;;  %v5489_v25 = vld [vmem:[%s15161_s1 + $0x1080] sm:$0xff] }
 0x33c   :  { %2834 = vmatpush1.msra.mxu1 %v5454_v26  ;;  %2744 = vmatprep.subr.mxu0 %v5455_v27  ;;  %v5490_v26 = vld [vmem:[%s15161_s1 + $0x150] sm:$0xff]  ;;  %v5491_v27 = vld [vmem:[%s15161_s1 + $0x1068] sm:$0xff] }
 0x33d   :  { %2835 = vmatprep.subr.mxu1 %v5456_v29  ;;  %2745 = vmatpush1.msra.mxu0 %v5457_v31  ;;  %v5492_v29 = vld [vmem:[%s15161_s1 + $0x138] sm:$0xff]  ;;  %v5493_v31 = vld [vmem:[%s15161_s1 + $0x1060] sm:$0xff] }
 0x33e   :  { %2836 = vmatpush1.msra.mxu1 %v5458_v43  ;;  %2746 = vmatprep.subr.mxu0 %v5459_v49  ;;  %v5494_v43 = vld [vmem:[%s15161_s1 + $0x130] sm:$0xff]  ;;  %v5495_v49 = vld [vmem:[%s15161_s1 + $0x1048] sm:$0xff] }
 0x33f   :  { %2837 = vmatprep.subr.mxu1 %v5460_v33  ;;  %2747 = vmatpush1.msra.mxu0 %v5461_v39  ;;  %v5496_v33 = vld [vmem:[%s15161_s1 + $0x118] sm:$0xff]  ;;  %v5497_v39 = vld [vmem:[%s15161_s1 + $0x1040] sm:$0xff] }
 0x340   :  { %2838 = vmatpush1.msra.mxu1 %v5462_v40  ;;  %2748 = vmatprep.subr.mxu0 %v5463_v17  ;;  %v5498_v40 = vld [vmem:[%s15161_s1 + $0x110] sm:$0xff]  ;;  %v5499_v17 = vld [vmem:[%s15161_s1 + $0x1028] sm:$0xff] }
 0x341   :  { %2839 = vmatprep.subr.mxu1 %v5464_v38  ;;  %2749 = vmatpush1.msra.mxu0 %v5465_v22  ;;  %v5500_v38 = vld [vmem:[%s15161_s1 + $0xf8] sm:$0xff]  ;;  %v5501_v22 = vld [vmem:[%s15161_s1 + $0x1020] sm:$0xff] }
 0x342   :  { %2840 = vmatpush1.msra.mxu1 %v5466_v46  ;;  %2873 = vmatprep.mubr.f32.mxu1 %v6515_v37  ;;  %v5502_v46 = vld [vmem:[%s15161_s1 + $0xf0] sm:$0xff] }
 0x343   :  { %2750 = vmatprep.subr.mxu0 %v5467_v47  ;;  %4453 = vmatmul.mubr.msk.f32.vlgmr.msra.gmra.mxu1 %vm699_vm1, %v11630_v42  ;;  %v5503_v47 = vld [vmem:[%s15161_s1 + $0x1008] sm:$0xff] }
 0x344   :  { %2880 = vmatprep.subr.mxu1 %v5468_v50  ;;  %2751 = vmatpush1.msra.mxu0 %v5469_v51  ;;  %v5504_v50 = vld [vmem:[%s15161_s1 + $0xd8] sm:$0xff]  ;;  %v5505_v51 = vld [vmem:[%s15161_s1 + $0x1000] sm:$0xff] }
 0x345   :  { %2881 = vmatpush1.msra.mxu1 %v5470_v53  ;;  %2752 = vmatprep.subr.mxu0 %v5471_v45  ;;  %v5506_v53 = vld [vmem:[%s15161_s1 + $0xd0] sm:$0xff]  ;;  %v5507_v45 = vld [vmem:[%s15161_s1 + $0x13e8] sm:$0xff] }
 0x346   :  { %2882 = vmatprep.subr.mxu1 %v5472_v56  ;;  %2753 = vmatpush1.msra.mxu0 %v5473_v57  ;;  %v5508_v56 = vld [vmem:[%s15161_s1 + $0xb8] sm:$0xff]  ;;  %v5509_v57 = vld [vmem:[%s15161_s1 + $0x13e0] sm:$0xff] }
 0x347   :  { %2883 = vmatpush1.msra.mxu1 %v5474_v23  ;;  %2754 = vmatprep.subr.mxu0 %v5475_v61  ;;  %v5510_v23 = vld [vmem:[%s15161_s1 + $0xb0] sm:$0xff]  ;;  %v5511_v61 = vld [vmem:[%s15161_s1 + $0x13c8] sm:$0xff] }
 0x348   :  { %2884 = vmatprep.subr.mxu1 %v5476_v62  ;;  %2755 = vmatpush1.msra.mxu0 %v5477_v18  ;;  %v5512_v62 = vld [vmem:[%s15161_s1 + $0x98] sm:$0xff]  ;;  %v5513_v18 = vld [vmem:[%s15161_s1 + $0x13c0] sm:$0xff] }
 0x349   :  { %2885 = vmatpush1.msra.mxu1 %v5478_v3  ;;  %2756 = vmatprep.subr.mxu0 %v5479_v14  ;;  %v5514_v3 = vld [vmem:[%s15161_s1 + $0x90] sm:$0xff]  ;;  %v5515_v14 = vld [vmem:[%s15161_s1 + $0x13a8] sm:$0xff] }
 0x34a   :  { %2886 = vmatprep.subr.mxu1 %v5480_v4  ;;  %2757 = vmatpush1.msra.mxu0 %v5481_v5  ;;  %v5516_v4 = vld [vmem:[%s15161_s1 + $0x78] sm:$0xff]  ;;  %v5517_v5 = vld [vmem:[%s15161_s1 + $0x13a0] sm:$0xff] }
 0x34b   :  { %2887 = vmatpush1.msra.mxu1 %v5482_v6  ;;  %2758 = vmatprep.subr.mxu0 %v5483_v7  ;;  %v5518_v6 = vld [vmem:[%s15161_s1 + $0x70] sm:$0xff]  ;;  %v5519_v7 = vld [vmem:[%s15161_s1 + $0x1388] sm:$0xff] }
 0x34c   :  { %2888 = vmatprep.subr.mxu1 %v5484_v8  ;;  %2759 = vmatpush1.msra.mxu0 %v5485_v13  ;;  %v5520_v8 = vld [vmem:[%s15161_s1 + $0x58] sm:$0xff]  ;;  %v5521_v13 = vld [vmem:[%s15161_s1 + $0x1380] sm:$0xff] }
 0x34d   :  { %2889 = vmatpush1.msra.mxu1 %v5486_v15  ;;  %2760 = vmatprep.subr.mxu0 %v5487_v16  ;;  %v5522_v15 = vld [vmem:[%s15161_s1 + $0x50] sm:$0xff]  ;;  %v5523_v16 = vld [vmem:[%s15161_s1 + $0x1368] sm:$0xff] }
 0x34e   :  { %2890 = vmatprep.subr.mxu1 %v5488_v20  ;;  %2761 = vmatpush1.msra.mxu0 %v5489_v25  ;;  %v5524_v20 = vld [vmem:[%s15161_s1 + $0x38] sm:$0xff]  ;;  %v5525_v25 = vld [vmem:[%s15161_s1 + $0x1360] sm:$0xff] }
 0x34f   :  { %2891 = vmatpush1.msra.mxu1 %v5490_v26  ;;  %2762 = vmatprep.subr.mxu0 %v5491_v27  ;;  %v5526_v26 = vld [vmem:[%s15161_s1 + $0x30] sm:$0xff]  ;;  %v5527_v27 = vld [vmem:[%s15161_s1 + $0x1348] sm:$0xff] }
 0x350   :  { %2892 = vmatprep.subr.mxu1 %v5492_v29  ;;  %2763 = vmatpush1.msra.mxu0 %v5493_v31  ;;  %v5528_v29 = vld [vmem:[%s15161_s1 + $0x18] sm:$0xff]  ;;  %v5529_v31 = vld [vmem:[%s15161_s1 + $0x1340] sm:$0xff] }
 0x351   :  { %2893 = vmatpush1.msra.mxu1 %v5494_v43  ;;  %2764 = vmatprep.subr.mxu0 %v5495_v49  ;;  %v5530_v43 = vld [vmem:[%s15161_s1 + $0x10] sm:$0xff]  ;;  %v5531_v49 = vld [vmem:[%s15161_s1 + $0x1328] sm:$0xff] }
 0x352   :  { %2894 = vmatprep.subr.mxu1 %v5496_v33  ;;  %2765 = vmatpush1.msra.mxu0 %v5497_v39  ;;  %v5532_v33 = vld [vmem:[%s15161_s1 + $0x3f8] sm:$0xff] }
 0x353   :  { %2895 = vmatpush1.msra.mxu1 %v5498_v40  ;;  %2766 = vmatprep.subr.mxu0 %v5499_v17  ;;  %v5533_v40 = vld [vmem:[%s15161_s1 + $0x1320] sm:$0xff]  ;;  %v5534_v17 = vld [vmem:[%s15161_s1 + $0x3f0] sm:$0xff] }
 0x354   :  { %2896 = vmatprep.subr.mxu1 %v5500_v38  ;;  %2767 = vmatpush1.msra.mxu0 %v5501_v22  ;;  %v5535_v22 = vld [vmem:[%s15161_s1 + $0x1308] sm:$0xff] }
 0x355   :  { %2897 = vmatpush1.msra.mxu1 %v5502_v46  ;;  %2768 = vmatprep.subr.mxu0 %v5503_v47  ;;  %v5536_v46 = vld [vmem:[%s15161_s1 + $0x3d8] sm:$0xff] }
 0x356   :  { %2898 = vmatprep.subr.mxu1 %v5504_v50  ;;  %2769 = vmatpush1.msra.mxu0 %v5505_v51  ;;  %v5537_v50 = vld [vmem:[%s15161_s1 + $0x1300] sm:$0xff] }
 0x357   :  { %2899 = vmatpush1.msra.mxu1 %v5506_v53  ;;  %2770 = vmatprep.subr.mxu0 %v5507_v45  ;;  %v5539_v53 = vld [vmem:[%s15161_s1 + $0x12e8] sm:$0xff]  ;;  %v5540_v45 = vld [vmem:[%s15161_s1 + $0x3b8] sm:$0xff] }
 0x358   :  { %2900 = vmatprep.subr.mxu1 %v5508_v56  ;;  %2771 = vmatpush2.msra.mxu0 %v5509_v57  ;;  %v5541_v56 = vld [vmem:[%s15161_s1 + $0x12e0] sm:$0xff]  ;;  %v5542_v57 = vld [vmem:[%s15161_s1 + $0x3b0] sm:$0xff] }
 0x359   :  { %2901 = vmatpush1.msra.mxu1 %v5510_v23  ;;  %2772 = vmatprep.subr.mxu0 %v5511_v61  ;;  %v5544_v23 = vld [vmem:[%s15161_s1 + $0x398] sm:$0xff]  ;;  %v5545_v61 = vld [vmem:[%s15161_s1 + $0x12c0] sm:$0xff] }
 0x35a   :  { %2902 = vmatprep.subr.mxu1 %v5512_v62  ;;  %2773 = vmatpush2.msra.mxu0 %v5513_v18  ;;  %v5546_v62 = vld [vmem:[%s15161_s1 + $0x390] sm:$0xff]  ;;  %v5547_v18 = vld [vmem:[%s15161_s1 + $0x12a8] sm:$0xff] }
 0x35b   :  { %2903 = vmatpush1.msra.mxu1 %v5514_v3  ;;  %2774 = vmatprep.subr.mxu0 %v5515_v14  ;;  %v5548_v3 = vld [vmem:[%s15161_s1 + $0x378] sm:$0xff]  ;;  %v5549_v14 = vld [vmem:[%s15161_s1 + $0x12a0] sm:$0xff] }
 0x35c   :  { %2904 = vmatprep.subr.mxu1 %v5516_v4  ;;  %2775 = vmatpush2.msra.mxu0 %v5517_v5  ;;  %v5550_v4 = vld [vmem:[%s15161_s1 + $0x370] sm:$0xff]  ;;  %v5551_v5 = vld [vmem:[%s15161_s1 + $0x1288] sm:$0xff] }
 0x35d   :  { %2905 = vmatpush1.msra.mxu1 %v5518_v6  ;;  %2776 = vmatprep.subr.mxu0 %v5519_v7  ;;  %v5552_v6 = vld [vmem:[%s15161_s1 + $0x358] sm:$0xff]  ;;  %v5553_v7 = vld [vmem:[%s15161_s1 + $0x1280] sm:$0xff] }
 0x35e   :  { %2906 = vmatprep.subr.mxu1 %v5520_v8  ;;  %2777 = vmatpush2.msra.mxu0 %v5521_v13  ;;  %v5554_v8 = vld [vmem:[%s15161_s1 + $0x350] sm:$0xff]  ;;  %v5555_v13 = vld [vmem:[%s15161_s1 + $0x1268] sm:$0xff] }
 0x35f   :  { %2907 = vmatpush1.msra.mxu1 %v5522_v15  ;;  %2778 = vmatprep.subr.mxu0 %v5523_v16  ;;  %v5556_v15 = vld [vmem:[%s15161_s1 + $0x338] sm:$0xff]  ;;  %v5557_v16 = vld [vmem:[%s15161_s1 + $0x1260] sm:$0xff] }
 0x360   :  { %2908 = vmatprep.subr.mxu1 %v5524_v20  ;;  %2779 = vmatpush2.msra.mxu0 %v5525_v25  ;;  %v5558_v20 = vld [vmem:[%s15161_s1 + $0x330] sm:$0xff] }
 0x361   :  { %2909 = vmatpush1.msra.mxu1 %v5526_v26  ;;  %2780 = vmatprep.subr.mxu0 %v5527_v27  ;;  %v5559_v26 = vld [vmem:[%s15161_s1 + $0x1248] sm:$0xff]  ;;  %v5560_v27 = vld [vmem:[%s15161_s1 + $0x318] sm:$0xff] }
 0x362   :  { %2910 = vmatprep.subr.mxu1 %v5528_v29  ;;  %2781 = vmatpush2.msra.mxu0 %v5529_v31  ;;  %v5561_v31 = vld [vmem:[%s15161_s1 + $0x1240] sm:$0xff] }
 0x363   :  { %2911 = vmatpush1.msra.mxu1 %v5530_v43  ;;  %2782 = vmatprep.subr.mxu0 %v5531_v49  ;;  %v5562_v43 = vld [vmem:[%s15161_s1 + $0x310] sm:$0xff] }
 0x364   :  { %2912 = vmatprep.subr.mxu1 %v5532_v33  ;;  %v2288_v39 = vpop.f32.mrf.mxu0  ;;  %2783 = vmatpush2.msra.mxu0 %v5533_v40  ;;  %v5564_v40 = vld [vmem:[%s15161_s1 + $0x2f8] sm:$0xff] }
 0x365   :  { %2913 = vmatpush2.msra.mxu1 %v5534_v17  ;;  %v2289_v38 = vadd.f32 %v2288_v39, %v11507_v52  ;;  %2784 = vmatprep.subr.mxu0 %v5535_v22  ;;  %v5538_v52 = vld [vmem:[%s15161_s1 + $0x3d0] sm:$0xff]  ;;  %v5563_v39 = vld [vmem:[%s15161_s1 + $0x1228] sm:$0xff]  ;;  %v11940_v17 = vld [vmem:[%s15160_s0 + $0xf8] sm:$0x3f] }
 0x366   :  { %2914 = vmatprep.subr.mxu1 %v5536_v46  ;;  %v2290_v47 = vpop.f32.mrf.mxu0  ;;  %2785 = vmatpush2.msra.mxu0 %v5537_v50  ;;  %v5565_v46 = vld [vmem:[%s15161_s1 + $0x1220] sm:$0xff]  ;;  %v11953_v50 = vld [vmem:[%s15160_s0 + $0xf0] sm:$0x3f] }
 0x367   :  { %2915 = vmatpush2.msra.mxu1 %v5538_v52  ;;  %v2291_v51 = vadd.f32 %v2290_v47, %v11531_v59  ;;  %2786 = vmatprep.subr.mxu0 %v5539_v53  ;;  %v5543_v59 = vld [vmem:[%s15161_s1 + $0x12c8] sm:$0xff]  ;;  %v5566_v47 = vld [vmem:[%s15161_s1 + $0x2f0] sm:$0xff]  ;;  %v5568_v53 = vld [vmem:[%s15161_s1 + $0x2d8] sm:$0xff] }
 0x368   :  { %2916 = vmatprep.subr.mxu1 %v5540_v45  ;;  %2787 = vmatpush2.msra.mxu0 %v5541_v56 }
 0x369   :  { %2917 = vmatpush2.msra.mxu1 %v5542_v57  ;;  %2788 = vmatprep.subr.mxu0 %v5543_v59  ;;  %v5569_v57 = vld [vmem:[%s15161_s1 + $0x1200] sm:$0xff]  ;;  %v5570_v59 = vld [vmem:[%s15161_s1 + $0x2d0] sm:$0xff] }
 0x36a   :  { %2918 = vmatprep.subr.mxu1 %v5544_v23  ;;  %2789 = vmatpush2.msra.mxu0 %v5545_v61  ;;  %v5571_v61 = vld [vmem:[%s15161_s1 + $0x2b8] sm:$0xff] }
 0x36b   :  { %2919 = vmatpush2.msra.mxu1 %v5546_v62  ;;  %2790 = vmatprep.subr.mxu0 %v5547_v18  ;;  %v5572_v62 = vld [vmem:[%s15161_s1 + $0x5f8] sm:$0xff]  ;;  %v5573_v18 = vld [vmem:[%s15161_s1 + $0x2b0] sm:$0xff] }
 0x36c   :  { %2920 = vmatprep.subr.mxu1 %v5548_v3  ;;  %2791 = vmatpush2.msra.mxu0 %v5549_v14  ;;  %v5574_v3 = vld [vmem:[%s15161_s1 + $0x5f0] sm:$0xff]  ;;  %v5575_v14 = vld [vmem:[%s15161_s1 + $0x298] sm:$0xff] }
 0x36d   :  { %2921 = vmatpush2.msra.mxu1 %v5550_v4  ;;  %2792 = vmatprep.subr.mxu0 %v5551_v5  ;;  %v5576_v4 = vld [vmem:[%s15161_s1 + $0x5d8] sm:$0xff]  ;;  %v5577_v5 = vld [vmem:[%s15161_s1 + $0x290] sm:$0xff] }
 0x36e   :  { %2922 = vmatprep.subr.mxu1 %v5552_v6  ;;  %2793 = vmatpush2.msra.mxu0 %v5553_v7  ;;  %v5578_v6 = vld [vmem:[%s15161_s1 + $0x5d0] sm:$0xff]  ;;  %v5579_v7 = vld [vmem:[%s15161_s1 + $0x278] sm:$0xff] }
 0x36f   :  { %2923 = vmatpush2.msra.mxu1 %v5554_v8  ;;  %2794 = vmatprep.subr.mxu0 %v5555_v13  ;;  %v5580_v8 = vld [vmem:[%s15161_s1 + $0x5b8] sm:$0xff]  ;;  %v5581_v13 = vld [vmem:[%s15161_s1 + $0x270] sm:$0xff] }
 0x370   :  { %2924 = vmatprep.subr.mxu1 %v5556_v15  ;;  %2795 = vmatpush2.msra.mxu0 %v5557_v16  ;;  %v5582_v15 = vld [vmem:[%s15161_s1 + $0x5b0] sm:$0xff]  ;;  %v5583_v16 = vld [vmem:[%s15161_s1 + $0x258] sm:$0xff] }
 0x371   :  { %2925 = vmatpush2.msra.mxu1 %v5558_v20  ;;  %v2359_v25 = vpop.f32.mrf.mxu1  ;;  %2796 = vmatprep.subr.mxu0 %v5559_v26  ;;  %v5584_v20 = vld [vmem:[%s15161_s1 + $0x598] sm:$0xff]  ;;  %v5586_v26 = vld [vmem:[%s15161_s1 + $0x590] sm:$0xff] }
 0x372   :  { %2926 = vmatprep.subr.mxu1 %v5560_v27  ;;  %v2360_v29 = vadd.f32 %v2359_v25, %v2289_v38  ;;  %2797 = vmatpush2.msra.mxu0 %v5561_v31  ;;  %v5585_v25 = vld [vmem:[%s15161_s1 + $0x250] sm:$0xff]  ;;  %v5587_v27 = vld [vmem:[%s15161_s1 + $0x238] sm:$0xff] }
 0x373   :  { %2927 = vmatpush2.msra.mxu1 %v5562_v43  ;;  %v2430_v49 = vpop.f32.mrf.mxu0  ;;  %v2361_v33 = vpop.f32.mrf.mxu1  ;;  %2798 = vmatprep.subr.mxu0 %v5563_v39  ;;  %v5589_v31 = vld [vmem:[%s15161_s1 + $0x230] sm:$0xff] }
 0x374   :  { %2928 = vmatprep.subr.mxu1 %v5564_v40  ;;  %v11942_v38 = vadd.f32 %v2430_v49, %v2360_v29  ;;  %v2362_v22 = vadd.f32 %v2361_v33, %v2291_v51  ;;  %2799 = vmatpush2.msra.mxu0 %v5565_v46  ;;  %v5567_v51 = vld [vmem:[%s15161_s1 + $0x1208] sm:$0xff]  ;;  %v5588_v29 = vld [vmem:[%s15161_s1 + $0x578] sm:$0xff]  ;;  %v5590_v43 = vld [vmem:[%s15161_s1 + $0x570] sm:$0xff] }
 0x375   :  { %2929 = vmatpush2.msra.mxu1 %v5566_v47  ;;  %v2432_v52 = vpop.f32.mrf.mxu0  ;;  %2800 = vmatprep.subr.mxu0 %v5567_v51  ;;  %v5591_v49 = vld [vmem:[%s15161_s1 + $0x218] sm:$0xff]  ;;  %v5593_v39 = vld [vmem:[%s15161_s1 + $0x210] sm:$0xff] }
 0x376   :  { %2930 = vmatprep.subr.mxu1 %v5568_v53  ;;  %v2437_v45 = vmax.f32 %v9831_v24, %v11942_v38  ;;  %v11963_v56 = vadd.f32 %v2432_v52, %v2362_v22  ;;  %2801 = vmatpush2.msra.mxu0 %v5569_v57  ;;  %v5592_v33 = vld [vmem:[%s15161_s1 + $0x558] sm:$0xff]  ;;  %v5594_v40 = vld [vmem:[%s15161_s1 + $0x550] sm:$0xff] }
 0x377   :  { %2802 = vmatprep.mubr.f32.mxu0 %v11940_v17  ;;  %2931 = vmatpush2.msra.mxu1 %v5570_v59  ;;  %v5595_v22 = vld [vmem:[%s15161_s1 + $0x538] sm:$0xff]  ;;  %v5598_v47 = vld [vmem:[%s15161_s1 + $0x9f0] sm:$0xff] }
 0x378   :  { %2803 = vmatmul.mubr.f32.vlgmr.msra.gmra.mxu0 %v11953_v50  ;;  %v2438_v23 = vmax.f32 %v9850_v32, %v11963_v56  ;;  %2932 = vmatprep.subr.mxu1 %v5571_v61  ;;  %v5596_v46 = vld [vmem:[%s15161_s1 + $0x9f8] sm:$0xff]  ;;  %v5601_v51 = vld [vmem:[%s15161_s1 + $0x510] sm:$0xff] }
 0x379   :  { %2951 = vmatprep.subr.mxu0 %v5572_v62  ;;  %2933 = vmatpush2.msra.mxu1 %v5573_v18  ;;  %v5600_v52 = vld [vmem:[%s15161_s1 + $0x9d8] sm:$0xff]  ;;  %v5602_v53 = vld [vmem:[%s15161_s1 + $0x9d0] sm:$0xff] }
 0x37a   :  { %2952 = vmatpush1.msra.mxu0 %v5574_v3  ;;  %2934 = vmatprep.subr.mxu1 %v5575_v14  ;;  %v5603_v57 = vld [vmem:[%s15161_s1 + $0x4f8] sm:$0xff]  ;;  %v5605_v61 = vld [vmem:[%s15161_s1 + $0x4f0] sm:$0xff] }
 0x37b   :  { %2953 = vmatprep.subr.mxu0 %v5576_v4  ;;  %2935 = vmatpush2.msra.mxu1 %v5577_v5  ;;  %v5604_v59 = vld [vmem:[%s15161_s1 + $0x9b8] sm:$0xff]  ;;  %v5606_v62 = vld [vmem:[%s15161_s1 + $0x9b0] sm:$0xff] }
 0x37c   :  { %2954 = vmatpush1.msra.mxu0 %v5578_v6  ;;  %2936 = vmatprep.subr.mxu1 %v5579_v7  ;;  %v5607_v18 = vld [vmem:[%s15161_s1 + $0x4d8] sm:$0xff]  ;;  %v5609_v14 = vld [vmem:[%s15161_s1 + $0x4d0] sm:$0xff] }
 0x37d   :  { %2955 = vmatprep.subr.mxu0 %v5580_v8  ;;  %2937 = vmatpush2.msra.mxu1 %v5581_v13  ;;  %v5608_v3 = vld [vmem:[%s15161_s1 + $0x998] sm:$0xff]  ;;  %v5610_v4 = vld [vmem:[%s15161_s1 + $0x990] sm:$0xff] }
 0x37e   :  { %2956 = vmatpush1.msra.mxu0 %v5582_v15  ;;  %2938 = vmatprep.subr.mxu1 %v5583_v16  ;;  %v5611_v5 = vld [vmem:[%s15161_s1 + $0x4b8] sm:$0xff]  ;;  %v5613_v7 = vld [vmem:[%s15161_s1 + $0x4b0] sm:$0xff] }
 0x37f   :  { %2957 = vmatprep.subr.mxu0 %v5584_v20  ;;  %2939 = vmatpush2.msra.mxu1 %v5585_v25  ;;  %v5612_v6 = vld [vmem:[%s15161_s1 + $0x978] sm:$0xff]  ;;  %v5614_v8 = vld [vmem:[%s15161_s1 + $0x970] sm:$0xff] }
 0x380   :  { %2958 = vmatpush1.msra.mxu0 %v5586_v26  ;;  %2940 = vmatprep.subr.mxu1 %v5587_v27  ;;  %v5615_v13 = vld [vmem:[%s15161_s1 + $0x498] sm:$0xff]  ;;  %v5617_v16 = vld [vmem:[%s15161_s1 + $0x490] sm:$0xff] }
 0x381   :  { %2959 = vmatprep.subr.mxu0 %v5588_v29  ;;  %2941 = vmatpush2.msra.mxu1 %v5589_v31  ;;  %v5616_v15 = vld [vmem:[%s15161_s1 + $0x958] sm:$0xff]  ;;  %v5618_v20 = vld [vmem:[%s15161_s1 + $0x950] sm:$0xff] }
 0x382   :  { %2960 = vmatpush1.msra.mxu0 %v5590_v43  ;;  %2942 = vmatprep.subr.mxu1 %v5591_v49  ;;  %v5619_v25 = vld [vmem:[%s15161_s1 + $0x478] sm:$0xff]  ;;  %v5621_v27 = vld [vmem:[%s15161_s1 + $0x470] sm:$0xff] }
 0x383   :  { %2961 = vmatprep.subr.mxu0 %v5592_v33  ;;  %2943 = vmatpush2.msra.mxu1 %v5593_v39  ;;  %v5620_v26 = vld [vmem:[%s15161_s1 + $0x938] sm:$0xff]  ;;  %v5622_v29 = vld [vmem:[%s15161_s1 + $0x930] sm:$0xff] }
 0x384   :  { %2944 = vmatprep.mubr.f32.mxu1 %v11084_v58  ;;  %2962 = vmatpush1.msra.mxu0 %v5594_v40  ;;  %v5597_v58 = vld [vmem:[%s15161_s1 + $0x530] sm:$0xff]  ;;  %v5623_v31 = vld [vmem:[%s15161_s1 + $0x458] sm:$0xff] }
 0x385   :  { %2945 = vmatmul.mubr.f32.vlgmr.msra.gmra.mxu1 %v11106_v63  ;;  %2963 = vmatprep.subr.mxu0 %v5595_v22  ;;  %v5599_v63 = vld [vmem:[%s15161_s1 + $0x518] sm:$0xff]  ;;  %v5625_v49 = vld [vmem:[%s15161_s1 + $0x450] sm:$0xff] }
 0x386   :  { %3022 = vmatprep.subr.mxu1 %v5596_v46  ;;  %2964 = vmatpush1.msra.mxu0 %v5597_v58  ;;  %v5624_v43 = vld [vmem:[%s15161_s1 + $0x918] sm:$0xff]  ;;  %v5626_v33 = vld [vmem:[%s15161_s1 + $0x910] sm:$0xff] }
 0x387   :  { %3023 = vmatpush1.msra.mxu1 %v5598_v47  ;;  %2965 = vmatprep.subr.mxu0 %v5599_v63  ;;  %v5627_v39 = vld [vmem:[%s15161_s1 + $0x438] sm:$0xff]  ;;  %v5629_v22 = vld [vmem:[%s15161_s1 + $0x430] sm:$0xff] }
 0x388   :  { %3024 = vmatprep.subr.mxu1 %v5600_v52  ;;  %2966 = vmatpush1.msra.mxu0 %v5601_v51  ;;  %v5628_v40 = vld [vmem:[%s15161_s1 + $0x8f8] sm:$0xff]  ;;  %v5630_v46 = vld [vmem:[%s15161_s1 + $0x8f0] sm:$0xff] }
 0x389   :  { %3025 = vmatpush1.msra.mxu1 %v5602_v53  ;;  %2967 = vmatprep.subr.mxu0 %v5603_v57  ;;  %v5631_v58 = vld [vmem:[%s15161_s1 + $0x418] sm:$0xff]  ;;  %v5633_v63 = vld [vmem:[%s15161_s1 + $0x410] sm:$0xff] }
 0x38a   :  { %3026 = vmatprep.subr.mxu1 %v5604_v59  ;;  %2968 = vmatpush1.msra.mxu0 %v5605_v61  ;;  %v5632_v47 = vld [vmem:[%s15161_s1 + $0x8d8] sm:$0xff]  ;;  %v5634_v52 = vld [vmem:[%s15161_s1 + $0x8d0] sm:$0xff] }
 0x38b   :  { %3027 = vmatpush1.msra.mxu1 %v5606_v62  ;;  %2969 = vmatprep.subr.mxu0 %v5607_v18  ;;  %v5635_v51 = vld [vmem:[%s15161_s1 + $0x7f8] sm:$0xff]  ;;  %v5637_v57 = vld [vmem:[%s15161_s1 + $0x7f0] sm:$0xff] }
 0x38c   :  { %3028 = vmatprep.subr.mxu1 %v5608_v3  ;;  %2970 = vmatpush1.msra.mxu0 %v5609_v14  ;;  %v5636_v53 = vld [vmem:[%s15161_s1 + $0x8b8] sm:$0xff]  ;;  %v5638_v59 = vld [vmem:[%s15161_s1 + $0x8b0] sm:$0xff] }
 0x38d   :  { %3029 = vmatpush1.msra.mxu1 %v5610_v4  ;;  %2971 = vmatprep.subr.mxu0 %v5611_v5  ;;  %v5639_v61 = vld [vmem:[%s15161_s1 + $0x7d8] sm:$0xff]  ;;  %v5641_v18 = vld [vmem:[%s15161_s1 + $0x7d0] sm:$0xff] }
 0x38e   :  { %3030 = vmatprep.subr.mxu1 %v5612_v6  ;;  %2972 = vmatpush1.msra.mxu0 %v5613_v7  ;;  %v5640_v62 = vld [vmem:[%s15161_s1 + $0x898] sm:$0xff]  ;;  %v5642_v3 = vld [vmem:[%s15161_s1 + $0x890] sm:$0xff] }
 0x38f   :  { %3031 = vmatpush1.msra.mxu1 %v5614_v8  ;;  %2973 = vmatprep.subr.mxu0 %v5615_v13  ;;  %v5643_v14 = vld [vmem:[%s15161_s1 + $0x7b8] sm:$0xff]  ;;  %v5645_v5 = vld [vmem:[%s15161_s1 + $0x7b0] sm:$0xff] }
 0x390   :  { %3032 = vmatprep.subr.mxu1 %v5616_v15  ;;  %2974 = vmatpush1.msra.mxu0 %v5617_v16  ;;  %v5644_v4 = vld [vmem:[%s15161_s1 + $0x878] sm:$0xff]  ;;  %v5646_v6 = vld [vmem:[%s15161_s1 + $0x870] sm:$0xff] }
 0x391   :  { %3033 = vmatpush1.msra.mxu1 %v5618_v20  ;;  %2975 = vmatprep.subr.mxu0 %v5619_v25  ;;  %v5647_v7 = vld [vmem:[%s15161_s1 + $0x798] sm:$0xff]  ;;  %v5649_v13 = vld [vmem:[%s15161_s1 + $0x790] sm:$0xff] }
 0x392   :  { %3034 = vmatprep.subr.mxu1 %v5620_v26  ;;  %2976 = vmatpush1.msra.mxu0 %v5621_v27  ;;  %v5648_v8 = vld [vmem:[%s15161_s1 + $0x858] sm:$0xff]  ;;  %v5650_v15 = vld [vmem:[%s15161_s1 + $0x850] sm:$0xff] }
 0x393   :  { %3035 = vmatpush1.msra.mxu1 %v5622_v29  ;;  %2977 = vmatprep.subr.mxu0 %v5623_v31  ;;  %v5651_v16 = vld [vmem:[%s15161_s1 + $0x778] sm:$0xff]  ;;  %v5653_v25 = vld [vmem:[%s15161_s1 + $0x770] sm:$0xff] }
 0x394   :  { %3036 = vmatprep.subr.mxu1 %v5624_v43  ;;  %2978 = vmatpush1.msra.mxu0 %v5625_v49  ;;  %v5652_v20 = vld [vmem:[%s15161_s1 + $0x838] sm:$0xff]  ;;  %v5654_v26 = vld [vmem:[%s15161_s1 + $0x830] sm:$0xff] }
 0x395   :  { %3037 = vmatpush1.msra.mxu1 %v5626_v33  ;;  %2979 = vmatprep.subr.mxu0 %v5627_v39  ;;  %v5655_v27 = vld [vmem:[%s15161_s1 + $0x758] sm:$0xff]  ;;  %v5657_v31 = vld [vmem:[%s15161_s1 + $0x750] sm:$0xff] }
 0x396   :  { %3038 = vmatprep.subr.mxu1 %v5628_v40  ;;  %2980 = vmatpush1.msra.mxu0 %v5629_v22  ;;  %v5656_v29 = vld [vmem:[%s15161_s1 + $0x818] sm:$0xff]  ;;  %v5658_v43 = vld [vmem:[%s15161_s1 + $0x810] sm:$0xff] }
 0x397   :  { %3039 = vmatpush1.msra.mxu1 %v5630_v46  ;;  %2981 = vmatprep.subr.mxu0 %v5631_v58  ;;  %v5659_v49 = vld [vmem:[%s15161_s1 + $0x738] sm:$0xff]  ;;  %v5661_v39 = vld [vmem:[%s15161_s1 + $0x730] sm:$0xff] }
 0x398   :  { %3040 = vmatprep.subr.mxu1 %v5632_v47  ;;  %2982 = vmatpush1.msra.mxu0 %v5633_v63  ;;  %v5660_v33 = vld [vmem:[%s15161_s1 + $0xbf8] sm:$0xff]  ;;  %v5662_v40 = vld [vmem:[%s15161_s1 + $0xbf0] sm:$0xff] }
 0x399   :  { %3041 = vmatpush1.msra.mxu1 %v5634_v52  ;;  %2983 = vmatprep.subr.mxu0 %v5635_v51  ;;  %v5663_v22 = vld [vmem:[%s15161_s1 + $0x718] sm:$0xff]  ;;  %v5665_v58 = vld [vmem:[%s15161_s1 + $0x710] sm:$0xff] }
 0x39a   :  { %3042 = vmatprep.subr.mxu1 %v5636_v53  ;;  %2984 = vmatpush2.msra.mxu0 %v5637_v57  ;;  %v5664_v46 = vld [vmem:[%s15161_s1 + $0xbd8] sm:$0xff]  ;;  %v5666_v47 = vld [vmem:[%s15161_s1 + $0xbd0] sm:$0xff] }
 0x39b   :  { %3043 = vmatpush1.msra.mxu1 %v5638_v59  ;;  %2985 = vmatprep.subr.mxu0 %v5639_v61  ;;  %v5667_v63 = vld [vmem:[%s15161_s1 + $0x6f8] sm:$0xff]  ;;  %v5669_v51 = vld [vmem:[%s15161_s1 + $0x6f0] sm:$0xff] }
 0x39c   :  { %3044 = vmatprep.subr.mxu1 %v5640_v62  ;;  %2986 = vmatpush2.msra.mxu0 %v5641_v18  ;;  %v5668_v52 = vld [vmem:[%s15161_s1 + $0xbb8] sm:$0xff]  ;;  %v5670_v53 = vld [vmem:[%s15161_s1 + $0xbb0] sm:$0xff] }
 0x39d   :  { %3045 = vmatpush1.msra.mxu1 %v5642_v3  ;;  %2987 = vmatprep.subr.mxu0 %v5643_v14  ;;  %v5671_v57 = vld [vmem:[%s15161_s1 + $0x6d8] sm:$0xff]  ;;  %v5673_v61 = vld [vmem:[%s15161_s1 + $0x6d0] sm:$0xff] }
 0x39e   :  { %3046 = vmatprep.subr.mxu1 %v5644_v4  ;;  %2988 = vmatpush2.msra.mxu0 %v5645_v5  ;;  %v5672_v59 = vld [vmem:[%s15161_s1 + $0xb98] sm:$0xff]  ;;  %v5674_v62 = vld [vmem:[%s15161_s1 + $0xb90] sm:$0xff] }
 0x39f   :  { %3047 = vmatpush1.msra.mxu1 %v5646_v6  ;;  %2989 = vmatprep.subr.mxu0 %v5647_v7  ;;  %v5675_v18 = vld [vmem:[%s15161_s1 + $0x6b8] sm:$0xff]  ;;  %v5677_v14 = vld [vmem:[%s15161_s1 + $0x6b0] sm:$0xff] }
 0x3a0   :  { %3048 = vmatprep.subr.mxu1 %v5648_v8  ;;  %2990 = vmatpush2.msra.mxu0 %v5649_v13  ;;  %v5676_v3 = vld [vmem:[%s15161_s1 + $0xb78] sm:$0xff]  ;;  %v5678_v4 = vld [vmem:[%s15161_s1 + $0xb70] sm:$0xff] }
 0x3a1   :  { %3049 = vmatpush1.msra.mxu1 %v5650_v15  ;;  %2991 = vmatprep.subr.mxu0 %v5651_v16  ;;  %v5679_v5 = vld [vmem:[%s15161_s1 + $0x698] sm:$0xff]  ;;  %v5681_v7 = vld [vmem:[%s15161_s1 + $0x690] sm:$0xff] }
 0x3a2   :  { %3050 = vmatprep.subr.mxu1 %v5652_v20  ;;  %2992 = vmatpush2.msra.mxu0 %v5653_v25  ;;  %v5680_v6 = vld [vmem:[%s15161_s1 + $0xb58] sm:$0xff]  ;;  %v5682_v8 = vld [vmem:[%s15161_s1 + $0xb50] sm:$0xff] }
 0x3a3   :  { %3051 = vmatpush1.msra.mxu1 %v5654_v26  ;;  %2993 = vmatprep.subr.mxu0 %v5655_v27  ;;  %v5683_v13 = vld [vmem:[%s15161_s1 + $0x678] sm:$0xff]  ;;  %v5685_v16 = vld [vmem:[%s15161_s1 + $0x670] sm:$0xff] }
 0x3a4   :  { %3052 = vmatprep.subr.mxu1 %v5656_v29  ;;  %2994 = vmatpush2.msra.mxu0 %v5657_v31  ;;  %v5684_v15 = vld [vmem:[%s15161_s1 + $0xb38] sm:$0xff]  ;;  %v5686_v20 = vld [vmem:[%s15161_s1 + $0xb30] sm:$0xff] }
 0x3a5   :  { %3053 = vmatpush1.msra.mxu1 %v5658_v43  ;;  %2995 = vmatprep.subr.mxu0 %v5659_v49  ;;  %v5687_v25 = vld [vmem:[%s15161_s1 + $0x658] sm:$0xff]  ;;  %v5689_v27 = vld [vmem:[%s15161_s1 + $0x650] sm:$0xff] }
 0x3a6   :  { %3054 = vmatprep.subr.mxu1 %v5660_v33  ;;  %2996 = vmatpush2.msra.mxu0 %v5661_v39  ;;  %v5688_v26 = vld [vmem:[%s15161_s1 + $0xb18] sm:$0xff]  ;;  %v5690_v29 = vld [vmem:[%s15161_s1 + $0xb10] sm:$0xff] }
 0x3a7   :  { %3055 = vmatpush2.msra.mxu1 %v5662_v40  ;;  %2997 = vmatprep.subr.mxu0 %v5663_v22  ;;  %v5691_v31 = vld [vmem:[%s15161_s1 + $0x638] sm:$0xff]  ;;  %v5693_v49 = vld [vmem:[%s15161_s1 + $0x630] sm:$0xff] }
 0x3a8   :  { %3056 = vmatprep.subr.mxu1 %v5664_v46  ;;  %2998 = vmatpush2.msra.mxu0 %v5665_v58  ;;  %v5692_v43 = vld [vmem:[%s15161_s1 + $0xaf8] sm:$0xff]  ;;  %v5694_v33 = vld [vmem:[%s15161_s1 + $0xaf0] sm:$0xff] }
 0x3a9   :  { %3057 = vmatpush2.msra.mxu1 %v5666_v47  ;;  %2999 = vmatprep.subr.mxu0 %v5667_v63  ;;  %v5695_v39 = vld [vmem:[%s15161_s1 + $0x618] sm:$0xff]  ;;  %v5697_v22 = vld [vmem:[%s15161_s1 + $0x610] sm:$0xff] }
 0x3aa   :  { %3058 = vmatprep.subr.mxu1 %v5668_v52  ;;  %3000 = vmatpush2.msra.mxu0 %v5669_v51  ;;  %v5696_v40 = vld [vmem:[%s15161_s1 + $0xad8] sm:$0xff]  ;;  %v5698_v46 = vld [vmem:[%s15161_s1 + $0xad0] sm:$0xff] }
 0x3ab   :  { %3059 = vmatpush2.msra.mxu1 %v5670_v53  ;;  %3001 = vmatprep.subr.mxu0 %v5671_v57  ;;  %v5699_v58 = vld [vmem:[%s15161_s1 + $0xab8] sm:$0xff]  ;;  %v5702_v63 = vld [vmem:[%s15161_s1 + $0xdf0] sm:$0xff] }
 0x3ac   :  { %3060 = vmatprep.subr.mxu1 %v5672_v59  ;;  %3002 = vmatpush2.msra.mxu0 %v5673_v61  ;;  %v5700_v47 = vld [vmem:[%s15161_s1 + $0xdf8] sm:$0xff]  ;;  %v5705_v51 = vld [vmem:[%s15161_s1 + $0xa90] sm:$0xff] }
 0x3ad   :  { %3061 = vmatpush2.msra.mxu1 %v5674_v62  ;;  %3003 = vmatprep.subr.mxu0 %v5675_v18  ;;  %v5704_v52 = vld [vmem:[%s15161_s1 + $0xdd8] sm:$0xff]  ;;  %v5706_v53 = vld [vmem:[%s15161_s1 + $0xdd0] sm:$0xff] }
 0x3ae   :  { %3062 = vmatprep.subr.mxu1 %v5676_v3  ;;  %3004 = vmatpush2.msra.mxu0 %v5677_v14  ;;  %v5707_v57 = vld [vmem:[%s15161_s1 + $0xa78] sm:$0xff]  ;;  %v5709_v61 = vld [vmem:[%s15161_s1 + $0xa70] sm:$0xff] }
 0x3af   :  { %3063 = vmatpush2.msra.mxu1 %v5678_v4  ;;  %3005 = vmatprep.subr.mxu0 %v5679_v5  ;;  %v5708_v59 = vld [vmem:[%s15161_s1 + $0xdb8] sm:$0xff]  ;;  %v5710_v62 = vld [vmem:[%s15161_s1 + $0xdb0] sm:$0xff] }
 0x3b0   :  { %3064 = vmatprep.subr.mxu1 %v5680_v6  ;;  %3006 = vmatpush2.msra.mxu0 %v5681_v7  ;;  %v5711_v18 = vld [vmem:[%s15161_s1 + $0xa58] sm:$0xff]  ;;  %v5713_v14 = vld [vmem:[%s15161_s1 + $0xa50] sm:$0xff] }
 0x3b1   :  { %3065 = vmatpush2.msra.mxu1 %v5682_v8  ;;  %3007 = vmatprep.subr.mxu0 %v5683_v13  ;;  %v5712_v3 = vld [vmem:[%s15161_s1 + $0xd98] sm:$0xff]  ;;  %v5714_v4 = vld [vmem:[%s15161_s1 + $0xd90] sm:$0xff] }
 0x3b2   :  { %3066 = vmatprep.subr.mxu1 %v5684_v15  ;;  %3008 = vmatpush2.msra.mxu0 %v5685_v16  ;;  %v5715_v5 = vld [vmem:[%s15161_s1 + $0xa38] sm:$0xff]  ;;  %v5717_v7 = vld [vmem:[%s15161_s1 + $0xa30] sm:$0xff] }
 0x3b3   :  { %3067 = vmatpush2.msra.mxu1 %v5686_v20  ;;  %3009 = vmatprep.subr.mxu0 %v5687_v25  ;;  %v5716_v6 = vld [vmem:[%s15161_s1 + $0xd78] sm:$0xff]  ;;  %v5718_v8 = vld [vmem:[%s15161_s1 + $0xd70] sm:$0xff] }
 0x3b4   :  { %3068 = vmatprep.subr.mxu1 %v5688_v26  ;;  %3010 = vmatpush2.msra.mxu0 %v5689_v27  ;;  %v5719_v13 = vld [vmem:[%s15161_s1 + $0xa18] sm:$0xff]  ;;  %v5721_v16 = vld [vmem:[%s15161_s1 + $0xa10] sm:$0xff] }
 0x3b5   :  { %3069 = vmatpush2.msra.mxu1 %v5690_v29  ;;  %3011 = vmatprep.subr.mxu0 %v5691_v31  ;;  %v5720_v15 = vld [vmem:[%s15161_s1 + $0xd58] sm:$0xff]  ;;  %v5722_v20 = vld [vmem:[%s15161_s1 + $0xd50] sm:$0xff] }
 0x3b6   :  { %3070 = vmatprep.subr.mxu1 %v5692_v43  ;;  %3012 = vmatpush2.msra.mxu0 %v5693_v49  ;;  %v5723_v25 = vld [vmem:[%s15161_s1 + $0xd38] sm:$0xff]  ;;  %v5726_v27 = vld [vmem:[%s15161_s1 + $0x11f0] sm:$0xff] }
 0x3b7   :  { %3071 = vmatpush2.msra.mxu1 %v5694_v33  ;;  %3013 = vmatprep.subr.mxu0 %v5695_v39  ;;  %v5724_v26 = vld [vmem:[%s15161_s1 + $0x11f8] sm:$0xff]  ;;  %v5729_v31 = vld [vmem:[%s15161_s1 + $0xd10] sm:$0xff] }
 0x3b8   :  { %3072 = vmatprep.subr.mxu1 %v5696_v40  ;;  %3014 = vmatpush2.msra.mxu0 %v5697_v22  ;;  %v5728_v29 = vld [vmem:[%s15161_s1 + $0x11d8] sm:$0xff]  ;;  %v5730_v43 = vld [vmem:[%s15161_s1 + $0x11d0] sm:$0xff] }
 0x3b9   :  { %3015 = vmatprep.mubr.f32.mxu0 %v11095_v60  ;;  %3073 = vmatpush2.msra.mxu1 %v5698_v46  ;;  %v5701_v60 = vld [vmem:[%s15161_s1 + $0xab0] sm:$0xff]  ;;  %v5731_v49 = vld [vmem:[%s15161_s1 + $0xcf8] sm:$0xff] }
 0x3ba   :  { %3016 = vmatmul.mubr.f32.vlgmr.msra.gmra.mxu0 %v11111_v0  ;;  %3074 = vmatprep.subr.mxu1 %v5699_v58  ;;  %v5703_v0 = vld [vmem:[%s15161_s1 + $0xa98] sm:$0xff]  ;;  %v5733_v39 = vld [vmem:[%s15161_s1 + $0xcf0] sm:$0xff] }
 0x3bb   :  { %3093 = vmatprep.subr.mxu0 %v5700_v47  ;;  %3075 = vmatpush2.msra.mxu1 %v5701_v60  ;;  %v5732_v33 = vld [vmem:[%s15161_s1 + $0x11b8] sm:$0xff]  ;;  %v5734_v40 = vld [vmem:[%s15161_s1 + $0x11b0] sm:$0xff] }
 0x3bc   :  { %3094 = vmatpush1.msra.mxu0 %v5702_v63  ;;  %3076 = vmatprep.subr.mxu1 %v5703_v0  ;;  %v5735_v22 = vld [vmem:[%s15161_s1 + $0xcd8] sm:$0xff]  ;;  %v5737_v58 = vld [vmem:[%s15161_s1 + $0xcd0] sm:$0xff] }
 0x3bd   :  { %3095 = vmatprep.subr.mxu0 %v5704_v52  ;;  %3077 = vmatpush2.msra.mxu1 %v5705_v51  ;;  %v5736_v46 = vld [vmem:[%s15161_s1 + $0x1198] sm:$0xff]  ;;  %v5738_v47 = vld [vmem:[%s15161_s1 + $0x1190] sm:$0xff] }
 0x3be   :  { %3096 = vmatpush1.msra.mxu0 %v5706_v53  ;;  %3078 = vmatprep.subr.mxu1 %v5707_v57  ;;  %v5739_v60 = vld [vmem:[%s15161_s1 + $0xcb8] sm:$0xff]  ;;  %v5741_v0 = vld [vmem:[%s15161_s1 + $0xcb0] sm:$0xff] }
 0x3bf   :  { %3097 = vmatprep.subr.mxu0 %v5708_v59  ;;  %3079 = vmatpush2.msra.mxu1 %v5709_v61  ;;  %v5740_v63 = vld [vmem:[%s15161_s1 + $0x1178] sm:$0xff]  ;;  %v5742_v52 = vld [vmem:[%s15161_s1 + $0x1170] sm:$0xff] }
 0x3c0   :  { %3098 = vmatpush1.msra.mxu0 %v5710_v62  ;;  %3080 = vmatprep.subr.mxu1 %v5711_v18  ;;  %v5743_v51 = vld [vmem:[%s15161_s1 + $0xc98] sm:$0xff]  ;;  %v5745_v57 = vld [vmem:[%s15161_s1 + $0xc90] sm:$0xff] }
 0x3c1   :  { %3099 = vmatprep.subr.mxu0 %v5712_v3  ;;  %3081 = vmatpush2.msra.mxu1 %v5713_v14  ;;  %v5744_v53 = vld [vmem:[%s15161_s1 + $0x1158] sm:$0xff]  ;;  %v5746_v59 = vld [vmem:[%s15161_s1 + $0x1150] sm:$0xff] }
 0x3c2   :  { %3100 = vmatpush1.msra.mxu0 %v5714_v4  ;;  %3082 = vmatprep.subr.mxu1 %v5715_v5  ;;  %v5747_v61 = vld [vmem:[%s15161_s1 + $0xc78] sm:$0xff]  ;;  %v5749_v18 = vld [vmem:[%s15161_s1 + $0xc70] sm:$0xff] }
 0x3c3   :  { %3101 = vmatprep.subr.mxu0 %v5716_v6  ;;  %3083 = vmatpush2.msra.mxu1 %v5717_v7  ;;  %v5748_v62 = vld [vmem:[%s15161_s1 + $0x1138] sm:$0xff]  ;;  %v5750_v3 = vld [vmem:[%s15161_s1 + $0x1130] sm:$0xff] }
 0x3c4   :  { %3102 = vmatpush1.msra.mxu0 %v5718_v8  ;;  %3084 = vmatprep.subr.mxu1 %v5719_v13  ;;  %v5751_v14 = vld [vmem:[%s15161_s1 + $0xc58] sm:$0xff]  ;;  %v5753_v5 = vld [vmem:[%s15161_s1 + $0xc50] sm:$0xff] }
 0x3c5   :  { %3103 = vmatprep.subr.mxu0 %v5720_v15  ;;  %3085 = vmatpush2.msra.mxu1 %v5721_v16  ;;  %v5752_v4 = vld [vmem:[%s15161_s1 + $0x1118] sm:$0xff]  ;;  %v5754_v6 = vld [vmem:[%s15161_s1 + $0x1110] sm:$0xff] }
 0x3c6   :  { %3086 = vmatprep.mubr.f32.mxu1 %v11518_v55  ;;  %3104 = vmatpush1.msra.mxu0 %v5722_v20  ;;  %v5725_v55 = vld [vmem:[%s15161_s1 + $0xd30] sm:$0xff]  ;;  %v5755_v7 = vld [vmem:[%s15161_s1 + $0xc38] sm:$0xff] }
 0x3c7   :  { %3087 = vmatmul.mubr.f32.vlgmr.msra.gmra.mxu1 %v11542_v1  ;;  %3105 = vmatprep.subr.mxu0 %v5723_v25  ;;  %v5727_v1 = vld [vmem:[%s15161_s1 + $0xd18] sm:$0xff]  ;;  %v5757_v13 = vld [vmem:[%s15161_s1 + $0xc30] sm:$0xff] }
 0x3c8   :  { %3164 = vmatprep.subr.mxu1 %v5724_v26  ;;  %3106 = vmatpush1.msra.mxu0 %v5725_v55  ;;  %v5756_v8 = vld [vmem:[%s15161_s1 + $0x10f8] sm:$0xff]  ;;  %v5758_v15 = vld [vmem:[%s15161_s1 + $0x10f0] sm:$0xff] }
 0x3c9   :  { %3165 = vmatpush1.msra.mxu1 %v5726_v27  ;;  %3107 = vmatprep.subr.mxu0 %v5727_v1  ;;  %v5759_v16 = vld [vmem:[%s15161_s1 + $0xc18] sm:$0xff]  ;;  %v5761_v25 = vld [vmem:[%s15161_s1 + $0xc10] sm:$0xff] }
 0x3ca   :  { %3166 = vmatprep.subr.mxu1 %v5728_v29  ;;  %3108 = vmatpush1.msra.mxu0 %v5729_v31  ;;  %v5760_v20 = vld [vmem:[%s15161_s1 + $0x10d8] sm:$0xff]  ;;  %v5762_v26 = vld [vmem:[%s15161_s1 + $0x10d0] sm:$0xff] }
 0x3cb   :  { %3167 = vmatpush1.msra.mxu1 %v5730_v43  ;;  %3109 = vmatprep.subr.mxu0 %v5731_v49  ;;  %v5763_v55 = vld [vmem:[%s15161_s1 + $0xff8] sm:$0xff]  ;;  %v5765_v1 = vld [vmem:[%s15161_s1 + $0xff0] sm:$0xff] }
 0x3cc   :  { %3168 = vmatprep.subr.mxu1 %v5732_v33  ;;  %3110 = vmatpush1.msra.mxu0 %v5733_v39  ;;  %v5764_v27 = vld [vmem:[%s15161_s1 + $0x10b8] sm:$0xff]  ;;  %v5766_v29 = vld [vmem:[%s15161_s1 + $0x10b0] sm:$0xff] }
 0x3cd   :  { %3169 = vmatpush1.msra.mxu1 %v5734_v40  ;;  %3111 = vmatprep.subr.mxu0 %v5735_v22  ;;  %v5767_v31 = vld [vmem:[%s15161_s1 + $0xfd8] sm:$0xff]  ;;  %v5769_v49 = vld [vmem:[%s15161_s1 + $0xfd0] sm:$0xff] }
 0x3ce   :  { %3170 = vmatprep.subr.mxu1 %v5736_v46  ;;  %3112 = vmatpush1.msra.mxu0 %v5737_v58  ;;  %v5768_v43 = vld [vmem:[%s15161_s1 + $0x1098] sm:$0xff]  ;;  %v5770_v33 = vld [vmem:[%s15161_s1 + $0x1090] sm:$0xff] }
 0x3cf   :  { %3171 = vmatpush1.msra.mxu1 %v5738_v47  ;;  %3113 = vmatprep.subr.mxu0 %v5739_v60  ;;  %v5771_v39 = vld [vmem:[%s15161_s1 + $0xfb8] sm:$0xff]  ;;  %v5773_v22 = vld [vmem:[%s15161_s1 + $0xfb0] sm:$0xff] }
 0x3d0   :  { %3172 = vmatprep.subr.mxu1 %v5740_v63  ;;  %3114 = vmatpush1.msra.mxu0 %v5741_v0  ;;  %v5772_v40 = vld [vmem:[%s15161_s1 + $0x1078] sm:$0xff]  ;;  %v5774_v46 = vld [vmem:[%s15161_s1 + $0x1070] sm:$0xff] }
 0x3d1   :  { %3173 = vmatpush1.msra.mxu1 %v5742_v52  ;;  %3115 = vmatprep.subr.mxu0 %v5743_v51  ;;  %v5775_v58 = vld [vmem:[%s15161_s1 + $0xf98] sm:$0xff]  ;;  %v5777_v60 = vld [vmem:[%s15161_s1 + $0xf90] sm:$0xff] }
 0x3d2   :  { %3174 = vmatprep.subr.mxu1 %v5744_v53  ;;  %3116 = vmatpush1.msra.mxu0 %v5745_v57  ;;  %v5776_v47 = vld [vmem:[%s15161_s1 + $0x1058] sm:$0xff]  ;;  %v5778_v63 = vld [vmem:[%s15161_s1 + $0x1050] sm:$0xff] }
 0x3d3   :  { %3175 = vmatpush1.msra.mxu1 %v5746_v59  ;;  %3117 = vmatprep.subr.mxu0 %v5747_v61  ;;  %v5779_v0 = vld [vmem:[%s15161_s1 + $0xf78] sm:$0xff]  ;;  %v5781_v51 = vld [vmem:[%s15161_s1 + $0xf70] sm:$0xff] }
 0x3d4   :  { %3176 = vmatprep.subr.mxu1 %v5748_v62  ;;  %3118 = vmatpush1.msra.mxu0 %v5749_v18  ;;  %v5780_v52 = vld [vmem:[%s15161_s1 + $0x1038] sm:$0xff]  ;;  %v5782_v53 = vld [vmem:[%s15161_s1 + $0x1030] sm:$0xff] }
 0x3d5   :  { %3177 = vmatpush1.msra.mxu1 %v5750_v3  ;;  %3119 = vmatprep.subr.mxu0 %v5751_v14  ;;  %v5783_v57 = vld [vmem:[%s15161_s1 + $0xf58] sm:$0xff]  ;;  %v5785_v61 = vld [vmem:[%s15161_s1 + $0xf50] sm:$0xff] }
 0x3d6   :  { %3178 = vmatprep.subr.mxu1 %v5752_v4  ;;  %3120 = vmatpush1.msra.mxu0 %v5753_v5  ;;  %v5784_v59 = vld [vmem:[%s15161_s1 + $0x1018] sm:$0xff]  ;;  %v5786_v62 = vld [vmem:[%s15161_s1 + $0x1010] sm:$0xff] }
 0x3d7   :  { %3179 = vmatpush1.msra.mxu1 %v5754_v6  ;;  %3121 = vmatprep.subr.mxu0 %v5755_v7  ;;  %v5787_v18 = vld [vmem:[%s15161_s1 + $0xf38] sm:$0xff]  ;;  %v5789_v14 = vld [vmem:[%s15161_s1 + $0xf30] sm:$0xff] }
 0x3d8   :  { %3180 = vmatprep.subr.mxu1 %v5756_v8  ;;  %3122 = vmatpush1.msra.mxu0 %v5757_v13  ;;  %v5788_v3 = vld [vmem:[%s15161_s1 + $0x13f8] sm:$0xff]  ;;  %v5790_v4 = vld [vmem:[%s15161_s1 + $0x13f0] sm:$0xff] }
 0x3d9   :  { %3181 = vmatpush1.msra.mxu1 %v5758_v15  ;;  %3123 = vmatprep.subr.mxu0 %v5759_v16  ;;  %v5791_v5 = vld [vmem:[%s15161_s1 + $0xf18] sm:$0xff]  ;;  %v5793_v7 = vld [vmem:[%s15161_s1 + $0xf10] sm:$0xff] }
 0x3da   :  { %3182 = vmatprep.subr.mxu1 %v5760_v20  ;;  %3124 = vmatpush1.msra.mxu0 %v5761_v25  ;;  %v5792_v6 = vld [vmem:[%s15161_s1 + $0x13d8] sm:$0xff]  ;;  %v5794_v8 = vld [vmem:[%s15161_s1 + $0x13d0] sm:$0xff] }
 0x3db   :  { %3183 = vmatpush1.msra.mxu1 %v5762_v26  ;;  %3125 = vmatprep.subr.mxu0 %v5763_v55  ;;  %v5795_v13 = vld [vmem:[%s15161_s1 + $0xef8] sm:$0xff]  ;;  %v5797_v16 = vld [vmem:[%s15161_s1 + $0xef0] sm:$0xff] }
 0x3dc   :  { %3184 = vmatprep.subr.mxu1 %v5764_v27  ;;  %3126 = vmatpush2.msra.mxu0 %v5765_v1  ;;  %v5796_v15 = vld [vmem:[%s15161_s1 + $0x13b8] sm:$0xff]  ;;  %v5798_v20 = vld [vmem:[%s15161_s1 + $0x13b0] sm:$0xff] }
 0x3dd   :  { %3185 = vmatpush1.msra.mxu1 %v5766_v29  ;;  %3127 = vmatprep.subr.mxu0 %v5767_v31  ;;  %v5799_v25 = vld [vmem:[%s15161_s1 + $0xed8] sm:$0xff]  ;;  %v5801_v55 = vld [vmem:[%s15161_s1 + $0xed0] sm:$0xff] }
 0x3de   :  { %3186 = vmatprep.subr.mxu1 %v5768_v43  ;;  %3128 = vmatpush2.msra.mxu0 %v5769_v49  ;;  %v5800_v26 = vld [vmem:[%s15161_s1 + $0x1398] sm:$0xff]  ;;  %v5802_v27 = vld [vmem:[%s15161_s1 + $0x1390] sm:$0xff] }
 0x3df   :  { %3187 = vmatpush1.msra.mxu1 %v5770_v33  ;;  %3129 = vmatprep.subr.mxu0 %v5771_v39  ;;  %v5803_v1 = vld [vmem:[%s15161_s1 + $0xeb8] sm:$0xff]  ;;  %v5805_v31 = vld [vmem:[%s15161_s1 + $0xeb0] sm:$0xff] }
 0x3e0   :  { %3188 = vmatprep.subr.mxu1 %v5772_v40  ;;  %3130 = vmatpush2.msra.mxu0 %v5773_v22  ;;  %v5804_v29 = vld [vmem:[%s15161_s1 + $0x1378] sm:$0xff]  ;;  %v5806_v43 = vld [vmem:[%s15161_s1 + $0x1370] sm:$0xff] }
 0x3e1   :  { %3189 = vmatpush1.msra.mxu1 %v5774_v46  ;;  %3131 = vmatprep.subr.mxu0 %v5775_v58  ;;  %v5807_v49 = vld [vmem:[%s15161_s1 + $0xe98] sm:$0xff]  ;;  %v5809_v39 = vld [vmem:[%s15161_s1 + $0xe90] sm:$0xff] }
 0x3e2   :  { %3190 = vmatprep.subr.mxu1 %v5776_v47  ;;  %3132 = vmatpush2.msra.mxu0 %v5777_v60  ;;  %v5808_v33 = vld [vmem:[%s15161_s1 + $0x1358] sm:$0xff]  ;;  %v5810_v40 = vld [vmem:[%s15161_s1 + $0x1350] sm:$0xff] }
 0x3e3   :  { %3191 = vmatpush1.msra.mxu1 %v5778_v63  ;;  %3133 = vmatprep.subr.mxu0 %v5779_v0  ;;  %v5811_v22 = vld [vmem:[%s15161_s1 + $0xe78] sm:$0xff]  ;;  %v5813_v58 = vld [vmem:[%s15161_s1 + $0xe70] sm:$0xff] }
 0x3e4   :  { %3192 = vmatprep.subr.mxu1 %v5780_v52  ;;  %3134 = vmatpush2.msra.mxu0 %v5781_v51  ;;  %v5812_v46 = vld [vmem:[%s15161_s1 + $0x1338] sm:$0xff]  ;;  %v5814_v47 = vld [vmem:[%s15161_s1 + $0x1330] sm:$0xff] }
 0x3e5   :  { %3193 = vmatpush1.msra.mxu1 %v5782_v53  ;;  %3135 = vmatprep.subr.mxu0 %v5783_v57  ;;  %v5815_v60 = vld [vmem:[%s15161_s1 + $0xe58] sm:$0xff]  ;;  %v5817_v0 = vld [vmem:[%s15161_s1 + $0xe50] sm:$0xff] }
 0x3e6   :  { %3194 = vmatprep.subr.mxu1 %v5784_v59  ;;  %3136 = vmatpush2.msra.mxu0 %v5785_v61  ;;  %v5816_v63 = vld [vmem:[%s15161_s1 + $0x1318] sm:$0xff]  ;;  %v5818_v52 = vld [vmem:[%s15161_s1 + $0x1310] sm:$0xff] }
 0x3e7   :  { %3195 = vmatpush1.msra.mxu1 %v5786_v62  ;;  %3137 = vmatprep.subr.mxu0 %v5787_v18  ;;  %v5819_v51 = vld [vmem:[%s15161_s1 + $0xe38] sm:$0xff]  ;;  %v5821_v57 = vld [vmem:[%s15161_s1 + $0xe30] sm:$0xff] }
 0x3e8   :  { %3196 = vmatprep.subr.mxu1 %v5788_v3  ;;  %3138 = vmatpush2.msra.mxu0 %v5789_v14  ;;  %v5820_v53 = vld [vmem:[%s15161_s1 + $0x12f8] sm:$0xff]  ;;  %v5822_v59 = vld [vmem:[%s15161_s1 + $0x12f0] sm:$0xff] }
 0x3e9   :  { %3197 = vmatpush2.msra.mxu1 %v5790_v4  ;;  %3139 = vmatprep.subr.mxu0 %v5791_v5  ;;  %v5823_v61 = vld [vmem:[%s15161_s1 + $0xe18] sm:$0xff]  ;;  %v5825_v18 = vld [vmem:[%s15161_s1 + $0xe10] sm:$0xff] }
 0x3ea   :  { %3198 = vmatprep.subr.mxu1 %v5792_v6  ;;  %3140 = vmatpush2.msra.mxu0 %v5793_v7  ;;  %v5824_v62 = vld [vmem:[%s15161_s1 + $0x12d8] sm:$0xff]  ;;  %v5826_v3 = vld [vmem:[%s15161_s1 + $0x12d0] sm:$0xff] }
 0x3eb   :  { %3199 = vmatpush2.msra.mxu1 %v5794_v8  ;;  %3141 = vmatprep.subr.mxu0 %v5795_v13  ;;  %v5827_v14 = vld [vmem:[%s15161_s1 + $0x12b8] sm:$0xff]  ;;  %v5833_v7 = vld [vmem:[%s15161_s1 + $0x1290] sm:$0xff] }
 0x3ec   :  { %3200 = vmatprep.subr.mxu1 %v5796_v15  ;;  %3142 = vmatpush2.msra.mxu0 %v5797_v16  ;;  %v5828_v4 = vld [vmem:[%s15161_s1 + $0x14b8] sm:$0x7]  ;;  %v5834_v8 = vld [vmem:[%s15161_s1 + $0x1490] sm:$0xff] }
 0x3ed   :  { %3201 = vmatpush2.msra.mxu1 %v5798_v20  ;;  %3143 = vmatprep.subr.mxu0 %v5799_v25  ;;  %v5831_v5 = vld [vmem:[%s15161_s1 + $0x1298] sm:$0xff]  ;;  %v5837_v16 = vld [vmem:[%s15161_s1 + $0x1270] sm:$0xff] }
 0x3ee   :  { %3202 = vmatprep.subr.mxu1 %v5800_v26  ;;  %3144 = vmatpush2.msra.mxu0 %v5801_v55  ;;  %v5832_v6 = vld [vmem:[%s15161_s1 + $0x1498] sm:$0xff]  ;;  %v5838_v20 = vld [vmem:[%s15161_s1 + $0x1470] sm:$0xff] }
 0x3ef   :  { %3203 = vmatpush2.msra.mxu1 %v5802_v27  ;;  %3145 = vmatprep.subr.mxu0 %v5803_v1  ;;  %v5835_v13 = vld [vmem:[%s15161_s1 + $0x1278] sm:$0xff]  ;;  %v5841_v55 = vld [vmem:[%s15161_s1 + $0x1250] sm:$0xff] }
 0x3f0   :  { %3204 = vmatprep.subr.mxu1 %v5804_v29  ;;  %3146 = vmatpush2.msra.mxu0 %v5805_v31  ;;  %v5836_v15 = vld [vmem:[%s15161_s1 + $0x1478] sm:$0xff]  ;;  %v5842_v27 = vld [vmem:[%s15161_s1 + $0x1450] sm:$0xff] }
 0x3f1   :  { %3205 = vmatpush2.msra.mxu1 %v5806_v43  ;;  %3147 = vmatprep.subr.mxu0 %v5807_v49  ;;  %v5839_v25 = vld [vmem:[%s15161_s1 + $0x1258] sm:$0xff]  ;;  %v5845_v31 = vld [vmem:[%s15161_s1 + $0x1230] sm:$0xff] }
 0x3f2   :  { %3206 = vmatprep.subr.mxu1 %v5808_v33  ;;  %3148 = vmatpush2.msra.mxu0 %v5809_v39  ;;  %v5840_v26 = vld [vmem:[%s15161_s1 + $0x1458] sm:$0xff]  ;;  %v5846_v43 = vld [vmem:[%s15161_s1 + $0x1430] sm:$0xff] }
 0x3f3   :  { %3207 = vmatpush2.msra.mxu1 %v5810_v40  ;;  %3149 = vmatprep.subr.mxu0 %v5811_v22  ;;  %v5843_v1 = vld [vmem:[%s15161_s1 + $0x1238] sm:$0xff]  ;;  %v5849_v39 = vld [vmem:[%s15161_s1 + $0x1210] sm:$0xff]  ;;  %v5851_v22 = vld [vmem:[%s15161_s1 + $0x1e8] sm:$0xff] }
 0x3f4   :  { %3208 = vmatprep.subr.mxu1 %v5812_v46  ;;  %3150 = vmatpush2.msra.mxu0 %v5813_v58  ;;  %v5844_v29 = vld [vmem:[%s15161_s1 + $0x1438] sm:$0xff]  ;;  %v5850_v40 = vld [vmem:[%s15161_s1 + $0x1410] sm:$0xff]  ;;  %v5852_v46 = vld [vmem:[%s15161_s1 + $0x5e8] sm:$0xff] }
 0x3f5   :  { %3209 = vmatpush2.msra.mxu1 %v5814_v47  ;;  %3151 = vmatprep.subr.mxu0 %v5815_v60  ;;  %v5847_v49 = vld [vmem:[%s15161_s1 + $0x1218] sm:$0xff]  ;;  %v5855_v58 = vld [vmem:[%s15161_s1 + $0x1c8] sm:$0xff]  ;;  %v5858_v60 = vld [vmem:[%s15161_s1 + $0x5c0] sm:$0xff] }
 0x3f6   :  { %3210 = vmatprep.subr.mxu1 %v5816_v63  ;;  %3152 = vmatpush2.msra.mxu0 %v5817_v0  ;;  %v5848_v33 = vld [vmem:[%s15161_s1 + $0x1418] sm:$0xff]  ;;  %v5856_v47 = vld [vmem:[%s15161_s1 + $0x5c8] sm:$0xff]  ;;  %v6238_v32 = vld [vmem:[%s15161_s1 + $0x5f0] sm:$0xff] }
 0x3f7   :  { %3211 = vmatpush2.msra.mxu1 %v5818_v52  ;;  %3153 = vmatprep.subr.mxu0 %v5819_v51  ;;  %v5859_v63 = vld [vmem:[%s15161_s1 + $0x1a8] sm:$0xff]  ;;  %v5861_v52 = vld [vmem:[%s15161_s1 + $0x1a0] sm:$0xff]  ;;  %v6235_v38 = vld [vmem:[%s15161_s1 + $0x2b8] sm:$0xff] }
 0x3f8   :  { %3212 = vmatprep.subr.mxu1 %v5820_v53  ;;  %3154 = vmatpush2.msra.mxu0 %v5821_v57  ;;  %v5860_v0 = vld [vmem:[%s15161_s1 + $0x5a8] sm:$0xff]  ;;  %v5862_v51 = vld [vmem:[%s15161_s1 + $0x5a0] sm:$0xff]  ;;  %v6239_v56 = vld [vmem:[%s15161_s1 + $0x298] sm:$0xff] }
 0x3f9   :  { %3213 = vmatpush2.msra.mxu1 %v5822_v59  ;;  %3155 = vmatprep.subr.mxu0 %v5823_v61  ;;  %v5863_v53 = vld [vmem:[%s15161_s1 + $0x188] sm:$0xff]  ;;  %v5865_v59 = vld [vmem:[%s15161_s1 + $0x180] sm:$0xff] }
 0x3fa   :  { %3214 = vmatprep.subr.mxu1 %v5824_v62  ;;  %3156 = vmatpush2.msra.mxu0 %v5825_v18  ;;  %v5864_v57 = vld [vmem:[%s15161_s1 + $0x588] sm:$0xff]  ;;  %v5866_v61 = vld [vmem:[%s15161_s1 + $0x580] sm:$0xff] }
 0x3fb   :  { %3157 = vmatprep.mubr.f32.mxu0 %v11529_v28  ;;  %3215 = vmatpush2.msra.mxu1 %v5826_v3  ;;  %v5829_v28 = vld [vmem:[%s15161_s1 + $0x12b0] sm:$0xff]  ;;  %v5867_v62 = vld [vmem:[%s15161_s1 + $0x168] sm:$0xff]  ;;  %v5869_v3 = vld [vmem:[%s15161_s1 + $0x160] sm:$0xff] }
 0x3fc   :  { %3158 = vmatmul.mubr.f32.vlgmr.msra.gmra.mxu0 %v11547_v11  ;;  %3216 = vmatprep.subr.mxu1 %v5827_v14  ;;  %v5830_v11 = vld [vmem:[%s15161_s1 + $0x14b0] sm:$0x7]  ;;  %v5868_v18 = vld [vmem:[%s15161_s1 + $0x568] sm:$0xff]  ;;  %v5870_v14 = vld [vmem:[%s15161_s1 + $0x560] sm:$0xff] }
 0x3fd   :  { %4454 = vmatprep.subr.msk.mxu0 %vm703_vm0, %v5828_v4  ;;  %3217 = vmatpush2.msra.mxu1 %v5829_v28  ;;  %v5871_v4 = vld [vmem:[%s15161_s1 + $0x148] sm:$0xff] }
 0x3fe   :  { %4455 = vmatpush1.msk.msra.mxu0 %vm703_vm0, %v5830_v11  ;;  %3218 = vmatprep.subr.mxu1 %v5831_v5  ;;  %v5872_v28 = vld [vmem:[%s15161_s1 + $0x548] sm:$0xff]  ;;  %v5873_v11 = vld [vmem:[%s15161_s1 + $0x140] sm:$0xff] }
 0x3ff   :  { %3257 = vmatprep.subr.mxu0 %v5832_v6  ;;  %3219 = vmatpush2.msra.mxu1 %v5833_v7  ;;  %v5874_v5 = vld [vmem:[%s15161_s1 + $0x540] sm:$0xff]  ;;  %v5875_v6 = vld [vmem:[%s15161_s1 + $0x128] sm:$0xff] }
 0x400   :  { %3258 = vmatpush1.msra.mxu0 %v5834_v8  ;;  %3220 = vmatprep.subr.mxu1 %v5835_v13  ;;  %v5876_v7 = vld [vmem:[%s15161_s1 + $0x528] sm:$0xff]  ;;  %v5877_v8 = vld [vmem:[%s15161_s1 + $0x120] sm:$0xff] }
 0x401   :  { %3259 = vmatprep.subr.mxu0 %v5836_v15  ;;  %3221 = vmatpush2.msra.mxu1 %v5837_v16  ;;  %v5878_v13 = vld [vmem:[%s15161_s1 + $0x520] sm:$0xff]  ;;  %v5879_v15 = vld [vmem:[%s15161_s1 + $0x108] sm:$0xff] }
 0x402   :  { %3260 = vmatpush1.msra.mxu0 %v5838_v20  ;;  %3222 = vmatprep.subr.mxu1 %v5839_v25  ;;  %v5880_v16 = vld [vmem:[%s15161_s1 + $0x508] sm:$0xff]  ;;  %v5881_v20 = vld [vmem:[%s15161_s1 + $0x100] sm:$0xff] }
 0x403   :  { %3261 = vmatprep.subr.mxu0 %v5840_v26  ;;  %3223 = vmatpush2.msra.mxu1 %v5841_v55  ;;  %v5882_v25 = vld [vmem:[%s15161_s1 + $0x500] sm:$0xff]  ;;  %v5883_v26 = vld [vmem:[%s15161_s1 + $0xe8] sm:$0xff] }
 0x404   :  { %3262 = vmatpush1.msra.mxu0 %v5842_v27  ;;  %3224 = vmatprep.subr.mxu1 %v5843_v1  ;;  %v5884_v55 = vld [vmem:[%s15161_s1 + $0x4e8] sm:$0xff]  ;;  %v5885_v27 = vld [vmem:[%s15161_s1 + $0xe0] sm:$0xff] }
 0x405   :  { %3263 = vmatprep.subr.mxu0 %v5844_v29  ;;  %3225 = vmatpush2.msra.mxu1 %v5845_v31  ;;  %v5886_v1 = vld [vmem:[%s15161_s1 + $0x4e0] sm:$0xff]  ;;  %v5887_v29 = vld [vmem:[%s15161_s1 + $0xc8] sm:$0xff] }
 0x406   :  { %3264 = vmatpush1.msra.mxu0 %v5846_v43  ;;  %3226 = vmatprep.subr.mxu1 %v5847_v49  ;;  %v5888_v31 = vld [vmem:[%s15161_s1 + $0x4c8] sm:$0xff]  ;;  %v5889_v43 = vld [vmem:[%s15161_s1 + $0xc0] sm:$0xff] }
 0x407   :  { %3265 = vmatprep.subr.mxu0 %v5848_v33  ;;  %3227 = vmatpush2.msra.mxu1 %v5849_v39  ;;  %v5890_v49 = vld [vmem:[%s15161_s1 + $0x4c0] sm:$0xff]  ;;  %v5891_v33 = vld [vmem:[%s15161_s1 + $0xa8] sm:$0xff] }
 0x408   :  { %3228 = vmatprep.mubr.f32.mxu1 %v11940_v17  ;;  %3266 = vmatpush1.msra.mxu0 %v5850_v40  ;;  %v5853_v17 = vld [vmem:[%s15161_s1 + $0x1e0] sm:$0xff]  ;;  %v5892_v39 = vld [vmem:[%s15161_s1 + $0x4a8] sm:$0xff] }
 0x409   :  { %3229 = vmatmul.mubr.f32.vlgmr.msra.gmra.mxu1 %v11953_v50  ;;  %3299 = vmatprep.mubr.f32.mxu0 %v6515_v37  ;;  %v5854_v50 = vld [vmem:[%s15161_s1 + $0x5e0] sm:$0xff] }
 0x40a   :  { %3325 = vmatprep.subr.mxu0 %v5851_v22  ;;  %3396 = vmatprep.subr.mxu1 %v5852_v46  ;;  %v5893_v40 = vld [vmem:[%s15161_s1 + $0xa0] sm:$0xff]  ;;  %v5895_v46 = vld [vmem:[%s15161_s1 + $0x88] sm:$0xff] }
 0x40b   :  { %4456 = vmatmul.mubr.msk.f32.vlgmr.msra.gmra.mxu0 %vm699_vm1, %v11630_v42  ;;  %3397 = vmatpush1.msra.mxu1 %v5854_v50  ;;  %v5857_v42 = vld [vmem:[%s15161_s1 + $0x1c0] sm:$0xff] }
 0x40c   :  { %3326 = vmatpush1.msra.mxu0 %v5853_v17  ;;  %3398 = vmatprep.subr.mxu1 %v5856_v47  ;;  %v5894_v22 = vld [vmem:[%s15161_s1 + $0x4a0] sm:$0xff]  ;;  %v5896_v17 = vld [vmem:[%s15161_s1 + $0x488] sm:$0xff] }
 0x40d   :  { %3327 = vmatprep.subr.mxu0 %v5855_v58  ;;  %3399 = vmatpush1.msra.mxu1 %v5858_v60  ;;  %v5897_v50 = vld [vmem:[%s15161_s1 + $0x80] sm:$0xff]  ;;  %v5899_v47 = vld [vmem:[%s15161_s1 + $0x68] sm:$0xff] }
 0x40e   :  { %3328 = vmatpush1.msra.mxu0 %v5857_v42  ;;  %3400 = vmatprep.subr.mxu1 %v5860_v0  ;;  %v5898_v58 = vld [vmem:[%s15161_s1 + $0x480] sm:$0xff]  ;;  %v5900_v42 = vld [vmem:[%s15161_s1 + $0x468] sm:$0xff] }
 0x40f   :  { %3329 = vmatprep.subr.mxu0 %v5859_v63  ;;  %3401 = vmatpush1.msra.mxu1 %v5862_v51  ;;  %v5901_v60 = vld [vmem:[%s15161_s1 + $0x60] sm:$0xff]  ;;  %v5903_v0 = vld [vmem:[%s15161_s1 + $0x48] sm:$0xff] }
 0x410   :  { %3330 = vmatpush1.msra.mxu0 %v5861_v52  ;;  %3402 = vmatprep.subr.mxu1 %v5864_v57  ;;  %v5902_v63 = vld [vmem:[%s15161_s1 + $0x460] sm:$0xff]  ;;  %v5904_v52 = vld [vmem:[%s15161_s1 + $0x448] sm:$0xff] }
 0x411   :  { %3331 = vmatprep.subr.mxu0 %v5863_v53  ;;  %3403 = vmatpush1.msra.mxu1 %v5866_v61  ;;  %v5905_v51 = vld [vmem:[%s15161_s1 + $0x40] sm:$0xff]  ;;  %v5907_v57 = vld [vmem:[%s15161_s1 + $0x28] sm:$0xff] }
 0x412   :  { %3332 = vmatpush1.msra.mxu0 %v5865_v59  ;;  %3404 = vmatprep.subr.mxu1 %v5868_v18  ;;  %v5906_v53 = vld [vmem:[%s15161_s1 + $0x440] sm:$0xff]  ;;  %v5908_v59 = vld [vmem:[%s15161_s1 + $0x428] sm:$0xff] }
 0x413   :  { %3333 = vmatprep.subr.mxu0 %v5867_v62  ;;  %3405 = vmatpush1.msra.mxu1 %v5870_v14  ;;  %v5909_v61 = vld [vmem:[%s15161_s1 + $0x20] sm:$0xff]  ;;  %v5911_v18 = vld [vmem:[%s15161_s1 + $0x8] sm:$0xff] }
 0x414   :  { %3334 = vmatpush1.msra.mxu0 %v5869_v3  ;;  %3406 = vmatprep.subr.mxu1 %v5872_v28  ;;  %v5910_v62 = vld [vmem:[%s15161_s1 + $0x420] sm:$0xff]  ;;  %v5912_v3 = vld [vmem:[%s15161_s1 + $0x408] sm:$0xff] }
 0x415   :  { %3335 = vmatprep.subr.mxu0 %v5871_v4  ;;  %3407 = vmatpush1.msra.mxu1 %v5874_v5  ;;  %v5913_v14 = vld [vmem:[%s15161_s1] sm:$0xff]  ;;  %v5915_v28 = vld [vmem:[%s15161_s1 + $0x3e8] sm:$0xff] }
 0x416   :  { %3336 = vmatpush1.msra.mxu0 %v5873_v11  ;;  %3408 = vmatprep.subr.mxu1 %v5876_v7  ;;  %v5914_v4 = vld [vmem:[%s15161_s1 + $0x400] sm:$0xff]  ;;  %v5916_v11 = vld [vmem:[%s15161_s1 + $0x7e8] sm:$0xff] }
 0x417   :  { %3337 = vmatprep.subr.mxu0 %v5875_v6  ;;  %3409 = vmatpush1.msra.mxu1 %v5878_v13  ;;  %v5917_v5 = vld [vmem:[%s15161_s1 + $0x3e0] sm:$0xff]  ;;  %v5919_v7 = vld [vmem:[%s15161_s1 + $0x3c8] sm:$0xff] }
 0x418   :  { %3338 = vmatpush1.msra.mxu0 %v5877_v8  ;;  %3410 = vmatprep.subr.mxu1 %v5880_v16  ;;  %v5918_v6 = vld [vmem:[%s15161_s1 + $0x7e0] sm:$0xff]  ;;  %v5920_v8 = vld [vmem:[%s15161_s1 + $0x7c8] sm:$0xff] }
 0x419   :  { %3339 = vmatprep.subr.mxu0 %v5879_v15  ;;  %3411 = vmatpush1.msra.mxu1 %v5882_v25  ;;  %v5921_v13 = vld [vmem:[%s15161_s1 + $0x3c0] sm:$0xff]  ;;  %v5923_v16 = vld [vmem:[%s15161_s1 + $0x3a8] sm:$0xff] }
 0x41a   :  { %3340 = vmatpush1.msra.mxu0 %v5881_v20  ;;  %3412 = vmatprep.subr.mxu1 %v5884_v55  ;;  %v5922_v15 = vld [vmem:[%s15161_s1 + $0x7c0] sm:$0xff]  ;;  %v5924_v20 = vld [vmem:[%s15161_s1 + $0x7a8] sm:$0xff] }
 0x41b   :  { %3341 = vmatprep.subr.mxu0 %v5883_v26  ;;  %3413 = vmatpush1.msra.mxu1 %v5886_v1  ;;  %v5925_v25 = vld [vmem:[%s15161_s1 + $0x3a0] sm:$0xff]  ;;  %v5927_v55 = vld [vmem:[%s15161_s1 + $0x388] sm:$0xff] }
 0x41c   :  { %3342 = vmatpush1.msra.mxu0 %v5885_v27  ;;  %3414 = vmatprep.subr.mxu1 %v5888_v31  ;;  %v5926_v26 = vld [vmem:[%s15161_s1 + $0x7a0] sm:$0xff]  ;;  %v5928_v27 = vld [vmem:[%s15161_s1 + $0x788] sm:$0xff] }
 0x41d   :  { %3343 = vmatprep.subr.mxu0 %v5887_v29  ;;  %3415 = vmatpush1.msra.mxu1 %v5890_v49  ;;  %v5929_v1 = vld [vmem:[%s15161_s1 + $0x380] sm:$0xff]  ;;  %v5931_v31 = vld [vmem:[%s15161_s1 + $0x368] sm:$0xff] }
 0x41e   :  { %3344 = vmatpush1.msra.mxu0 %v5889_v43  ;;  %3416 = vmatprep.subr.mxu1 %v5892_v39  ;;  %v5930_v29 = vld [vmem:[%s15161_s1 + $0x780] sm:$0xff]  ;;  %v5932_v43 = vld [vmem:[%s15161_s1 + $0x768] sm:$0xff] }
 0x41f   :  { %3345 = vmatprep.subr.mxu0 %v5891_v33  ;;  %3417 = vmatpush1.msra.mxu1 %v5894_v22  ;;  %v5933_v49 = vld [vmem:[%s15161_s1 + $0x360] sm:$0xff]  ;;  %v5935_v39 = vld [vmem:[%s15161_s1 + $0x348] sm:$0xff] }
 0x420   :  { %3346 = vmatpush1.msra.mxu0 %v5893_v40  ;;  %3418 = vmatprep.subr.mxu1 %v5896_v17  ;;  %v5934_v33 = vld [vmem:[%s15161_s1 + $0x760] sm:$0xff]  ;;  %v5936_v40 = vld [vmem:[%s15161_s1 + $0x748] sm:$0xff] }
 0x421   :  { %3347 = vmatprep.subr.mxu0 %v5895_v46  ;;  %3419 = vmatpush1.msra.mxu1 %v5898_v58  ;;  %v5937_v22 = vld [vmem:[%s15161_s1 + $0x340] sm:$0xff]  ;;  %v5939_v17 = vld [vmem:[%s15161_s1 + $0x328] sm:$0xff] }
 0x422   :  { %3348 = vmatpush1.msra.mxu0 %v5897_v50  ;;  %3420 = vmatprep.subr.mxu1 %v5900_v42  ;;  %v5938_v46 = vld [vmem:[%s15161_s1 + $0x740] sm:$0xff]  ;;  %v5940_v50 = vld [vmem:[%s15161_s1 + $0x728] sm:$0xff] }
 0x423   :  { %3349 = vmatprep.subr.mxu0 %v5899_v47  ;;  %3421 = vmatpush1.msra.mxu1 %v5902_v63  ;;  %v5941_v58 = vld [vmem:[%s15161_s1 + $0x320] sm:$0xff]  ;;  %v5943_v42 = vld [vmem:[%s15161_s1 + $0x308] sm:$0xff] }
 0x424   :  { %3350 = vmatpush1.msra.mxu0 %v5901_v60  ;;  %3422 = vmatprep.subr.mxu1 %v5904_v52  ;;  %v5942_v47 = vld [vmem:[%s15161_s1 + $0x720] sm:$0xff]  ;;  %v5944_v60 = vld [vmem:[%s15161_s1 + $0x708] sm:$0xff] }
 0x425   :  { %3351 = vmatprep.subr.mxu0 %v5903_v0  ;;  %3423 = vmatpush1.msra.mxu1 %v5906_v53  ;;  %v5945_v63 = vld [vmem:[%s15161_s1 + $0x300] sm:$0xff]  ;;  %v5947_v52 = vld [vmem:[%s15161_s1 + $0x2e8] sm:$0xff] }
 0x426   :  { %3352 = vmatpush1.msra.mxu0 %v5905_v51  ;;  %3424 = vmatprep.subr.mxu1 %v5908_v59  ;;  %v5946_v0 = vld [vmem:[%s15161_s1 + $0x700] sm:$0xff]  ;;  %v5948_v51 = vld [vmem:[%s15161_s1 + $0x6e8] sm:$0xff] }
 0x427   :  { %3353 = vmatprep.subr.mxu0 %v5907_v57  ;;  %3425 = vmatpush1.msra.mxu1 %v5910_v62  ;;  %v5949_v53 = vld [vmem:[%s15161_s1 + $0x2e0] sm:$0xff]  ;;  %v5951_v59 = vld [vmem:[%s15161_s1 + $0x2c8] sm:$0xff] }
 0x428   :  { %3354 = vmatpush1.msra.mxu0 %v5909_v61  ;;  %3426 = vmatprep.subr.mxu1 %v5912_v3  ;;  %v5950_v57 = vld [vmem:[%s15161_s1 + $0x6e0] sm:$0xff]  ;;  %v5952_v61 = vld [vmem:[%s15161_s1 + $0x6c8] sm:$0xff] }
 0x429   :  { %3355 = vmatprep.subr.mxu0 %v5911_v18  ;;  %3427 = vmatpush1.msra.mxu1 %v5914_v4  ;;  %v5953_v62 = vld [vmem:[%s15161_s1 + $0x2c0] sm:$0xff]  ;;  %v5955_v3 = vld [vmem:[%s15161_s1 + $0x2a8] sm:$0xff] }
 0x42a   :  { %3356 = vmatpush1.msra.mxu0 %v5913_v14  ;;  %3428 = vmatprep.subr.mxu1 %v5916_v11  ;;  %v5954_v18 = vld [vmem:[%s15161_s1 + $0x6c0] sm:$0xff]  ;;  %v5956_v14 = vld [vmem:[%s15161_s1 + $0x6a8] sm:$0xff] }
 0x42b   :  { %3357 = vmatprep.subr.mxu0 %v5915_v28  ;;  %3429 = vmatpush2.msra.mxu1 %v5918_v6  ;;  %v5957_v4 = vld [vmem:[%s15161_s1 + $0x2a0] sm:$0xff]  ;;  %v5959_v11 = vld [vmem:[%s15161_s1 + $0x288] sm:$0xff] }
 0x42c   :  { %3358 = vmatpush2.msra.mxu0 %v5917_v5  ;;  %3430 = vmatprep.subr.mxu1 %v5920_v8  ;;  %v5958_v28 = vld [vmem:[%s15161_s1 + $0x6a0] sm:$0xff]  ;;  %v5960_v5 = vld [vmem:[%s15161_s1 + $0x688] sm:$0xff] }
 0x42d   :  { %3359 = vmatprep.subr.mxu0 %v5919_v7  ;;  %3431 = vmatpush2.msra.mxu1 %v5922_v15  ;;  %v5961_v6 = vld [vmem:[%s15161_s1 + $0x280] sm:$0xff]  ;;  %v5963_v8 = vld [vmem:[%s15161_s1 + $0x268] sm:$0xff] }
 0x42e   :  { %3360 = vmatpush2.msra.mxu0 %v5921_v13  ;;  %3432 = vmatprep.subr.mxu1 %v5924_v20  ;;  %v5962_v7 = vld [vmem:[%s15161_s1 + $0x680] sm:$0xff]  ;;  %v5964_v13 = vld [vmem:[%s15161_s1 + $0x668] sm:$0xff] }
 0x42f   :  { %3361 = vmatprep.subr.mxu0 %v5923_v16  ;;  %3433 = vmatpush2.msra.mxu1 %v5926_v26  ;;  %v5965_v15 = vld [vmem:[%s15161_s1 + $0x260] sm:$0xff]  ;;  %v5967_v20 = vld [vmem:[%s15161_s1 + $0x248] sm:$0xff] }
 0x430   :  { %3362 = vmatpush2.msra.mxu0 %v5925_v25  ;;  %3434 = vmatprep.subr.mxu1 %v5928_v27  ;;  %v5966_v16 = vld [vmem:[%s15161_s1 + $0x660] sm:$0xff]  ;;  %v5968_v25 = vld [vmem:[%s15161_s1 + $0x648] sm:$0xff] }
 0x431   :  { %3363 = vmatprep.subr.mxu0 %v5927_v55  ;;  %3435 = vmatpush2.msra.mxu1 %v5930_v29  ;;  %v5969_v26 = vld [vmem:[%s15161_s1 + $0x240] sm:$0xff]  ;;  %v5971_v27 = vld [vmem:[%s15161_s1 + $0x228] sm:$0xff]  ;;  %v13199_v29 = vld [vmem:[%s15160_s0 + $0x110] sm:$0x3f] }
 0x432   :  { %3364 = vmatpush2.msra.mxu0 %v5929_v1  ;;  %3436 = vmatprep.subr.mxu1 %v5932_v43  ;;  %v5970_v55 = vld [vmem:[%s15161_s1 + $0x640] sm:$0xff]  ;;  %v5972_v1 = vld [vmem:[%s15161_s1 + $0x628] sm:$0xff] }
 0x433   :  { %3365 = vmatprep.subr.mxu0 %v5931_v31  ;;  %3437 = vmatpush2.msra.mxu1 %v5934_v33  ;;  %v5973_v31 = vld [vmem:[%s15161_s1 + $0x220] sm:$0xff]  ;;  %v5975_v33 = vld [vmem:[%s15161_s1 + $0x208] sm:$0xff] }
 0x434   :  { %3366 = vmatpush2.msra.mxu0 %v5933_v49  ;;  %3438 = vmatprep.subr.mxu1 %v5936_v40  ;;  %v5974_v43 = vld [vmem:[%s15161_s1 + $0x620] sm:$0xff]  ;;  %v13221_v40 = vld [vmem:[%s15160_s0 + $0x108] sm:$0x3f] }
 0x435   :  { %3367 = vmatprep.subr.mxu0 %v5935_v39  ;;  %3439 = vmatpush2.msra.mxu1 %v5938_v46  ;;  %v13210_v49 = vld [vmem:[%s15160_s0 + $0x120] sm:$0x3f]  ;;  %v5976_v39 = vld [vmem:[%s15161_s1 + $0x608] sm:$0xff] }
 0x436   :  { %3368 = vmatpush2.msra.mxu0 %v5937_v22  ;;  %3440 = vmatprep.subr.mxu1 %v5940_v50  ;;  %v13226_v22 = vld [vmem:[%s15160_s0 + $0x118] sm:$0x3f]  ;;  %v5977_v46 = vld [vmem:[%s15161_s1 + $0x200] sm:$0xff]  ;;  %v5979_v50 = vld [vmem:[%s15161_s1 + $0x9e8] sm:$0xff] }
 0x437   :  { %3369 = vmatprep.subr.mxu0 %v5939_v17  ;;  %3441 = vmatpush2.msra.mxu1 %v5942_v47  ;;  %v5978_v17 = vld [vmem:[%s15161_s1 + $0x600] sm:$0xff] }
 0x438   :  { %3370 = vmatpush2.msra.mxu0 %v5941_v58  ;;  %3442 = vmatprep.subr.mxu1 %v5944_v60  ;;  %v5980_v58 = vld [vmem:[%s15161_s1 + $0xde8] sm:$0xff]  ;;  %v5981_v47 = vld [vmem:[%s15161_s1 + $0x9e0] sm:$0xff] }
 0x439   :  { %3371 = vmatprep.subr.mxu0 %v5943_v42  ;;  %3443 = vmatpush2.msra.mxu1 %v5946_v0  ;;  %v5982_v42 = vld [vmem:[%s15161_s1 + $0xde0] sm:$0xff]  ;;  %v5983_v60 = vld [vmem:[%s15161_s1 + $0x9c8] sm:$0xff] }
 0x43a   :  { %3372 = vmatpush2.msra.mxu0 %v5945_v63  ;;  %3444 = vmatprep.subr.mxu1 %v5948_v51  ;;  %v5984_v63 = vld [vmem:[%s15161_s1 + $0xdc8] sm:$0xff]  ;;  %v5985_v0 = vld [vmem:[%s15161_s1 + $0x9c0] sm:$0xff] }
 0x43b   :  { %3373 = vmatprep.subr.mxu0 %v5947_v52  ;;  %3445 = vmatpush2.msra.mxu1 %v5950_v57  ;;  %v5986_v52 = vld [vmem:[%s15161_s1 + $0xdc0] sm:$0xff]  ;;  %v5987_v51 = vld [vmem:[%s15161_s1 + $0x9a8] sm:$0xff] }
 0x43c   :  { %3374 = vmatpush2.msra.mxu0 %v5949_v53  ;;  %3446 = vmatprep.subr.mxu1 %v5952_v61  ;;  %v5988_v53 = vld [vmem:[%s15161_s1 + $0xda8] sm:$0xff]  ;;  %v5989_v57 = vld [vmem:[%s15161_s1 + $0x9a0] sm:$0xff] }
 0x43d   :  { %3375 = vmatprep.subr.mxu0 %v5951_v59  ;;  %3447 = vmatpush2.msra.mxu1 %v5954_v18  ;;  %v5990_v59 = vld [vmem:[%s15161_s1 + $0xda0] sm:$0xff]  ;;  %v5991_v61 = vld [vmem:[%s15161_s1 + $0x988] sm:$0xff] }
 0x43e   :  { %3376 = vmatpush2.msra.mxu0 %v5953_v62  ;;  %3448 = vmatprep.subr.mxu1 %v5956_v14  ;;  %v5992_v62 = vld [vmem:[%s15161_s1 + $0xd88] sm:$0xff]  ;;  %v5993_v18 = vld [vmem:[%s15161_s1 + $0x980] sm:$0xff] }
 0x43f   :  { %3377 = vmatprep.subr.mxu0 %v5955_v3  ;;  %3449 = vmatpush2.msra.mxu1 %v5958_v28  ;;  %v5994_v3 = vld [vmem:[%s15161_s1 + $0xd80] sm:$0xff]  ;;  %v5995_v14 = vld [vmem:[%s15161_s1 + $0x968] sm:$0xff] }
 0x440   :  { %3378 = vmatpush2.msra.mxu0 %v5957_v4  ;;  %3450 = vmatprep.subr.mxu1 %v5960_v5  ;;  %v5996_v4 = vld [vmem:[%s15161_s1 + $0xd68] sm:$0xff]  ;;  %v5997_v28 = vld [vmem:[%s15161_s1 + $0x960] sm:$0xff] }
 0x441   :  { %3379 = vmatprep.subr.mxu0 %v5959_v11  ;;  %3451 = vmatpush2.msra.mxu1 %v5962_v7  ;;  %v5998_v11 = vld [vmem:[%s15161_s1 + $0xd60] sm:$0xff]  ;;  %v5999_v5 = vld [vmem:[%s15161_s1 + $0x948] sm:$0xff] }
 0x442   :  { %3380 = vmatpush2.msra.mxu0 %v5961_v6  ;;  %3452 = vmatprep.subr.mxu1 %v5964_v13  ;;  %v6000_v6 = vld [vmem:[%s15161_s1 + $0xd48] sm:$0xff]  ;;  %v6001_v7 = vld [vmem:[%s15161_s1 + $0x940] sm:$0xff] }
 0x443   :  { %3381 = vmatprep.subr.mxu0 %v5963_v8  ;;  %3453 = vmatpush2.msra.mxu1 %v5966_v16  ;;  %v6002_v8 = vld [vmem:[%s15161_s1 + $0xd40] sm:$0xff]  ;;  %v6003_v13 = vld [vmem:[%s15161_s1 + $0x928] sm:$0xff] }
 0x444   :  { %3382 = vmatpush2.msra.mxu0 %v5965_v15  ;;  %3454 = vmatprep.subr.mxu1 %v5968_v25  ;;  %v6004_v15 = vld [vmem:[%s15161_s1 + $0xd28] sm:$0xff]  ;;  %v6005_v16 = vld [vmem:[%s15161_s1 + $0x920] sm:$0xff] }
 0x445   :  { %3383 = vmatprep.subr.mxu0 %v5967_v20  ;;  %3455 = vmatpush2.msra.mxu1 %v5970_v55  ;;  %v6006_v20 = vld [vmem:[%s15161_s1 + $0xd20] sm:$0xff]  ;;  %v6007_v25 = vld [vmem:[%s15161_s1 + $0x908] sm:$0xff] }
 0x446   :  { %3384 = vmatpush2.msra.mxu0 %v5969_v26  ;;  %3456 = vmatprep.subr.mxu1 %v5972_v1  ;;  %v6008_v26 = vld [vmem:[%s15161_s1 + $0xd08] sm:$0xff]  ;;  %v6009_v55 = vld [vmem:[%s15161_s1 + $0x900] sm:$0xff] }
 0x447   :  { %3385 = vmatprep.subr.mxu0 %v5971_v27  ;;  %3457 = vmatpush2.msra.mxu1 %v5974_v43  ;;  %v6010_v27 = vld [vmem:[%s15161_s1 + $0xd00] sm:$0xff]  ;;  %v6011_v1 = vld [vmem:[%s15161_s1 + $0x8e8] sm:$0xff] }
 0x448   :  { %3386 = vmatpush2.msra.mxu0 %v5973_v31  ;;  %3458 = vmatprep.subr.mxu1 %v5976_v39  ;;  %v6012_v31 = vld [vmem:[%s15161_s1 + $0xce8] sm:$0xff]  ;;  %v6013_v43 = vld [vmem:[%s15161_s1 + $0x8e0] sm:$0xff] }
 0x449   :  { %3387 = vmatprep.subr.mxu0 %v5975_v33  ;;  %3389 = vmatprep.mubr.f32.mxu0 %v13199_v29  ;;  %v6014_v33 = vld [vmem:[%s15161_s1 + $0xce0] sm:$0xff]  ;;  %v6015_v39 = vld [vmem:[%s15161_s1 + $0x8c8] sm:$0xff] }
 0x44a   :  { %3388 = vmatpush2.msra.mxu0 %v5977_v46  ;;  %3459 = vmatpush2.msra.mxu1 %v5978_v17  ;;  %v6016_v46 = vld [vmem:[%s15161_s1 + $0xcc8] sm:$0xff]  ;;  %v6017_v17 = vld [vmem:[%s15161_s1 + $0x8c0] sm:$0xff] }
 0x44b   :  { %3460 = vmatprep.mubr.f32.mxu1 %v13210_v49  ;;  %3390 = vmatmul.mubr.f32.vlgmr.msra.gmra.mxu0 %v13221_v40 }
 0x44c   :  { %3461 = vmatmul.mubr.f32.vlgmr.msra.gmra.mxu1 %v13226_v22  ;;  %3467 = vmatprep.subr.mxu0 %v5979_v50  ;;  %v6018_v50 = vld [vmem:[%s15161_s1 + $0xcc0] sm:$0xff] }
 0x44d   :  { %3538 = vmatprep.subr.mxu1 %v5980_v58  ;;  %3468 = vmatpush1.msra.mxu0 %v5981_v47  ;;  %v6019_v58 = vld [vmem:[%s15161_s1 + $0x8a8] sm:$0xff] }
 0x44e   :  { %3539 = vmatpush1.msra.mxu1 %v5982_v42  ;;  %3469 = vmatprep.subr.mxu0 %v5983_v60  ;;  %v6020_v47 = vld [vmem:[%s15161_s1 + $0xca8] sm:$0xff]  ;;  %v6021_v42 = vld [vmem:[%s15161_s1 + $0x8a0] sm:$0xff] }
 0x44f   :  { %3540 = vmatprep.subr.mxu1 %v5984_v63  ;;  %3470 = vmatpush1.msra.mxu0 %v5985_v0  ;;  %v6022_v60 = vld [vmem:[%s15161_s1 + $0xca0] sm:$0xff]  ;;  %v6023_v63 = vld [vmem:[%s15161_s1 + $0x888] sm:$0xff] }
 0x450   :  { %3541 = vmatpush1.msra.mxu1 %v5986_v52  ;;  %3471 = vmatprep.subr.mxu0 %v5987_v51  ;;  %v6024_v0 = vld [vmem:[%s15161_s1 + $0xc88] sm:$0xff]  ;;  %v6025_v52 = vld [vmem:[%s15161_s1 + $0x880] sm:$0xff] }
 0x451   :  { %3542 = vmatprep.subr.mxu1 %v5988_v53  ;;  %3472 = vmatpush1.msra.mxu0 %v5989_v57  ;;  %v6026_v51 = vld [vmem:[%s15161_s1 + $0xc80] sm:$0xff]  ;;  %v6027_v53 = vld [vmem:[%s15161_s1 + $0x868] sm:$0xff] }
 0x452   :  { %3543 = vmatpush1.msra.mxu1 %v5990_v59  ;;  %3473 = vmatprep.subr.mxu0 %v5991_v61  ;;  %v6028_v57 = vld [vmem:[%s15161_s1 + $0xc68] sm:$0xff]  ;;  %v13388_v59 = vpop.f32.mrf.mxu1  ;;  %v6029_v61 = vld [vmem:[%s15161_s1 + $0x860] sm:$0xff] }
 0x453   :  { %3544 = vmatprep.subr.mxu1 %v5992_v62  ;;  %3474 = vmatpush1.msra.mxu0 %v5993_v18  ;;  %v6030_v62 = vld [vmem:[%s15161_s1 + $0xc60] sm:$0xff]  ;;  %v6031_v18 = vld [vmem:[%s15161_s1 + $0x848] sm:$0xff] }
 0x454   :  { %3545 = vmatpush1.msra.mxu1 %v5994_v3  ;;  %3475 = vmatprep.subr.mxu0 %v5995_v14  ;;  %v6032_v3 = vld [vmem:[%s15161_s1 + $0xc48] sm:$0xff]  ;;  %v13402_v14 = vpop.f32.mrf.mxu0 }
 0x455   :  { %3546 = vmatprep.subr.mxu1 %v5996_v4  ;;  %3476 = vmatpush1.msra.mxu0 %v5997_v28  ;;  %v6033_v4 = vld [vmem:[%s15161_s1 + $0x840] sm:$0xff] }
 0x456   :  { %3547 = vmatpush1.msra.mxu1 %v5998_v11  ;;  %3477 = vmatprep.subr.mxu0 %v5999_v5  ;;  %v6034_v28 = vld [vmem:[%s15161_s1 + $0xc40] sm:$0xff]  ;;  %v6035_v11 = vld [vmem:[%s15161_s1 + $0x828] sm:$0xff] }
 0x457   :  { %3548 = vmatprep.subr.mxu1 %v6000_v6  ;;  %3478 = vmatpush1.msra.mxu0 %v6001_v7  ;;  %v6036_v5 = vld [vmem:[%s15161_s1 + $0xc28] sm:$0xff]  ;;  %v13416_v6 = vpop.f32.mrf.mxu1  ;;  %v6037_v7 = vld [vmem:[%s15161_s1 + $0x820] sm:$0xff] }
 0x458   :  { %3549 = vmatpush1.msra.mxu1 %v6002_v8  ;;  %3479 = vmatprep.subr.mxu0 %v6003_v13  ;;  %v6038_v8 = vld [vmem:[%s15161_s1 + $0xc20] sm:$0xff]  ;;  %v6039_v13 = vld [vmem:[%s15161_s1 + $0x808] sm:$0xff] }
 0x459   :  { %3550 = vmatprep.subr.mxu1 %v6004_v15  ;;  %3480 = vmatpush1.msra.mxu0 %v6005_v16  ;;  %v6040_v15 = vld [vmem:[%s15161_s1 + $0xc08] sm:$0xff]  ;;  %v13430_v16 = vpop.f32.mrf.mxu0 }
 0x45a   :  { %3551 = vmatpush1.msra.mxu1 %v6006_v20  ;;  %3481 = vmatprep.subr.mxu0 %v6007_v25  ;;  %v13432_v20 = vpop.f32.mrf.mxu1  ;;  %v6041_v25 = vld [vmem:[%s15161_s1 + $0x800] sm:$0xff] }
 0x45b   :  { %3552 = vmatprep.subr.mxu1 %v6008_v26  ;;  %3482 = vmatpush1.msra.mxu0 %v6009_v55  ;;  %v6042_v26 = vld [vmem:[%s15161_s1 + $0xc00] sm:$0xff]  ;;  %v6043_v55 = vld [vmem:[%s15161_s1 + $0xbe8] sm:$0xff] }
 0x45c   :  { %3553 = vmatpush1.msra.mxu1 %v6010_v27  ;;  %3483 = vmatprep.subr.mxu0 %v6011_v1  ;;  %v6044_v27 = vld [vmem:[%s15161_s1 + $0xfe8] sm:$0xff]  ;;  %v13446_v1 = vpop.f32.mrf.mxu0 }
 0x45d   :  { %3554 = vmatprep.subr.mxu1 %v6012_v31  ;;  %3484 = vmatpush1.msra.mxu0 %v6013_v43  ;;  %v6045_v31 = vld [vmem:[%s15161_s1 + $0xbe0] sm:$0xff] }
 0x45e   :  { %3555 = vmatpush1.msra.mxu1 %v6014_v33  ;;  %3485 = vmatprep.subr.mxu0 %v6015_v39  ;;  %v6046_v43 = vld [vmem:[%s15161_s1 + $0xfe0] sm:$0xff]  ;;  %v6047_v33 = vld [vmem:[%s15161_s1 + $0xbc8] sm:$0xff] }
 0x45f   :  { %3556 = vmatprep.subr.mxu1 %v6016_v46  ;;  %3486 = vmatpush1.msra.mxu0 %v6017_v17  ;;  %v6048_v39 = vld [vmem:[%s15161_s1 + $0xfc8] sm:$0xff]  ;;  %v13460_v46 = vpop.f32.mrf.mxu1  ;;  %v6049_v17 = vld [vmem:[%s15161_s1 + $0xbc0] sm:$0xff] }
 0x460   :  { %3557 = vmatpush1.msra.mxu1 %v6018_v50  ;;  %3487 = vmatprep.subr.mxu0 %v6019_v58  ;;  %v6050_v50 = vld [vmem:[%s15161_s1 + $0xfc0] sm:$0xff]  ;;  %v6051_v58 = vld [vmem:[%s15161_s1 + $0xba8] sm:$0xff] }
 0x461   :  { %3558 = vmatprep.subr.mxu1 %v6020_v47  ;;  %3488 = vmatpush1.msra.mxu0 %v6021_v42  ;;  %v6052_v47 = vld [vmem:[%s15161_s1 + $0xfa8] sm:$0xff]  ;;  %v13474_v42 = vpop.f32.mrf.mxu0 }
 0x462   :  { %3559 = vmatpush1.msra.mxu1 %v6022_v60  ;;  %3489 = vmatprep.subr.mxu0 %v6023_v63  ;;  %v13476_v60 = vpop.f32.mrf.mxu1  ;;  %v6053_v63 = vld [vmem:[%s15161_s1 + $0xba0] sm:$0xff] }
 0x463   :  { %3560 = vmatprep.subr.mxu1 %v6024_v0  ;;  %3490 = vmatpush1.msra.mxu0 %v6025_v52  ;;  %v6054_v0 = vld [vmem:[%s15161_s1 + $0xfa0] sm:$0xff]  ;;  %v6055_v52 = vld [vmem:[%s15161_s1 + $0xb88] sm:$0xff] }
 0x464   :  { %3561 = vmatpush1.msra.mxu1 %v6026_v51  ;;  %3491 = vmatprep.subr.mxu0 %v6027_v53  ;;  %v6056_v51 = vld [vmem:[%s15161_s1 + $0xf88] sm:$0xff]  ;;  %v13490_v53 = vpop.f32.mrf.mxu0 }
 0x465   :  { %3562 = vmatprep.subr.mxu1 %v6028_v57  ;;  %3492 = vmatpush1.msra.mxu0 %v6029_v61  ;;  %v6057_v57 = vld [vmem:[%s15161_s1 + $0xb80] sm:$0xff] }
 0x466   :  { %3563 = vmatpush1.msra.mxu1 %v6030_v62  ;;  %3493 = vmatprep.subr.mxu0 %v6031_v18  ;;  %v6058_v61 = vld [vmem:[%s15161_s1 + $0xf80] sm:$0xff]  ;;  %v6059_v62 = vld [vmem:[%s15161_s1 + $0xb68] sm:$0xff] }
 0x467   :  { %3564 = vmatprep.subr.mxu1 %v6032_v3  ;;  %3494 = vmatpush1.msra.mxu0 %v6033_v4  ;;  %v6060_v18 = vld [vmem:[%s15161_s1 + $0xf68] sm:$0xff]  ;;  %v13504_v3 = vpop.f32.mrf.mxu1  ;;  %v6061_v4 = vld [vmem:[%s15161_s1 + $0xb60] sm:$0xff] }
 0x468   :  { %3565 = vmatpush1.msra.mxu1 %v6034_v28  ;;  %3495 = vmatprep.subr.mxu0 %v6035_v11  ;;  %v6062_v28 = vld [vmem:[%s15161_s1 + $0xf60] sm:$0xff]  ;;  %v6063_v11 = vld [vmem:[%s15161_s1 + $0xb48] sm:$0xff] }
 0x469   :  { %3566 = vmatprep.subr.mxu1 %v6036_v5  ;;  %3496 = vmatpush1.msra.mxu0 %v6037_v7  ;;  %v6064_v5 = vld [vmem:[%s15161_s1 + $0xf48] sm:$0xff]  ;;  %v13518_v7 = vpop.f32.mrf.mxu0 }
 0x46a   :  { %3567 = vmatpush1.msra.mxu1 %v6038_v8  ;;  %3497 = vmatprep.subr.mxu0 %v6039_v13  ;;  %v2946_v8 = vpop.f32.mrf.mxu1  ;;  %v6065_v13 = vld [vmem:[%s15161_s1 + $0xb40] sm:$0xff] }
 0x46b   :  { %3568 = vmatprep.subr.mxu1 %v6040_v15  ;;  %3498 = vmatpush1.msra.mxu0 %v6041_v25  ;;  %v6066_v15 = vld [vmem:[%s15161_s1 + $0xf40] sm:$0xff]  ;;  %v6067_v25 = vld [vmem:[%s15161_s1 + $0xb28] sm:$0xff] }
 0x46c   :  { %3569 = vmatpush1.msra.mxu1 %v6042_v26  ;;  %3499 = vmatprep.subr.mxu0 %v6043_v55  ;;  %v6068_v26 = vld [vmem:[%s15161_s1 + $0xf28] sm:$0xff]  ;;  %v6069_v55 = vld [vmem:[%s15161_s1 + $0xb20] sm:$0xff] }
 0x46d   :  { %3570 = vmatprep.subr.mxu1 %v6044_v27  ;;  %3500 = vmatpush2.msra.mxu0 %v6045_v31  ;;  %v6070_v27 = vld [vmem:[%s15161_s1 + $0xf20] sm:$0xff] }
 0x46e   :  { %3571 = vmatpush2.msra.mxu1 %v6046_v43  ;;  %3501 = vmatprep.subr.mxu0 %v6047_v33  ;;  %v6071_v43 = vld [vmem:[%s15161_s1 + $0xb08] sm:$0xff] }
 0x46f   :  { %3572 = vmatprep.subr.mxu1 %v6048_v39  ;;  %3502 = vmatpush2.msra.mxu0 %v6049_v17  ;;  %v6072_v33 = vld [vmem:[%s15161_s1 + $0xf08] sm:$0xff]  ;;  %v2948_v17 = vpop.f32.mrf.mxu1 }
 0x470   :  { %3573 = vmatpush2.msra.mxu1 %v6050_v50  ;;  %3503 = vmatprep.subr.mxu0 %v6051_v58  ;;  %v6073_v50 = vld [vmem:[%s15161_s1 + $0xb00] sm:$0xff] }
 0x471   :  { %3574 = vmatprep.subr.mxu1 %v6052_v47  ;;  %3504 = vmatpush2.msra.mxu0 %v6053_v63  ;;  %v6074_v58 = vld [vmem:[%s15161_s1 + $0xf00] sm:$0xff]  ;;  %v6075_v63 = vld [vmem:[%s15161_s1 + $0xae8] sm:$0xff] }
 0x472   :  { %3575 = vmatpush2.msra.mxu1 %v6054_v0  ;;  %3505 = vmatprep.subr.mxu0 %v6055_v52  ;;  %v6076_v0 = vld [vmem:[%s15161_s1 + $0xee8] sm:$0xff] }
 0x473   :  { %3576 = vmatprep.subr.mxu1 %v6056_v51  ;;  %3506 = vmatpush2.msra.mxu0 %v6057_v57  ;;  %v6077_v51 = vld [vmem:[%s15161_s1 + $0xae0] sm:$0xff] }
 0x474   :  { %3577 = vmatpush2.msra.mxu1 %v6058_v61  ;;  %3507 = vmatprep.subr.mxu0 %v6059_v62  ;;  %v6078_v57 = vld [vmem:[%s15161_s1 + $0xee0] sm:$0xff]  ;;  %v6079_v61 = vld [vmem:[%s15161_s1 + $0xac8] sm:$0xff] }
 0x475   :  { %3578 = vmatprep.subr.mxu1 %v6060_v18  ;;  %3508 = vmatpush2.msra.mxu0 %v6061_v4  ;;  %v6080_v62 = vld [vmem:[%s15161_s1 + $0xec8] sm:$0xff]  ;;  %v6081_v18 = vld [vmem:[%s15161_s1 + $0xac0] sm:$0xff] }
 0x476   :  { %3579 = vmatpush2.msra.mxu1 %v6062_v28  ;;  %3509 = vmatprep.subr.mxu0 %v6063_v11  ;;  %v6082_v4 = vld [vmem:[%s15161_s1 + $0xec0] sm:$0xff]  ;;  %v6083_v28 = vld [vmem:[%s15161_s1 + $0xaa8] sm:$0xff] }
 0x477   :  { %3580 = vmatprep.subr.mxu1 %v6064_v5  ;;  %3510 = vmatpush2.msra.mxu0 %v6065_v13  ;;  %v6084_v11 = vld [vmem:[%s15161_s1 + $0xea8] sm:$0xff]  ;;  %v6085_v5 = vld [vmem:[%s15161_s1 + $0xaa0] sm:$0xff] }
 0x478   :  { %3581 = vmatpush2.msra.mxu1 %v6066_v15  ;;  %3511 = vmatprep.subr.mxu0 %v6067_v25  ;;  %v6087_v13 = vld [vmem:[%s15161_s1 + $0xa88] sm:$0xff]  ;;  %v6089_v25 = vld [vmem:[%s15161_s1 + $0xa80] sm:$0xff] }
 0x479   :  { %3582 = vmatprep.subr.mxu1 %v6068_v26  ;;  %3512 = vmatpush2.msra.mxu0 %v6069_v55  ;;  %v6088_v15 = vld [vmem:[%s15161_s1 + $0xe88] sm:$0xff]  ;;  %v6090_v26 = vld [vmem:[%s15161_s1 + $0xe80] sm:$0xff] }
 0x47a   :  { %3583 = vmatpush2.msra.mxu1 %v6070_v27  ;;  %v3017_v31 = vpop.f32.mrf.mxu0  ;;  %3513 = vmatprep.subr.mxu0 %v6071_v43  ;;  %v6091_v55 = vld [vmem:[%s15161_s1 + $0xa68] sm:$0xff]  ;;  %v6094_v43 = vld [vmem:[%s15161_s1 + $0xe60] sm:$0xff] }
 0x47b   :  { %3584 = vmatprep.subr.mxu1 %v6072_v33  ;;  %v3018_v39 = vadd.f32 %v3017_v31, %v2946_v8  ;;  %3514 = vmatpush2.msra.mxu0 %v6073_v50  ;;  %v6086_v8 = vld [vmem:[%s15161_s1 + $0xea0] sm:$0xff]  ;;  %v6092_v27 = vld [vmem:[%s15161_s1 + $0xe68] sm:$0xff] }
 0x47c   :  { %3585 = vmatpush2.msra.mxu1 %v6074_v58  ;;  %v3019_v47 = vpop.f32.mrf.mxu0  ;;  %3515 = vmatprep.subr.mxu0 %v6075_v63  ;;  %v6093_v31 = vld [vmem:[%s15161_s1 + $0xa60] sm:$0xff]  ;;  %v6095_v33 = vld [vmem:[%s15161_s1 + $0xa48] sm:$0xff] }
 0x47d   :  { %3586 = vmatprep.subr.mxu1 %v6076_v0  ;;  %v3020_v52 = vadd.f32 %v3019_v47, %v2948_v17  ;;  %3516 = vmatpush2.msra.mxu0 %v6077_v51  ;;  %v6096_v17 = vld [vmem:[%s15161_s1 + $0xe48] sm:$0xff]  ;;  %v6097_v58 = vld [vmem:[%s15161_s1 + $0xa40] sm:$0xff] }
 0x47e   :  { %3587 = vmatpush2.msra.mxu1 %v6078_v57  ;;  %3517 = vmatprep.subr.mxu0 %v6079_v61  ;;  %v6098_v47 = vld [vmem:[%s15161_s1 + $0xe40] sm:$0xff]  ;;  %v6099_v0 = vld [vmem:[%s15161_s1 + $0xa28] sm:$0xff]  ;;  %v13633_v57 = vld [vmem:[%s15160_s0 + $0x130] sm:$0x3f] }
 0x47f   :  { %3588 = vmatprep.subr.mxu1 %v6080_v62  ;;  %3518 = vmatpush2.msra.mxu0 %v6081_v18  ;;  %v6100_v51 = vld [vmem:[%s15161_s1 + $0xe28] sm:$0xff]  ;;  %v6102_v62 = vld [vmem:[%s15161_s1 + $0xe20] sm:$0xff] }
 0x480   :  { %3589 = vmatpush2.msra.mxu1 %v6082_v4  ;;  %3519 = vmatprep.subr.mxu0 %v6083_v28  ;;  %v13644_v18 = vld [vmem:[%s15160_s0 + $0x140] sm:$0x3f]  ;;  %v6103_v28 = vld [vmem:[%s15161_s1 + $0xa08] sm:$0xff] }
 0x481   :  { %3590 = vmatprep.subr.mxu1 %v6084_v11  ;;  %3520 = vmatpush2.msra.mxu0 %v6085_v5  ;;  %v6104_v11 = vld [vmem:[%s15161_s1 + $0xe08] sm:$0xff] }
 0x482   :  { %3591 = vmatpush2.msra.mxu1 %v6086_v8  ;;  %3521 = vmatprep.subr.mxu0 %v6087_v13  ;;  %v13657_v5 = vld [vmem:[%s15160_s0 + $0x128] sm:$0x3f]  ;;  %v6105_v8 = vld [vmem:[%s15161_s1 + $0xa00] sm:$0xff] }
 0x483   :  { %3592 = vmatprep.subr.mxu1 %v6088_v15  ;;  %3522 = vmatpush2.msra.mxu0 %v6089_v25  ;;  %v6106_v13 = vld [vmem:[%s15161_s1 + $0xe00] sm:$0xff]  ;;  %v6107_v15 = vld [vmem:[%s15161_s1 + $0x11e8] sm:$0xff] }
 0x484   :  { %3593 = vmatpush2.msra.mxu1 %v6090_v26  ;;  %3523 = vmatprep.subr.mxu0 %v6091_v55  ;;  %v6108_v25 = vld [vmem:[%s15161_s1 + $0x14a8] sm:$0x7]  ;;  %v6109_v26 = vld [vmem:[%s15161_s1 + $0x11e0] sm:$0xff] }
 0x485   :  { %3594 = vmatprep.subr.mxu1 %v6092_v27  ;;  %3524 = vmatpush2.msra.mxu0 %v6093_v31  ;;  %v6110_v55 = vld [vmem:[%s15161_s1 + $0x14a0] sm:$0x7]  ;;  %v6111_v27 = vld [vmem:[%s15161_s1 + $0x11c8] sm:$0xff] }
 0x486   :  { %3595 = vmatpush2.msra.mxu1 %v6094_v43  ;;  %3525 = vmatprep.subr.mxu0 %v6095_v33  ;;  %v6112_v31 = vld [vmem:[%s15161_s1 + $0x1488] sm:$0xff]  ;;  %v6113_v43 = vld [vmem:[%s15161_s1 + $0x11c0] sm:$0xff] }
 0x487   :  { %3596 = vmatprep.subr.mxu1 %v6096_v17  ;;  %v3088_v50 = vpop.f32.mrf.mxu1  ;;  %3526 = vmatpush2.msra.mxu0 %v6097_v58  ;;  %v6114_v33 = vld [vmem:[%s15161_s1 + $0x1480] sm:$0xff]  ;;  %v6115_v17 = vld [vmem:[%s15161_s1 + $0x11a8] sm:$0xff] }
 0x488   :  { %3597 = vmatpush2.msra.mxu1 %v6098_v47  ;;  %v13622_v63 = vadd.f32 %v3088_v50, %v3018_v39  ;;  %3527 = vmatprep.subr.mxu0 %v6099_v0  ;;  %v6101_v39 = vld [vmem:[%s15161_s1 + $0xa20] sm:$0xff]  ;;  %v6116_v50 = vld [vmem:[%s15161_s1 + $0x1468] sm:$0xff] }
 0x489   :  { %3598 = vmatprep.subr.mxu1 %v6100_v51  ;;  %v3090_v61 = vpop.f32.mrf.mxu1  ;;  %3528 = vmatpush2.msra.mxu0 %v6101_v39  ;;  %v6117_v58 = vld [vmem:[%s15161_s1 + $0x11a0] sm:$0xff]  ;;  %v6119_v0 = vld [vmem:[%s15161_s1 + $0x1188] sm:$0xff] }
 0x48a   :  { %3599 = vmatpush2.msra.mxu1 %v6102_v62  ;;  %v13646_v4 = vadd.f32 %v3090_v61, %v3020_v52  ;;  %3529 = vmatprep.subr.mxu0 %v6103_v28  ;;  %v13662_v52 = vld [vmem:[%s15160_s0 + $0x138] sm:$0x3f]  ;;  %v6118_v47 = vld [vmem:[%s15161_s1 + $0x1460] sm:$0xff]  ;;  %v6120_v51 = vld [vmem:[%s15161_s1 + $0x1448] sm:$0xff] }
 0x48b   :  { %3600 = vmatprep.subr.mxu1 %v6104_v11  ;;  %3530 = vmatpush2.msra.mxu0 %v6105_v8  ;;  %v6121_v61 = vld [vmem:[%s15161_s1 + $0x1180] sm:$0xff]  ;;  %v6123_v62 = vld [vmem:[%s15161_s1 + $0x1168] sm:$0xff] }
 0x48c   :  { %3531 = vmatprep.mubr.f32.mxu0 %v13633_v57  ;;  %3601 = vmatpush2.msra.mxu1 %v6106_v13  ;;  %v6122_v39 = vld [vmem:[%s15161_s1 + $0x1440] sm:$0xff]  ;;  %v6124_v28 = vld [vmem:[%s15161_s1 + $0x1428] sm:$0xff] }
 0x48d   :  { %3602 = vmatprep.mubr.f32.mxu1 %v13644_v18  ;;  %3532 = vmatmul.mubr.f32.vlgmr.msra.gmra.mxu0 %v13657_v5  ;;  %v6125_v11 = vld [vmem:[%s15161_s1 + $0x1160] sm:$0xff]  ;;  %v6127_v13 = vld [vmem:[%s15161_s1 + $0x1148] sm:$0xff] }
 0x48e   :  { %3603 = vmatmul.mubr.f32.vlgmr.msra.gmra.mxu1 %v13662_v52  ;;  %3609 = vmatprep.subr.mxu0 %v6107_v15  ;;  %v6126_v8 = vld [vmem:[%s15161_s1 + $0x1420] sm:$0xff]  ;;  %v6128_v15 = vld [vmem:[%s15161_s1 + $0x1408] sm:$0xff] }
 0x48f   :  { %4468 = vmatprep.subr.msk.mxu1 %vm703_vm0, %v6108_v25  ;;  %3610 = vmatpush1.msra.mxu0 %v6109_v26  ;;  %v13745_v25 = vld [vmem:[%s15160_s0 + $0x158] sm:$0x3f]  ;;  %v6129_v26 = vld [vmem:[%s15161_s1 + $0x1140] sm:$0xff] }
 0x490   :  { %4469 = vmatpush1.msk.msra.mxu1 %vm703_vm0, %v6110_v55  ;;  %3611 = vmatprep.subr.mxu0 %v6111_v27  ;;  %v6130_v55 = vld [vmem:[%s15161_s1 + $0x1400] sm:$0xff]  ;;  %v6131_v27 = vld [vmem:[%s15161_s1 + $0x1128] sm:$0xff] }
 0x491   :  { %3702 = vmatprep.subr.mxu1 %v6112_v31  ;;  %3612 = vmatpush1.msra.mxu0 %v6113_v43  ;;  %v6132_v31 = vld [vmem:[%s15161_s1 + $0x1f8] sm:$0xff]  ;;  %v6133_v43 = vld [vmem:[%s15161_s1 + $0x1120] sm:$0xff] }
 0x492   :  { %3703 = vmatpush1.msra.mxu1 %v6114_v33  ;;  %3613 = vmatprep.subr.mxu0 %v6115_v17  ;;  %v6134_v33 = vld [vmem:[%s15161_s1 + $0x1f0] sm:$0xff]  ;;  %v6135_v17 = vld [vmem:[%s15161_s1 + $0x1108] sm:$0xff] }
 0x493   :  { %3704 = vmatprep.subr.mxu1 %v6116_v50  ;;  %3614 = vmatpush1.msra.mxu0 %v6117_v58  ;;  %v6136_v50 = vld [vmem:[%s15161_s1 + $0x1d8] sm:$0xff]  ;;  %v6137_v58 = vld [vmem:[%s15161_s1 + $0x1100] sm:$0xff] }
 0x494   :  { %3705 = vmatpush1.msra.mxu1 %v6118_v47  ;;  %3615 = vmatprep.subr.mxu0 %v6119_v0  ;;  %v6138_v47 = vld [vmem:[%s15161_s1 + $0x1d0] sm:$0xff]  ;;  %v6139_v0 = vld [vmem:[%s15161_s1 + $0x10e8] sm:$0xff] }
 0x495   :  { %3706 = vmatprep.subr.mxu1 %v6120_v51  ;;  %3616 = vmatpush1.msra.mxu0 %v6121_v61  ;;  %v6140_v51 = vld [vmem:[%s15161_s1 + $0x1b8] sm:$0xff]  ;;  %v6141_v61 = vld [vmem:[%s15161_s1 + $0x10e0] sm:$0xff] }
 0x496   :  { %3707 = vmatpush1.msra.mxu1 %v6122_v39  ;;  %3617 = vmatprep.subr.mxu0 %v6123_v62  ;;  %v6142_v39 = vld [vmem:[%s15161_s1 + $0x1b0] sm:$0xff]  ;;  %v6143_v62 = vld [vmem:[%s15161_s1 + $0x10c8] sm:$0xff] }
 0x497   :  { %3708 = vmatprep.subr.mxu1 %v6124_v28  ;;  %3618 = vmatpush1.msra.mxu0 %v6125_v11  ;;  %v6144_v28 = vld [vmem:[%s15161_s1 + $0x198] sm:$0xff]  ;;  %v6145_v11 = vld [vmem:[%s15161_s1 + $0x10c0] sm:$0xff] }
 0x498   :  { %3709 = vmatpush1.msra.mxu1 %v6126_v8  ;;  %3619 = vmatprep.subr.mxu0 %v6127_v13  ;;  %v6146_v8 = vld [vmem:[%s15161_s1 + $0x190] sm:$0xff]  ;;  %v6147_v13 = vld [vmem:[%s15161_s1 + $0x10a8] sm:$0xff] }
 0x499   :  { %3710 = vmatprep.subr.mxu1 %v6128_v15  ;;  %3620 = vmatpush1.msra.mxu0 %v6129_v26  ;;  %v6148_v15 = vld [vmem:[%s15161_s1 + $0x178] sm:$0xff]  ;;  %v6149_v26 = vld [vmem:[%s15161_s1 + $0x10a0] sm:$0xff] }
 0x49a   :  { %3711 = vmatpush1.msra.mxu1 %v6130_v55  ;;  %3744 = vmatprep.mubr.f32.mxu1 %v6515_v37  ;;  %v6150_v55 = vld [vmem:[%s15161_s1 + $0x170] sm:$0xff] }
 0x49b   :  { %3621 = vmatprep.subr.mxu0 %v6131_v27  ;;  %4470 = vmatmul.mubr.msk.f32.vlgmr.msra.gmra.mxu1 %vm699_vm1, %v13745_v25  ;;  %v6151_v27 = vld [vmem:[%s15161_s1 + $0x1088] sm:$0xff] }
 0x49c   :  { %3751 = vmatprep.subr.mxu1 %v6132_v31  ;;  %3622 = vmatpush1.msra.mxu0 %v6133_v43  ;;  %v6152_v31 = vld [vmem:[%s15161_s1 + $0x158] sm:$0xff]  ;;  %v6153_v43 = vld [vmem:[%s15161_s1 + $0x1080] sm:$0xff] }
 0x49d   :  { %3752 = vmatpush1.msra.mxu1 %v6134_v33  ;;  %3623 = vmatprep.subr.mxu0 %v6135_v17  ;;  %v6154_v33 = vld [vmem:[%s15161_s1 + $0x150] sm:$0xff]  ;;  %v6155_v17 = vld [vmem:[%s15161_s1 + $0x1068] sm:$0xff] }
 0x49e   :  { %3753 = vmatprep.subr.mxu1 %v6136_v50  ;;  %3624 = vmatpush1.msra.mxu0 %v6137_v58  ;;  %v6156_v50 = vld [vmem:[%s15161_s1 + $0x138] sm:$0xff]  ;;  %v6157_v58 = vld [vmem:[%s15161_s1 + $0x1060] sm:$0xff] }
 0x49f   :  { %3754 = vmatpush1.msra.mxu1 %v6138_v47  ;;  %3625 = vmatprep.subr.mxu0 %v6139_v0  ;;  %v6158_v47 = vld [vmem:[%s15161_s1 + $0x130] sm:$0xff]  ;;  %v6159_v0 = vld [vmem:[%s15161_s1 + $0x1048] sm:$0xff] }
 0x4a0   :  { %3755 = vmatprep.subr.mxu1 %v6140_v51  ;;  %3626 = vmatpush1.msra.mxu0 %v6141_v61  ;;  %v6160_v51 = vld [vmem:[%s15161_s1 + $0x118] sm:$0xff]  ;;  %v6161_v61 = vld [vmem:[%s15161_s1 + $0x1040] sm:$0xff] }
 0x4a1   :  { %3756 = vmatpush1.msra.mxu1 %v6142_v39  ;;  %3627 = vmatprep.subr.mxu0 %v6143_v62  ;;  %v6162_v39 = vld [vmem:[%s15161_s1 + $0x110] sm:$0xff]  ;;  %v6163_v62 = vld [vmem:[%s15161_s1 + $0x1028] sm:$0xff] }
 0x4a2   :  { %3757 = vmatprep.subr.mxu1 %v6144_v28  ;;  %3628 = vmatpush1.msra.mxu0 %v6145_v11  ;;  %v6164_v28 = vld [vmem:[%s15161_s1 + $0xf8] sm:$0xff]  ;;  %v6165_v11 = vld [vmem:[%s15161_s1 + $0x1020] sm:$0xff] }
 0x4a3   :  { %3758 = vmatpush1.msra.mxu1 %v6146_v8  ;;  %3629 = vmatprep.subr.mxu0 %v6147_v13  ;;  %v6166_v8 = vld [vmem:[%s15161_s1 + $0xf0] sm:$0xff]  ;;  %v6167_v13 = vld [vmem:[%s15161_s1 + $0x1008] sm:$0xff] }
 0x4a4   :  { %3759 = vmatprep.subr.mxu1 %v6148_v15  ;;  %3630 = vmatpush1.msra.mxu0 %v6149_v26  ;;  %v6168_v15 = vld [vmem:[%s15161_s1 + $0xd8] sm:$0xff]  ;;  %v6169_v26 = vld [vmem:[%s15161_s1 + $0x1000] sm:$0xff] }
 0x4a5   :  { %3760 = vmatpush1.msra.mxu1 %v6150_v55  ;;  %3631 = vmatprep.subr.mxu0 %v6151_v27  ;;  %v6170_v55 = vld [vmem:[%s15161_s1 + $0xd0] sm:$0xff]  ;;  %v6171_v27 = vld [vmem:[%s15161_s1 + $0x13e8] sm:$0xff] }
 0x4a6   :  { %3761 = vmatprep.subr.mxu1 %v6152_v31  ;;  %3632 = vmatpush1.msra.mxu0 %v6153_v43  ;;  %v6172_v31 = vld [vmem:[%s15161_s1 + $0xb8] sm:$0xff]  ;;  %v6173_v43 = vld [vmem:[%s15161_s1 + $0x13e0] sm:$0xff] }
 0x4a7   :  { %3762 = vmatpush1.msra.mxu1 %v6154_v33  ;;  %3633 = vmatprep.subr.mxu0 %v6155_v17  ;;  %v6174_v33 = vld [vmem:[%s15161_s1 + $0xb0] sm:$0xff]  ;;  %v6175_v17 = vld [vmem:[%s15161_s1 + $0x13c8] sm:$0xff] }
 0x4a8   :  { %3763 = vmatprep.subr.mxu1 %v6156_v50  ;;  %3634 = vmatpush1.msra.mxu0 %v6157_v58  ;;  %v6176_v50 = vld [vmem:[%s15161_s1 + $0x98] sm:$0xff]  ;;  %v6177_v58 = vld [vmem:[%s15161_s1 + $0x13c0] sm:$0xff] }
 0x4a9   :  { %3764 = vmatpush1.msra.mxu1 %v6158_v47  ;;  %3635 = vmatprep.subr.mxu0 %v6159_v0  ;;  %v6178_v47 = vld [vmem:[%s15161_s1 + $0x90] sm:$0xff]  ;;  %v6179_v0 = vld [vmem:[%s15161_s1 + $0x13a8] sm:$0xff] }
 0x4aa   :  { %3765 = vmatprep.subr.mxu1 %v6160_v51  ;;  %3636 = vmatpush1.msra.mxu0 %v6161_v61  ;;  %v6180_v51 = vld [vmem:[%s15161_s1 + $0x78] sm:$0xff]  ;;  %v6181_v61 = vld [vmem:[%s15161_s1 + $0x13a0] sm:$0xff] }
 0x4ab   :  { %3766 = vmatpush1.msra.mxu1 %v6162_v39  ;;  %3637 = vmatprep.subr.mxu0 %v6163_v62  ;;  %v6182_v39 = vld [vmem:[%s15161_s1 + $0x70] sm:$0xff]  ;;  %v6183_v62 = vld [vmem:[%s15161_s1 + $0x1388] sm:$0xff] }
 0x4ac   :  { %3767 = vmatprep.subr.mxu1 %v6164_v28  ;;  %3638 = vmatpush1.msra.mxu0 %v6165_v11  ;;  %v6184_v28 = vld [vmem:[%s15161_s1 + $0x58] sm:$0xff]  ;;  %v6185_v11 = vld [vmem:[%s15161_s1 + $0x1380] sm:$0xff] }
 0x4ad   :  { %3768 = vmatpush1.msra.mxu1 %v6166_v8  ;;  %3639 = vmatprep.subr.mxu0 %v6167_v13  ;;  %v6186_v8 = vld [vmem:[%s15161_s1 + $0x50] sm:$0xff]  ;;  %v6187_v13 = vld [vmem:[%s15161_s1 + $0x1368] sm:$0xff] }
 0x4ae   :  { %3769 = vmatprep.subr.mxu1 %v6168_v15  ;;  %3640 = vmatpush1.msra.mxu0 %v6169_v26  ;;  %v6188_v15 = vld [vmem:[%s15161_s1 + $0x38] sm:$0xff]  ;;  %v6189_v26 = vld [vmem:[%s15161_s1 + $0x1360] sm:$0xff] }
 0x4af   :  { %3770 = vmatpush1.msra.mxu1 %v6170_v55  ;;  %3641 = vmatprep.subr.mxu0 %v6171_v27  ;;  %v6190_v55 = vld [vmem:[%s15161_s1 + $0x30] sm:$0xff]  ;;  %v6191_v27 = vld [vmem:[%s15161_s1 + $0x1348] sm:$0xff] }
 0x4b0   :  { %3771 = vmatprep.subr.mxu1 %v6172_v31  ;;  %3642 = vmatpush2.msra.mxu0 %v6173_v43  ;;  %v6192_v31 = vld [vmem:[%s15161_s1 + $0x18] sm:$0xff]  ;;  %v6193_v43 = vld [vmem:[%s15161_s1 + $0x1340] sm:$0xff] }
 0x4b1   :  { %3772 = vmatpush1.msra.mxu1 %v6174_v33  ;;  %3643 = vmatprep.subr.mxu0 %v6175_v17  ;;  %v6194_v33 = vld [vmem:[%s15161_s1 + $0x10] sm:$0xff]  ;;  %v6195_v17 = vld [vmem:[%s15161_s1 + $0x1328] sm:$0xff] }
 0x4b2   :  { %3773 = vmatprep.subr.mxu1 %v6176_v50  ;;  %3644 = vmatpush2.msra.mxu0 %v6177_v58  ;;  %v6196_v50 = vld [vmem:[%s15161_s1 + $0x3f8] sm:$0xff] }
 0x4b3   :  { %3774 = vmatpush1.msra.mxu1 %v6178_v47  ;;  %3645 = vmatprep.subr.mxu0 %v6179_v0  ;;  %v6197_v47 = vld [vmem:[%s15161_s1 + $0x1320] sm:$0xff]  ;;  %v6198_v0 = vld [vmem:[%s15161_s1 + $0x3f0] sm:$0xff] }
 0x4b4   :  { %3775 = vmatprep.subr.mxu1 %v6180_v51  ;;  %3646 = vmatpush2.msra.mxu0 %v6181_v61  ;;  %v6199_v61 = vld [vmem:[%s15161_s1 + $0x1308] sm:$0xff] }
 0x4b5   :  { %3776 = vmatpush1.msra.mxu1 %v6182_v39  ;;  %3647 = vmatprep.subr.mxu0 %v6183_v62  ;;  %v6200_v39 = vld [vmem:[%s15161_s1 + $0x3d8] sm:$0xff] }
 0x4b6   :  { %3777 = vmatprep.subr.mxu1 %v6184_v28  ;;  %3648 = vmatpush2.msra.mxu0 %v6185_v11  ;;  %v6201_v28 = vld [vmem:[%s15161_s1 + $0x1300] sm:$0xff] }
 0x4b7   :  { %3778 = vmatpush1.msra.mxu1 %v6186_v8  ;;  %3649 = vmatprep.subr.mxu0 %v6187_v13  ;;  %v6203_v8 = vld [vmem:[%s15161_s1 + $0x12e8] sm:$0xff]  ;;  %v6204_v13 = vld [vmem:[%s15161_s1 + $0x3b8] sm:$0xff] }
 0x4b8   :  { %3779 = vmatprep.subr.mxu1 %v6188_v15  ;;  %3650 = vmatpush2.msra.mxu0 %v6189_v26  ;;  %v6205_v15 = vld [vmem:[%s15161_s1 + $0x12e0] sm:$0xff]  ;;  %v6206_v26 = vld [vmem:[%s15161_s1 + $0x3b0] sm:$0xff] }
 0x4b9   :  { %3780 = vmatpush1.msra.mxu1 %v6190_v55  ;;  %3651 = vmatprep.subr.mxu0 %v6191_v27  ;;  %v6208_v55 = vld [vmem:[%s15161_s1 + $0x398] sm:$0xff]  ;;  %v6209_v27 = vld [vmem:[%s15161_s1 + $0x12c0] sm:$0xff] }
 0x4ba   :  { %3781 = vmatprep.subr.mxu1 %v6192_v31  ;;  %3652 = vmatpush2.msra.mxu0 %v6193_v43  ;;  %v6210_v31 = vld [vmem:[%s15161_s1 + $0x390] sm:$0xff]  ;;  %v6211_v43 = vld [vmem:[%s15161_s1 + $0x12a8] sm:$0xff] }
 0x4bb   :  { %3782 = vmatpush1.msra.mxu1 %v6194_v33  ;;  %3653 = vmatprep.subr.mxu0 %v6195_v17  ;;  %v6212_v33 = vld [vmem:[%s15161_s1 + $0x378] sm:$0xff]  ;;  %v6213_v17 = vld [vmem:[%s15161_s1 + $0x12a0] sm:$0xff] }
 0x4bc   :  { %3783 = vmatprep.subr.mxu1 %v6196_v50  ;;  %v3159_v58 = vpop.f32.mrf.mxu0  ;;  %3654 = vmatpush2.msra.mxu0 %v6197_v47  ;;  %v6214_v50 = vld [vmem:[%s15161_s1 + $0x370] sm:$0xff]  ;;  %v6216_v47 = vld [vmem:[%s15161_s1 + $0x358] sm:$0xff] }
 0x4bd   :  { %3784 = vmatpush2.msra.mxu1 %v6198_v0  ;;  %v3160_v51 = vadd.f32 %v3159_v58, %v13622_v63  ;;  %3655 = vmatprep.subr.mxu0 %v6199_v61  ;;  %v6202_v63 = vld [vmem:[%s15161_s1 + $0x3d0] sm:$0xff]  ;;  %v6215_v58 = vld [vmem:[%s15161_s1 + $0x1288] sm:$0xff]  ;;  %v6217_v0 = vld [vmem:[%s15161_s1 + $0x1280] sm:$0xff] }
 0x4be   :  { %3785 = vmatprep.subr.mxu1 %v6200_v39  ;;  %v3161_v62 = vpop.f32.mrf.mxu0  ;;  %3656 = vmatpush2.msra.mxu0 %v6201_v28  ;;  %v6218_v61 = vld [vmem:[%s15161_s1 + $0x350] sm:$0xff]  ;;  %v6219_v39 = vld [vmem:[%s15161_s1 + $0x1268] sm:$0xff]  ;;  %v6221_v28 = vld [vmem:[%s15161_s1 + $0x1260] sm:$0xff] }
 0x4bf   :  { %3786 = vmatpush2.msra.mxu1 %v6202_v63  ;;  %v3162_v11 = vadd.f32 %v3161_v62, %v13646_v4  ;;  %3657 = vmatprep.subr.mxu0 %v6203_v8  ;;  %v6207_v4 = vld [vmem:[%s15161_s1 + $0x12c8] sm:$0xff]  ;;  %v6220_v62 = vld [vmem:[%s15161_s1 + $0x338] sm:$0xff]  ;;  %v6222_v63 = vld [vmem:[%s15161_s1 + $0x330] sm:$0xff] }
 0x4c0   :  { %3787 = vmatprep.subr.mxu1 %v6204_v13  ;;  %3658 = vmatpush2.msra.mxu0 %v6205_v15  ;;  %v6223_v13 = vld [vmem:[%s15161_s1 + $0x1248] sm:$0xff]  ;;  %v6224_v15 = vld [vmem:[%s15161_s1 + $0x318] sm:$0xff] }
 0x4c1   :  { %3788 = vmatpush2.msra.mxu1 %v6206_v26  ;;  %3659 = vmatprep.subr.mxu0 %v6207_v4  ;;  %v6225_v4 = vld [vmem:[%s15161_s1 + $0x1240] sm:$0xff] }
 0x4c2   :  { %3789 = vmatprep.subr.mxu1 %v6208_v55  ;;  %3660 = vmatpush2.msra.mxu0 %v6209_v27  ;;  %v6226_v55 = vld [vmem:[%s15161_s1 + $0x310] sm:$0xff] }
 0x4c3   :  { %3790 = vmatpush2.msra.mxu1 %v6210_v31  ;;  %3661 = vmatprep.subr.mxu0 %v6211_v43  ;;  %v6227_v43 = vld [vmem:[%s15161_s1 + $0x1228] sm:$0xff] }
 0x4c4   :  { %3791 = vmatprep.subr.mxu1 %v6212_v33  ;;  %3662 = vmatpush2.msra.mxu0 %v6213_v17  ;;  %v14055_v33 = vld [vmem:[%s15160_s0 + $0x150] sm:$0x3f] }
 0x4c5   :  { %3792 = vmatpush2.msra.mxu1 %v6214_v50  ;;  %3663 = vmatprep.subr.mxu0 %v6215_v58  ;;  %v6229_v58 = vld [vmem:[%s15161_s1 + $0x1220] sm:$0xff] }
 0x4c6   :  { %3793 = vmatprep.subr.mxu1 %v6216_v47  ;;  %3664 = vmatpush2.msra.mxu0 %v6217_v0  ;;  %v6230_v47 = vld [vmem:[%s15161_s1 + $0x2f0] sm:$0xff]  ;;  %v14066_v0 = vld [vmem:[%s15160_s0 + $0x148] sm:$0x3f] }
 0x4c7   :  { %3794 = vmatpush2.msra.mxu1 %v6218_v61  ;;  %3665 = vmatprep.subr.mxu0 %v6219_v39  ;;  %v6232_v39 = vld [vmem:[%s15161_s1 + $0x2d8] sm:$0xff] }
 0x4c8   :  { %3795 = vmatprep.subr.mxu1 %v6220_v62  ;;  %3666 = vmatpush2.msra.mxu0 %v6221_v28 }
 0x4c9   :  { %3796 = vmatpush2.msra.mxu1 %v6222_v63  ;;  %v3230_v8 = vpop.f32.mrf.mxu1  ;;  %3667 = vmatprep.subr.mxu0 %v6223_v13  ;;  %v6233_v63 = vld [vmem:[%s15161_s1 + $0x1200] sm:$0xff]  ;;  %v6237_v13 = vld [vmem:[%s15161_s1 + $0x2b0] sm:$0xff] }
 0x4ca   :  { %3797 = vmatprep.subr.mxu1 %v6224_v15  ;;  %v3231_v26 = vadd.f32 %v3230_v8, %v3160_v51  ;;  %3668 = vmatpush2.msra.mxu0 %v6225_v4  ;;  %v6228_v51 = vld [vmem:[%s15161_s1 + $0x2f8] sm:$0xff]  ;;  %v6234_v8 = vld [vmem:[%s15161_s1 + $0x2d0] sm:$0xff] }
 0x4cb   :  { %3798 = vmatpush2.msra.mxu1 %v6226_v55  ;;  %v3301_v27 = vpop.f32.mrf.mxu0  ;;  %v3232_v31 = vpop.f32.mrf.mxu1  ;;  %3669 = vmatprep.subr.mxu0 %v6227_v43  ;;  %v6241_v15 = vld [vmem:[%s15161_s1 + $0x290] sm:$0xff]  ;;  %v6243_v4 = vld [vmem:[%s15161_s1 + $0x278] sm:$0xff] }
 0x4cc   :  { %3799 = vmatprep.subr.mxu1 %v6228_v51  ;;  %v3302_v17 = vadd.f32 %v3301_v27, %v3231_v26  ;;  %v3233_v50 = vadd.f32 %v3232_v31, %v3162_v11  ;;  %3670 = vmatpush2.msra.mxu0 %v6229_v58  ;;  %v6231_v11 = vld [vmem:[%s15161_s1 + $0x1208] sm:$0xff]  ;;  %v6242_v26 = vld [vmem:[%s15161_s1 + $0x5d0] sm:$0xff]  ;;  %v6244_v55 = vld [vmem:[%s15161_s1 + $0x5b8] sm:$0xff] }
 0x4cd   :  { %3800 = vmatpush2.msra.mxu1 %v6230_v47  ;;  %v3303_v61 = vpop.f32.mrf.mxu0  ;;  %3671 = vmatprep.subr.mxu0 %v6231_v11  ;;  %v6245_v27 = vld [vmem:[%s15161_s1 + $0x270] sm:$0xff]  ;;  %v6247_v43 = vld [vmem:[%s15161_s1 + $0x258] sm:$0xff] }
 0x4ce   :  { %3801 = vmatprep.subr.mxu1 %v6232_v39  ;;  %v14077_v62 = vmax.f32 %v2437_v45, %v3302_v17  ;;  %v3304_v28 = vadd.f32 %v3303_v61, %v3233_v50  ;;  %3672 = vmatpush2.msra.mxu0 %v6233_v63  ;;  %v6236_v45 = vld [vmem:[%s15161_s1 + $0x5f8] sm:$0xff]  ;;  %v6246_v31 = vld [vmem:[%s15161_s1 + $0x5b0] sm:$0xff] }
 0x4cf   :  { %3673 = vmatprep.mubr.f32.mxu0 %v14055_v33  ;;  %3802 = vmatpush2.msra.mxu1 %v6234_v8  ;;  %v6248_v51 = vld [vmem:[%s15161_s1 + $0x598] sm:$0xff]  ;;  %v6249_v17 = vld [vmem:[%s15161_s1 + $0x250] sm:$0xff] }
 0x4d0   :  { %3674 = vmatmul.mubr.f32.vlgmr.msra.gmra.mxu0 %v14066_v0  ;;  %v14090_v24 = vmax.f32 %v2438_v23, %v3304_v28  ;;  %3803 = vmatprep.subr.mxu1 %v6235_v38  ;;  %v6240_v23 = vld [vmem:[%s15161_s1 + $0x5d8] sm:$0xff]  ;;  %v6250_v50 = vld [vmem:[%s15161_s1 + $0x590] sm:$0xff] }
 0x4d1   :  { %3822 = vmatprep.subr.mxu0 %v6236_v45  ;;  %3804 = vmatpush2.msra.mxu1 %v6237_v13  ;;  %v6251_v58 = vld [vmem:[%s15161_s1 + $0x238] sm:$0xff]  ;;  %v6253_v61 = vld [vmem:[%s15161_s1 + $0x230] sm:$0xff] }
 0x4d2   :  { %3823 = vmatpush1.msra.mxu0 %v6238_v32  ;;  %3805 = vmatprep.subr.mxu1 %v6239_v56  ;;  %v6252_v47 = vld [vmem:[%s15161_s1 + $0x578] sm:$0xff]  ;;  %v6254_v11 = vld [vmem:[%s15161_s1 + $0x570] sm:$0xff] }
 0x4d3   :  { %3824 = vmatprep.subr.mxu0 %v6240_v23  ;;  %3806 = vmatpush2.msra.mxu1 %v6241_v15  ;;  %v6255_v39 = vld [vmem:[%s15161_s1 + $0x218] sm:$0xff]  ;;  %v6257_v63 = vld [vmem:[%s15161_s1 + $0x210] sm:$0xff] }
 0x4d4   :  { %3825 = vmatpush1.msra.mxu0 %v6242_v26  ;;  %3807 = vmatprep.subr.mxu1 %v6243_v4  ;;  %v6256_v28 = vld [vmem:[%s15161_s1 + $0x558] sm:$0xff]  ;;  %v6258_v8 = vld [vmem:[%s15161_s1 + $0x550] sm:$0xff] }
 0x4d5   :  { %3826 = vmatprep.subr.mxu0 %v6244_v55  ;;  %3808 = vmatpush2.msra.mxu1 %v6245_v27  ;;  %v6259_v38 = vld [vmem:[%s15161_s1 + $0x538] sm:$0xff]  ;;  %v6262_v13 = vld [vmem:[%s15161_s1 + $0x9f0] sm:$0xff] }
 0x4d6   :  { %3827 = vmatpush1.msra.mxu0 %v6246_v31  ;;  %3809 = vmatprep.subr.mxu1 %v6247_v43  ;;  %v6260_v45 = vld [vmem:[%s15161_s1 + $0x9f8] sm:$0xff]  ;;  %v6265_v56 = vld [vmem:[%s15161_s1 + $0x510] sm:$0xff] }
 0x4d7   :  { %3828 = vmatprep.subr.mxu0 %v6248_v51  ;;  %3810 = vmatpush2.msra.mxu1 %v6249_v17  ;;  %v6264_v32 = vld [vmem:[%s15161_s1 + $0x9d8] sm:$0xff]  ;;  %v6266_v23 = vld [vmem:[%s15161_s1 + $0x9d0] sm:$0xff] }
 0x4d8   :  { %3829 = vmatpush1.msra.mxu0 %v6250_v50  ;;  %3811 = vmatprep.subr.mxu1 %v6251_v58  ;;  %v6267_v15 = vld [vmem:[%s15161_s1 + $0x4f8] sm:$0xff]  ;;  %v6269_v4 = vld [vmem:[%s15161_s1 + $0x4f0] sm:$0xff] }
 0x4d9   :  { %3830 = vmatprep.subr.mxu0 %v6252_v47  ;;  %3812 = vmatpush2.msra.mxu1 %v6253_v61  ;;  %v6268_v26 = vld [vmem:[%s15161_s1 + $0x9b8] sm:$0xff]  ;;  %v6270_v55 = vld [vmem:[%s15161_s1 + $0x9b0] sm:$0xff] }
 0x4da   :  { %3831 = vmatpush1.msra.mxu0 %v6254_v11  ;;  %3813 = vmatprep.subr.mxu1 %v6255_v39  ;;  %v6271_v27 = vld [vmem:[%s15161_s1 + $0x4d8] sm:$0xff]  ;;  %v6273_v43 = vld [vmem:[%s15161_s1 + $0x4d0] sm:$0xff] }
 0x4db   :  { %3832 = vmatprep.subr.mxu0 %v6256_v28  ;;  %3814 = vmatpush2.msra.mxu1 %v6257_v63  ;;  %v6272_v31 = vld [vmem:[%s15161_s1 + $0x998] sm:$0xff]  ;;  %v6274_v51 = vld [vmem:[%s15161_s1 + $0x990] sm:$0xff] }
 0x4dc   :  { %3815 = vmatprep.mubr.f32.mxu1 %v13199_v29  ;;  %3833 = vmatpush1.msra.mxu0 %v6258_v8  ;;  %v6261_v29 = vld [vmem:[%s15161_s1 + $0x530] sm:$0xff]  ;;  %v6275_v17 = vld [vmem:[%s15161_s1 + $0x4b8] sm:$0xff] }
 0x4dd   :  { %3816 = vmatmul.mubr.f32.vlgmr.msra.gmra.mxu1 %v13221_v40  ;;  %3834 = vmatprep.subr.mxu0 %v6259_v38  ;;  %v6263_v40 = vld [vmem:[%s15161_s1 + $0x518] sm:$0xff]  ;;  %v6277_v58 = vld [vmem:[%s15161_s1 + $0x4b0] sm:$0xff] }
 0x4de   :  { %3893 = vmatprep.subr.mxu1 %v6260_v45  ;;  %3835 = vmatpush1.msra.mxu0 %v6261_v29  ;;  %v6276_v50 = vld [vmem:[%s15161_s1 + $0x978] sm:$0xff]  ;;  %v6278_v47 = vld [vmem:[%s15161_s1 + $0x970] sm:$0xff] }
 0x4df   :  { %3894 = vmatpush1.msra.mxu1 %v6262_v13  ;;  %3836 = vmatprep.subr.mxu0 %v6263_v40  ;;  %v6279_v61 = vld [vmem:[%s15161_s1 + $0x498] sm:$0xff]  ;;  %v6281_v39 = vld [vmem:[%s15161_s1 + $0x490] sm:$0xff] }
 0x4e0   :  { %3895 = vmatprep.subr.mxu1 %v6264_v32  ;;  %3837 = vmatpush1.msra.mxu0 %v6265_v56  ;;  %v6280_v11 = vld [vmem:[%s15161_s1 + $0x958] sm:$0xff]  ;;  %v6282_v28 = vld [vmem:[%s15161_s1 + $0x950] sm:$0xff] }
 0x4e1   :  { %3896 = vmatpush1.msra.mxu1 %v6266_v23  ;;  %3838 = vmatprep.subr.mxu0 %v6267_v15  ;;  %v6283_v63 = vld [vmem:[%s15161_s1 + $0x478] sm:$0xff]  ;;  %v6285_v38 = vld [vmem:[%s15161_s1 + $0x470] sm:$0xff] }
 0x4e2   :  { %3897 = vmatprep.subr.mxu1 %v6268_v26  ;;  %3839 = vmatpush1.msra.mxu0 %v6269_v4  ;;  %v6284_v8 = vld [vmem:[%s15161_s1 + $0x938] sm:$0xff]  ;;  %v6286_v45 = vld [vmem:[%s15161_s1 + $0x930] sm:$0xff] }
 0x4e3   :  { %3898 = vmatpush1.msra.mxu1 %v6270_v55  ;;  %3840 = vmatprep.subr.mxu0 %v6271_v27  ;;  %v6287_v29 = vld [vmem:[%s15161_s1 + $0x458] sm:$0xff]  ;;  %v6289_v40 = vld [vmem:[%s15161_s1 + $0x450] sm:$0xff] }
 0x4e4   :  { %3899 = vmatprep.subr.mxu1 %v6272_v31  ;;  %3841 = vmatpush1.msra.mxu0 %v6273_v43  ;;  %v6288_v13 = vld [vmem:[%s15161_s1 + $0x918] sm:$0xff]  ;;  %v6290_v32 = vld [vmem:[%s15161_s1 + $0x910] sm:$0xff] }
 0x4e5   :  { %3900 = vmatpush1.msra.mxu1 %v6274_v51  ;;  %3842 = vmatprep.subr.mxu0 %v6275_v17  ;;  %v6291_v56 = vld [vmem:[%s15161_s1 + $0x438] sm:$0xff]  ;;  %v6293_v15 = vld [vmem:[%s15161_s1 + $0x430] sm:$0xff] }
 0x4e6   :  { %3901 = vmatprep.subr.mxu1 %v6276_v50  ;;  %3843 = vmatpush1.msra.mxu0 %v6277_v58  ;;  %v6292_v23 = vld [vmem:[%s15161_s1 + $0x8f8] sm:$0xff]  ;;  %v6294_v26 = vld [vmem:[%s15161_s1 + $0x8f0] sm:$0xff] }
 0x4e7   :  { %3902 = vmatpush1.msra.mxu1 %v6278_v47  ;;  %3844 = vmatprep.subr.mxu0 %v6279_v61  ;;  %v6295_v4 = vld [vmem:[%s15161_s1 + $0x418] sm:$0xff]  ;;  %v6297_v27 = vld [vmem:[%s15161_s1 + $0x410] sm:$0xff] }
 0x4e8   :  { %3903 = vmatprep.subr.mxu1 %v6280_v11  ;;  %3845 = vmatpush1.msra.mxu0 %v6281_v39  ;;  %v6296_v55 = vld [vmem:[%s15161_s1 + $0x8d8] sm:$0xff]  ;;  %v6298_v31 = vld [vmem:[%s15161_s1 + $0x8d0] sm:$0xff] }
 0x4e9   :  { %3904 = vmatpush1.msra.mxu1 %v6282_v28  ;;  %3846 = vmatprep.subr.mxu0 %v6283_v63  ;;  %v6299_v43 = vld [vmem:[%s15161_s1 + $0x7f8] sm:$0xff]  ;;  %v6301_v17 = vld [vmem:[%s15161_s1 + $0x7f0] sm:$0xff] }
 0x4ea   :  { %3905 = vmatprep.subr.mxu1 %v6284_v8  ;;  %3847 = vmatpush1.msra.mxu0 %v6285_v38  ;;  %v6300_v51 = vld [vmem:[%s15161_s1 + $0x8b8] sm:$0xff]  ;;  %v6302_v50 = vld [vmem:[%s15161_s1 + $0x8b0] sm:$0xff] }
 0x4eb   :  { %3906 = vmatpush1.msra.mxu1 %v6286_v45  ;;  %3848 = vmatprep.subr.mxu0 %v6287_v29  ;;  %v6303_v58 = vld [vmem:[%s15161_s1 + $0x7d8] sm:$0xff]  ;;  %v6305_v61 = vld [vmem:[%s15161_s1 + $0x7d0] sm:$0xff] }
 0x4ec   :  { %3907 = vmatprep.subr.mxu1 %v6288_v13  ;;  %3849 = vmatpush1.msra.mxu0 %v6289_v40  ;;  %v6304_v47 = vld [vmem:[%s15161_s1 + $0x898] sm:$0xff]  ;;  %v6306_v11 = vld [vmem:[%s15161_s1 + $0x890] sm:$0xff] }
 0x4ed   :  { %3908 = vmatpush1.msra.mxu1 %v6290_v32  ;;  %3850 = vmatprep.subr.mxu0 %v6291_v56  ;;  %v6307_v39 = vld [vmem:[%s15161_s1 + $0x7b8] sm:$0xff]  ;;  %v6309_v63 = vld [vmem:[%s15161_s1 + $0x7b0] sm:$0xff] }
 0x4ee   :  { %3909 = vmatprep.subr.mxu1 %v6292_v23  ;;  %3851 = vmatpush1.msra.mxu0 %v6293_v15  ;;  %v6308_v28 = vld [vmem:[%s15161_s1 + $0x878] sm:$0xff]  ;;  %v6310_v8 = vld [vmem:[%s15161_s1 + $0x870] sm:$0xff] }
 0x4ef   :  { %3910 = vmatpush1.msra.mxu1 %v6294_v26  ;;  %3852 = vmatprep.subr.mxu0 %v6295_v4  ;;  %v6311_v38 = vld [vmem:[%s15161_s1 + $0x798] sm:$0xff]  ;;  %v6313_v29 = vld [vmem:[%s15161_s1 + $0x790] sm:$0xff] }
 0x4f0   :  { %3911 = vmatprep.subr.mxu1 %v6296_v55  ;;  %3853 = vmatpush1.msra.mxu0 %v6297_v27  ;;  %v6312_v45 = vld [vmem:[%s15161_s1 + $0x858] sm:$0xff]  ;;  %v6314_v13 = vld [vmem:[%s15161_s1 + $0x850] sm:$0xff] }
 0x4f1   :  { %3912 = vmatpush1.msra.mxu1 %v6298_v31  ;;  %3854 = vmatprep.subr.mxu0 %v6299_v43  ;;  %v6315_v40 = vld [vmem:[%s15161_s1 + $0x778] sm:$0xff]  ;;  %v6317_v56 = vld [vmem:[%s15161_s1 + $0x770] sm:$0xff] }
 0x4f2   :  { %3913 = vmatprep.subr.mxu1 %v6300_v51  ;;  %3855 = vmatpush2.msra.mxu0 %v6301_v17  ;;  %v6316_v32 = vld [vmem:[%s15161_s1 + $0x838] sm:$0xff]  ;;  %v6318_v23 = vld [vmem:[%s15161_s1 + $0x830] sm:$0xff] }
 0x4f3   :  { %3914 = vmatpush1.msra.mxu1 %v6302_v50  ;;  %3856 = vmatprep.subr.mxu0 %v6303_v58  ;;  %v6319_v15 = vld [vmem:[%s15161_s1 + $0x758] sm:$0xff]  ;;  %v6321_v4 = vld [vmem:[%s15161_s1 + $0x750] sm:$0xff] }
 0x4f4   :  { %3915 = vmatprep.subr.mxu1 %v6304_v47  ;;  %3857 = vmatpush2.msra.mxu0 %v6305_v61  ;;  %v6320_v26 = vld [vmem:[%s15161_s1 + $0x818] sm:$0xff]  ;;  %v6322_v55 = vld [vmem:[%s15161_s1 + $0x810] sm:$0xff] }
 0x4f5   :  { %3916 = vmatpush1.msra.mxu1 %v6306_v11  ;;  %3858 = vmatprep.subr.mxu0 %v6307_v39  ;;  %v6323_v27 = vld [vmem:[%s15161_s1 + $0x738] sm:$0xff]  ;;  %v6325_v43 = vld [vmem:[%s15161_s1 + $0x730] sm:$0xff] }
 0x4f6   :  { %3917 = vmatprep.subr.mxu1 %v6308_v28  ;;  %3859 = vmatpush2.msra.mxu0 %v6309_v63  ;;  %v6324_v31 = vld [vmem:[%s15161_s1 + $0xbf8] sm:$0xff]  ;;  %v6326_v51 = vld [vmem:[%s15161_s1 + $0xbf0] sm:$0xff] }
 0x4f7   :  { %3918 = vmatpush1.msra.mxu1 %v6310_v8  ;;  %3860 = vmatprep.subr.mxu0 %v6311_v38  ;;  %v6327_v17 = vld [vmem:[%s15161_s1 + $0x718] sm:$0xff]  ;;  %v6329_v58 = vld [vmem:[%s15161_s1 + $0x710] sm:$0xff] }
 0x4f8   :  { %3919 = vmatprep.subr.mxu1 %v6312_v45  ;;  %3861 = vmatpush2.msra.mxu0 %v6313_v29  ;;  %v6328_v50 = vld [vmem:[%s15161_s1 + $0xbd8] sm:$0xff]  ;;  %v6330_v47 = vld [vmem:[%s15161_s1 + $0xbd0] sm:$0xff] }
 0x4f9   :  { %3920 = vmatpush1.msra.mxu1 %v6314_v13  ;;  %3862 = vmatprep.subr.mxu0 %v6315_v40  ;;  %v6331_v61 = vld [vmem:[%s15161_s1 + $0x6f8] sm:$0xff]  ;;  %v6333_v39 = vld [vmem:[%s15161_s1 + $0x6f0] sm:$0xff] }
 0x4fa   :  { %3921 = vmatprep.subr.mxu1 %v6316_v32  ;;  %3863 = vmatpush2.msra.mxu0 %v6317_v56  ;;  %v6332_v11 = vld [vmem:[%s15161_s1 + $0xbb8] sm:$0xff]  ;;  %v6334_v28 = vld [vmem:[%s15161_s1 + $0xbb0] sm:$0xff] }
 0x4fb   :  { %3922 = vmatpush1.msra.mxu1 %v6318_v23  ;;  %3864 = vmatprep.subr.mxu0 %v6319_v15  ;;  %v6335_v63 = vld [vmem:[%s15161_s1 + $0x6d8] sm:$0xff]  ;;  %v6337_v38 = vld [vmem:[%s15161_s1 + $0x6d0] sm:$0xff] }
 0x4fc   :  { %3923 = vmatprep.subr.mxu1 %v6320_v26  ;;  %3865 = vmatpush2.msra.mxu0 %v6321_v4  ;;  %v6336_v8 = vld [vmem:[%s15161_s1 + $0xb98] sm:$0xff]  ;;  %v6338_v45 = vld [vmem:[%s15161_s1 + $0xb90] sm:$0xff] }
 0x4fd   :  { %3924 = vmatpush1.msra.mxu1 %v6322_v55  ;;  %3866 = vmatprep.subr.mxu0 %v6323_v27  ;;  %v6339_v29 = vld [vmem:[%s15161_s1 + $0x6b8] sm:$0xff]  ;;  %v6341_v40 = vld [vmem:[%s15161_s1 + $0x6b0] sm:$0xff] }
 0x4fe   :  { %3925 = vmatprep.subr.mxu1 %v6324_v31  ;;  %3867 = vmatpush2.msra.mxu0 %v6325_v43  ;;  %v6340_v13 = vld [vmem:[%s15161_s1 + $0xb78] sm:$0xff]  ;;  %v6342_v32 = vld [vmem:[%s15161_s1 + $0xb70] sm:$0xff] }
 0x4ff   :  { %3926 = vmatpush2.msra.mxu1 %v6326_v51  ;;  %3868 = vmatprep.subr.mxu0 %v6327_v17  ;;  %v6343_v56 = vld [vmem:[%s15161_s1 + $0x698] sm:$0xff]  ;;  %v6345_v15 = vld [vmem:[%s15161_s1 + $0x690] sm:$0xff] }
 0x500   :  { %3927 = vmatprep.subr.mxu1 %v6328_v50  ;;  %3869 = vmatpush2.msra.mxu0 %v6329_v58  ;;  %v6344_v23 = vld [vmem:[%s15161_s1 + $0xb58] sm:$0xff]  ;;  %v6346_v26 = vld [vmem:[%s15161_s1 + $0xb50] sm:$0xff] }
 0x501   :  { %3928 = vmatpush2.msra.mxu1 %v6330_v47  ;;  %3870 = vmatprep.subr.mxu0 %v6331_v61  ;;  %v6347_v4 = vld [vmem:[%s15161_s1 + $0x678] sm:$0xff]  ;;  %v6349_v27 = vld [vmem:[%s15161_s1 + $0x670] sm:$0xff] }
 0x502   :  { %3929 = vmatprep.subr.mxu1 %v6332_v11  ;;  %3871 = vmatpush2.msra.mxu0 %v6333_v39  ;;  %v6348_v55 = vld [vmem:[%s15161_s1 + $0xb38] sm:$0xff]  ;;  %v6350_v31 = vld [vmem:[%s15161_s1 + $0xb30] sm:$0xff] }
 0x503   :  { %3930 = vmatpush2.msra.mxu1 %v6334_v28  ;;  %3872 = vmatprep.subr.mxu0 %v6335_v63  ;;  %v6351_v43 = vld [vmem:[%s15161_s1 + $0x658] sm:$0xff]  ;;  %v6353_v17 = vld [vmem:[%s15161_s1 + $0x650] sm:$0xff] }
 0x504   :  { %3931 = vmatprep.subr.mxu1 %v6336_v8  ;;  %3873 = vmatpush2.msra.mxu0 %v6337_v38  ;;  %v6352_v51 = vld [vmem:[%s15161_s1 + $0xb18] sm:$0xff]  ;;  %v6354_v50 = vld [vmem:[%s15161_s1 + $0xb10] sm:$0xff] }
 0x505   :  { %3932 = vmatpush2.msra.mxu1 %v6338_v45  ;;  %3874 = vmatprep.subr.mxu0 %v6339_v29  ;;  %v6355_v58 = vld [vmem:[%s15161_s1 + $0x638] sm:$0xff]  ;;  %v6357_v61 = vld [vmem:[%s15161_s1 + $0x630] sm:$0xff] }
 0x506   :  { %3933 = vmatprep.subr.mxu1 %v6340_v13  ;;  %3875 = vmatpush2.msra.mxu0 %v6341_v40  ;;  %v6356_v47 = vld [vmem:[%s15161_s1 + $0xaf8] sm:$0xff]  ;;  %v6358_v11 = vld [vmem:[%s15161_s1 + $0xaf0] sm:$0xff] }
 0x507   :  { %3934 = vmatpush2.msra.mxu1 %v6342_v32  ;;  %3876 = vmatprep.subr.mxu0 %v6343_v56  ;;  %v6359_v39 = vld [vmem:[%s15161_s1 + $0x618] sm:$0xff]  ;;  %v6361_v63 = vld [vmem:[%s15161_s1 + $0x610] sm:$0xff] }
 0x508   :  { %3935 = vmatprep.subr.mxu1 %v6344_v23  ;;  %3877 = vmatpush2.msra.mxu0 %v6345_v15  ;;  %v6360_v28 = vld [vmem:[%s15161_s1 + $0xad8] sm:$0xff]  ;;  %v6362_v8 = vld [vmem:[%s15161_s1 + $0xad0] sm:$0xff] }
 0x509   :  { %3936 = vmatpush2.msra.mxu1 %v6346_v26  ;;  %3878 = vmatprep.subr.mxu0 %v6347_v4  ;;  %v6363_v38 = vld [vmem:[%s15161_s1 + $0xab8] sm:$0xff]  ;;  %v6366_v29 = vld [vmem:[%s15161_s1 + $0xdf0] sm:$0xff] }
 0x50a   :  { %3937 = vmatprep.subr.mxu1 %v6348_v55  ;;  %3879 = vmatpush2.msra.mxu0 %v6349_v27  ;;  %v6364_v45 = vld [vmem:[%s15161_s1 + $0xdf8] sm:$0xff]  ;;  %v6369_v40 = vld [vmem:[%s15161_s1 + $0xa90] sm:$0xff] }
 0x50b   :  { %3938 = vmatpush2.msra.mxu1 %v6350_v31  ;;  %3880 = vmatprep.subr.mxu0 %v6351_v43  ;;  %v6368_v13 = vld [vmem:[%s15161_s1 + $0xdd8] sm:$0xff]  ;;  %v6370_v32 = vld [vmem:[%s15161_s1 + $0xdd0] sm:$0xff] }
 0x50c   :  { %3939 = vmatprep.subr.mxu1 %v6352_v51  ;;  %3881 = vmatpush2.msra.mxu0 %v6353_v17  ;;  %v6371_v56 = vld [vmem:[%s15161_s1 + $0xa78] sm:$0xff]  ;;  %v6373_v15 = vld [vmem:[%s15161_s1 + $0xa70] sm:$0xff] }
 0x50d   :  { %3940 = vmatpush2.msra.mxu1 %v6354_v50  ;;  %3882 = vmatprep.subr.mxu0 %v6355_v58  ;;  %v6372_v23 = vld [vmem:[%s15161_s1 + $0xdb8] sm:$0xff]  ;;  %v6374_v26 = vld [vmem:[%s15161_s1 + $0xdb0] sm:$0xff] }
 0x50e   :  { %3941 = vmatprep.subr.mxu1 %v6356_v47  ;;  %3883 = vmatpush2.msra.mxu0 %v6357_v61  ;;  %v6375_v4 = vld [vmem:[%s15161_s1 + $0xa58] sm:$0xff]  ;;  %v6377_v27 = vld [vmem:[%s15161_s1 + $0xa50] sm:$0xff] }
 0x50f   :  { %3942 = vmatpush2.msra.mxu1 %v6358_v11  ;;  %3884 = vmatprep.subr.mxu0 %v6359_v39  ;;  %v6376_v55 = vld [vmem:[%s15161_s1 + $0xd98] sm:$0xff]  ;;  %v6378_v31 = vld [vmem:[%s15161_s1 + $0xd90] sm:$0xff] }
 0x510   :  { %3943 = vmatprep.subr.mxu1 %v6360_v28  ;;  %3885 = vmatpush2.msra.mxu0 %v6361_v63  ;;  %v6379_v43 = vld [vmem:[%s15161_s1 + $0xa38] sm:$0xff]  ;;  %v6381_v17 = vld [vmem:[%s15161_s1 + $0xa30] sm:$0xff] }
 0x511   :  { %3886 = vmatprep.mubr.f32.mxu0 %v13210_v49  ;;  %3944 = vmatpush2.msra.mxu1 %v6362_v8  ;;  %v6365_v49 = vld [vmem:[%s15161_s1 + $0xab0] sm:$0xff]  ;;  %v6380_v51 = vld [vmem:[%s15161_s1 + $0xd78] sm:$0xff] }
 0x512   :  { %3887 = vmatmul.mubr.f32.vlgmr.msra.gmra.mxu0 %v13226_v22  ;;  %3945 = vmatprep.subr.mxu1 %v6363_v38  ;;  %v6367_v22 = vld [vmem:[%s15161_s1 + $0xa98] sm:$0xff]  ;;  %v6382_v50 = vld [vmem:[%s15161_s1 + $0xd70] sm:$0xff] }
 0x513   :  { %3964 = vmatprep.subr.mxu0 %v6364_v45  ;;  %3946 = vmatpush2.msra.mxu1 %v6365_v49  ;;  %v6383_v58 = vld [vmem:[%s15161_s1 + $0xa18] sm:$0xff]  ;;  %v6385_v61 = vld [vmem:[%s15161_s1 + $0xa10] sm:$0xff] }
 0x514   :  { %3965 = vmatpush1.msra.mxu0 %v6366_v29  ;;  %3947 = vmatprep.subr.mxu1 %v6367_v22  ;;  %v6384_v47 = vld [vmem:[%s15161_s1 + $0xd58] sm:$0xff]  ;;  %v6386_v11 = vld [vmem:[%s15161_s1 + $0xd50] sm:$0xff] }
 0x515   :  { %3966 = vmatprep.subr.mxu0 %v6368_v13  ;;  %3948 = vmatpush2.msra.mxu1 %v6369_v40  ;;  %v6387_v39 = vld [vmem:[%s15161_s1 + $0xd38] sm:$0xff]  ;;  %v6390_v63 = vld [vmem:[%s15161_s1 + $0x11f0] sm:$0xff] }
 0x516   :  { %3967 = vmatpush1.msra.mxu0 %v6370_v32  ;;  %3949 = vmatprep.subr.mxu1 %v6371_v56  ;;  %v6388_v28 = vld [vmem:[%s15161_s1 + $0x11f8] sm:$0xff]  ;;  %v6393_v38 = vld [vmem:[%s15161_s1 + $0xd10] sm:$0xff] }
 0x517   :  { %3968 = vmatprep.subr.mxu0 %v6372_v23  ;;  %3950 = vmatpush2.msra.mxu1 %v6373_v15  ;;  %v6392_v8 = vld [vmem:[%s15161_s1 + $0x11d8] sm:$0xff]  ;;  %v6394_v45 = vld [vmem:[%s15161_s1 + $0x11d0] sm:$0xff] }
 0x518   :  { %3969 = vmatpush1.msra.mxu0 %v6374_v26  ;;  %3951 = vmatprep.subr.mxu1 %v6375_v4  ;;  %v6395_v49 = vld [vmem:[%s15161_s1 + $0xcf8] sm:$0xff]  ;;  %v6397_v22 = vld [vmem:[%s15161_s1 + $0xcf0] sm:$0xff] }
 0x519   :  { %3970 = vmatprep.subr.mxu0 %v6376_v55  ;;  %3952 = vmatpush2.msra.mxu1 %v6377_v27  ;;  %v6396_v29 = vld [vmem:[%s15161_s1 + $0x11b8] sm:$0xff]  ;;  %v6398_v13 = vld [vmem:[%s15161_s1 + $0x11b0] sm:$0xff] }
 0x51a   :  { %3971 = vmatpush1.msra.mxu0 %v6378_v31  ;;  %3953 = vmatprep.subr.mxu1 %v6379_v43  ;;  %v6399_v40 = vld [vmem:[%s15161_s1 + $0xcd8] sm:$0xff]  ;;  %v6401_v56 = vld [vmem:[%s15161_s1 + $0xcd0] sm:$0xff] }
 0x51b   :  { %3972 = vmatprep.subr.mxu0 %v6380_v51  ;;  %3954 = vmatpush2.msra.mxu1 %v6381_v17  ;;  %v6400_v32 = vld [vmem:[%s15161_s1 + $0x1198] sm:$0xff]  ;;  %v6402_v23 = vld [vmem:[%s15161_s1 + $0x1190] sm:$0xff] }
 0x51c   :  { %3973 = vmatpush1.msra.mxu0 %v6382_v50  ;;  %3955 = vmatprep.subr.mxu1 %v6383_v58  ;;  %v6403_v15 = vld [vmem:[%s15161_s1 + $0xcb8] sm:$0xff]  ;;  %v6405_v4 = vld [vmem:[%s15161_s1 + $0xcb0] sm:$0xff] }
 0x51d   :  { %3974 = vmatprep.subr.mxu0 %v6384_v47  ;;  %3956 = vmatpush2.msra.mxu1 %v6385_v61  ;;  %v6404_v26 = vld [vmem:[%s15161_s1 + $0x1178] sm:$0xff]  ;;  %v6406_v55 = vld [vmem:[%s15161_s1 + $0x1170] sm:$0xff] }
 0x51e   :  { %3957 = vmatprep.mubr.f32.mxu1 %v13633_v57  ;;  %3975 = vmatpush1.msra.mxu0 %v6386_v11  ;;  %v6389_v57 = vld [vmem:[%s15161_s1 + $0xd30] sm:$0xff]  ;;  %v6407_v27 = vld [vmem:[%s15161_s1 + $0xc98] sm:$0xff] }
 0x51f   :  { %3958 = vmatmul.mubr.f32.vlgmr.msra.gmra.mxu1 %v13657_v5  ;;  %3976 = vmatprep.subr.mxu0 %v6387_v39  ;;  %v6391_v5 = vld [vmem:[%s15161_s1 + $0xd18] sm:$0xff]  ;;  %v6409_v43 = vld [vmem:[%s15161_s1 + $0xc90] sm:$0xff] }
 0x520   :  { %4035 = vmatprep.subr.mxu1 %v6388_v28  ;;  %3977 = vmatpush1.msra.mxu0 %v6389_v57  ;;  %v6408_v31 = vld [vmem:[%s15161_s1 + $0x1158] sm:$0xff]  ;;  %v6410_v51 = vld [vmem:[%s15161_s1 + $0x1150] sm:$0xff] }
 0x521   :  { %4036 = vmatpush1.msra.mxu1 %v6390_v63  ;;  %3978 = vmatprep.subr.mxu0 %v6391_v5  ;;  %v6411_v17 = vld [vmem:[%s15161_s1 + $0xc78] sm:$0xff]  ;;  %v6413_v58 = vld [vmem:[%s15161_s1 + $0xc70] sm:$0xff] }
 0x522   :  { %4037 = vmatprep.subr.mxu1 %v6392_v8  ;;  %3979 = vmatpush1.msra.mxu0 %v6393_v38  ;;  %v6412_v50 = vld [vmem:[%s15161_s1 + $0x1138] sm:$0xff]  ;;  %v6414_v47 = vld [vmem:[%s15161_s1 + $0x1130] sm:$0xff] }
 0x523   :  { %4038 = vmatpush1.msra.mxu1 %v6394_v45  ;;  %3980 = vmatprep.subr.mxu0 %v6395_v49  ;;  %v6415_v61 = vld [vmem:[%s15161_s1 + $0xc58] sm:$0xff]  ;;  %v6417_v39 = vld [vmem:[%s15161_s1 + $0xc50] sm:$0xff] }
 0x524   :  { %4039 = vmatprep.subr.mxu1 %v6396_v29  ;;  %3981 = vmatpush1.msra.mxu0 %v6397_v22  ;;  %v6416_v11 = vld [vmem:[%s15161_s1 + $0x1118] sm:$0xff]  ;;  %v6418_v28 = vld [vmem:[%s15161_s1 + $0x1110] sm:$0xff] }
 0x525   :  { %4040 = vmatpush1.msra.mxu1 %v6398_v13  ;;  %3982 = vmatprep.subr.mxu0 %v6399_v40  ;;  %v6419_v57 = vld [vmem:[%s15161_s1 + $0xc38] sm:$0xff]  ;;  %v6421_v5 = vld [vmem:[%s15161_s1 + $0xc30] sm:$0xff] }
 0x526   :  { %4041 = vmatprep.subr.mxu1 %v6400_v32  ;;  %3983 = vmatpush1.msra.mxu0 %v6401_v56  ;;  %v6420_v63 = vld [vmem:[%s15161_s1 + $0x10f8] sm:$0xff]  ;;  %v6422_v8 = vld [vmem:[%s15161_s1 + $0x10f0] sm:$0xff] }
 0x527   :  { %4042 = vmatpush1.msra.mxu1 %v6402_v23  ;;  %3984 = vmatprep.subr.mxu0 %v6403_v15  ;;  %v6423_v38 = vld [vmem:[%s15161_s1 + $0xc18] sm:$0xff]  ;;  %v6425_v49 = vld [vmem:[%s15161_s1 + $0xc10] sm:$0xff] }
 0x528   :  { %4043 = vmatprep.subr.mxu1 %v6404_v26  ;;  %3985 = vmatpush1.msra.mxu0 %v6405_v4  ;;  %v6424_v45 = vld [vmem:[%s15161_s1 + $0x10d8] sm:$0xff]  ;;  %v6426_v29 = vld [vmem:[%s15161_s1 + $0x10d0] sm:$0xff] }
 0x529   :  { %4044 = vmatpush1.msra.mxu1 %v6406_v55  ;;  %3986 = vmatprep.subr.mxu0 %v6407_v27  ;;  %v6427_v22 = vld [vmem:[%s15161_s1 + $0xff8] sm:$0xff]  ;;  %v6429_v40 = vld [vmem:[%s15161_s1 + $0xff0] sm:$0xff] }
 0x52a   :  { %4045 = vmatprep.subr.mxu1 %v6408_v31  ;;  %3987 = vmatpush1.msra.mxu0 %v6409_v43  ;;  %v6428_v13 = vld [vmem:[%s15161_s1 + $0x10b8] sm:$0xff]  ;;  %v6430_v32 = vld [vmem:[%s15161_s1 + $0x10b0] sm:$0xff] }
 0x52b   :  { %4046 = vmatpush1.msra.mxu1 %v6410_v51  ;;  %3988 = vmatprep.subr.mxu0 %v6411_v17  ;;  %v6431_v56 = vld [vmem:[%s15161_s1 + $0xfd8] sm:$0xff]  ;;  %v6433_v15 = vld [vmem:[%s15161_s1 + $0xfd0] sm:$0xff] }
 0x52c   :  { %4047 = vmatprep.subr.mxu1 %v6412_v50  ;;  %3989 = vmatpush1.msra.mxu0 %v6413_v58  ;;  %v6432_v23 = vld [vmem:[%s15161_s1 + $0x1098] sm:$0xff]  ;;  %v6434_v26 = vld [vmem:[%s15161_s1 + $0x1090] sm:$0xff] }
 0x52d   :  { %4048 = vmatpush1.msra.mxu1 %v6414_v47  ;;  %3990 = vmatprep.subr.mxu0 %v6415_v61  ;;  %v6435_v4 = vld [vmem:[%s15161_s1 + $0xfb8] sm:$0xff]  ;;  %v6437_v27 = vld [vmem:[%s15161_s1 + $0xfb0] sm:$0xff] }
 0x52e   :  { %4049 = vmatprep.subr.mxu1 %v6416_v11  ;;  %3991 = vmatpush1.msra.mxu0 %v6417_v39  ;;  %v6436_v55 = vld [vmem:[%s15161_s1 + $0x1078] sm:$0xff]  ;;  %v6438_v31 = vld [vmem:[%s15161_s1 + $0x1070] sm:$0xff] }
 0x52f   :  { %4050 = vmatpush1.msra.mxu1 %v6418_v28  ;;  %3992 = vmatprep.subr.mxu0 %v6419_v57  ;;  %v6439_v43 = vld [vmem:[%s15161_s1 + $0xf98] sm:$0xff]  ;;  %v6441_v17 = vld [vmem:[%s15161_s1 + $0xf90] sm:$0xff] }
 0x530   :  { %4051 = vmatprep.subr.mxu1 %v6420_v63  ;;  %3993 = vmatpush1.msra.mxu0 %v6421_v5  ;;  %v6440_v51 = vld [vmem:[%s15161_s1 + $0x1058] sm:$0xff]  ;;  %v6442_v50 = vld [vmem:[%s15161_s1 + $0x1050] sm:$0xff] }
 0x531   :  { %4052 = vmatpush1.msra.mxu1 %v6422_v8  ;;  %3994 = vmatprep.subr.mxu0 %v6423_v38  ;;  %v6443_v58 = vld [vmem:[%s15161_s1 + $0xf78] sm:$0xff]  ;;  %v6445_v61 = vld [vmem:[%s15161_s1 + $0xf70] sm:$0xff] }
 0x532   :  { %4053 = vmatprep.subr.mxu1 %v6424_v45  ;;  %3995 = vmatpush1.msra.mxu0 %v6425_v49  ;;  %v6444_v47 = vld [vmem:[%s15161_s1 + $0x1038] sm:$0xff]  ;;  %v6446_v11 = vld [vmem:[%s15161_s1 + $0x1030] sm:$0xff] }
 0x533   :  { %4054 = vmatpush1.msra.mxu1 %v6426_v29  ;;  %3996 = vmatprep.subr.mxu0 %v6427_v22  ;;  %v6447_v39 = vld [vmem:[%s15161_s1 + $0xf58] sm:$0xff]  ;;  %v6449_v57 = vld [vmem:[%s15161_s1 + $0xf50] sm:$0xff] }
 0x534   :  { %4055 = vmatprep.subr.mxu1 %v6428_v13  ;;  %3997 = vmatpush2.msra.mxu0 %v6429_v40  ;;  %v6448_v28 = vld [vmem:[%s15161_s1 + $0x1018] sm:$0xff]  ;;  %v6450_v63 = vld [vmem:[%s15161_s1 + $0x1010] sm:$0xff] }
 0x535   :  { %4056 = vmatpush1.msra.mxu1 %v6430_v32  ;;  %3998 = vmatprep.subr.mxu0 %v6431_v56  ;;  %v6451_v5 = vld [vmem:[%s15161_s1 + $0xf38] sm:$0xff]  ;;  %v6453_v38 = vld [vmem:[%s15161_s1 + $0xf30] sm:$0xff] }
 0x536   :  { %4057 = vmatprep.subr.mxu1 %v6432_v23  ;;  %3999 = vmatpush2.msra.mxu0 %v6433_v15  ;;  %v6452_v8 = vld [vmem:[%s15161_s1 + $0x13f8] sm:$0xff]  ;;  %v6454_v45 = vld [vmem:[%s15161_s1 + $0x13f0] sm:$0xff] }
 0x537   :  { %4058 = vmatpush1.msra.mxu1 %v6434_v26  ;;  %4000 = vmatprep.subr.mxu0 %v6435_v4  ;;  %v6455_v49 = vld [vmem:[%s15161_s1 + $0xf18] sm:$0xff]  ;;  %v6457_v22 = vld [vmem:[%s15161_s1 + $0xf10] sm:$0xff] }
 0x538   :  { %4059 = vmatprep.subr.mxu1 %v6436_v55  ;;  %4001 = vmatpush2.msra.mxu0 %v6437_v27  ;;  %v6456_v29 = vld [vmem:[%s15161_s1 + $0x13d8] sm:$0xff]  ;;  %v6458_v13 = vld [vmem:[%s15161_s1 + $0x13d0] sm:$0xff] }
 0x539   :  { %4060 = vmatpush1.msra.mxu1 %v6438_v31  ;;  %4002 = vmatprep.subr.mxu0 %v6439_v43  ;;  %v6459_v40 = vld [vmem:[%s15161_s1 + $0xef8] sm:$0xff]  ;;  %v6461_v56 = vld [vmem:[%s15161_s1 + $0xef0] sm:$0xff] }
 0x53a   :  { %4061 = vmatprep.subr.mxu1 %v6440_v51  ;;  %4003 = vmatpush2.msra.mxu0 %v6441_v17  ;;  %v6460_v32 = vld [vmem:[%s15161_s1 + $0x13b8] sm:$0xff]  ;;  %v6462_v23 = vld [vmem:[%s15161_s1 + $0x13b0] sm:$0xff] }
 0x53b   :  { %4062 = vmatpush1.msra.mxu1 %v6442_v50  ;;  %4004 = vmatprep.subr.mxu0 %v6443_v58  ;;  %v6463_v15 = vld [vmem:[%s15161_s1 + $0xed8] sm:$0xff]  ;;  %v6465_v4 = vld [vmem:[%s15161_s1 + $0xed0] sm:$0xff] }
 0x53c   :  { %4063 = vmatprep.subr.mxu1 %v6444_v47  ;;  %4005 = vmatpush2.msra.mxu0 %v6445_v61  ;;  %v6464_v26 = vld [vmem:[%s15161_s1 + $0x1398] sm:$0xff]  ;;  %v6466_v55 = vld [vmem:[%s15161_s1 + $0x1390] sm:$0xff] }
 0x53d   :  { %4064 = vmatpush1.msra.mxu1 %v6446_v11  ;;  %4006 = vmatprep.subr.mxu0 %v6447_v39  ;;  %v6467_v27 = vld [vmem:[%s15161_s1 + $0xeb8] sm:$0xff]  ;;  %v6469_v43 = vld [vmem:[%s15161_s1 + $0xeb0] sm:$0xff] }
 0x53e   :  { %4065 = vmatprep.subr.mxu1 %v6448_v28  ;;  %4007 = vmatpush2.msra.mxu0 %v6449_v57  ;;  %v6468_v31 = vld [vmem:[%s15161_s1 + $0x1378] sm:$0xff]  ;;  %v6470_v51 = vld [vmem:[%s15161_s1 + $0x1370] sm:$0xff] }
 0x53f   :  { %4066 = vmatpush1.msra.mxu1 %v6450_v63  ;;  %4008 = vmatprep.subr.mxu0 %v6451_v5  ;;  %v6471_v17 = vld [vmem:[%s15161_s1 + $0xe98] sm:$0xff]  ;;  %v6473_v58 = vld [vmem:[%s15161_s1 + $0xe90] sm:$0xff] }
 0x540   :  { %4067 = vmatprep.subr.mxu1 %v6452_v8  ;;  %4009 = vmatpush2.msra.mxu0 %v6453_v38  ;;  %v6472_v50 = vld [vmem:[%s15161_s1 + $0x1358] sm:$0xff]  ;;  %v6474_v47 = vld [vmem:[%s15161_s1 + $0x1350] sm:$0xff] }
 0x541   :  { %4068 = vmatpush2.msra.mxu1 %v6454_v45  ;;  %4010 = vmatprep.subr.mxu0 %v6455_v49  ;;  %v6475_v61 = vld [vmem:[%s15161_s1 + $0xe78] sm:$0xff]  ;;  %v6477_v39 = vld [vmem:[%s15161_s1 + $0xe70] sm:$0xff] }
 0x542   :  { %4069 = vmatprep.subr.mxu1 %v6456_v29  ;;  %4011 = vmatpush2.msra.mxu0 %v6457_v22  ;;  %v6476_v11 = vld [vmem:[%s15161_s1 + $0x1338] sm:$0xff]  ;;  %v6478_v28 = vld [vmem:[%s15161_s1 + $0x1330] sm:$0xff] }
 0x543   :  { %4070 = vmatpush2.msra.mxu1 %v6458_v13  ;;  %4012 = vmatprep.subr.mxu0 %v6459_v40  ;;  %v6479_v57 = vld [vmem:[%s15161_s1 + $0xe58] sm:$0xff]  ;;  %v6481_v5 = vld [vmem:[%s15161_s1 + $0xe50] sm:$0xff] }
 0x544   :  { %4071 = vmatprep.subr.mxu1 %v6460_v32  ;;  %4013 = vmatpush2.msra.mxu0 %v6461_v56  ;;  %v6480_v63 = vld [vmem:[%s15161_s1 + $0x1318] sm:$0xff]  ;;  %v6482_v8 = vld [vmem:[%s15161_s1 + $0x1310] sm:$0xff] }
 0x545   :  { %4072 = vmatpush2.msra.mxu1 %v6462_v23  ;;  %4014 = vmatprep.subr.mxu0 %v6463_v15  ;;  %v6483_v38 = vld [vmem:[%s15161_s1 + $0xe38] sm:$0xff]  ;;  %v6485_v49 = vld [vmem:[%s15161_s1 + $0xe30] sm:$0xff] }
 0x546   :  { %4073 = vmatprep.subr.mxu1 %v6464_v26  ;;  %4015 = vmatpush2.msra.mxu0 %v6465_v4  ;;  %v6484_v45 = vld [vmem:[%s15161_s1 + $0x12f8] sm:$0xff]  ;;  %v6486_v29 = vld [vmem:[%s15161_s1 + $0x12f0] sm:$0xff] }
 0x547   :  { %4074 = vmatpush2.msra.mxu1 %v6466_v55  ;;  %4016 = vmatprep.subr.mxu0 %v6467_v27  ;;  %v6487_v22 = vld [vmem:[%s15161_s1 + $0xe18] sm:$0xff]  ;;  %v6489_v40 = vld [vmem:[%s15161_s1 + $0xe10] sm:$0xff] }
 0x548   :  { %4075 = vmatprep.subr.mxu1 %v6468_v31  ;;  %4017 = vmatpush2.msra.mxu0 %v6469_v43  ;;  %v6488_v13 = vld [vmem:[%s15161_s1 + $0x12d8] sm:$0xff]  ;;  %v6490_v32 = vld [vmem:[%s15161_s1 + $0x12d0] sm:$0xff] }
 0x549   :  { %4076 = vmatpush2.msra.mxu1 %v6470_v51  ;;  %4018 = vmatprep.subr.mxu0 %v6471_v17  ;;  %v6491_v56 = vld [vmem:[%s15161_s1 + $0x12b8] sm:$0xff]  ;;  %v6497_v4 = vld [vmem:[%s15161_s1 + $0x1290] sm:$0xff] }
 0x54a   :  { %4077 = vmatprep.subr.mxu1 %v6472_v50  ;;  %4019 = vmatpush2.msra.mxu0 %v6473_v58  ;;  %v6492_v23 = vld [vmem:[%s15161_s1 + $0x14b8] sm:$0x7]  ;;  %v6498_v55 = vld [vmem:[%s15161_s1 + $0x1490] sm:$0xff] }
 0x54b   :  { %4078 = vmatpush2.msra.mxu1 %v6474_v47  ;;  %4020 = vmatprep.subr.mxu0 %v6475_v61  ;;  %v6495_v15 = vld [vmem:[%s15161_s1 + $0x1298] sm:$0xff]  ;;  %v6501_v43 = vld [vmem:[%s15161_s1 + $0x1270] sm:$0xff] }
 0x54c   :  { %4079 = vmatprep.subr.mxu1 %v6476_v11  ;;  %4021 = vmatpush2.msra.mxu0 %v6477_v39  ;;  %v6496_v26 = vld [vmem:[%s15161_s1 + $0x1498] sm:$0xff]  ;;  %v6502_v51 = vld [vmem:[%s15161_s1 + $0x1470] sm:$0xff] }
 0x54d   :  { %4080 = vmatpush2.msra.mxu1 %v6478_v28  ;;  %4022 = vmatprep.subr.mxu0 %v6479_v57  ;;  %v6499_v27 = vld [vmem:[%s15161_s1 + $0x1278] sm:$0xff]  ;;  %v6505_v58 = vld [vmem:[%s15161_s1 + $0x1250] sm:$0xff] }
 0x54e   :  { %4081 = vmatprep.subr.mxu1 %v6480_v63  ;;  %4023 = vmatpush2.msra.mxu0 %v6481_v5  ;;  %v6500_v31 = vld [vmem:[%s15161_s1 + $0x1478] sm:$0xff]  ;;  %v6506_v47 = vld [vmem:[%s15161_s1 + $0x1450] sm:$0xff] }
 0x54f   :  { %4082 = vmatpush2.msra.mxu1 %v6482_v8  ;;  %4024 = vmatprep.subr.mxu0 %v6483_v38  ;;  %v6503_v17 = vld [vmem:[%s15161_s1 + $0x1258] sm:$0xff]  ;;  %v6509_v39 = vld [vmem:[%s15161_s1 + $0x1230] sm:$0xff] }
 0x550   :  { %4083 = vmatprep.subr.mxu1 %v6484_v45  ;;  %4025 = vmatpush2.msra.mxu0 %v6485_v49  ;;  %v6504_v50 = vld [vmem:[%s15161_s1 + $0x1458] sm:$0xff]  ;;  %v6510_v28 = vld [vmem:[%s15161_s1 + $0x1430] sm:$0xff] }
 0x551   :  { %4084 = vmatpush2.msra.mxu1 %v6486_v29  ;;  %4026 = vmatprep.subr.mxu0 %v6487_v22  ;;  %v6507_v61 = vld [vmem:[%s15161_s1 + $0x1238] sm:$0xff]  ;;  %v6513_v5 = vld [vmem:[%s15161_s1 + $0x1210] sm:$0xff]  ;;  %v4224_v22 = vld [vmem:[%s15163_s3 + $0x68] sm:$0xff] }
 0x552   :  { %4085 = vmatprep.subr.mxu1 %v6488_v13  ;;  %4027 = vmatpush2.msra.mxu0 %v6489_v40  ;;  %v6508_v11 = vld [vmem:[%s15161_s1 + $0x1438] sm:$0xff]  ;;  %v6514_v38 = vld [vmem:[%s15161_s1 + $0x1410] sm:$0xff]  ;;  %v4256_v13 = vld [vmem:[%s15163_s3 + $0x168] sm:$0xff] }
 0x553   :  { %4028 = vmatprep.mubr.f32.mxu0 %v13644_v18  ;;  %4086 = vmatpush2.msra.mxu1 %v6490_v32  ;;  %v6493_v18 = vld [vmem:[%s15161_s1 + $0x12b0] sm:$0xff]  ;;  %v6511_v57 = vld [vmem:[%s15161_s1 + $0x1218] sm:$0xff]  ;;  %v4239_v40 = vld [vmem:[%s15163_s3 + $0xe0] sm:$0xff] }
 0x554   :  { %4029 = vmatmul.mubr.f32.vlgmr.msra.gmra.mxu0 %v13662_v52  ;;  %4087 = vmatprep.subr.mxu1 %v6491_v56  ;;  %v6494_v52 = vld [vmem:[%s15161_s1 + $0x14b0] sm:$0x7]  ;;  %v6512_v63 = vld [vmem:[%s15161_s1 + $0x1418] sm:$0xff]  ;;  %v4223_v32 = vld [vmem:[%s15163_s3 + $0x60] sm:$0xff] }
 0x555   :  { %4471 = vmatprep.subr.msk.mxu0 %vm703_vm0, %v6492_v23  ;;  %4088 = vmatpush2.msra.mxu1 %v6493_v18  ;;  %v4242_v8 = vld [vmem:[%s15163_s3 + $0xf8] sm:$0xff]  ;;  %v4225_v29 = vld [vmem:[%s15163_s3 + $0x70] sm:$0xff]  ;;  %v4255_v56 = vld [vmem:[%s15163_s3 + $0x160] sm:$0xff] }
 0x556   :  { %4472 = vmatpush1.msk.msra.mxu0 %vm703_vm0, %v6494_v52  ;;  %4089 = vmatprep.subr.mxu1 %v6495_v15  ;;  %v4226_v45 = vld [vmem:[%s15163_s3 + $0x78] sm:$0xff]  ;;  %v4237_v52 = vld [vmem:[%s15163_s3 + $0xd0] sm:$0xff] }
 0x557   :  { %4128 = vmatprep.subr.mxu0 %v6496_v26  ;;  %4090 = vmatpush2.msra.mxu1 %v6497_v4  ;;  %v4258_v49 = vld [vmem:[%s15163_s3 + $0x178] sm:$0xff]  ;;  %v4221_v15 = vld [vmem:[%s15163_s3 + $0x50] sm:$0xff]  ;;  %v4236_v26 = vld [vmem:[%s15163_s3 + $0xc8] sm:$0xff] }
 0x558   :  { %4129 = vmatpush1.msra.mxu0 %v6498_v55  ;;  %4091 = vmatprep.subr.mxu1 %v6499_v27  ;;  %v4238_v23 = vld [vmem:[%s15163_s3 + $0xd8] sm:$0xff]  ;;  %v4220_v4 = vld [vmem:[%s15163_s3 + $0x48] sm:$0xff]  ;;  %v4235_v55 = vld [vmem:[%s15163_s3 + $0xc0] sm:$0xff] }
 0x559   :  { %4130 = vmatprep.subr.mxu0 %v6500_v31  ;;  %4092 = vmatpush2.msra.mxu1 %v6501_v43  ;;  %v4222_v18 = vld [vmem:[%s15163_s3 + $0x58] sm:$0xff]  ;;  %v4219_v27 = vld [vmem:[%s15163_s3 + $0x40] sm:$0xff] }
 0x55a   :  { %4131 = vmatpush1.msra.mxu0 %v6502_v51  ;;  %4093 = vmatprep.subr.mxu1 %v6503_v17  ;;  %v4234_v31 = vld [vmem:[%s15163_s3 + $0xb8] sm:$0xff]  ;;  %v4233_v51 = vld [vmem:[%s15163_s3 + $0xb0] sm:$0xff] }
 0x55b   :  { %4132 = vmatprep.subr.mxu0 %v6504_v50  ;;  %4094 = vmatpush2.msra.mxu1 %v6505_v58  ;;  %v4218_v43 = vld [vmem:[%s15163_s3 + $0x38] sm:$0xff]  ;;  %v4217_v17 = vld [vmem:[%s15163_s3 + $0x30] sm:$0xff]  ;;  %v4232_v50 = vld [vmem:[%s15163_s3 + $0xa8] sm:$0xff] }
 0x55c   :  { %4133 = vmatpush1.msra.mxu0 %v6506_v47  ;;  %4095 = vmatprep.subr.mxu1 %v6507_v61  ;;  %v4216_v58 = vld [vmem:[%s15163_s3 + $0x28] sm:$0xff]  ;;  %v4231_v47 = vld [vmem:[%s15163_s3 + $0xa0] sm:$0xff] }
 0x55d   :  { %4134 = vmatprep.subr.mxu0 %v6508_v11  ;;  %4096 = vmatpush2.msra.mxu1 %v6509_v39  ;;  %v4215_v61 = vld [vmem:[%s15163_s3 + $0x20] sm:$0xff]  ;;  %v4230_v11 = vld [vmem:[%s15163_s3 + $0x98] sm:$0xff] }
 0x55e   :  { %4135 = vmatpush1.msra.mxu0 %v6510_v28  ;;  %4097 = vmatprep.subr.mxu1 %v6511_v57  ;;  %v4214_v39 = vld [vmem:[%s15163_s3 + $0x18] sm:$0xff]  ;;  %v4229_v28 = vld [vmem:[%s15163_s3 + $0x90] sm:$0xff] }
 0x55f   :  { %4136 = vmatprep.subr.mxu0 %v6512_v63  ;;  %4098 = vmatpush2.msra.mxu1 %v6513_v5  ;;  %v4213_v57 = vld [vmem:[%s15163_s3 + $0x10] sm:$0xff]  ;;  %v4228_v63 = vld [vmem:[%s15163_s3 + $0x88] sm:$0xff] }
 0x560   :  { %4099 = vmatprep.mubr.f32.mxu1 %v14055_v33  ;;  %4137 = vmatpush1.msra.mxu0 %v6514_v38  ;;  %v4241_v33 = vld [vmem:[%s15163_s3 + $0xf0] sm:$0xff]  ;;  %v4212_v5 = vld [vmem:[%s15163_s3 + $0x8] sm:$0xff]  ;;  %v4211_v38 = vld [vmem:[%s15163_s3] sm:$0xff] }
 0x561   :  { %4170 = vmatprep.mubr.f32.mxu0 %v6515_v37  ;;  %4100 = vmatmul.mubr.f32.vlgmr.msra.gmra.mxu1 %v14066_v0  ;;  %v4257_v0 = vld [vmem:[%s15163_s3 + $0x170] sm:$0xff] }
 0x562   :  { %4473 = vmatmul.mubr.msk.f32.vlgmr.msra.gmra.mxu0 %vm699_vm1, %v13745_v25  ;;  %4476 = vmatprep.subr.mxu0 %v4242_v8  ;;  %v4240_v25 = vld [vmem:[%s15163_s3 + $0xe8] sm:$0xff]  ;;  %v4227_v8 = vld [vmem:[%s15163_s3 + $0x80] sm:$0xff] }
 0x563   :  { %4341 = vmatprep.subr.mxu1 %v6515_v37  ;;  %4477 = vmatpush3.msra.mxu0 %v4226_v45  ;;  %v1721_v45 = vadd.f32 %v11273_v10, %v11287_v2 }
 0x564   :  { %4342 = vmatpush1.msra.mxu1 %v4258_v49  ;;  %4478 = vmatprep.subr.mxu0 %v4241_v33  ;;  %v3391_v33 = vpop.f32.mrf.mxu0  ;;  %v1723_v49 = vadd.f32 %v11301_v19, %v11315_v9 }
 0x565   :  { %4343 = vmatprep.subr.mxu1 %v6515_v37  ;;  %4479 = vmatpush3.msra.mxu0 %v4225_v29  ;;  %v1792_v29 = vadd.f32 %v11331_v21, %v1721_v45 }
 0x566   :  { %4344 = vmatpush1.msra.mxu1 %v4257_v0  ;;  %4480 = vmatprep.subr.mxu0 %v4240_v25  ;;  %v2592_v0 = vadd.f32 %v13388_v59, %v13402_v14  ;;  %v1794_v25 = vadd.f32 %v11359_v34, %v1723_v49  ;;  %v4183_v59 = vlaneseq }
 0x567   :  { %4345 = vmatprep.subr.mxu1 %v6515_v37  ;;  %4481 = vmatpush3.msra.mxu0 %v4224_v22  ;;  %v3462_v22 = vpop.f32.mrf.mxu1  ;;  %v1863_v2 = vadd.f32 %v11317_v12, %v1792_v29  ;;  %v4249_v29 = vld [vmem:[%s15163_s3 + $0x130] sm:$0xff] }
 0x568   :  { %4346 = vmatpush1.msra.mxu1 %v4256_v13  ;;  %4482 = vmatprep.subr.mxu0 %v4239_v40  ;;  %v3393_v13 = vpop.f32.mrf.mxu0  ;;  %v2594_v40 = vadd.f32 %v13416_v6, %v13430_v16  ;;  %v2663_v10 = vadd.f32 %v13446_v1, %v2592_v0  ;;  %v1865_v9 = vadd.f32 %v11345_v30, %v1794_v25  ;;  %v15080_v30 = vshrl.u32 %v4183_v59, 7  ;;  %v4248_v0 = vld [vmem:[%s15163_s3 + $0x128] sm:$0xff]  ;;  %v4247_v25 = vld [vmem:[%s15163_s3 + $0x120] sm:$0xff] }
 0x569   :  { %4347 = vmatprep.subr.mxu1 %v6515_v37  ;;  %4483 = vmatpush3.msra.mxu0 %v4223_v32  ;;  %v1934_v21 = vadd.f32 %v11375_v41, %v1863_v2  ;;  %v3463_v14 = vadd.f32 %v3462_v22, %v3391_v33  ;;  %v4250_v33 = vld [vmem:[%s15163_s3 + $0x138] sm:$0xff]  ;;  %v4259_v2 = vld [vmem:[%s15163_s3 + $0x180] sm:$0xff] }
 0x56a   :  { %4348 = vmatpush1.msra.mxu1 %v4255_v56  ;;  %4484 = vmatprep.subr.mxu0 %v4238_v23  ;;  %v3533_v32 = vpop.f32.mrf.mxu0  ;;  %v2665_v19 = vadd.f32 %v13474_v42, %v2594_v40  ;;  %v3464_v56 = vpop.f32.mrf.mxu1  ;;  %v2734_v34 = vadd.f32 %v13432_v20, %v2663_v10  ;;  %v1936_v23 = vadd.f32 %v11403_v44, %v1865_v9  ;;  %v4246_v22 = vld [vmem:[%s15163_s3 + $0x118] sm:$0xff]  ;;  %v4244_v40 = vld [vmem:[%s15163_s3 + $0x108] sm:$0xff]  ;;  %v4243_v10 = vld [vmem:[%s15163_s3 + $0x100] sm:$0xff] }
 0x56b   :  { %4349 = vmatprep.subr.mxu1 %v6515_v37  ;;  %4485 = vmatpush3.msra.mxu0 %v4222_v18  ;;  %v3465_v1 = vadd.f32 %v3464_v56, %v3393_v13  ;;  %v2005_v42 = vadd.f32 %v11361_v35, %v1934_v21  ;;  %v4245_v13 = vld [vmem:[%s15163_s3 + $0x110] sm:$0xff] }
 0x56c   :  { %4486 = vmatprep.subr.mxu0 %v4237_v52  ;;  %v3604_v18 = vpop.f32.mrf.mxu1  ;;  %v3535_v6 = vpop.f32.mrf.mxu0  ;;  %v2736_v16 = vadd.f32 %v13460_v46, %v2665_v19  ;;  %v2805_v12 = vadd.f32 %v13490_v53, %v2734_v34  ;;  %v3534_v52 = vadd.f32 %v3533_v32, %v3463_v14  ;;  %v2007_v20 = vadd.f32 %v11389_v36, %v1936_v23  ;;  %v20_v32 = vld [vmem:[%s15164_s4] sm:$0x1] }
 0x56d   :  { %4487 = vmatpush3.msra.mxu0 %v4221_v15  ;;  %v3536_v15 = vadd.f32 %v3535_v6, %v3465_v1  ;;  %v4185_v53 = vsub.s32 0, %v15080_v30  ;;  %v4189_v36 = vsub.s32 1, %v15080_v30  ;;  %23 = vst [vmem:[#allocation2] sm:$0x1] %v20_v32 }
 0x56e   :  { %4488 = vmatprep.subr.mxu0 %v4236_v26  ;;  %v2807_v41 = vadd.f32 %v13518_v7, %v2736_v16  ;;  %v3606_v26 = vpop.f32.mrf.mxu1  ;;  %v2876_v44 = vadd.f32 %v13476_v60, %v2805_v12  ;;  %v15091_v7 = vld [vmem:[%s15162_s2] sm:$0xf]  ;;  %v2436_v60 = vmax.f32 %v8932_v54, %v2007_v20  ;;  %v4253_v54 = vld [vmem:[%s15163_s3 + $0x150] sm:$0xff] }
 0x56f   :  { %4489 = vmatpush3.msra.mxu0 %v4220_v4  ;;  %v3605_v4 = vadd.f32 %v3604_v18, %v3534_v52  ;;  %v3607_v35 = vadd.f32 %v3606_v26, %v3536_v15  ;;  %v4197_v26 = vsub.s32 3, %v15080_v30 }
 0x570   :  { %4490 = vmatprep.subr.mxu0 %v4235_v55  ;;  %v2435_v55 = vmax.f32 %v8917_v48, %v2005_v42  ;;  %v3746_v46 = vpop.f32.mrf.mxu1  ;;  %v4193_v42 = vsub.s32 2, %v15080_v30 }
 0x571   :  { %4491 = vmatpush3.msra.mxu0 %v4219_v27 }
 0x572   :  { %4492 = vmatprep.subr.mxu0 %v4234_v31  ;;  %v2878_v31 = vadd.f32 %v13504_v3, %v2807_v41 }
 0x573   :  { %4493 = vmatpush3.msra.mxu0 %v4218_v43 }
 0x574   :  { %4494 = vmatprep.subr.mxu0 %v4233_v51 }
 0x575   :  { %4495 = vmatpush3.msra.mxu0 %v4217_v17  ;;  %v3306_v17 = vmax.f32 %v2435_v55, %v2876_v44  ;;  %v4194_v55 = vrot.slane %v15091_v7, %v4193_v42 }
 0x576   :  { %4496 = vmatprep.subr.mxu0 %v4232_v50 }
 0x577   :  { %4497 = vmatpush3.msra.mxu0 %v4216_v58  ;;  %v3748_v58 = vpop.f32.mrf.mxu1 }
 0x578   :  { %4498 = vmatprep.subr.mxu0 %v4231_v47  ;;  %v4186_v47 = vrot.slane %v15091_v7, %v4185_v53 }
 0x579   :  { %4499 = vmatpush3.msra.mxu0 %v4215_v61  ;;  %v3307_v61 = vmax.f32 %v2436_v60, %v2878_v31  ;;  %v4198_v31 = vrot.slane %v15091_v7, %v4197_v26 }
 0x57a   :  { %4500 = vmatprep.subr.mxu0 %v4230_v11 }
 0x57b   :  { %4501 = vmatpush3.msra.mxu0 %v4214_v39  ;;  %v4190_v39 = vrot.slane %v15091_v7, %v4189_v36 }
 0x57c   :  { %4502 = vmatprep.subr.mxu0 %v4229_v28  ;;  %v4254_v28 = vld [vmem:[%s15163_s3 + $0x158] sm:$0xff] }
 0x57d   :  { %4503 = vmatpush3.msra.mxu0 %v4213_v57  ;;  %4350 = vmatpush1.msra.mxu1 %v4254_v28 }
 0x57e   :  { %4504 = vmatprep.subr.mxu0 %v4228_v63  ;;  %4351 = vmatprep.subr.mxu1 %v6515_v37  ;;  %v4252_v63 = vld [vmem:[%s15163_s3 + $0x148] sm:$0xff] }
 0x57f   :  { %4505 = vmatpush3.msra.mxu0 %v4212_v5  ;;  %4352 = vmatpush1.msra.mxu1 %v4253_v54 }
 0x580   :  { %4506 = vmatprep.subr.mxu0 %v4227_v8  ;;  %4353 = vmatprep.subr.mxu1 %v6515_v37 }
 0x581   :  { %4507 = vmatpush3.msra.mxu0 %v4211_v38  ;;  %v4251_v38 = vld [vmem:[%s15163_s3 + $0x140] sm:$0xff]  ;;  %4354 = vmatpush1.msra.mxu1 %v4252_v63 }
 0x582   :  { %4355 = vmatprep.subr.mxu1 %v6515_v37 }
 0x583   :  { %4356 = vmatpush1.msra.mxu1 %v4251_v38 }
 0x584   :  { %4357 = vmatprep.subr.mxu1 %v6515_v37 }
 0x585   :  { %4358 = vmatpush1.msra.mxu1 %v4250_v33 }
 0x586   :  { %4359 = vmatprep.subr.mxu1 %v6515_v37 }
 0x587   :  { %4360 = vmatpush1.msra.mxu1 %v4249_v29 }
 0x588   :  { %4361 = vmatprep.subr.mxu1 %v6515_v37 }
 0x589   :  { %4362 = vmatpush1.msra.mxu1 %v4248_v0 }
 0x58a   :  { %4363 = vmatprep.subr.mxu1 %v6515_v37 }
 0x58b   :  { %4364 = vmatpush1.msra.mxu1 %v4247_v25 }
 0x58c   :  { %4365 = vmatprep.subr.mxu1 %v6515_v37 }
 0x58d   :  { %4366 = vmatpush1.msra.mxu1 %v4246_v22 }
 0x58e   :  { %4367 = vmatprep.subr.mxu1 %v6515_v37 }
 0x58f   :  { %4368 = vmatpush1.msra.mxu1 %v4245_v13 }
 0x590   :  { %v3675_v27 = vpop.f32.mrf.mxu0  ;;  %4369 = vmatprep.subr.mxu1 %v6515_v37 }
 0x591   :  { %v3676_v43 = vadd.f32 %v3675_v27, %v3605_v4  ;;  %4370 = vmatpush1.msra.mxu1 %v4244_v40 }
 0x592   :  { %v3677_v51 = vpop.f32.mrf.mxu0  ;;  %4371 = vmatprep.subr.mxu1 %v6515_v37 }
 0x593   :  { %v3747_v48 = vadd.f32 %v3746_v46, %v3676_v43  ;;  %v3678_v50 = vadd.f32 %v3677_v51, %v3607_v35  ;;  %4372 = vmatpush1.msra.mxu1 %v4243_v10 }
 0x594   :  { %4403 = vmatprep.subr.mxu1 %v6515_v37 }
 0x595   :  { %v4177_v3 = vmax.f32 %v3306_v17, %v3747_v48  ;;  %v3749_v11 = vadd.f32 %v3748_v58, %v3678_v50  ;;  %4404 = vmatpush2.msra.mxu1 %v4259_v2  ;;  %v4474_v50 = vld [vmem:[#allocation2] ss:$0 sm:$0xff] }
 0x597   :  { %v4178_v57 = vmax.f32 %v3307_v61, %v3749_v11  ;;  %v4203_v5 = vadd.f32 %v4186_v47, %v4177_v3 }
 0x599   :  { %v4204_v8 = vadd.f32 %v4190_v39, %v4178_v57  ;;  %v4207_v49 = vmax.f32 %v4203_v5, 0.0 }
 0x59b   :  { %v4208_v45 = vmax.f32 %v4204_v8, 0.0 }
 0x59d   :  { %4335 = vmatprep.mubr.f32.mxu0 %v4208_v45  ;;  %v3817_v19 = vpop.f32.mrf.mxu1 }
 0x59e   :  { %4336 = vmatmul.mubr.f32.vlgmr.msra.gmra.mxu0 %v4207_v49 }
 0x59f   :  { %v3819_v21 = vpop.f32.mrf.mxu1 }
 0x5d2   :  { %v3888_v9 = vpop.f32.mrf.mxu0 }
 0x5d3   :  { %v3889_v14 = vadd.f32 %v3888_v9, %v3817_v19 }
 0x5d4   :  { %v3890_v56 = vpop.f32.mrf.mxu0 }
 0x5d5   :  { %v3891_v18 = vadd.f32 %v3890_v56, %v3819_v21 }
 0x5df   :  { %v3959_v59 = vpop.f32.mrf.mxu1 }
 0x5e0   :  { %v3960_v6 = vadd.f32 %v3959_v59, %v3889_v14 }
 0x5e1   :  { %v3961_v23 = vpop.f32.mrf.mxu1 }
 0x5e2   :  { %v3962_v12 = vadd.f32 %v3961_v23, %v3891_v18 }
 0x614   :  { %v4030_v34 = vpop.f32.mrf.mxu0 }
 0x615   :  { %v4031_v1 = vadd.f32 %v4030_v34, %v3960_v6 }
 0x616   :  { %v4032_v16 = vpop.f32.mrf.mxu0 }
 0x617   :  { %v4033_v41 = vadd.f32 %v4032_v16, %v3962_v12 }
 0x621   :  { %v4101_v37 = vpop.f32.mrf.mxu1 }
 0x622   :  { %v4172_v52 = vpop.f32.mrf.mxu0  ;;  %v4102_v15 = vadd.f32 %v4101_v37, %v4031_v1 }
 0x623   :  { %v4103_v20 = vpop.f32.mrf.mxu1 }
 0x624   :  { %v4173_v44 = vadd.f32 %v4172_v52, %v4102_v15  ;;  %v4104_v4 = vadd.f32 %v4103_v20, %v4033_v41  ;;  %v4174_v46 = vpop.f32.mrf.mxu0 }
 0x626   :  { %v4179_v27 = vmax.f32 %v14077_v62, %v4173_v44  ;;  %v4175_v53 = vadd.f32 %v4174_v46, %v4104_v4 }
 0x628   :  { %v4180_v35 = vmax.f32 %v14090_v24, %v4175_v53  ;;  %v4205_v43 = vadd.f32 %v4194_v55, %v4179_v27 }
 0x62a   :  { %v4206_v36 = vadd.f32 %v4198_v31, %v4180_v35  ;;  %v4209_v60 = vmax.f32 %v4205_v43, 0.0 }
 0x62c   :  { %v4210_v51 = vmax.f32 %v4206_v36, 0.0 }
 0x62e   :  { %4475 = vmatprep.mubr.msk.f32.mxu1 %vm4267_vm2, %v4210_v51 }
 0x62f   :  { %4406 = vmatmul.mubr.f32.vlgmr.msra.gmra.mxu1 %v4209_v60 }
 0x65e   :  { %v4508_v30 = vpop.f32.mrf.mxu0 }
 0x660   :  { %v4509_v17 = vpop.f32.mrf.mxu0 }
 0x661   :  { %v4510_v48 = vadd.f32 %v4509_v17, %v4508_v30 }
 0x663   :  { %v4338_v58 = vadd.f32 %v4510_v48, %v4474_v50 }
 0x6ef   :  { %v4407_v47 = vpop.f32.mrf.mxu1 }
 0x6f0   :  { %v4408_v62 = vadd.f32 %v4407_v47, %v4338_v58 }
 0x6f1   :  { %v4409_v61 = vpop.f32.mrf.mxu1 }
 0x6f2   :  { %4412 = vst.msk [vmem:[%s15165_s5] sm:$0x3f] %vm4411_vm3, %v4408_v62 }

</bundles_post_ra>
